<compile_context>
chip_gen: v7x
topology: tpu7x:2x2x1
jax: 0.10.0
libtpu: 0.0.40
codegen_flags: <defaults>
</compile_context>

<pallas_src>
import functools
import math

import numpy as np
import jax
import jax.numpy as jnp
from jax import lax
from jax.experimental import pallas as pl
from jax.experimental.pallas import tpu as pltpu

_LN_EPS = 1e-6                              # norm_layer = partial(nn.LayerNorm, eps=1e-6)
_BN_SCALE = 1.0 / math.sqrt(1.0 + 1e-5)     # eval-mode BatchNorm2d with fresh running stats
# TODO(synk): BatchNorm2d is folded assuming eval mode (running_mean=0, running_var=1,
# identity affine); train-mode batch statistics / loaded running stats are not implemented.


# ----------------------------- in-kernel helpers -----------------------------

def _layernorm(x, g, b, eps):
    mean = jnp.mean(x, axis=-1, keepdims=True)
    xc = x - mean
    var = jnp.mean(xc * xc, axis=-1, keepdims=True)
    return xc * lax.rsqrt(var + eps) * g + b


def _erf(x):
    # Abramowitz & Stegun 7.1.26 polynomial, |abs err| < 1.5e-7 -- keeps the exact-GELU
    # (erf form, matching nn.GELU()) inside the fused Mosaic kernel with exp/mul/add only.
    a1, a2, a3, a4, a5 = 0.254829592, -0.284496736, 1.421413741, -1.453152027, 1.061405429
    p = 0.3275911
    ax = jnp.abs(x)
    t = 1.0 / (1.0 + p * ax)
    poly = ((((a5 * t + a4) * t + a3) * t + a2) * t + a1) * t
    y = 1.0 - poly * jnp.exp(-ax * ax)
    return jnp.where(x >= 0, y, -y)


def _gelu_exact(x):
    return 0.5 * x * (1.0 + _erf(x * (1.0 / math.sqrt(2.0))))


# ------------------------- the single fused kernel ---------------------------

def _vit_kernel(patches_ref, wpe_ref, bpe_ref, w1_ref, b1_ref, pm_ref, w2_ref, b2_ref,
                ln1g_ref, ln1b_ref, wqkv_ref, bqkv_ref, wo_ref, bo_ref,
                ln2g_ref, ln2b_ref, wm1_ref, bm1_ref, wm2_ref, bm2_ref,
                lnfg_ref, lnfb_ref, wh_ref, bh_ref,
                out_ref, pad_ref, *, num_layers, num_heads, Hp, Wp, eps):
    f32 = jnp.float32
    D = wpe_ref.shape[1]
    Np = Hp * Wp
    dh = D // num_heads
    scale = 1.0 / math.sqrt(dh)

    # ------------------------------ token generator ------------------------------
    # patch embedding: (Np, C*p*p) @ (C*p*p, D)
    tok1 = jnp.dot(patches_ref[...], wpe_ref[...], preferred_element_type=f32) + bpe_ref[...]

    # stage 1: 3x3 dilation-1 conv ("same" pad) + eval-BN + ReLU.
    # Padding is done in-kernel on a VMEM scratch; the im2col matrix is built in VMEM
    # and contracted with one K = 9*D matmul (one deep MXU push instead of nine K=D ones).
    pad_ref[...] = jnp.zeros_like(pad_ref)
    pad_ref[pl.ds(1, Hp), pl.ds(1, Wp), :] = tok1.reshape(Hp, Wp, D)
    cols = []
    for ky in range(3):
        for kx in range(3):
            cols.append(pad_ref[pl.ds(ky, Hp), pl.ds(kx, Wp), :].reshape(Np, D))
    im2col = jnp.concatenate(cols, axis=1)                                  # (Np, 9*D)
    s1 = jnp.dot(im2col, w1_ref[...], preferred_element_type=f32) + b1_ref[...]
    s1 = jnp.maximum(s1 * _BN_SCALE, 0.0)                                   # eval-BN + ReLU

    # 4x4 average pool as a matmul with a constant pooling matrix
    tok2 = jnp.dot(pm_ref[...], s1, preferred_element_type=f32)             # (P2, D)

    # stage 2: 3x3 dilation-4 conv on the pooled (<=4x4) map -- every tap except the
    # centre falls entirely inside the zero padding, so it collapses to one matmul.
    s2 = jnp.dot(tok2, w2_ref[...], preferred_element_type=f32) + b2_ref[...]
    s2 = jnp.maximum(s2 * _BN_SCALE, 0.0)
    tok3 = jnp.mean(s2, axis=0, keepdims=True)                              # (1, D) global avg pool

    # full token sequence stays resident in VMEM -- no HBM concat
    x = jnp.concatenate([tok1, tok2, tok3], axis=0)                         # (S, D)

    # ----------------------- transformer encoder (static layer loop) ----------------------
    for l in range(num_layers):
        # LN1 + fused QKV projection
        y = _layernorm(x, ln1g_ref[l], ln1b_ref[l], eps)
        qkv = jnp.dot(y, wqkv_ref[l], preferred_element_type=f32) + bqkv_ref[l]   # (S, 3D)

        # multi-head attention: static head loop; single out-projection over the
        # concatenated head outputs (no per-head K=dh out-proj matmuls / VPU adds).
        heads = []
        for h in range(num_heads):
            q = qkv[:, h * dh:(h + 1) * dh]
            k = qkv[:, D + h * dh:D + (h + 1) * dh]
            v = qkv[:, 2 * D + h * dh:2 * D + (h + 1) * dh]
            s = lax.dot_general(q, k, (((1,), (1,)), ((), ())),
                                preferred_element_type=f32) * scale               # (S, S)
            s = s - jnp.max(s, axis=-1, keepdims=True)
            p = jnp.exp(s)
            p = p * pl.reciprocal(jnp.sum(p, axis=-1, keepdims=True), approx=True)
            heads.append(jnp.dot(p, v, preferred_element_type=f32))               # (S, dh)
        attn = jnp.concatenate(heads, axis=1)                                      # (S, D)
        x = x + jnp.dot(attn, wo_ref[l], preferred_element_type=f32) + bo_ref[l]   # residual

        # LN2 + MLP (FC1 + exact GELU + FC2) + residual
        y = _layernorm(x, ln2g_ref[l], ln2b_ref[l], eps)
        hmid = _gelu_exact(jnp.dot(y, wm1_ref[l], preferred_element_type=f32) + bm1_ref[l])
        x = x + jnp.dot(hmid, wm2_ref[l], preferred_element_type=f32) + bm2_ref[l]

    # ----------------------- tail: final LN + token mean + head ----------------------
    y = _layernorm(x, lnfg_ref[...], lnfb_ref[...], eps)
    pooled = jnp.mean(y, axis=0, keepdims=True)                                    # (1, D)
    out_ref[...] = (jnp.dot(pooled, wh_ref[...], preferred_element_type=f32)
                    + bh_ref[...]).astype(out_ref.dtype)


# -------------------------- host-side weight preparation --------------------------

def _avgpool_matrix(H, W, pool):
    Ho, Wo = H // pool, W // pool
    m = np.zeros((Ho * Wo, H * W), np.float32)
    inv = 1.0 / (pool * pool)
    for ph in range(Ho):
        for pw in range(Wo):
            for dy in range(pool):
                for dx in range(pool):
                    m[ph * Wo + pw, (ph * pool + dy) * W + (pw * pool + dx)] = inv
    return m


_ARG_ORDER = ("wpe", "bpe", "w1", "b1", "pm", "w2", "b2",
              "ln1g", "ln1b", "wqkv", "bqkv", "wo", "bo", "ln2g", "ln2b",
              "wm1", "bm1", "wm2", "bm2", "lnfg", "lnfb", "wh", "bh")


def prepare_params(params, *, patch_size, image_size):
    """All weight transposes / reshapes / per-layer stacking, done once outside jit."""
    f32 = jnp.float32
    D = params["patch_w"].shape[0]
    p = patch_size
    Hp = Wp = image_size // p
    H2, W2 = Hp // 4, Wp // 4
    # centre-tap shortcut for the dilation-4 conv requires the pooled map <= 4x4
    assert 1 <= H2 <= 4 and 1 <= W2 <= 4, "stage-2 centre-tap shortcut needs pooled map <= 4x4"

    layers = params["layers"]

    def stack(fn):
        return jnp.stack([fn(lp) for lp in layers]).astype(f32)

    return dict(
        wpe=params["patch_w"].reshape(D, -1).T.astype(f32),                     # (C*p*p, D)
        bpe=params["patch_b"].reshape(1, D).astype(f32),
        w1=jnp.transpose(params["s1_w"], (2, 3, 1, 0)).reshape(9 * D, D).astype(f32),
        b1=params["s1_b"].reshape(1, D).astype(f32),
        pm=jnp.asarray(_avgpool_matrix(Hp, Wp, 4), f32),                        # (H2*W2, Hp*Wp)
        w2=params["s2_w"][:, :, 1, 1].T.astype(f32),                            # centre tap only
        b2=params["s2_b"].reshape(1, D).astype(f32),
        ln1g=stack(lambda lp: lp["ln1_g"].reshape(1, D)),
        ln1b=stack(lambda lp: lp["ln1_b"].reshape(1, D)),
        wqkv=stack(lambda lp: lp["in_proj_w"].T),                               # (L, D, 3D)
        bqkv=stack(lambda lp: lp["in_proj_b"].reshape(1, -1)),
        wo=stack(lambda lp: lp["out_proj_w"].T),                                # (L, D, D)
        bo=stack(lambda lp: lp["out_proj_b"].reshape(1, D)),
        ln2g=stack(lambda lp: lp["ln2_g"].reshape(1, D)),
        ln2b=stack(lambda lp: lp["ln2_b"].reshape(1, D)),
        wm1=stack(lambda lp: lp["fc1_w"].T),                                    # (L, D, mlp)
        bm1=stack(lambda lp: lp["fc1_b"].reshape(1, -1)),
        wm2=stack(lambda lp: lp["fc2_w"].T),                                    # (L, mlp, D)
        bm2=stack(lambda lp: lp["fc2_b"].reshape(1, D)),
        lnfg=params["ln_g"].reshape(1, D).astype(f32),
        lnfb=params["ln_b"].reshape(1, D).astype(f32),
        wh=params["head_w"].T.astype(f32),                                      # (D, N)
        bh=params["head_b"].reshape(1, -1).astype(f32),
    )


# --------------------------------- forward -----------------------------------

def simple_vit_forward(x_nchw, prep, *, patch_size, num_heads):
    B, C, H, W = x_nchw.shape
    p = patch_size
    Hp, Wp = H // p, W // p
    D = prep["wpe"].shape[1]
    N = prep["wh"].shape[1]
    mlp = prep["wm1"].shape[2]
    num_layers = prep["wqkv"].shape[0]
    P2 = prep["pm"].shape[0]
    S = Hp * Wp + P2 + 1

    # patch extraction (kernel == stride): one XLA reshape/transpose; everything else
    # happens inside the single fused Pallas kernel.
    patches = (x_nchw.reshape(B, C, Hp, p, Wp, p)
               .transpose(0, 2, 4, 1, 3, 5)
               .reshape(B, Hp * Wp, C * p * p)).astype(jnp.float32)

    def _const(a):
        return pl.BlockSpec(a.shape, lambda b, n=len(a.shape): (0,) * n)

    in_specs = [pl.BlockSpec((None, Hp * Wp, C * p * p), lambda b: (b, 0, 0))]
    in_specs += [_const(prep[k]) for k in _ARG_ORDER]

    flops = B * (2 * Hp * Wp * (C * p * p) * D            # patch embed
                 + 2 * Hp * Wp * 9 * D * D                 # stage-1 im2col matmul
                 + 2 * P2 * Hp * Wp * D                    # avg-pool matmul
                 + 2 * P2 * D * D                          # stage-2 centre tap
                 + num_layers * (2 * S * D * 3 * D         # qkv
                                 + 4 * S * S * D           # scores + p@v
                                 + 2 * S * D * D           # out proj
                                 + 4 * S * D * mlp)        # fc1 + fc2
                 + 2 * D * N)                              # head
    trans = B * num_layers * (num_heads * S * S + S * mlp)
    bytes_acc = 4 * (B * Hp * Wp * C * p * p + B * N
                     + sum(int(np.prod(prep[k].shape)) for k in _ARG_ORDER))

    out = pl.pallas_call(
        functools.partial(_vit_kernel, num_layers=num_layers, num_heads=num_heads,
                          Hp=Hp, Wp=Wp, eps=_LN_EPS),
        out_shape=jax.ShapeDtypeStruct((B, 1, N), jnp.float32),
        grid=(B,),
        in_specs=in_specs,
        out_specs=pl.BlockSpec((None, 1, N), lambda b: (b, 0, 0)),
        scratch_shapes=[pltpu.VMEM((Hp + 2, Wp + 2, D), jnp.float32)],   # padded stage-1 map
        compiler_params=pltpu.CompilerParams(dimension_semantics=("parallel",)),
        cost_estimate=pl.CostEstimate(flops=int(flops), transcendentals=int(trans),
                                      bytes_accessed=int(bytes_acc)),
    )(patches, *[prep[k] for k in _ARG_ORDER])
    return out.reshape(B, N)


# ----------------------------- parameter init --------------------------------

def init_params(key, *, patch_size, num_layers, hidden_dim, mlp_dim, num_classes):
    D = hidden_dim
    keys = iter(jax.random.split(key, 8 + 6 * num_layers))

    fan_in = 3 * patch_size * patch_size
    std_pe = math.sqrt(1.0 / fan_in) / 0.8796256610342398
    patch_w = std_pe * jax.random.truncated_normal(
        next(keys), -2.0, 2.0, (D, 3, patch_size, patch_size), jnp.float32)

    def conv_w(k):
        return math.sqrt(2.0 / D) * jax.random.normal(k, (D, D, 3, 3), jnp.float32)

    def xavier(k, shape):
        fan_out, fan_in_ = shape
        bound = math.sqrt(6.0 / (fan_in_ + fan_out))
        return jax.random.uniform(k, shape, jnp.float32, -bound, bound)

    params = dict(
        patch_w=patch_w,
        patch_b=jnp.zeros((D,), jnp.float32),
        s1_w=conv_w(next(keys)), s1_b=jnp.zeros((D,), jnp.float32),
        s2_w=conv_w(next(keys)), s2_b=jnp.zeros((D,), jnp.float32),
        ln_g=jnp.ones((D,), jnp.float32), ln_b=jnp.zeros((D,), jnp.float32),
        # classification head is zero-initialized, exactly as in the PyTorch module
        head_w=jnp.zeros((num_classes, D), jnp.float32),
        head_b=jnp.zeros((num_classes,), jnp.float32),
        layers=[],
    )
    bound = math.sqrt(3.0 / D)
    for _ in range(num_layers):
        lp = dict(
            ln1_g=jnp.ones((D,), jnp.float32), ln1_b=jnp.zeros((D,), jnp.float32),
            in_proj_w=jax.random.uniform(next(keys), (3 * D, D), jnp.float32, -bound, bound),
            in_proj_b=jnp.zeros((3 * D,), jnp.float32),
            out_proj_w=jax.random.uniform(next(keys), (D, D), jnp.float32, -bound, bound),
            out_proj_b=jnp.zeros((D,), jnp.float32),
            ln2_g=jnp.ones((D,), jnp.float32), ln2_b=jnp.zeros((D,), jnp.float32),
            fc1_w=xavier(next(keys), (mlp_dim, D)),
            fc1_b=1e-6 * jax.random.normal(next(keys), (mlp_dim,), jnp.float32),
            fc2_w=xavier(next(keys), (D, mlp_dim)),
            fc2_b=1e-6 * jax.random.normal(next(keys), (D,), jnp.float32),
        )
        params["layers"].append(lp)
    return params


# ---------------------------------- main --------------------------------------

if __name__ == "__main__":
    key = jax.random.PRNGKey(0)
    kx, kp = jax.random.split(key)

    image_size, patch_size = 32, 4          # -> 8x8=64 + 2x2=4 + 1 = 69 tokens
    hidden_dim, mlp_dim = 32, 64
    num_layers, num_heads, num_classes = 2, 4, 10

    x = jax.random.normal(kx, (2, 3, image_size, image_size), jnp.float32)
    params = init_params(kp, patch_size=patch_size, num_layers=num_layers,
                         hidden_dim=hidden_dim, mlp_dim=mlp_dim,
                         num_classes=num_classes)
    prep = prepare_params(params, patch_size=patch_size, image_size=image_size)

    forward = jax.jit(functools.partial(simple_vit_forward,
                                        patch_size=patch_size, num_heads=num_heads))
    out = forward(x, prep)
    jax.block_until_ready(out)
    assert out.shape == (2, num_classes), out.shape
    assert bool(jnp.all(jnp.isfinite(out)))
    print("KERNEL_OK")
</pallas_src>

<mosaic_0001>
module attributes {stable_mosaic.version = 11 : i64} {
  func.func @_vit_kernel(%arg0: i32, %arg1: memref<1x64x48xf32, #tpu.memory_space<vmem>>, %arg2: memref<48x32xf32, #tpu.memory_space<vmem>>, %arg3: memref<1x32xf32, #tpu.memory_space<vmem>>, %arg4: memref<288x32xf32, #tpu.memory_space<vmem>>, %arg5: memref<1x32xf32, #tpu.memory_space<vmem>>, %arg6: memref<4x64xf32, #tpu.memory_space<vmem>>, %arg7: memref<32x32xf32, #tpu.memory_space<vmem>>, %arg8: memref<1x32xf32, #tpu.memory_space<vmem>>, %arg9: memref<2x1x32xf32, #tpu.memory_space<vmem>>, %arg10: memref<2x1x32xf32, #tpu.memory_space<vmem>>, %arg11: memref<2x32x96xf32, #tpu.memory_space<vmem>>, %arg12: memref<2x1x96xf32, #tpu.memory_space<vmem>>, %arg13: memref<2x32x32xf32, #tpu.memory_space<vmem>>, %arg14: memref<2x1x32xf32, #tpu.memory_space<vmem>>, %arg15: memref<2x1x32xf32, #tpu.memory_space<vmem>>, %arg16: memref<2x1x32xf32, #tpu.memory_space<vmem>>, %arg17: memref<2x32x64xf32, #tpu.memory_space<vmem>>, %arg18: memref<2x1x64xf32, #tpu.memory_space<vmem>>, %arg19: memref<2x64x32xf32, #tpu.memory_space<vmem>>, %arg20: memref<2x1x32xf32, #tpu.memory_space<vmem>>, %arg21: memref<1x32xf32, #tpu.memory_space<vmem>>, %arg22: memref<1x32xf32, #tpu.memory_space<vmem>>, %arg23: memref<32x10xf32, #tpu.memory_space<vmem>>, %arg24: memref<1x10xf32, #tpu.memory_space<vmem>>, %arg25: memref<1x1x10xf32, #tpu.memory_space<vmem>>, %arg26: memref<10x10x32xf32, #tpu.memory_space<vmem>>) attributes {dimension_semantics = [#tpu.dimension_semantics<parallel>], iteration_bounds = array<i64: 2>, scalar_prefetch = 0 : i64, scratch_operands = 1 : i64, tpu.core_type = #tpu.core_type<tc>, window_params = [{transform_indices = @transform_0, window_bounds = array<i64: 1, 64, 48>}, {pipeline_mode = #tpu.pipeline_mode<synchronous>, transform_indices = @transform_1, window_bounds = array<i64: 48, 32>}, {pipeline_mode = #tpu.pipeline_mode<synchronous>, transform_indices = @transform_2, window_bounds = array<i64: 1, 32>}, {pipeline_mode = #tpu.pipeline_mode<synchronous>, transform_indices = @transform_3, window_bounds = array<i64: 288, 32>}, {pipeline_mode = #tpu.pipeline_mode<synchronous>, transform_indices = @transform_4, window_bounds = array<i64: 1, 32>}, {pipeline_mode = #tpu.pipeline_mode<synchronous>, transform_indices = @transform_5, window_bounds = array<i64: 4, 64>}, {pipeline_mode = #tpu.pipeline_mode<synchronous>, transform_indices = @transform_6, window_bounds = array<i64: 32, 32>}, {pipeline_mode = #tpu.pipeline_mode<synchronous>, transform_indices = @transform_7, window_bounds = array<i64: 1, 32>}, {pipeline_mode = #tpu.pipeline_mode<synchronous>, transform_indices = @transform_8, window_bounds = array<i64: 2, 1, 32>}, {pipeline_mode = #tpu.pipeline_mode<synchronous>, transform_indices = @transform_9, window_bounds = array<i64: 2, 1, 32>}, {pipeline_mode = #tpu.pipeline_mode<synchronous>, transform_indices = @transform_10, window_bounds = array<i64: 2, 32, 96>}, {pipeline_mode = #tpu.pipeline_mode<synchronous>, transform_indices = @transform_11, window_bounds = array<i64: 2, 1, 96>}, {pipeline_mode = #tpu.pipeline_mode<synchronous>, transform_indices = @transform_12, window_bounds = array<i64: 2, 32, 32>}, {pipeline_mode = #tpu.pipeline_mode<synchronous>, transform_indices = @transform_13, window_bounds = array<i64: 2, 1, 32>}, {pipeline_mode = #tpu.pipeline_mode<synchronous>, transform_indices = @transform_14, window_bounds = array<i64: 2, 1, 32>}, {pipeline_mode = #tpu.pipeline_mode<synchronous>, transform_indices = @transform_15, window_bounds = array<i64: 2, 1, 32>}, {pipeline_mode = #tpu.pipeline_mode<synchronous>, transform_indices = @transform_16, window_bounds = array<i64: 2, 32, 64>}, {pipeline_mode = #tpu.pipeline_mode<synchronous>, transform_indices = @transform_17, window_bounds = array<i64: 2, 1, 64>}, {pipeline_mode = #tpu.pipeline_mode<synchronous>, transform_indices = @transform_18, window_bounds = array<i64: 2, 64, 32>}, {pipeline_mode = #tpu.pipeline_mode<synchronous>, transform_indices = @transform_19, window_bounds = array<i64: 2, 1, 32>}, {pipeline_mode = #tpu.pipeline_mode<synchronous>, transform_indices = @transform_20, window_bounds = array<i64: 1, 32>}, {pipeline_mode = #tpu.pipeline_mode<synchronous>, transform_indices = @transform_21, window_bounds = array<i64: 1, 32>}, {pipeline_mode = #tpu.pipeline_mode<synchronous>, transform_indices = @transform_22, window_bounds = array<i64: 32, 10>}, {pipeline_mode = #tpu.pipeline_mode<synchronous>, transform_indices = @transform_23, window_bounds = array<i64: 1, 10>}, {transform_indices = @transform_24, window_bounds = array<i64: 1, 1, 10>}]} {
    %c0 = arith.constant 0 : index
    %c0_0 = arith.constant 0 : index
    %c0_1 = arith.constant 0 : index
    %0 = vector.load %arg1[%c0, %c0_0, %c0_1] : memref<1x64x48xf32, #tpu.memory_space<vmem>>, vector<1x64x48xf32>
    %1 = vector.shape_cast %0 : vector<1x64x48xf32> to vector<64x48xf32>
    %c0_2 = arith.constant 0 : index
    %c0_3 = arith.constant 0 : index
    %2 = vector.load %arg2[%c0_2, %c0_3] : memref<48x32xf32, #tpu.memory_space<vmem>>, vector<48x32xf32>
    %cst = arith.constant dense<0.000000e+00> : vector<64x32xf32>
    %3 = tpu.matmul %1, %2, %cst {dimension_numbers = #tpu.dot_dimension_numbers<[1], [0], [0], [1], [0, 0, 1, 1], [], []>} : vector<64x48xf32>, vector<48x32xf32>, vector<64x32xf32> -> vector<64x32xf32>
    %c0_4 = arith.constant 0 : index
    %c0_5 = arith.constant 0 : index
    %4 = vector.load %arg3[%c0_4, %c0_5] : memref<1x32xf32, #tpu.memory_space<vmem>>, vector<1x32xf32>
    %5 = vector.broadcast %4 : vector<1x32xf32> to vector<64x32xf32>
    %6 = arith.addf %3, %5 : vector<64x32xf32>
    %cst_6 = arith.constant 0.000000e+00 : f32
    %7 = vector.broadcast %cst_6 : f32 to vector<10x10x32xf32>
    %c0_7 = arith.constant 0 : index
    %c0_8 = arith.constant 0 : index
    %c0_9 = arith.constant 0 : index
    %8 = vector.load %arg26[%c0_7, %c0_8, %c0_9] : memref<10x10x32xf32, #tpu.memory_space<vmem>>, vector<10x10x32xf32>
    tpu.vector_store %arg26[%c0_7, %c0_8, %c0_9], %7 {strides = array<i32>} : memref<10x10x32xf32, #tpu.memory_space<vmem>>, vector<10x10x32xf32>,
    %9 = vector.shape_cast %6 : vector<64x32xf32> to vector<8x8x32xf32>
    %c1 = arith.constant 1 : index
    %c1_10 = arith.constant 1 : index
    %c0_11 = arith.constant 0 : index
    %10 = vector.load %arg26[%c1, %c1_10, %c0_11] : memref<10x10x32xf32, #tpu.memory_space<vmem>>, vector<8x8x32xf32>
    tpu.vector_store %arg26[%c1, %c1_10, %c0_11], %9 {strides = array<i32>} : memref<10x10x32xf32, #tpu.memory_space<vmem>>, vector<8x8x32xf32>,
    %c0_12 = arith.constant 0 : index
    %c0_13 = arith.constant 0 : index
    %c0_14 = arith.constant 0 : index
    %11 = vector.load %arg26[%c0_12, %c0_13, %c0_14] : memref<10x10x32xf32, #tpu.memory_space<vmem>>, vector<8x8x32xf32>
    %12 = vector.shape_cast %11 : vector<8x8x32xf32> to vector<64x32xf32>
    %c0_15 = arith.constant 0 : index
    %c1_16 = arith.constant 1 : index
    %c0_17 = arith.constant 0 : index
    %13 = vector.load %arg26[%c0_15, %c1_16, %c0_17] : memref<10x10x32xf32, #tpu.memory_space<vmem>>, vector<8x8x32xf32>
    %14 = vector.shape_cast %13 : vector<8x8x32xf32> to vector<64x32xf32>
    %c0_18 = arith.constant 0 : index
    %c2 = arith.constant 2 : index
    %c0_19 = arith.constant 0 : index
    %15 = vector.load %arg26[%c0_18, %c2, %c0_19] : memref<10x10x32xf32, #tpu.memory_space<vmem>>, vector<8x8x32xf32>
    %16 = vector.shape_cast %15 : vector<8x8x32xf32> to vector<64x32xf32>
    %c1_20 = arith.constant 1 : index
    %c0_21 = arith.constant 0 : index
    %c0_22 = arith.constant 0 : index
    %17 = vector.load %arg26[%c1_20, %c0_21, %c0_22] : memref<10x10x32xf32, #tpu.memory_space<vmem>>, vector<8x8x32xf32>
    %18 = vector.shape_cast %17 : vector<8x8x32xf32> to vector<64x32xf32>
    %c1_23 = arith.constant 1 : index
    %c1_24 = arith.constant 1 : index
    %c0_25 = arith.constant 0 : index
    %19 = vector.load %arg26[%c1_23, %c1_24, %c0_25] : memref<10x10x32xf32, #tpu.memory_space<vmem>>, vector<8x8x32xf32>
    %20 = vector.shape_cast %19 : vector<8x8x32xf32> to vector<64x32xf32>
    %c1_26 = arith.constant 1 : index
    %c2_27 = arith.constant 2 : index
    %c0_28 = arith.constant 0 : index
    %21 = vector.load %arg26[%c1_26, %c2_27, %c0_28] : memref<10x10x32xf32, #tpu.memory_space<vmem>>, vector<8x8x32xf32>
    %22 = vector.shape_cast %21 : vector<8x8x32xf32> to vector<64x32xf32>
    %c2_29 = arith.constant 2 : index
    %c0_30 = arith.constant 0 : index
    %c0_31 = arith.constant 0 : index
    %23 = vector.load %arg26[%c2_29, %c0_30, %c0_31] : memref<10x10x32xf32, #tpu.memory_space<vmem>>, vector<8x8x32xf32>
    %24 = vector.shape_cast %23 : vector<8x8x32xf32> to vector<64x32xf32>
    %c2_32 = arith.constant 2 : index
    %c1_33 = arith.constant 1 : index
    %c0_34 = arith.constant 0 : index
    %25 = vector.load %arg26[%c2_32, %c1_33, %c0_34] : memref<10x10x32xf32, #tpu.memory_space<vmem>>, vector<8x8x32xf32>
    %26 = vector.shape_cast %25 : vector<8x8x32xf32> to vector<64x32xf32>
    %c2_35 = arith.constant 2 : index
    %c2_36 = arith.constant 2 : index
    %c0_37 = arith.constant 0 : index
    %27 = vector.load %arg26[%c2_35, %c2_36, %c0_37] : memref<10x10x32xf32, #tpu.memory_space<vmem>>, vector<8x8x32xf32>
    %28 = vector.shape_cast %27 : vector<8x8x32xf32> to vector<64x32xf32>
    %29 = tpu.concatenate %12, %14, %16, %18, %20, %22, %24, %26, %28 in 1 : vector<64x32xf32>, vector<64x32xf32>, vector<64x32xf32>, vector<64x32xf32>, vector<64x32xf32>, vector<64x32xf32>, vector<64x32xf32>, vector<64x32xf32>, vector<64x32xf32> -> vector<64x288xf32>
    %c0_38 = arith.constant 0 : index
    %c0_39 = arith.constant 0 : index
    %30 = vector.load %arg4[%c0_38, %c0_39] : memref<288x32xf32, #tpu.memory_space<vmem>>, vector<288x32xf32>
    %cst_40 = arith.constant dense<0.000000e+00> : vector<64x32xf32>
    %31 = tpu.matmul %29, %30, %cst_40 {dimension_numbers = #tpu.dot_dimension_numbers<[1], [0], [0], [1], [0, 0, 1, 1], [], []>} : vector<64x288xf32>, vector<288x32xf32>, vector<64x32xf32> -> vector<64x32xf32>
    %c0_41 = arith.constant 0 : index
    %c0_42 = arith.constant 0 : index
    %32 = vector.load %arg5[%c0_41, %c0_42] : memref<1x32xf32, #tpu.memory_space<vmem>>, vector<1x32xf32>
    %33 = vector.broadcast %32 : vector<1x32xf32> to vector<64x32xf32>
    %34 = arith.addf %31, %33 : vector<64x32xf32>
    %cst_43 = arith.constant 0.999994993 : f32
    %35 = vector.broadcast %cst_43 : f32 to vector<64x32xf32>
    %36 = arith.mulf %34, %35 : vector<64x32xf32>
    %cst_44 = arith.constant 0.000000e+00 : f32
    %37 = vector.broadcast %cst_44 : f32 to vector<64x32xf32>
    %38 = arith.maximumf %36, %37 : vector<64x32xf32>
    %c0_45 = arith.constant 0 : index
    %c0_46 = arith.constant 0 : index
    %39 = vector.load %arg6[%c0_45, %c0_46] : memref<4x64xf32, #tpu.memory_space<vmem>>, vector<4x64xf32>
    %cst_47 = arith.constant dense<0.000000e+00> : vector<4x32xf32>
    %40 = tpu.matmul %39, %38, %cst_47 {dimension_numbers = #tpu.dot_dimension_numbers<[1], [0], [0], [1], [0, 0, 1, 1], [], []>} : vector<4x64xf32>, vector<64x32xf32>, vector<4x32xf32> -> vector<4x32xf32>
    %c0_48 = arith.constant 0 : index
    %c0_49 = arith.constant 0 : index
    %41 = vector.load %arg7[%c0_48, %c0_49] : memref<32x32xf32, #tpu.memory_space<vmem>>, vector<32x32xf32>
    %cst_50 = arith.constant dense<0.000000e+00> : vector<4x32xf32>
    %42 = tpu.matmul %40, %41, %cst_50 {dimension_numbers = #tpu.dot_dimension_numbers<[1], [0], [0], [1], [0, 0, 1, 1], [], []>} : vector<4x32xf32>, vector<32x32xf32>, vector<4x32xf32> -> vector<4x32xf32>
    %c0_51 = arith.constant 0 : index
    %c0_52 = arith.constant 0 : index
    %43 = vector.load %arg8[%c0_51, %c0_52] : memref<1x32xf32, #tpu.memory_space<vmem>>, vector<1x32xf32>
    %44 = vector.broadcast %43 : vector<1x32xf32> to vector<4x32xf32>
    %45 = arith.addf %42, %44 : vector<4x32xf32>
    %cst_53 = arith.constant 0.999994993 : f32
    %46 = vector.broadcast %cst_53 : f32 to vector<4x32xf32>
    %47 = arith.mulf %45, %46 : vector<4x32xf32>
    %cst_54 = arith.constant 0.000000e+00 : f32
    %48 = vector.broadcast %cst_54 : f32 to vector<4x32xf32>
    %49 = arith.maximumf %47, %48 : vector<4x32xf32>
    %cst_55 = arith.constant dense<0.000000e+00> : vector<32xf32>
    %50 = vector.multi_reduction <add>, %49, %cst_55 [0] : vector<4x32xf32> to vector<32xf32>
    %51 = vector.shape_cast %50 : vector<32xf32> to vector<1x32xf32>
    %cst_56 = arith.constant 4.000000e+00 : f32
    %52 = vector.broadcast %cst_56 : f32 to vector<1x32xf32>
    %53 = arith.divf %51, %52 : vector<1x32xf32>
    %54 = tpu.concatenate %6, %40, %53 in 0 : vector<64x32xf32>, vector<4x32xf32>, vector<1x32xf32> -> vector<69x32xf32>
    %c0_57 = arith.constant 0 : index
    %c0_58 = arith.constant 0 : index
    %c0_59 = arith.constant 0 : index
    %55 = vector.load %arg9[%c0_57, %c0_58, %c0_59] : memref<2x1x32xf32, #tpu.memory_space<vmem>>, vector<1x1x32xf32>
    %56 = vector.shape_cast %55 : vector<1x1x32xf32> to vector<1x32xf32>
    %c0_60 = arith.constant 0 : index
    %c0_61 = arith.constant 0 : index
    %c0_62 = arith.constant 0 : index
    %57 = vector.load %arg10[%c0_60, %c0_61, %c0_62] : memref<2x1x32xf32, #tpu.memory_space<vmem>>, vector<1x1x32xf32>
    %58 = vector.shape_cast %57 : vector<1x1x32xf32> to vector<1x32xf32>
    %cst_63 = arith.constant dense<0.000000e+00> : vector<69xf32>
    %59 = vector.multi_reduction <add>, %54, %cst_63 [1] : vector<69x32xf32> to vector<69xf32>
    %60 = vector.shape_cast %59 : vector<69xf32> to vector<69x1xf32>
    %cst_64 = arith.constant 3.200000e+01 : f32
    %61 = vector.broadcast %cst_64 : f32 to vector<69x1xf32>
    %62 = arith.divf %60, %61 : vector<69x1xf32>
    %63 = vector.broadcast %62 : vector<69x1xf32> to vector<69x32xf32>
    %64 = arith.subf %54, %63 : vector<69x32xf32>
    %65 = arith.mulf %64, %64 : vector<69x32xf32>
    %cst_65 = arith.constant dense<0.000000e+00> : vector<69xf32>
    %66 = vector.multi_reduction <add>, %65, %cst_65 [1] : vector<69x32xf32> to vector<69xf32>
    %67 = vector.shape_cast %66 : vector<69xf32> to vector<69x1xf32>
    %cst_66 = arith.constant 3.200000e+01 : f32
    %68 = vector.broadcast %cst_66 : f32 to vector<69x1xf32>
    %69 = arith.divf %67, %68 : vector<69x1xf32>
    %cst_67 = arith.constant 9.99999997E-7 : f32
    %70 = vector.broadcast %cst_67 : f32 to vector<69x1xf32>
    %71 = arith.addf %69, %70 : vector<69x1xf32>
    %72 = math.rsqrt %71 : vector<69x1xf32>
    %73 = vector.broadcast %72 : vector<69x1xf32> to vector<69x32xf32>
    %74 = arith.mulf %64, %73 : vector<69x32xf32>
    %75 = vector.broadcast %56 : vector<1x32xf32> to vector<69x32xf32>
    %76 = arith.mulf %74, %75 : vector<69x32xf32>
    %77 = vector.broadcast %58 : vector<1x32xf32> to vector<69x32xf32>
    %78 = arith.addf %76, %77 : vector<69x32xf32>
    %c0_68 = arith.constant 0 : index
    %c0_69 = arith.constant 0 : index
    %c0_70 = arith.constant 0 : index
    %79 = vector.load %arg11[%c0_68, %c0_69, %c0_70] : memref<2x32x96xf32, #tpu.memory_space<vmem>>, vector<1x32x96xf32>
    %80 = vector.shape_cast %79 : vector<1x32x96xf32> to vector<32x96xf32>
    %cst_71 = arith.constant dense<0.000000e+00> : vector<69x96xf32>
    %81 = tpu.matmul %78, %80, %cst_71 {dimension_numbers = #tpu.dot_dimension_numbers<[1], [0], [0], [1], [0, 0, 1, 1], [], []>} : vector<69x32xf32>, vector<32x96xf32>, vector<69x96xf32> -> vector<69x96xf32>
    %c0_72 = arith.constant 0 : index
    %c0_73 = arith.constant 0 : index
    %c0_74 = arith.constant 0 : index
    %82 = vector.load %arg12[%c0_72, %c0_73, %c0_74] : memref<2x1x96xf32, #tpu.memory_space<vmem>>, vector<1x1x96xf32>
    %83 = vector.shape_cast %82 : vector<1x1x96xf32> to vector<1x96xf32>
    %84 = vector.broadcast %83 : vector<1x96xf32> to vector<69x96xf32>
    %85 = arith.addf %81, %84 : vector<69x96xf32>
    %86 = vector.extract_strided_slice %85 {offsets = [0, 0], sizes = [69, 8], strides = [1, 1]} : vector<69x96xf32> to vector<69x8xf32>
    %87 = vector.extract_strided_slice %85 {offsets = [0, 32], sizes = [69, 8], strides = [1, 1]} : vector<69x96xf32> to vector<69x8xf32>
    %88 = vector.extract_strided_slice %85 {offsets = [0, 64], sizes = [69, 8], strides = [1, 1]} : vector<69x96xf32> to vector<69x8xf32>
    %cst_75 = arith.constant dense<0.000000e+00> : vector<69x69xf32>
    %89 = tpu.matmul %86, %87, %cst_75 {dimension_numbers = #tpu.dot_dimension_numbers<[1], [1], [0], [0], [0, 0, 1, 0], [], []>} : vector<69x8xf32>, vector<69x8xf32>, vector<69x69xf32> -> vector<69x69xf32>
    %cst_76 = arith.constant 0.353553385 : f32
    %90 = vector.broadcast %cst_76 : f32 to vector<69x69xf32>
    %91 = arith.mulf %89, %90 : vector<69x69xf32>
    %cst_77 = arith.constant dense<0xFF800000> : vector<69xf32>
    %92 = vector.multi_reduction <maximumf>, %91, %cst_77 [1] : vector<69x69xf32> to vector<69xf32>
    %93 = vector.shape_cast %92 : vector<69xf32> to vector<69x1xf32>
    %94 = vector.broadcast %93 : vector<69x1xf32> to vector<69x69xf32>
    %95 = arith.subf %91, %94 : vector<69x69xf32>
    %96 = math.exp %95 : vector<69x69xf32>
    %cst_78 = arith.constant dense<0.000000e+00> : vector<69xf32>
    %97 = vector.multi_reduction <add>, %96, %cst_78 [1] : vector<69x69xf32> to vector<69xf32>
    %98 = vector.shape_cast %97 : vector<69xf32> to vector<69x1xf32>
    %99 = tpu.reciprocal %98 {approx = true} : vector<69x1xf32> -> vector<69x1xf32>
    %100 = vector.broadcast %99 : vector<69x1xf32> to vector<69x69xf32>
    %101 = arith.mulf %96, %100 : vector<69x69xf32>
    %cst_79 = arith.constant dense<0.000000e+00> : vector<69x8xf32>
    %102 = tpu.matmul %101, %88, %cst_79 {dimension_numbers = #tpu.dot_dimension_numbers<[1], [0], [0], [1], [0, 0, 1, 1], [], []>} : vector<69x69xf32>, vector<69x8xf32>, vector<69x8xf32> -> vector<69x8xf32>
    %103 = vector.extract_strided_slice %85 {offsets = [0, 8], sizes = [69, 8], strides = [1, 1]} : vector<69x96xf32> to vector<69x8xf32>
    %104 = vector.extract_strided_slice %85 {offsets = [0, 40], sizes = [69, 8], strides = [1, 1]} : vector<69x96xf32> to vector<69x8xf32>
    %105 = vector.extract_strided_slice %85 {offsets = [0, 72], sizes = [69, 8], strides = [1, 1]} : vector<69x96xf32> to vector<69x8xf32>
    %cst_80 = arith.constant dense<0.000000e+00> : vector<69x69xf32>
    %106 = tpu.matmul %103, %104, %cst_80 {dimension_numbers = #tpu.dot_dimension_numbers<[1], [1], [0], [0], [0, 0, 1, 0], [], []>} : vector<69x8xf32>, vector<69x8xf32>, vector<69x69xf32> -> vector<69x69xf32>
    %cst_81 = arith.constant 0.353553385 : f32
    %107 = vector.broadcast %cst_81 : f32 to vector<69x69xf32>
    %108 = arith.mulf %106, %107 : vector<69x69xf32>
    %cst_82 = arith.constant dense<0xFF800000> : vector<69xf32>
    %109 = vector.multi_reduction <maximumf>, %108, %cst_82 [1] : vector<69x69xf32> to vector<69xf32>
    %110 = vector.shape_cast %109 : vector<69xf32> to vector<69x1xf32>
    %111 = vector.broadcast %110 : vector<69x1xf32> to vector<69x69xf32>
    %112 = arith.subf %108, %111 : vector<69x69xf32>
    %113 = math.exp %112 : vector<69x69xf32>
    %cst_83 = arith.constant dense<0.000000e+00> : vector<69xf32>
    %114 = vector.multi_reduction <add>, %113, %cst_83 [1] : vector<69x69xf32> to vector<69xf32>
    %115 = vector.shape_cast %114 : vector<69xf32> to vector<69x1xf32>
    %116 = tpu.reciprocal %115 {approx = true} : vector<69x1xf32> -> vector<69x1xf32>
    %117 = vector.broadcast %116 : vector<69x1xf32> to vector<69x69xf32>
    %118 = arith.mulf %113, %117 : vector<69x69xf32>
    %cst_84 = arith.constant dense<0.000000e+00> : vector<69x8xf32>
    %119 = tpu.matmul %118, %105, %cst_84 {dimension_numbers = #tpu.dot_dimension_numbers<[1], [0], [0], [1], [0, 0, 1, 1], [], []>} : vector<69x69xf32>, vector<69x8xf32>, vector<69x8xf32> -> vector<69x8xf32>
    %120 = vector.extract_strided_slice %85 {offsets = [0, 16], sizes = [69, 8], strides = [1, 1]} : vector<69x96xf32> to vector<69x8xf32>
    %121 = vector.extract_strided_slice %85 {offsets = [0, 48], sizes = [69, 8], strides = [1, 1]} : vector<69x96xf32> to vector<69x8xf32>
    %122 = vector.extract_strided_slice %85 {offsets = [0, 80], sizes = [69, 8], strides = [1, 1]} : vector<69x96xf32> to vector<69x8xf32>
    %cst_85 = arith.constant dense<0.000000e+00> : vector<69x69xf32>
    %123 = tpu.matmul %120, %121, %cst_85 {dimension_numbers = #tpu.dot_dimension_numbers<[1], [1], [0], [0], [0, 0, 1, 0], [], []>} : vector<69x8xf32>, vector<69x8xf32>, vector<69x69xf32> -> vector<69x69xf32>
    %cst_86 = arith.constant 0.353553385 : f32
    %124 = vector.broadcast %cst_86 : f32 to vector<69x69xf32>
    %125 = arith.mulf %123, %124 : vector<69x69xf32>
    %cst_87 = arith.constant dense<0xFF800000> : vector<69xf32>
    %126 = vector.multi_reduction <maximumf>, %125, %cst_87 [1] : vector<69x69xf32> to vector<69xf32>
    %127 = vector.shape_cast %126 : vector<69xf32> to vector<69x1xf32>
    %128 = vector.broadcast %127 : vector<69x1xf32> to vector<69x69xf32>
    %129 = arith.subf %125, %128 : vector<69x69xf32>
    %130 = math.exp %129 : vector<69x69xf32>
    %cst_88 = arith.constant dense<0.000000e+00> : vector<69xf32>
    %131 = vector.multi_reduction <add>, %130, %cst_88 [1] : vector<69x69xf32> to vector<69xf32>
    %132 = vector.shape_cast %131 : vector<69xf32> to vector<69x1xf32>
    %133 = tpu.reciprocal %132 {approx = true} : vector<69x1xf32> -> vector<69x1xf32>
    %134 = vector.broadcast %133 : vector<69x1xf32> to vector<69x69xf32>
    %135 = arith.mulf %130, %134 : vector<69x69xf32>
    %cst_89 = arith.constant dense<0.000000e+00> : vector<69x8xf32>
    %136 = tpu.matmul %135, %122, %cst_89 {dimension_numbers = #tpu.dot_dimension_numbers<[1], [0], [0], [1], [0, 0, 1, 1], [], []>} : vector<69x69xf32>, vector<69x8xf32>, vector<69x8xf32> -> vector<69x8xf32>
    %137 = vector.extract_strided_slice %85 {offsets = [0, 24], sizes = [69, 8], strides = [1, 1]} : vector<69x96xf32> to vector<69x8xf32>
    %138 = vector.extract_strided_slice %85 {offsets = [0, 56], sizes = [69, 8], strides = [1, 1]} : vector<69x96xf32> to vector<69x8xf32>
    %139 = vector.extract_strided_slice %85 {offsets = [0, 88], sizes = [69, 8], strides = [1, 1]} : vector<69x96xf32> to vector<69x8xf32>
    %cst_90 = arith.constant dense<0.000000e+00> : vector<69x69xf32>
    %140 = tpu.matmul %137, %138, %cst_90 {dimension_numbers = #tpu.dot_dimension_numbers<[1], [1], [0], [0], [0, 0, 1, 0], [], []>} : vector<69x8xf32>, vector<69x8xf32>, vector<69x69xf32> -> vector<69x69xf32>
    %cst_91 = arith.constant 0.353553385 : f32
    %141 = vector.broadcast %cst_91 : f32 to vector<69x69xf32>
    %142 = arith.mulf %140, %141 : vector<69x69xf32>
    %cst_92 = arith.constant dense<0xFF800000> : vector<69xf32>
    %143 = vector.multi_reduction <maximumf>, %142, %cst_92 [1] : vector<69x69xf32> to vector<69xf32>
    %144 = vector.shape_cast %143 : vector<69xf32> to vector<69x1xf32>
    %145 = vector.broadcast %144 : vector<69x1xf32> to vector<69x69xf32>
    %146 = arith.subf %142, %145 : vector<69x69xf32>
    %147 = math.exp %146 : vector<69x69xf32>
    %cst_93 = arith.constant dense<0.000000e+00> : vector<69xf32>
    %148 = vector.multi_reduction <add>, %147, %cst_93 [1] : vector<69x69xf32> to vector<69xf32>
    %149 = vector.shape_cast %148 : vector<69xf32> to vector<69x1xf32>
    %150 = tpu.reciprocal %149 {approx = true} : vector<69x1xf32> -> vector<69x1xf32>
    %151 = vector.broadcast %150 : vector<69x1xf32> to vector<69x69xf32>
    %152 = arith.mulf %147, %151 : vector<69x69xf32>
    %cst_94 = arith.constant dense<0.000000e+00> : vector<69x8xf32>
    %153 = tpu.matmul %152, %139, %cst_94 {dimension_numbers = #tpu.dot_dimension_numbers<[1], [0], [0], [1], [0, 0, 1, 1], [], []>} : vector<69x69xf32>, vector<69x8xf32>, vector<69x8xf32> -> vector<69x8xf32>
    %154 = tpu.concatenate %102, %119, %136, %153 in 1 : vector<69x8xf32>, vector<69x8xf32>, vector<69x8xf32>, vector<69x8xf32> -> vector<69x32xf32>
    %c0_95 = arith.constant 0 : index
    %c0_96 = arith.constant 0 : index
    %c0_97 = arith.constant 0 : index
    %155 = vector.load %arg13[%c0_95, %c0_96, %c0_97] : memref<2x32x32xf32, #tpu.memory_space<vmem>>, vector<1x32x32xf32>
    %156 = vector.shape_cast %155 : vector<1x32x32xf32> to vector<32x32xf32>
    %cst_98 = arith.constant dense<0.000000e+00> : vector<69x32xf32>
    %157 = tpu.matmul %154, %156, %cst_98 {dimension_numbers = #tpu.dot_dimension_numbers<[1], [0], [0], [1], [0, 0, 1, 1], [], []>} : vector<69x32xf32>, vector<32x32xf32>, vector<69x32xf32> -> vector<69x32xf32>
    %158 = arith.addf %54, %157 : vector<69x32xf32>
    %c0_99 = arith.constant 0 : index
    %c0_100 = arith.constant 0 : index
    %c0_101 = arith.constant 0 : index
    %159 = vector.load %arg14[%c0_99, %c0_100, %c0_101] : memref<2x1x32xf32, #tpu.memory_space<vmem>>, vector<1x1x32xf32>
    %160 = vector.shape_cast %159 : vector<1x1x32xf32> to vector<1x32xf32>
    %161 = vector.broadcast %160 : vector<1x32xf32> to vector<69x32xf32>
    %162 = arith.addf %158, %161 : vector<69x32xf32>
    %c0_102 = arith.constant 0 : index
    %c0_103 = arith.constant 0 : index
    %c0_104 = arith.constant 0 : index
    %163 = vector.load %arg15[%c0_102, %c0_103, %c0_104] : memref<2x1x32xf32, #tpu.memory_space<vmem>>, vector<1x1x32xf32>
    %164 = vector.shape_cast %163 : vector<1x1x32xf32> to vector<1x32xf32>
    %c0_105 = arith.constant 0 : index
    %c0_106 = arith.constant 0 : index
    %c0_107 = arith.constant 0 : index
    %165 = vector.load %arg16[%c0_105, %c0_106, %c0_107] : memref<2x1x32xf32, #tpu.memory_space<vmem>>, vector<1x1x32xf32>
    %166 = vector.shape_cast %165 : vector<1x1x32xf32> to vector<1x32xf32>
    %cst_108 = arith.constant dense<0.000000e+00> : vector<69xf32>
    %167 = vector.multi_reduction <add>, %162, %cst_108 [1] : vector<69x32xf32> to vector<69xf32>
    %168 = vector.shape_cast %167 : vector<69xf32> to vector<69x1xf32>
    %cst_109 = arith.constant 3.200000e+01 : f32
    %169 = vector.broadcast %cst_109 : f32 to vector<69x1xf32>
    %170 = arith.divf %168, %169 : vector<69x1xf32>
    %171 = vector.broadcast %170 : vector<69x1xf32> to vector<69x32xf32>
    %172 = arith.subf %162, %171 : vector<69x32xf32>
    %173 = arith.mulf %172, %172 : vector<69x32xf32>
    %cst_110 = arith.constant dense<0.000000e+00> : vector<69xf32>
    %174 = vector.multi_reduction <add>, %173, %cst_110 [1] : vector<69x32xf32> to vector<69xf32>
    %175 = vector.shape_cast %174 : vector<69xf32> to vector<69x1xf32>
    %cst_111 = arith.constant 3.200000e+01 : f32
    %176 = vector.broadcast %cst_111 : f32 to vector<69x1xf32>
    %177 = arith.divf %175, %176 : vector<69x1xf32>
    %cst_112 = arith.constant 9.99999997E-7 : f32
    %178 = vector.broadcast %cst_112 : f32 to vector<69x1xf32>
    %179 = arith.addf %177, %178 : vector<69x1xf32>
    %180 = math.rsqrt %179 : vector<69x1xf32>
    %181 = vector.broadcast %180 : vector<69x1xf32> to vector<69x32xf32>
    %182 = arith.mulf %172, %181 : vector<69x32xf32>
    %183 = vector.broadcast %164 : vector<1x32xf32> to vector<69x32xf32>
    %184 = arith.mulf %182, %183 : vector<69x32xf32>
    %185 = vector.broadcast %166 : vector<1x32xf32> to vector<69x32xf32>
    %186 = arith.addf %184, %185 : vector<69x32xf32>
    %c0_113 = arith.constant 0 : index
    %c0_114 = arith.constant 0 : index
    %c0_115 = arith.constant 0 : index
    %187 = vector.load %arg17[%c0_113, %c0_114, %c0_115] : memref<2x32x64xf32, #tpu.memory_space<vmem>>, vector<1x32x64xf32>
    %188 = vector.shape_cast %187 : vector<1x32x64xf32> to vector<32x64xf32>
    %cst_116 = arith.constant dense<0.000000e+00> : vector<69x64xf32>
    %189 = tpu.matmul %186, %188, %cst_116 {dimension_numbers = #tpu.dot_dimension_numbers<[1], [0], [0], [1], [0, 0, 1, 1], [], []>} : vector<69x32xf32>, vector<32x64xf32>, vector<69x64xf32> -> vector<69x64xf32>
    %c0_117 = arith.constant 0 : index
    %c0_118 = arith.constant 0 : index
    %c0_119 = arith.constant 0 : index
    %190 = vector.load %arg18[%c0_117, %c0_118, %c0_119] : memref<2x1x64xf32, #tpu.memory_space<vmem>>, vector<1x1x64xf32>
    %191 = vector.shape_cast %190 : vector<1x1x64xf32> to vector<1x64xf32>
    %192 = vector.broadcast %191 : vector<1x64xf32> to vector<69x64xf32>
    %193 = arith.addf %189, %192 : vector<69x64xf32>
    %cst_120 = arith.constant 5.000000e-01 : f32
    %194 = vector.broadcast %cst_120 : f32 to vector<69x64xf32>
    %195 = arith.mulf %194, %193 : vector<69x64xf32>
    %cst_121 = arith.constant 0.707106769 : f32
    %196 = vector.broadcast %cst_121 : f32 to vector<69x64xf32>
    %197 = arith.mulf %193, %196 : vector<69x64xf32>
    %198 = math.absf %197 : vector<69x64xf32>
    %cst_122 = arith.constant 0.327591091 : f32
    %199 = vector.broadcast %cst_122 : f32 to vector<69x64xf32>
    %200 = arith.mulf %199, %198 : vector<69x64xf32>
    %cst_123 = arith.constant 1.000000e+00 : f32
    %201 = vector.broadcast %cst_123 : f32 to vector<69x64xf32>
    %202 = arith.addf %201, %200 : vector<69x64xf32>
    %cst_124 = arith.constant 1.000000e+00 : f32
    %203 = vector.broadcast %cst_124 : f32 to vector<69x64xf32>
    %204 = arith.divf %203, %202 : vector<69x64xf32>
    %cst_125 = arith.constant 1.06140542 : f32
    %205 = vector.broadcast %cst_125 : f32 to vector<69x64xf32>
    %206 = arith.mulf %205, %204 : vector<69x64xf32>
    %cst_126 = arith.constant -1.45315206 : f32
    %207 = vector.broadcast %cst_126 : f32 to vector<69x64xf32>
    %208 = arith.addf %206, %207 : vector<69x64xf32>
    %209 = arith.mulf %208, %204 : vector<69x64xf32>
    %cst_127 = arith.constant 1.42141378 : f32
    %210 = vector.broadcast %cst_127 : f32 to vector<69x64xf32>
    %211 = arith.addf %209, %210 : vector<69x64xf32>
    %212 = arith.mulf %211, %204 : vector<69x64xf32>
    %cst_128 = arith.constant -0.284496725 : f32
    %213 = vector.broadcast %cst_128 : f32 to vector<69x64xf32>
    %214 = arith.addf %212, %213 : vector<69x64xf32>
    %215 = arith.mulf %214, %204 : vector<69x64xf32>
    %cst_129 = arith.constant 0.254829586 : f32
    %216 = vector.broadcast %cst_129 : f32 to vector<69x64xf32>
    %217 = arith.addf %215, %216 : vector<69x64xf32>
    %218 = arith.mulf %217, %204 : vector<69x64xf32>
    %cst_130 = arith.constant 0.000000e+00 : f32
    %219 = vector.broadcast %cst_130 : f32 to vector<69x64xf32>
    %220 = arith.subf %219, %198 : vector<69x64xf32>
    %221 = arith.mulf %220, %198 : vector<69x64xf32>
    %222 = math.exp %221 : vector<69x64xf32>
    %223 = arith.mulf %218, %222 : vector<69x64xf32>
    %cst_131 = arith.constant 1.000000e+00 : f32
    %224 = vector.broadcast %cst_131 : f32 to vector<69x64xf32>
    %225 = arith.subf %224, %223 : vector<69x64xf32>
    %cst_132 = arith.constant 0.000000e+00 : f32
    %226 = vector.broadcast %cst_132 : f32 to vector<69x64xf32>
    %227 = arith.cmpf oge, %197, %226 : vector<69x64xf32>
    %cst_133 = arith.constant 0.000000e+00 : f32
    %228 = vector.broadcast %cst_133 : f32 to vector<69x64xf32>
    %229 = arith.subf %228, %225 : vector<69x64xf32>
    %230 = arith.select %227, %225, %229 : vector<69x64xi1>, vector<69x64xf32>
    %cst_134 = arith.constant 1.000000e+00 : f32
    %231 = vector.broadcast %cst_134 : f32 to vector<69x64xf32>
    %232 = arith.addf %231, %230 : vector<69x64xf32>
    %233 = arith.mulf %195, %232 : vector<69x64xf32>
    %c0_135 = arith.constant 0 : index
    %c0_136 = arith.constant 0 : index
    %c0_137 = arith.constant 0 : index
    %234 = vector.load %arg19[%c0_135, %c0_136, %c0_137] : memref<2x64x32xf32, #tpu.memory_space<vmem>>, vector<1x64x32xf32>
    %235 = vector.shape_cast %234 : vector<1x64x32xf32> to vector<64x32xf32>
    %cst_138 = arith.constant dense<0.000000e+00> : vector<69x32xf32>
    %236 = tpu.matmul %233, %235, %cst_138 {dimension_numbers = #tpu.dot_dimension_numbers<[1], [0], [0], [1], [0, 0, 1, 1], [], []>} : vector<69x64xf32>, vector<64x32xf32>, vector<69x32xf32> -> vector<69x32xf32>
    %237 = arith.addf %162, %236 : vector<69x32xf32>
    %c0_139 = arith.constant 0 : index
    %c0_140 = arith.constant 0 : index
    %c0_141 = arith.constant 0 : index
    %238 = vector.load %arg20[%c0_139, %c0_140, %c0_141] : memref<2x1x32xf32, #tpu.memory_space<vmem>>, vector<1x1x32xf32>
    %239 = vector.shape_cast %238 : vector<1x1x32xf32> to vector<1x32xf32>
    %240 = vector.broadcast %239 : vector<1x32xf32> to vector<69x32xf32>
    %241 = arith.addf %237, %240 : vector<69x32xf32>
    %c1_142 = arith.constant 1 : index
    %c0_143 = arith.constant 0 : index
    %c0_144 = arith.constant 0 : index
    %242 = vector.load %arg9[%c1_142, %c0_143, %c0_144] : memref<2x1x32xf32, #tpu.memory_space<vmem>>, vector<1x1x32xf32>
    %243 = vector.shape_cast %242 : vector<1x1x32xf32> to vector<1x32xf32>
    %c1_145 = arith.constant 1 : index
    %c0_146 = arith.constant 0 : index
    %c0_147 = arith.constant 0 : index
    %244 = vector.load %arg10[%c1_145, %c0_146, %c0_147] : memref<2x1x32xf32, #tpu.memory_space<vmem>>, vector<1x1x32xf32>
    %245 = vector.shape_cast %244 : vector<1x1x32xf32> to vector<1x32xf32>
    %cst_148 = arith.constant dense<0.000000e+00> : vector<69xf32>
    %246 = vector.multi_reduction <add>, %241, %cst_148 [1] : vector<69x32xf32> to vector<69xf32>
    %247 = vector.shape_cast %246 : vector<69xf32> to vector<69x1xf32>
    %cst_149 = arith.constant 3.200000e+01 : f32
    %248 = vector.broadcast %cst_149 : f32 to vector<69x1xf32>
    %249 = arith.divf %247, %248 : vector<69x1xf32>
    %250 = vector.broadcast %249 : vector<69x1xf32> to vector<69x32xf32>
    %251 = arith.subf %241, %250 : vector<69x32xf32>
    %252 = arith.mulf %251, %251 : vector<69x32xf32>
    %cst_150 = arith.constant dense<0.000000e+00> : vector<69xf32>
    %253 = vector.multi_reduction <add>, %252, %cst_150 [1] : vector<69x32xf32> to vector<69xf32>
    %254 = vector.shape_cast %253 : vector<69xf32> to vector<69x1xf32>
    %cst_151 = arith.constant 3.200000e+01 : f32
    %255 = vector.broadcast %cst_151 : f32 to vector<69x1xf32>
    %256 = arith.divf %254, %255 : vector<69x1xf32>
    %cst_152 = arith.constant 9.99999997E-7 : f32
    %257 = vector.broadcast %cst_152 : f32 to vector<69x1xf32>
    %258 = arith.addf %256, %257 : vector<69x1xf32>
    %259 = math.rsqrt %258 : vector<69x1xf32>
    %260 = vector.broadcast %259 : vector<69x1xf32> to vector<69x32xf32>
    %261 = arith.mulf %251, %260 : vector<69x32xf32>
    %262 = vector.broadcast %243 : vector<1x32xf32> to vector<69x32xf32>
    %263 = arith.mulf %261, %262 : vector<69x32xf32>
    %264 = vector.broadcast %245 : vector<1x32xf32> to vector<69x32xf32>
    %265 = arith.addf %263, %264 : vector<69x32xf32>
    %c1_153 = arith.constant 1 : index
    %c0_154 = arith.constant 0 : index
    %c0_155 = arith.constant 0 : index
    %266 = vector.load %arg11[%c1_153, %c0_154, %c0_155] : memref<2x32x96xf32, #tpu.memory_space<vmem>>, vector<1x32x96xf32>
    %267 = vector.shape_cast %266 : vector<1x32x96xf32> to vector<32x96xf32>
    %cst_156 = arith.constant dense<0.000000e+00> : vector<69x96xf32>
    %268 = tpu.matmul %265, %267, %cst_156 {dimension_numbers = #tpu.dot_dimension_numbers<[1], [0], [0], [1], [0, 0, 1, 1], [], []>} : vector<69x32xf32>, vector<32x96xf32>, vector<69x96xf32> -> vector<69x96xf32>
    %c1_157 = arith.constant 1 : index
    %c0_158 = arith.constant 0 : index
    %c0_159 = arith.constant 0 : index
    %269 = vector.load %arg12[%c1_157, %c0_158, %c0_159] : memref<2x1x96xf32, #tpu.memory_space<vmem>>, vector<1x1x96xf32>
    %270 = vector.shape_cast %269 : vector<1x1x96xf32> to vector<1x96xf32>
    %271 = vector.broadcast %270 : vector<1x96xf32> to vector<69x96xf32>
    %272 = arith.addf %268, %271 : vector<69x96xf32>
    %273 = vector.extract_strided_slice %272 {offsets = [0, 0], sizes = [69, 8], strides = [1, 1]} : vector<69x96xf32> to vector<69x8xf32>
    %274 = vector.extract_strided_slice %272 {offsets = [0, 32], sizes = [69, 8], strides = [1, 1]} : vector<69x96xf32> to vector<69x8xf32>
    %275 = vector.extract_strided_slice %272 {offsets = [0, 64], sizes = [69, 8], strides = [1, 1]} : vector<69x96xf32> to vector<69x8xf32>
    %cst_160 = arith.constant dense<0.000000e+00> : vector<69x69xf32>
    %276 = tpu.matmul %273, %274, %cst_160 {dimension_numbers = #tpu.dot_dimension_numbers<[1], [1], [0], [0], [0, 0, 1, 0], [], []>} : vector<69x8xf32>, vector<69x8xf32>, vector<69x69xf32> -> vector<69x69xf32>
    %cst_161 = arith.constant 0.353553385 : f32
    %277 = vector.broadcast %cst_161 : f32 to vector<69x69xf32>
    %278 = arith.mulf %276, %277 : vector<69x69xf32>
    %cst_162 = arith.constant dense<0xFF800000> : vector<69xf32>
    %279 = vector.multi_reduction <maximumf>, %278, %cst_162 [1] : vector<69x69xf32> to vector<69xf32>
    %280 = vector.shape_cast %279 : vector<69xf32> to vector<69x1xf32>
    %281 = vector.broadcast %280 : vector<69x1xf32> to vector<69x69xf32>
    %282 = arith.subf %278, %281 : vector<69x69xf32>
    %283 = math.exp %282 : vector<69x69xf32>
    %cst_163 = arith.constant dense<0.000000e+00> : vector<69xf32>
    %284 = vector.multi_reduction <add>, %283, %cst_163 [1] : vector<69x69xf32> to vector<69xf32>
    %285 = vector.shape_cast %284 : vector<69xf32> to vector<69x1xf32>
    %286 = tpu.reciprocal %285 {approx = true} : vector<69x1xf32> -> vector<69x1xf32>
    %287 = vector.broadcast %286 : vector<69x1xf32> to vector<69x69xf32>
    %288 = arith.mulf %283, %287 : vector<69x69xf32>
    %cst_164 = arith.constant dense<0.000000e+00> : vector<69x8xf32>
    %289 = tpu.matmul %288, %275, %cst_164 {dimension_numbers = #tpu.dot_dimension_numbers<[1], [0], [0], [1], [0, 0, 1, 1], [], []>} : vector<69x69xf32>, vector<69x8xf32>, vector<69x8xf32> -> vector<69x8xf32>
    %290 = vector.extract_strided_slice %272 {offsets = [0, 8], sizes = [69, 8], strides = [1, 1]} : vector<69x96xf32> to vector<69x8xf32>
    %291 = vector.extract_strided_slice %272 {offsets = [0, 40], sizes = [69, 8], strides = [1, 1]} : vector<69x96xf32> to vector<69x8xf32>
    %292 = vector.extract_strided_slice %272 {offsets = [0, 72], sizes = [69, 8], strides = [1, 1]} : vector<69x96xf32> to vector<69x8xf32>
    %cst_165 = arith.constant dense<0.000000e+00> : vector<69x69xf32>
    %293 = tpu.matmul %290, %291, %cst_165 {dimension_numbers = #tpu.dot_dimension_numbers<[1], [1], [0], [0], [0, 0, 1, 0], [], []>} : vector<69x8xf32>, vector<69x8xf32>, vector<69x69xf32> -> vector<69x69xf32>
    %cst_166 = arith.constant 0.353553385 : f32
    %294 = vector.broadcast %cst_166 : f32 to vector<69x69xf32>
    %295 = arith.mulf %293, %294 : vector<69x69xf32>
    %cst_167 = arith.constant dense<0xFF800000> : vector<69xf32>
    %296 = vector.multi_reduction <maximumf>, %295, %cst_167 [1] : vector<69x69xf32> to vector<69xf32>
    %297 = vector.shape_cast %296 : vector<69xf32> to vector<69x1xf32>
    %298 = vector.broadcast %297 : vector<69x1xf32> to vector<69x69xf32>
    %299 = arith.subf %295, %298 : vector<69x69xf32>
    %300 = math.exp %299 : vector<69x69xf32>
    %cst_168 = arith.constant dense<0.000000e+00> : vector<69xf32>
    %301 = vector.multi_reduction <add>, %300, %cst_168 [1] : vector<69x69xf32> to vector<69xf32>
    %302 = vector.shape_cast %301 : vector<69xf32> to vector<69x1xf32>
    %303 = tpu.reciprocal %302 {approx = true} : vector<69x1xf32> -> vector<69x1xf32>
    %304 = vector.broadcast %303 : vector<69x1xf32> to vector<69x69xf32>
    %305 = arith.mulf %300, %304 : vector<69x69xf32>
    %cst_169 = arith.constant dense<0.000000e+00> : vector<69x8xf32>
    %306 = tpu.matmul %305, %292, %cst_169 {dimension_numbers = #tpu.dot_dimension_numbers<[1], [0], [0], [1], [0, 0, 1, 1], [], []>} : vector<69x69xf32>, vector<69x8xf32>, vector<69x8xf32> -> vector<69x8xf32>
    %307 = vector.extract_strided_slice %272 {offsets = [0, 16], sizes = [69, 8], strides = [1, 1]} : vector<69x96xf32> to vector<69x8xf32>
    %308 = vector.extract_strided_slice %272 {offsets = [0, 48], sizes = [69, 8], strides = [1, 1]} : vector<69x96xf32> to vector<69x8xf32>
    %309 = vector.extract_strided_slice %272 {offsets = [0, 80], sizes = [69, 8], strides = [1, 1]} : vector<69x96xf32> to vector<69x8xf32>
    %cst_170 = arith.constant dense<0.000000e+00> : vector<69x69xf32>
    %310 = tpu.matmul %307, %308, %cst_170 {dimension_numbers = #tpu.dot_dimension_numbers<[1], [1], [0], [0], [0, 0, 1, 0], [], []>} : vector<69x8xf32>, vector<69x8xf32>, vector<69x69xf32> -> vector<69x69xf32>
    %cst_171 = arith.constant 0.353553385 : f32
    %311 = vector.broadcast %cst_171 : f32 to vector<69x69xf32>
    %312 = arith.mulf %310, %311 : vector<69x69xf32>
    %cst_172 = arith.constant dense<0xFF800000> : vector<69xf32>
    %313 = vector.multi_reduction <maximumf>, %312, %cst_172 [1] : vector<69x69xf32> to vector<69xf32>
    %314 = vector.shape_cast %313 : vector<69xf32> to vector<69x1xf32>
    %315 = vector.broadcast %314 : vector<69x1xf32> to vector<69x69xf32>
    %316 = arith.subf %312, %315 : vector<69x69xf32>
    %317 = math.exp %316 : vector<69x69xf32>
    %cst_173 = arith.constant dense<0.000000e+00> : vector<69xf32>
    %318 = vector.multi_reduction <add>, %317, %cst_173 [1] : vector<69x69xf32> to vector<69xf32>
    %319 = vector.shape_cast %318 : vector<69xf32> to vector<69x1xf32>
    %320 = tpu.reciprocal %319 {approx = true} : vector<69x1xf32> -> vector<69x1xf32>
    %321 = vector.broadcast %320 : vector<69x1xf32> to vector<69x69xf32>
    %322 = arith.mulf %317, %321 : vector<69x69xf32>
    %cst_174 = arith.constant dense<0.000000e+00> : vector<69x8xf32>
    %323 = tpu.matmul %322, %309, %cst_174 {dimension_numbers = #tpu.dot_dimension_numbers<[1], [0], [0], [1], [0, 0, 1, 1], [], []>} : vector<69x69xf32>, vector<69x8xf32>, vector<69x8xf32> -> vector<69x8xf32>
    %324 = vector.extract_strided_slice %272 {offsets = [0, 24], sizes = [69, 8], strides = [1, 1]} : vector<69x96xf32> to vector<69x8xf32>
    %325 = vector.extract_strided_slice %272 {offsets = [0, 56], sizes = [69, 8], strides = [1, 1]} : vector<69x96xf32> to vector<69x8xf32>
    %326 = vector.extract_strided_slice %272 {offsets = [0, 88], sizes = [69, 8], strides = [1, 1]} : vector<69x96xf32> to vector<69x8xf32>
    %cst_175 = arith.constant dense<0.000000e+00> : vector<69x69xf32>
    %327 = tpu.matmul %324, %325, %cst_175 {dimension_numbers = #tpu.dot_dimension_numbers<[1], [1], [0], [0], [0, 0, 1, 0], [], []>} : vector<69x8xf32>, vector<69x8xf32>, vector<69x69xf32> -> vector<69x69xf32>
    %cst_176 = arith.constant 0.353553385 : f32
    %328 = vector.broadcast %cst_176 : f32 to vector<69x69xf32>
    %329 = arith.mulf %327, %328 : vector<69x69xf32>
    %cst_177 = arith.constant dense<0xFF800000> : vector<69xf32>
    %330 = vector.multi_reduction <maximumf>, %329, %cst_177 [1] : vector<69x69xf32> to vector<69xf32>
    %331 = vector.shape_cast %330 : vector<69xf32> to vector<69x1xf32>
    %332 = vector.broadcast %331 : vector<69x1xf32> to vector<69x69xf32>
    %333 = arith.subf %329, %332 : vector<69x69xf32>
    %334 = math.exp %333 : vector<69x69xf32>
    %cst_178 = arith.constant dense<0.000000e+00> : vector<69xf32>
    %335 = vector.multi_reduction <add>, %334, %cst_178 [1] : vector<69x69xf32> to vector<69xf32>
    %336 = vector.shape_cast %335 : vector<69xf32> to vector<69x1xf32>
    %337 = tpu.reciprocal %336 {approx = true} : vector<69x1xf32> -> vector<69x1xf32>
    %338 = vector.broadcast %337 : vector<69x1xf32> to vector<69x69xf32>
    %339 = arith.mulf %334, %338 : vector<69x69xf32>
    %cst_179 = arith.constant dense<0.000000e+00> : vector<69x8xf32>
    %340 = tpu.matmul %339, %326, %cst_179 {dimension_numbers = #tpu.dot_dimension_numbers<[1], [0], [0], [1], [0, 0, 1, 1], [], []>} : vector<69x69xf32>, vector<69x8xf32>, vector<69x8xf32> -> vector<69x8xf32>
    %341 = tpu.concatenate %289, %306, %323, %340 in 1 : vector<69x8xf32>, vector<69x8xf32>, vector<69x8xf32>, vector<69x8xf32> -> vector<69x32xf32>
    %c1_180 = arith.constant 1 : index
    %c0_181 = arith.constant 0 : index
    %c0_182 = arith.constant 0 : index
    %342 = vector.load %arg13[%c1_180, %c0_181, %c0_182] : memref<2x32x32xf32, #tpu.memory_space<vmem>>, vector<1x32x32xf32>
    %343 = vector.shape_cast %342 : vector<1x32x32xf32> to vector<32x32xf32>
    %cst_183 = arith.constant dense<0.000000e+00> : vector<69x32xf32>
    %344 = tpu.matmul %341, %343, %cst_183 {dimension_numbers = #tpu.dot_dimension_numbers<[1], [0], [0], [1], [0, 0, 1, 1], [], []>} : vector<69x32xf32>, vector<32x32xf32>, vector<69x32xf32> -> vector<69x32xf32>
    %345 = arith.addf %241, %344 : vector<69x32xf32>
    %c1_184 = arith.constant 1 : index
    %c0_185 = arith.constant 0 : index
    %c0_186 = arith.constant 0 : index
    %346 = vector.load %arg14[%c1_184, %c0_185, %c0_186] : memref<2x1x32xf32, #tpu.memory_space<vmem>>, vector<1x1x32xf32>
    %347 = vector.shape_cast %346 : vector<1x1x32xf32> to vector<1x32xf32>
    %348 = vector.broadcast %347 : vector<1x32xf32> to vector<69x32xf32>
    %349 = arith.addf %345, %348 : vector<69x32xf32>
    %c1_187 = arith.constant 1 : index
    %c0_188 = arith.constant 0 : index
    %c0_189 = arith.constant 0 : index
    %350 = vector.load %arg15[%c1_187, %c0_188, %c0_189] : memref<2x1x32xf32, #tpu.memory_space<vmem>>, vector<1x1x32xf32>
    %351 = vector.shape_cast %350 : vector<1x1x32xf32> to vector<1x32xf32>
    %c1_190 = arith.constant 1 : index
    %c0_191 = arith.constant 0 : index
    %c0_192 = arith.constant 0 : index
    %352 = vector.load %arg16[%c1_190, %c0_191, %c0_192] : memref<2x1x32xf32, #tpu.memory_space<vmem>>, vector<1x1x32xf32>
    %353 = vector.shape_cast %352 : vector<1x1x32xf32> to vector<1x32xf32>
    %cst_193 = arith.constant dense<0.000000e+00> : vector<69xf32>
    %354 = vector.multi_reduction <add>, %349, %cst_193 [1] : vector<69x32xf32> to vector<69xf32>
    %355 = vector.shape_cast %354 : vector<69xf32> to vector<69x1xf32>
    %cst_194 = arith.constant 3.200000e+01 : f32
    %356 = vector.broadcast %cst_194 : f32 to vector<69x1xf32>
    %357 = arith.divf %355, %356 : vector<69x1xf32>
    %358 = vector.broadcast %357 : vector<69x1xf32> to vector<69x32xf32>
    %359 = arith.subf %349, %358 : vector<69x32xf32>
    %360 = arith.mulf %359, %359 : vector<69x32xf32>
    %cst_195 = arith.constant dense<0.000000e+00> : vector<69xf32>
    %361 = vector.multi_reduction <add>, %360, %cst_195 [1] : vector<69x32xf32> to vector<69xf32>
    %362 = vector.shape_cast %361 : vector<69xf32> to vector<69x1xf32>
    %cst_196 = arith.constant 3.200000e+01 : f32
    %363 = vector.broadcast %cst_196 : f32 to vector<69x1xf32>
    %364 = arith.divf %362, %363 : vector<69x1xf32>
    %cst_197 = arith.constant 9.99999997E-7 : f32
    %365 = vector.broadcast %cst_197 : f32 to vector<69x1xf32>
    %366 = arith.addf %364, %365 : vector<69x1xf32>
    %367 = math.rsqrt %366 : vector<69x1xf32>
    %368 = vector.broadcast %367 : vector<69x1xf32> to vector<69x32xf32>
    %369 = arith.mulf %359, %368 : vector<69x32xf32>
    %370 = vector.broadcast %351 : vector<1x32xf32> to vector<69x32xf32>
    %371 = arith.mulf %369, %370 : vector<69x32xf32>
    %372 = vector.broadcast %353 : vector<1x32xf32> to vector<69x32xf32>
    %373 = arith.addf %371, %372 : vector<69x32xf32>
    %c1_198 = arith.constant 1 : index
    %c0_199 = arith.constant 0 : index
    %c0_200 = arith.constant 0 : index
    %374 = vector.load %arg17[%c1_198, %c0_199, %c0_200] : memref<2x32x64xf32, #tpu.memory_space<vmem>>, vector<1x32x64xf32>
    %375 = vector.shape_cast %374 : vector<1x32x64xf32> to vector<32x64xf32>
    %cst_201 = arith.constant dense<0.000000e+00> : vector<69x64xf32>
    %376 = tpu.matmul %373, %375, %cst_201 {dimension_numbers = #tpu.dot_dimension_numbers<[1], [0], [0], [1], [0, 0, 1, 1], [], []>} : vector<69x32xf32>, vector<32x64xf32>, vector<69x64xf32> -> vector<69x64xf32>
    %c1_202 = arith.constant 1 : index
    %c0_203 = arith.constant 0 : index
    %c0_204 = arith.constant 0 : index
    %377 = vector.load %arg18[%c1_202, %c0_203, %c0_204] : memref<2x1x64xf32, #tpu.memory_space<vmem>>, vector<1x1x64xf32>
    %378 = vector.shape_cast %377 : vector<1x1x64xf32> to vector<1x64xf32>
    %379 = vector.broadcast %378 : vector<1x64xf32> to vector<69x64xf32>
    %380 = arith.addf %376, %379 : vector<69x64xf32>
    %cst_205 = arith.constant 5.000000e-01 : f32
    %381 = vector.broadcast %cst_205 : f32 to vector<69x64xf32>
    %382 = arith.mulf %381, %380 : vector<69x64xf32>
    %cst_206 = arith.constant 0.707106769 : f32
    %383 = vector.broadcast %cst_206 : f32 to vector<69x64xf32>
    %384 = arith.mulf %380, %383 : vector<69x64xf32>
    %385 = math.absf %384 : vector<69x64xf32>
    %cst_207 = arith.constant 0.327591091 : f32
    %386 = vector.broadcast %cst_207 : f32 to vector<69x64xf32>
    %387 = arith.mulf %386, %385 : vector<69x64xf32>
    %cst_208 = arith.constant 1.000000e+00 : f32
    %388 = vector.broadcast %cst_208 : f32 to vector<69x64xf32>
    %389 = arith.addf %388, %387 : vector<69x64xf32>
    %cst_209 = arith.constant 1.000000e+00 : f32
    %390 = vector.broadcast %cst_209 : f32 to vector<69x64xf32>
    %391 = arith.divf %390, %389 : vector<69x64xf32>
    %cst_210 = arith.constant 1.06140542 : f32
    %392 = vector.broadcast %cst_210 : f32 to vector<69x64xf32>
    %393 = arith.mulf %392, %391 : vector<69x64xf32>
    %cst_211 = arith.constant -1.45315206 : f32
    %394 = vector.broadcast %cst_211 : f32 to vector<69x64xf32>
    %395 = arith.addf %393, %394 : vector<69x64xf32>
    %396 = arith.mulf %395, %391 : vector<69x64xf32>
    %cst_212 = arith.constant 1.42141378 : f32
    %397 = vector.broadcast %cst_212 : f32 to vector<69x64xf32>
    %398 = arith.addf %396, %397 : vector<69x64xf32>
    %399 = arith.mulf %398, %391 : vector<69x64xf32>
    %cst_213 = arith.constant -0.284496725 : f32
    %400 = vector.broadcast %cst_213 : f32 to vector<69x64xf32>
    %401 = arith.addf %399, %400 : vector<69x64xf32>
    %402 = arith.mulf %401, %391 : vector<69x64xf32>
    %cst_214 = arith.constant 0.254829586 : f32
    %403 = vector.broadcast %cst_214 : f32 to vector<69x64xf32>
    %404 = arith.addf %402, %403 : vector<69x64xf32>
    %405 = arith.mulf %404, %391 : vector<69x64xf32>
    %cst_215 = arith.constant 0.000000e+00 : f32
    %406 = vector.broadcast %cst_215 : f32 to vector<69x64xf32>
    %407 = arith.subf %406, %385 : vector<69x64xf32>
    %408 = arith.mulf %407, %385 : vector<69x64xf32>
    %409 = math.exp %408 : vector<69x64xf32>
    %410 = arith.mulf %405, %409 : vector<69x64xf32>
    %cst_216 = arith.constant 1.000000e+00 : f32
    %411 = vector.broadcast %cst_216 : f32 to vector<69x64xf32>
    %412 = arith.subf %411, %410 : vector<69x64xf32>
    %cst_217 = arith.constant 0.000000e+00 : f32
    %413 = vector.broadcast %cst_217 : f32 to vector<69x64xf32>
    %414 = arith.cmpf oge, %384, %413 : vector<69x64xf32>
    %cst_218 = arith.constant 0.000000e+00 : f32
    %415 = vector.broadcast %cst_218 : f32 to vector<69x64xf32>
    %416 = arith.subf %415, %412 : vector<69x64xf32>
    %417 = arith.select %414, %412, %416 : vector<69x64xi1>, vector<69x64xf32>
    %cst_219 = arith.constant 1.000000e+00 : f32
    %418 = vector.broadcast %cst_219 : f32 to vector<69x64xf32>
    %419 = arith.addf %418, %417 : vector<69x64xf32>
    %420 = arith.mulf %382, %419 : vector<69x64xf32>
    %c1_220 = arith.constant 1 : index
    %c0_221 = arith.constant 0 : index
    %c0_222 = arith.constant 0 : index
    %421 = vector.load %arg19[%c1_220, %c0_221, %c0_222] : memref<2x64x32xf32, #tpu.memory_space<vmem>>, vector<1x64x32xf32>
    %422 = vector.shape_cast %421 : vector<1x64x32xf32> to vector<64x32xf32>
    %cst_223 = arith.constant dense<0.000000e+00> : vector<69x32xf32>
    %423 = tpu.matmul %420, %422, %cst_223 {dimension_numbers = #tpu.dot_dimension_numbers<[1], [0], [0], [1], [0, 0, 1, 1], [], []>} : vector<69x64xf32>, vector<64x32xf32>, vector<69x32xf32> -> vector<69x32xf32>
    %424 = arith.addf %349, %423 : vector<69x32xf32>
    %c1_224 = arith.constant 1 : index
    %c0_225 = arith.constant 0 : index
    %c0_226 = arith.constant 0 : index
    %425 = vector.load %arg20[%c1_224, %c0_225, %c0_226] : memref<2x1x32xf32, #tpu.memory_space<vmem>>, vector<1x1x32xf32>
    %426 = vector.shape_cast %425 : vector<1x1x32xf32> to vector<1x32xf32>
    %427 = vector.broadcast %426 : vector<1x32xf32> to vector<69x32xf32>
    %428 = arith.addf %424, %427 : vector<69x32xf32>
    %c0_227 = arith.constant 0 : index
    %c0_228 = arith.constant 0 : index
    %429 = vector.load %arg21[%c0_227, %c0_228] : memref<1x32xf32, #tpu.memory_space<vmem>>, vector<1x32xf32>
    %c0_229 = arith.constant 0 : index
    %c0_230 = arith.constant 0 : index
    %430 = vector.load %arg22[%c0_229, %c0_230] : memref<1x32xf32, #tpu.memory_space<vmem>>, vector<1x32xf32>
    %cst_231 = arith.constant dense<0.000000e+00> : vector<69xf32>
    %431 = vector.multi_reduction <add>, %428, %cst_231 [1] : vector<69x32xf32> to vector<69xf32>
    %432 = vector.shape_cast %431 : vector<69xf32> to vector<69x1xf32>
    %cst_232 = arith.constant 3.200000e+01 : f32
    %433 = vector.broadcast %cst_232 : f32 to vector<69x1xf32>
    %434 = arith.divf %432, %433 : vector<69x1xf32>
    %435 = vector.broadcast %434 : vector<69x1xf32> to vector<69x32xf32>
    %436 = arith.subf %428, %435 : vector<69x32xf32>
    %437 = arith.mulf %436, %436 : vector<69x32xf32>
    %cst_233 = arith.constant dense<0.000000e+00> : vector<69xf32>
    %438 = vector.multi_reduction <add>, %437, %cst_233 [1] : vector<69x32xf32> to vector<69xf32>
    %439 = vector.shape_cast %438 : vector<69xf32> to vector<69x1xf32>
    %cst_234 = arith.constant 3.200000e+01 : f32
    %440 = vector.broadcast %cst_234 : f32 to vector<69x1xf32>
    %441 = arith.divf %439, %440 : vector<69x1xf32>
    %cst_235 = arith.constant 9.99999997E-7 : f32
    %442 = vector.broadcast %cst_235 : f32 to vector<69x1xf32>
    %443 = arith.addf %441, %442 : vector<69x1xf32>
    %444 = math.rsqrt %443 : vector<69x1xf32>
    %445 = vector.broadcast %444 : vector<69x1xf32> to vector<69x32xf32>
    %446 = arith.mulf %436, %445 : vector<69x32xf32>
    %447 = vector.broadcast %429 : vector<1x32xf32> to vector<69x32xf32>
    %448 = arith.mulf %446, %447 : vector<69x32xf32>
    %449 = vector.broadcast %430 : vector<1x32xf32> to vector<69x32xf32>
    %450 = arith.addf %448, %449 : vector<69x32xf32>
    %cst_236 = arith.constant dense<0.000000e+00> : vector<32xf32>
    %451 = vector.multi_reduction <add>, %450, %cst_236 [0] : vector<69x32xf32> to vector<32xf32>
    %452 = vector.shape_cast %451 : vector<32xf32> to vector<1x32xf32>
    %cst_237 = arith.constant 6.900000e+01 : f32
    %453 = vector.broadcast %cst_237 : f32 to vector<1x32xf32>
    %454 = arith.divf %452, %453 : vector<1x32xf32>
    %c0_238 = arith.constant 0 : index
    %c0_239 = arith.constant 0 : index
    %455 = vector.load %arg23[%c0_238, %c0_239] : memref<32x10xf32, #tpu.memory_space<vmem>>, vector<32x10xf32>
    %cst_240 = arith.constant dense<0.000000e+00> : vector<1x10xf32>
    %456 = tpu.matmul %454, %455, %cst_240 {dimension_numbers = #tpu.dot_dimension_numbers<[1], [0], [0], [1], [0, 0, 1, 1], [], []>} : vector<1x32xf32>, vector<32x10xf32>, vector<1x10xf32> -> vector<1x10xf32>
    %c0_241 = arith.constant 0 : index
    %c0_242 = arith.constant 0 : index
    %457 = vector.load %arg24[%c0_241, %c0_242] : memref<1x10xf32, #tpu.memory_space<vmem>>, vector<1x10xf32>
    %458 = arith.addf %456, %457 : vector<1x10xf32>
    %c0_243 = arith.constant 0 : index
    %c0_244 = arith.constant 0 : index
    %c0_245 = arith.constant 0 : index
    %459 = vector.load %arg25[%c0_243, %c0_244, %c0_245] : memref<1x1x10xf32, #tpu.memory_space<vmem>>, vector<1x1x10xf32>
    %460 = vector.shape_cast %459 : vector<1x1x10xf32> to vector<1x10xf32>
    %461 = vector.shape_cast %458 : vector<1x10xf32> to vector<1x1x10xf32>
    tpu.vector_store %arg25[%c0_243, %c0_244, %c0_245], %461 {strides = array<i32>} : memref<1x1x10xf32, #tpu.memory_space<vmem>>, vector<1x1x10xf32>,
    return
  }
  func.func @transform_0(%arg0: i32) -> (i32, i32, i32) {
    %c0_i32 = arith.constant 0 : i32
    %c0_i32_0 = arith.constant 0 : i32
    %c0_i32_1 = arith.constant 0 : i32
    return %arg0, %c0_i32, %c0_i32_0 : i32, i32, i32
  }
  func.func @transform_1(%arg0: i32) -> (i32, i32) {
    %c0_i32 = arith.constant 0 : i32
    %c0_i32_0 = arith.constant 0 : i32
    %c0_i32_1 = arith.constant 0 : i32
    return %c0_i32, %c0_i32_0 : i32, i32
  }
  func.func @transform_2(%arg0: i32) -> (i32, i32) {
    %c0_i32 = arith.constant 0 : i32
    %c0_i32_0 = arith.constant 0 : i32
    %c0_i32_1 = arith.constant 0 : i32
    return %c0_i32, %c0_i32_0 : i32, i32
  }
  func.func @transform_3(%arg0: i32) -> (i32, i32) {
    %c0_i32 = arith.constant 0 : i32
    %c0_i32_0 = arith.constant 0 : i32
    %c0_i32_1 = arith.constant 0 : i32
    return %c0_i32, %c0_i32_0 : i32, i32
  }
  func.func @transform_4(%arg0: i32) -> (i32, i32) {
    %c0_i32 = arith.constant 0 : i32
    %c0_i32_0 = arith.constant 0 : i32
    %c0_i32_1 = arith.constant 0 : i32
    return %c0_i32, %c0_i32_0 : i32, i32
  }
  func.func @transform_5(%arg0: i32) -> (i32, i32) {
    %c0_i32 = arith.constant 0 : i32
    %c0_i32_0 = arith.constant 0 : i32
    %c0_i32_1 = arith.constant 0 : i32
    return %c0_i32, %c0_i32_0 : i32, i32
  }
  func.func @transform_6(%arg0: i32) -> (i32, i32) {
    %c0_i32 = arith.constant 0 : i32
    %c0_i32_0 = arith.constant 0 : i32
    %c0_i32_1 = arith.constant 0 : i32
    return %c0_i32, %c0_i32_0 : i32, i32
  }
  func.func @transform_7(%arg0: i32) -> (i32, i32) {
    %c0_i32 = arith.constant 0 : i32
    %c0_i32_0 = arith.constant 0 : i32
    %c0_i32_1 = arith.constant 0 : i32
    return %c0_i32, %c0_i32_0 : i32, i32
  }
  func.func @transform_8(%arg0: i32) -> (i32, i32, i32) {
    %c0_i32 = arith.constant 0 : i32
    %c0_i32_0 = arith.constant 0 : i32
    %c0_i32_1 = arith.constant 0 : i32
    %c0_i32_2 = arith.constant 0 : i32
    return %c0_i32, %c0_i32_0, %c0_i32_1 : i32, i32, i32
  }
  func.func @transform_9(%arg0: i32) -> (i32, i32, i32) {
    %c0_i32 = arith.constant 0 : i32
    %c0_i32_0 = arith.constant 0 : i32
    %c0_i32_1 = arith.constant 0 : i32
    %c0_i32_2 = arith.constant 0 : i32
    return %c0_i32, %c0_i32_0, %c0_i32_1 : i32, i32, i32
  }
  func.func @transform_10(%arg0: i32) -> (i32, i32, i32) {
    %c0_i32 = arith.constant 0 : i32
    %c0_i32_0 = arith.constant 0 : i32
    %c0_i32_1 = arith.constant 0 : i32
    %c0_i32_2 = arith.constant 0 : i32
    return %c0_i32, %c0_i32_0, %c0_i32_1 : i32, i32, i32
  }
  func.func @transform_11(%arg0: i32) -> (i32, i32, i32) {
    %c0_i32 = arith.constant 0 : i32
    %c0_i32_0 = arith.constant 0 : i32
    %c0_i32_1 = arith.constant 0 : i32
    %c0_i32_2 = arith.constant 0 : i32
    return %c0_i32, %c0_i32_0, %c0_i32_1 : i32, i32, i32
  }
  func.func @transform_12(%arg0: i32) -> (i32, i32, i32) {
    %c0_i32 = arith.constant 0 : i32
    %c0_i32_0 = arith.constant 0 : i32
    %c0_i32_1 = arith.constant 0 : i32
    %c0_i32_2 = arith.constant 0 : i32
    return %c0_i32, %c0_i32_0, %c0_i32_1 : i32, i32, i32
  }
  func.func @transform_13(%arg0: i32) -> (i32, i32, i32) {
    %c0_i32 = arith.constant 0 : i32
    %c0_i32_0 = arith.constant 0 : i32
    %c0_i32_1 = arith.constant 0 : i32
    %c0_i32_2 = arith.constant 0 : i32
    return %c0_i32, %c0_i32_0, %c0_i32_1 : i32, i32, i32
  }
  func.func @transform_14(%arg0: i32) -> (i32, i32, i32) {
    %c0_i32 = arith.constant 0 : i32
    %c0_i32_0 = arith.constant 0 : i32
    %c0_i32_1 = arith.constant 0 : i32
    %c0_i32_2 = arith.constant 0 : i32
    return %c0_i32, %c0_i32_0, %c0_i32_1 : i32, i32, i32
  }
  func.func @transform_15(%arg0: i32) -> (i32, i32, i32) {
    %c0_i32 = arith.constant 0 : i32
    %c0_i32_0 = arith.constant 0 : i32
    %c0_i32_1 = arith.constant 0 : i32
    %c0_i32_2 = arith.constant 0 : i32
    return %c0_i32, %c0_i32_0, %c0_i32_1 : i32, i32, i32
  }
  func.func @transform_16(%arg0: i32) -> (i32, i32, i32) {
    %c0_i32 = arith.constant 0 : i32
    %c0_i32_0 = arith.constant 0 : i32
    %c0_i32_1 = arith.constant 0 : i32
    %c0_i32_2 = arith.constant 0 : i32
    return %c0_i32, %c0_i32_0, %c0_i32_1 : i32, i32, i32
  }
  func.func @transform_17(%arg0: i32) -> (i32, i32, i32) {
    %c0_i32 = arith.constant 0 : i32
    %c0_i32_0 = arith.constant 0 : i32
    %c0_i32_1 = arith.constant 0 : i32
    %c0_i32_2 = arith.constant 0 : i32
    return %c0_i32, %c0_i32_0, %c0_i32_1 : i32, i32, i32
  }
  func.func @transform_18(%arg0: i32) -> (i32, i32, i32) {
    %c0_i32 = arith.constant 0 : i32
    %c0_i32_0 = arith.constant 0 : i32
    %c0_i32_1 = arith.constant 0 : i32
    %c0_i32_2 = arith.constant 0 : i32
    return %c0_i32, %c0_i32_0, %c0_i32_1 : i32, i32, i32
  }
  func.func @transform_19(%arg0: i32) -> (i32, i32, i32) {
    %c0_i32 = arith.constant 0 : i32
    %c0_i32_0 = arith.constant 0 : i32
    %c0_i32_1 = arith.constant 0 : i32
    %c0_i32_2 = arith.constant 0 : i32
    return %c0_i32, %c0_i32_0, %c0_i32_1 : i32, i32, i32
  }
  func.func @transform_20(%arg0: i32) -> (i32, i32) {
    %c0_i32 = arith.constant 0 : i32
    %c0_i32_0 = arith.constant 0 : i32
    %c0_i32_1 = arith.constant 0 : i32
    return %c0_i32, %c0_i32_0 : i32, i32
  }
  func.func @transform_21(%arg0: i32) -> (i32, i32) {
    %c0_i32 = arith.constant 0 : i32
    %c0_i32_0 = arith.constant 0 : i32
    %c0_i32_1 = arith.constant 0 : i32
    return %c0_i32, %c0_i32_0 : i32, i32
  }
  func.func @transform_22(%arg0: i32) -> (i32, i32) {
    %c0_i32 = arith.constant 0 : i32
    %c0_i32_0 = arith.constant 0 : i32
    %c0_i32_1 = arith.constant 0 : i32
    return %c0_i32, %c0_i32_0 : i32, i32
  }
  func.func @transform_23(%arg0: i32) -> (i32, i32) {
    %c0_i32 = arith.constant 0 : i32
    %c0_i32_0 = arith.constant 0 : i32
    %c0_i32_1 = arith.constant 0 : i32
    return %c0_i32, %c0_i32_0 : i32, i32
  }
  func.func @transform_24(%arg0: i32) -> (i32, i32, i32) {
    %c0_i32 = arith.constant 0 : i32
    %c0_i32_0 = arith.constant 0 : i32
    %c0_i32_1 = arith.constant 0 : i32
    return %arg0, %c0_i32, %c0_i32_0 : i32, i32, i32
  }
}

</mosaic_0001>

<bundles_post_ra>
// kernel: simple_vit_forward.1
= control target key start
LH: loop header
LB: loop body
LE: loop exit
PB: predicated region body
PF: predicated region fallthrough
CT: control target
= control target key end

     0   :  { %s15684_s0 = inlined_call_operand.vmem [shape: f32[2,64,48], index: 0, kind: input, shape index: {}]   ;;  %s15685_s1 = inlined_call_operand.vmem [shape: f32[48,32], index: 1, kind: input, shape index: {}]   ;;  %s15686_s2 = inlined_call_operand.vmem [shape: f32[1,32], index: 2, kind: input, shape index: {}]   ;;  %s15687_s3 = inlined_call_operand.vmem [shape: f32[288,32], index: 3, kind: input, shape index: {}]   ;;  %s15688_s4 = inlined_call_operand.vmem [shape: f32[1,32], index: 4, kind: input, shape index: {}]   ;;  %s15689_s5 = inlined_call_operand.vmem [shape: f32[4,64], index: 5, kind: input, shape index: {}]   ;;  %s15690_s6 = inlined_call_operand.vmem [shape: f32[32,32], index: 6, kind: input, shape index: {}]   ;;  %s15691_s7 = inlined_call_operand.vmem [shape: f32[1,32], index: 7, kind: input, shape index: {}]   ;;  %s15692_s8 = inlined_call_operand.vmem [shape: f32[2,1,32], index: 8, kind: input, shape index: {}]   ;;  %s15693_s9 = inlined_call_operand.vmem [shape: f32[2,1,32], index: 9, kind: input, shape index: {}]   ;;  %s15694_s10 = inlined_call_operand.vmem [shape: f32[2,32,96], index: 10, kind: input, shape index: {}]   ;;  %s15695_s11 = inlined_call_operand.vmem [shape: f32[2,1,96], index: 11, kind: input, shape index: {}]   ;;  %s15696_s12 = inlined_call_operand.vmem [shape: f32[2,32,32], index: 12, kind: input, shape index: {}]   ;;  %s15697_s13 = inlined_call_operand.vmem [shape: f32[2,1,32], index: 13, kind: input, shape index: {}]   ;;  %s15698_s14 = inlined_call_operand.vmem [shape: f32[2,1,32], index: 14, kind: input, shape index: {}]   ;;  %s15699_s15 = inlined_call_operand.vmem [shape: f32[2,1,32], index: 15, kind: input, shape index: {}]   ;;  %s15700_s16 = inlined_call_operand.vmem [shape: f32[2,32,64], index: 16, kind: input, shape index: {}]   ;;  %s15701_s17 = inlined_call_operand.vmem [shape: f32[2,1,64], index: 17, kind: input, shape index: {}]   ;;  %s15702_s18 = inlined_call_operand.vmem [shape: f32[2,64,32], index: 18, kind: input, shape index: {}]   ;;  %s15703_s19 = inlined_call_operand.vmem [shape: f32[2,1,32], index: 19, kind: input, shape index: {}]   ;;  %s15704_s20 = inlined_call_operand.vmem [shape: f32[1,32], index: 20, kind: input, shape index: {}]   ;;  %s15705_s21 = inlined_call_operand.vmem [shape: f32[1,32], index: 21, kind: input, shape index: {}]   ;;  %s15706_s22 = inlined_call_operand.vmem [shape: f32[32,10], index: 22, kind: input, shape index: {}]   ;;  %s15707_s23 = inlined_call_operand.vmem [shape: f32[1,10], index: 23, kind: input, shape index: {}]   ;;  %s15708_s24 = inlined_call_operand.hbm [shape: f32[2,1,10], index: 24, kind: output, shape index: {}]  }
   0x1   :  { %15780 = sst [smem:[#allocation25_spill]] %s15684_s0 }
   0x2   :  { %15781 = sst [smem:[#allocation26_spill]] %s15685_s1 }
   0x3   :  { %15782 = sst [smem:[#allocation27_spill]] %s15686_s2 }
   0x4   :  { %15783 = sst [smem:[#allocation28_spill]] %s15687_s3 }
   0x5   :  { %15784 = sst [smem:[#allocation29_spill]] %s15688_s4 }
   0x6   :  { %15785 = sst [smem:[#allocation30_spill]] %s15689_s5 }
   0x7   :  { %15786 = sst [smem:[#allocation31_spill]] %s15690_s6 }
   0x8   :  { %15787 = sst [smem:[#allocation32_spill]] %s15691_s7 }
   0x9   :  { %15788 = sst [smem:[#allocation33_spill]] %s15692_s8 }
   0xa   :  { %29 = vsyncpa [#allocation4], 0 }
   0xb   :  { %31 = vsyncpa [#allocation4 + $0x1], 0  ;;  %s11768_s5 = smov 0   ;;  %s11770_s26 = smov 0  }
   0xc   :  { %s11772_s27 = smov 0   ;;  %s11774_s28 = smov 0  }
   0xd LB: > { %15789 = sst [smem:[#allocation6_spill]] %s11610_s5  ;;  %s11789_s6 = sadd.s32 4294967295, %s11622_s28   ;;  %s11622_s28 = sphi %s11774_s28, %s15878_s28   ;;  %s11618_s27 = sphi %s11772_s27, %s15880_s27   ;;  %s11614_s26 = sphi %s11770_s26, %s15882_s26   ;;  %s11610_s5 = sphi %s11768_s5, %s15881_s5  }
   0xe   : > { %15790 = sst [smem:[#allocation7_spill]] %s11618_s27  ;;  %s8277_s2 = sadd.s32 4294967294, %s11622_s28  }
   0xf   : > { %15791 = sst [smem:[#allocation8_spill]] %s11622_s28  ;;  %s11793_s29 = sadd.s32 1, %s11622_s28  }
  0x10   : > { %15792 = sst [smem:[#allocation9_spill]] %s11793_s29  ;;  %s553_s0 = sadd.s32 1, %s11618_s27 }
  0x11   : > { %s550_s7 = ssub.s32 %s11622_s28, %s11793_s29  ;;  %p563_p0 = scmp.ne.s32.totalorder %s11618_s27, %s11614_s26 }
  0x12   : > { %p551_p1 = scmp.eq.s32.totalorder %s550_s7, 0  ;;  %p564_p2 = scmp.eq.s32.totalorder %s11789_s6, 1 }
  0x13   : > { %p569_p3 = scmp.ne.s32.totalorder %s11614_s26, %s11610_s5  ;;  %p570_p4 = scmp.eq.s32.totalorder %s8277_s2, 1 }
  0x14   : > { %s11804_s30 = scalar_select %p551_p1, %s11618_s27, %s553_s0  }
  0x15   : > { %p11806_p5 = por %p564_p2, %p563_p0  ;;  %p11810_p6 = por %p570_p4, %p569_p3 }
  0x16   : > { %15793 = sst [smem:[#allocation10_spill]] %s11804_s30  ;;  %p8280_p7 = scmp.ge.s32.totalorder %s11622_s28, 1 }
  0x17   : > { %s15795_s25 = scalar_select %p11810_p6, 1, 0 }
  0x18   : > { %p665_p8 = scmp.lt.s32.totalorder %s11622_s28, 3 }
  0x19   : > { %15796 = sst [smem:[#allocation11_spill]] %s15795_s25 }
  0x1a   : > { %p666_p9 = pnand %p8280_p7, %p665_p8 }
  0x1c   : > { %669 = sbr.rel (%p666_p9) target bundleno = 7152 (0x1bf0), region = 116 }
  0x23   : > { %s15797_s1 = sld [smem:[#allocation26_spill]]  ;;  %p730_p10 = scmp.lt.s32.totalorder %s11789_s6, 1  ;;  %vm756_vm0 = vcmask 392192   ;;  %vm886_vm1 = vcmask 261120   ;;  %vm888_vm2 = vcmask 254976   ;;  %v15729_v17 = vmov 0.0  }
  0x24   : > { %s15798_s27 = sld [smem:[#allocation25_spill]]  ;;  %892 = vst.msk [vmem:[#allocation2 + $0x20] sm:$0xff] %vm886_vm1, %v15729_v17  ;;  %887 = vst.msk [vmem:[#allocation2] sm:$0xff] %vm886_vm1, %v15729_v17  ;;  %s15799_s8 = sld [smem:[#allocation28_spill]]  ;;  %vm1190_vm3 = vcmask 523264   ;;  %vm1199_vm4 = vcmask 785408  }
  0x25   : > { %s731_s2 = scalar_select %p730_p10, %s11789_s6, 1  ;;  %893 = vst.msk [vmem:[#allocation2 + $0x28] sm:$0x3] %vm888_vm2, %v15729_v17  ;;  %889 = vst.msk [vmem:[#allocation2 + $0x8] sm:$0x3] %vm888_vm2, %v15729_v17  ;;  %vm11629_vm5 = vmmov 0  }
  0x26   : > { %890 = vst.msk [vmem:[#allocation2 + $0x10] sm:$0xff] %vm886_vm1, %v15729_v17  ;;  %894 = vst.msk [vmem:[#allocation2 + $0x30] sm:$0xff] %vm886_vm1, %v15729_v17  ;;  %s15720_s5 = smov 64   ;;  %s15722_s25 = smov 96   ;;  %vm1685_vm6 = vcmask 257024   ;;  %vm1695_vm7 = vcmask 1043456  }
  0x27   : > { %s8650_s30 = sshll.u32 %s731_s2, 6  ;;  %891 = vst.msk [vmem:[#allocation2 + $0x18] sm:$0x3] %vm888_vm2, %v15729_v17  ;;  %895 = vst.msk [vmem:[#allocation2 + $0x38] sm:$0x3] %vm888_vm2, %v15729_v17  ;;  %s11627_s4 = smov 32  }
  0x28   : > { %896 = vst.msk [vmem:[#allocation2 + $0x40] sm:$0xff] %vm886_vm1, %v15729_v17  ;;  %898 = vst.msk [vmem:[#allocation2 + $0x50] sm:$0xff] %vm886_vm1, %v15729_v17  ;;  %s15813_s0 = sld [smem:[#allocation33_spill]]  ;;  %vm1723_vm8 = vcmask 258048   ;;  %s15759_s2 = smov 88   ;;  %vm2023_vm9 = vcmask 64512  }
  0x29   : > { %v743_v0 = vld [vmem:[%s15797_s1] sm:$0xff]  ;;  %v744_v1 = vld [vmem:[%s15797_s1 + $0x8] sm:$0xff]  ;;  %v745_v2 = vld [vmem:[%s15797_s1 + $0x10] sm:$0xff]  ;;  %897 = vst.msk [vmem:[#allocation2 + $0x48] sm:$0x3] %vm888_vm2, %v15729_v17  ;;  %s15725_s7 = smov 104  }
  0x2a   : > { %v10253_v3 = vpack.c.bf16 %v744_v1, %v743_v0  ;;  %v746_v4 = vld [vmem:[%s15797_s1 + $0x18] sm:$0xff]  ;;  %v747_v6 = vld [vmem:[%s15797_s1 + $0x20] sm:$0xff]  ;;  %v748_v7 = vld [vmem:[%s15797_s1 + $0x28] sm:$0xff]  ;;  %s734_s29 = scalar_lea.vmem %s15798_s27, %s8650_s30  ;;  %899 = vst.msk [vmem:[#allocation2 + $0x58] sm:$0x3] %vm888_vm2, %v15729_v17  ;;  %s15800_s30 = sld [smem:[#allocation27_spill]] }
  0x2b   : > { %v10257_v5 = vpack.c.bf16 %v746_v4, %v745_v2  ;;  %v10261_v8 = vpack.c.bf16 %v748_v7, %v747_v6  ;;  %v735_v9 = vld [vmem:[%s734_s29] sm:$0xff]  ;;  %v736_v10 = vld [vmem:[%s734_s29 + $0x8] sm:$0xff]  ;;  %v737_v11 = vld [vmem:[%s734_s29 + $0x10] sm:$0xff]  ;;  %900 = vst.msk [vmem:[#allocation2 + $0x60] sm:$0xff] %vm886_vm1, %v15729_v17  ;;  %s15810_s27 = sld [smem:[#allocation31_spill]]  ;;  %s15816_s1 = smov 96  }
  0x2c   : > { %10254 = vmatprep.subr.bf16.mxu0 %v10253_v3  ;;  %9164 = vmatprep.mubr.msk.f32.mxu0 %vm756_vm0, %v735_v9  ;;  %v738_v12 = vld [vmem:[%s734_s29 + $0x18] sm:$0xff]  ;;  %v739_v13 = vld [vmem:[%s734_s29 + $0x20] sm:$0xff]  ;;  %v740_v14 = vld [vmem:[%s734_s29 + $0x28] sm:$0xff]  ;;  %901 = vst.msk [vmem:[#allocation2 + $0x68] sm:$0x3] %vm888_vm2, %v15729_v17  ;;  %s15749_s28 = smov 56  }
  0x2d   : > { %10256 = vmatpush3.bf16.msra.mxu0 %v10253_v3  ;;  %v741_v15 = vld [vmem:[%s734_s29 + $0x30] sm:$0xff]  ;;  %v742_v16 = vld [vmem:[%s734_s29 + $0x38] sm:$0xff]  ;;  %902 = vst.msk [vmem:[#allocation2 + $0x70] sm:$0xff] %vm886_vm1, %v15729_v17  ;;  %904 = vst.msk [vmem:[#allocation2 + $0x80] sm:$0xff] %vm886_vm1, %v15729_v17  ;;  %vm2333_vm11 = vcmask 1044480   ;;  %vm2179_vm12 = vcmask 564224  }
  0x2e   : > { %10258 = vmatprep.subr.bf16.mxu0 %v10257_v5  ;;  %903 = vst.msk [vmem:[#allocation2 + $0x78] sm:$0x3] %vm888_vm2, %v15729_v17  ;;  %905 = vst.msk [vmem:[#allocation2 + $0x88] sm:$0x3] %vm888_vm2, %v15729_v17  ;;  %v1264_v18 = vld [vmem:[%s15799_s8 + $0x100] sm:$0xff]  ;;  %v1265_v19 = vld [vmem:[%s15799_s8 + $0x108] sm:$0xff] }
  0x2f   : > { %906 = vst.msk [vmem:[#allocation2 + $0x90] sm:$0xff] %vm886_vm1, %v15729_v17  ;;  %v10297_v20 = vpack.c.bf16 %v1265_v19, %v1264_v18  ;;  %v1266_v21 = vld [vmem:[%s15799_s8 + $0x110] sm:$0xff]  ;;  %v1267_v22 = vld [vmem:[%s15799_s8 + $0x118] sm:$0xff]  ;;  %v1248_v24 = vld [vmem:[%s15799_s8 + $0x80] sm:$0xff]  ;;  %vm2204_vm13 = vcmask 561152   ;;  %vm3928_vm14 = vcmask 130048  }
  0x30   : > { %907 = vst.msk [vmem:[#allocation2 + $0x98] sm:$0x3] %vm888_vm2, %v15729_v17  ;;  %v10301_v23 = vpack.c.bf16 %v1267_v22, %v1266_v21  ;;  %v1249_v25 = vld [vmem:[%s15799_s8 + $0x88] sm:$0xff]  ;;  %v1232_v27 = vld [vmem:[%s15799_s8] sm:$0xff]  ;;  %v1250_v29 = vld [vmem:[%s15799_s8 + $0x90] sm:$0xff]  ;;  %vm3938_vm15 = vcmask 195584  }
  0x31   : > { %10260 = vmatpush3.bf16.msra.mxu0 %v10257_v5  ;;  %v10265_v26 = vpack.c.bf16 %v1249_v25, %v1248_v24  ;;  %v1233_v28 = vld [vmem:[%s15799_s8 + $0x8] sm:$0xff]  ;;  %v1251_v31 = vld [vmem:[%s15799_s8 + $0x98] sm:$0xff]  ;;  %v1234_v32 = vld [vmem:[%s15799_s8 + $0x10] sm:$0xff]  ;;  %s15811_s29 = smov %s15810_s27 }
  0x32   : > { %10262 = vmatprep.subr.bf16.mxu0 %v10261_v8  ;;  %v10267_v30 = vpack.c.bf16 %v1233_v28, %v1232_v27  ;;  %v1235_v33 = vld [vmem:[%s15799_s8 + $0x18] sm:$0xff]  ;;  %v10269_v34 = vpack.c.bf16 %v1251_v31, %v1250_v29  ;;  %v1252_v35 = vld [vmem:[%s15799_s8 + $0xa0] sm:$0xff]  ;;  %v1253_v36 = vld [vmem:[%s15799_s8 + $0xa8] sm:$0xff] }
  0x33   : > { %10266 = vmatprep.subr.bf16.mxu1 %v10265_v26  ;;  %v10271_v37 = vpack.c.bf16 %v1235_v33, %v1234_v32  ;;  %v10273_v38 = vpack.c.bf16 %v1253_v36, %v1252_v35  ;;  %v1236_v39 = vld [vmem:[%s15799_s8 + $0x20] sm:$0xff]  ;;  %v1237_v40 = vld [vmem:[%s15799_s8 + $0x28] sm:$0xff]  ;;  %v1254_v41 = vld [vmem:[%s15799_s8 + $0xb0] sm:$0xff] }
  0x34   : > { %10268 = vmatpush3.bf16.msra.mxu1 %v10267_v30  ;;  %v1255_v42 = vld [vmem:[%s15799_s8 + $0xb8] sm:$0xff]  ;;  %v10275_v43 = vpack.c.bf16 %v1237_v40, %v1236_v39  ;;  %v1238_v45 = vld [vmem:[%s15799_s8 + $0x30] sm:$0xff]  ;;  %v1256_v47 = vld [vmem:[%s15799_s8 + $0xc0] sm:$0xff] }
  0x35   : > { %10264 = vmatpush3.bf16.msra.mxu0 %v10261_v8  ;;  %10270 = vmatprep.subr.bf16.mxu1 %v10269_v34  ;;  %v10277_v44 = vpack.c.bf16 %v1255_v42, %v1254_v41  ;;  %v1239_v46 = vld [vmem:[%s15799_s8 + $0x38] sm:$0xff]  ;;  %v1257_v48 = vld [vmem:[%s15799_s8 + $0xc8] sm:$0xff]  ;;  %v1240_v51 = vld [vmem:[%s15799_s8 + $0x40] sm:$0xff] }
  0x36   : > { %10298 = vmatprep.subr.bf16.mxu0 %v10297_v20  ;;  %v10279_v49 = vpack.c.bf16 %v1239_v46, %v1238_v45  ;;  %v10281_v50 = vpack.c.bf16 %v1257_v48, %v1256_v47  ;;  %v1241_v52 = vld [vmem:[%s15799_s8 + $0x48] sm:$0xff]  ;;  %v1258_v53 = vld [vmem:[%s15799_s8 + $0xd0] sm:$0xff]  ;;  %v1259_v54 = vld [vmem:[%s15799_s8 + $0xd8] sm:$0xff] }
  0x37   : > { %v10283_v55 = vpack.c.bf16 %v1241_v52, %v1240_v51  ;;  %v10285_v56 = vpack.c.bf16 %v1259_v54, %v1258_v53  ;;  %v1242_v57 = vld [vmem:[%s15799_s8 + $0x50] sm:$0xff]  ;;  %v1243_v58 = vld [vmem:[%s15799_s8 + $0x58] sm:$0xff]  ;;  %v8283_v60 = vld [vmem:[%s15800_s30] ss:$0 sm:$0xff]  ;;  %s15809_s30 = sld [smem:[#allocation29_spill]] }
  0x38   : > { %9165 = vmatmul.mubr.msk.f32.vlgmr.msra.gmra.mrb[0].mxu0 %vm756_vm0, %v736_v10  ;;  %10272 = vmatpush3.bf16.msra.mxu1 %v10271_v37  ;;  %v10287_v59 = vpack.c.bf16 %v1243_v58, %v1242_v57  ;;  %v1260_v61 = vld [vmem:[%s15799_s8 + $0xe0] sm:$0xff]  ;;  %v1261_v62 = vld [vmem:[%s15799_s8 + $0xe8] sm:$0xff]  ;;  %v1262_v7 = vld [vmem:[%s15799_s8 + $0xf0] sm:$0xff] }
  0x39   : > { %9167 = vmatprep.mubr.msk.f32.mxu0 %vm756_vm0, %v737_v11  ;;  %10300 = vmatpush3.bf16.msra.mxu0 %v10297_v20  ;;  %v10289_v0 = vpack.c.bf16 %v1261_v62, %v1260_v61  ;;  %v1244_v1 = vld [vmem:[%s15799_s8 + $0x60] sm:$0xff]  ;;  %v1245_v2 = vld [vmem:[%s15799_s8 + $0x68] sm:$0xff]  ;;  %v1263_v8 = vld [vmem:[%s15799_s8 + $0xf8] sm:$0xff] }
  0x3a   : > { %10302 = vmatprep.subr.bf16.mxu0 %v10301_v23  ;;  %10274 = vmatprep.subr.bf16.mxu1 %v10273_v38  ;;  %v10291_v5 = vpack.c.bf16 %v1245_v2, %v1244_v1  ;;  %v10293_v10 = vpack.c.bf16 %v1263_v8, %v1262_v7  ;;  %v1246_v11 = vld [vmem:[%s15799_s8 + $0x70] sm:$0xff]  ;;  %v933_v19 = vld [vmem:[#allocation2 + $0x2] sm:$0xff]  ;;  %vm12427_vm10 = vmpackc.low %vm2023_vm9, %vm2023_vm9 }
  0x3b   : > { %v925_v29 = vld [vmem:[#allocation2 + $0x1] sm:$0xff] }
  0x3c   : > { %9168 = vmatmul.mubr.msk.f32.gmra.mrb[2].mxu0 %vm756_vm0, %v738_v12  ;;  %10276 = vmatpush3.bf16.msra.mxu1 %v10275_v43  ;;  %v1247_v12 = vld [vmem:[%s15799_s8 + $0x78] sm:$0xff]  ;;  %s15755_s8 = smov 80  }
  0x3d   : > { %9170 = vmatprep.mubr.msk.f32.mxu0 %vm756_vm0, %v739_v13  ;;  %10304 = vmatpush3.bf16.msra.mxu0 %v10301_v23 }
  0x3e   : > { %10278 = vmatprep.subr.bf16.mxu1 %v10277_v44 }
  0x40   : > { %9171 = vmatmul.mubr.msk.f32.gmra.mrb[4].mxu0 %vm756_vm0, %v740_v14  ;;  %10280 = vmatpush3.bf16.msra.mxu1 %v10279_v49 }
  0x41   : > { %9173 = vmatprep.mubr.msk.f32.mxu0 %vm756_vm0, %v741_v15  ;;  %10282 = vmatprep.subr.bf16.mxu1 %v10281_v50  ;;  %v10295_v15 = vpack.c.bf16 %v1247_v12, %v1246_v11 }
  0x44   : > { %9174 = vmatmul.mubr.msk.f32.gmra.mrb[6].mxu0 %vm756_vm0, %v742_v16  ;;  %10284 = vmatpush3.bf16.msra.mxu1 %v10283_v55 }
  0x45   : > { %10286 = vmatprep.subr.bf16.mxu1 %v10285_v56 }
  0x48   : > { %10288 = vmatpush3.bf16.msra.mxu1 %v10287_v59 }
  0x49   : > { %10290 = vmatprep.subr.bf16.mxu1 %v10289_v0 }
  0x4c   : > { %10292 = vmatpush3.bf16.msra.mxu1 %v10291_v5 }
  0x4d   : > { %10294 = vmatprep.subr.bf16.mxu1 %v10293_v10  ;;  %v989_v10 = vld [vmem:[#allocation2 + $0x92] sm:$0xff] }
  0x50   : > { %10296 = vmatpush3.bf16.msra.mxu1 %v10295_v15  ;;  %v981_v15 = vld [vmem:[#allocation2 + $0x91] sm:$0xff] }
 0x10b   : > { %v9166_v63 = vpop.f32.mrb[0].mxu0 }
 0x10c   : > { %v11986_v3 = vadd.f32 %v9166_v63, %v8283_v60  ;;  %v847_v4 = vpop.f32.mrb[1].mxu0 }
 0x10d   : > { %v11988_v6 = vadd.f32 %v8283_v60, %v847_v4 }
 0x10e   : > { %15801 = vst [vmem:[#allocation12_spill] sm:$0xff] %v11986_v3  ;;  %910 = vst.msk [vmem:[#allocation2 + $0x21] sm:$0xff] %vm886_vm1, %v11986_v3 }
 0x10f   : > { %15802 = vst [vmem:[#allocation13_spill] sm:$0xff] %v11988_v6  ;;  %909 = vst.msk [vmem:[#allocation2 + $0x11] sm:$0xff] %vm886_vm1, %v11988_v6  ;;  %v9169_v9 = vpop.f32.mrb[2].mxu0 }
 0x110   : > { %v12006_v13 = vadd.f32 %v9169_v9, %v8283_v60  ;;  %v857_v14 = vpop.f32.mrb[3].mxu0 }
 0x111   : > { %v12008_v16 = vadd.f32 %v8283_v60, %v857_v14  ;;  %v973_v14 = vld [vmem:[#allocation2 + $0x90] sm:$0xff] }
 0x112   : > { %15803 = vst [vmem:[#allocation14_spill] sm:$0xff] %v12006_v13  ;;  %912 = vst.msk [vmem:[#allocation2 + $0x41] sm:$0xff] %vm886_vm1, %v12006_v13 }
 0x113   : > { %15804 = vst [vmem:[#allocation15_spill] sm:$0xff] %v12008_v16  ;;  %911 = vst.msk [vmem:[#allocation2 + $0x31] sm:$0xff] %vm886_vm1, %v12008_v16  ;;  %v9172_v18 = vpop.f32.mrb[4].mxu0 }
 0x114   : > { %v12014_v20 = vadd.f32 %v9172_v18, %v8283_v60  ;;  %v867_v21 = vpop.f32.mrb[5].mxu0 }
 0x115   : > { %v12016_v22 = vadd.f32 %v8283_v60, %v867_v21  ;;  %v982_v23 = vld [vmem:[#allocation2 + $0x22] sm:$0xff]  ;;  %v1699_v21 = vsel %vm886_vm1, %v11988_v6, 0.0 }
 0x116   : > { %15805 = vst [vmem:[#allocation16_spill] sm:$0xff] %v12014_v20  ;;  %v12018_v24 = vld [vmem:[#allocation2 + $0x20] sm:$0xff]  ;;  %914 = vst.msk [vmem:[#allocation2 + $0x61] sm:$0xff] %vm886_vm1, %v12014_v20  ;;  %9184 = vmatprep.mubr.msk.f32.mxu0 %vm886_vm1, %v982_v23  ;;  %v12026_v27 = vld [vmem:[#allocation2 + $0x10] sm:$0xff] }
 0x117   : > { %15806 = vst [vmem:[#allocation17_spill] sm:$0xff] %v12016_v22  ;;  %v12020_v25 = vld [vmem:[#allocation2 + $0x21] sm:$0xff]  ;;  %v10670_v26 = vpack.i.bf16 %v933_v19, %v12018_v24  ;;  %913 = vst.msk [vmem:[#allocation2 + $0x51] sm:$0xff] %vm886_vm1, %v12016_v22  ;;  %v957_v30 = vld [vmem:[#allocation2 + $0x12] sm:$0xff]  ;;  %v9175_v31 = vpop.f32.mrb[6].mxu0 }
 0x118   : > { %v10680_v28 = vpack.i.bf16 %v12026_v27, %v12020_v25  ;;  %v12033_v32 = vadd.f32 %v9175_v31, %v8283_v60  ;;  %v12035_v33 = vld [vmem:[#allocation2 + $0x11] sm:$0xff]  ;;  %v877_v34 = vpop.f32.mrb[7].mxu0  ;;  %v10675_v38 = vpack.i.bf16 %v925_v29, %v957_v30  ;;  %v1711_v29 = vsel %vm886_vm1, %v12016_v22, 0.0 }
 0x119   : > { %10671 = vrot.lane.b32.xlu0 %v10670_v26, %s15720_s5  ;;  %v984_v35 = vld [vmem:[#allocation2 + $0x42] sm:$0xff]  ;;  %v12038_v36 = vadd.f32 %v8283_v60, %v877_v34  ;;  %v10685_v39 = vpack.i.bf16 %v12035_v33, %v982_v23  ;;  %v1702_v26 = vsel %vm886_vm1, %v11986_v3, 0.0 }
 0x11a   : > { %15807 = vst [vmem:[#allocation18_spill] sm:$0xff] %v12033_v32  ;;  %10681 = vrot.lane.b32.xlu1 %v10680_v28, %s15722_s25  ;;  %v983_v37 = vld [vmem:[#allocation2 + $0x32] sm:$0xff]  ;;  %916 = vst.msk [vmem:[#allocation2 + $0x81] sm:$0xff] %vm886_vm1, %v12033_v32  ;;  %v12050_v41 = vld [vmem:[#allocation2 + $0x40] sm:$0xff]  ;;  %v1708_v28 = vsel %vm886_vm1, %v12006_v13, 0.0  ;;  %v1720_v34 = vsel %vm886_vm1, %v12033_v32, 0.0 }
 0x11b   : > { %15808 = vst [vmem:[#allocation19_spill] sm:$0xff] %v12038_v36  ;;  %9185 = vmatmul.mubr.msk.f32.vlgmr.msra.gmra.mrb[8].mxu0 %vm886_vm1, %v983_v37  ;;  %915 = vst.msk [vmem:[#allocation2 + $0x71] sm:$0xff] %vm886_vm1, %v12038_v36  ;;  %v12046_v40 = vld [vmem:[#allocation2 + $0x30] sm:$0xff]  ;;  %v10690_v45 = vpack.i.bf16 %v982_v23, %v12050_v41  ;;  %v10705_v48 = vpack.i.bf16 %v12020_v25, %v983_v37  ;;  %v12064_v51 = vld [vmem:[#allocation2 + $0x41] sm:$0xff]  ;;  %v1705_v23 = vsel %vm886_vm1, %v12008_v16, 0.0  ;;  %v1717_v31 = vsel %vm886_vm1, %v12038_v36, 0.0 }
 0x11c   : > { %9187 = vmatprep.mubr.msk.f32.mxu0 %vm886_vm1, %v984_v35  ;;  %v10695_v43 = vpack.i.bf16 %v957_v30, %v12046_v40  ;;  %v12057_v46 = vld [vmem:[#allocation2 + $0x31] sm:$0xff]  ;;  %v10710_v52 = vpack.i.bf16 %v12046_v40, %v12064_v51  ;;  %v1714_v30 = vsel %vm886_vm1, %v12014_v20, 0.0 }
 0x11d   : > { %10676 = vrot.lane.b32.xlu0 %v10675_v38, %s11627_s4  ;;  %v986_v42 = vld [vmem:[#allocation2 + $0x62] sm:$0xff]  ;;  %v10700_v50 = vpack.i.bf16 %v12018_v24, %v12057_v46  ;;  %v10715_v53 = vpack.i.bf16 %v12057_v46, %v984_v35 }
 0x11e   : > { %10686 = vrot.lane.b32.xlu1 %v10685_v39, %s11627_s4  ;;  %v985_v44 = vld [vmem:[#allocation2 + $0x52] sm:$0xff]  ;;  %v12076_v55 = vld [vmem:[#allocation2 + $0x60] sm:$0xff] }
 0x11f   : > { %9188 = vmatmul.mubr.msk.f32.gmra.mrb[10].mxu0 %vm886_vm1, %v985_v44  ;;  %v12073_v54 = vld [vmem:[#allocation2 + $0x50] sm:$0xff]  ;;  %v10720_v57 = vpack.i.bf16 %v984_v35, %v12076_v55  ;;  %v10735_v59 = vpack.i.bf16 %v12064_v51, %v985_v44  ;;  %v12088_v61 = vld [vmem:[#allocation2 + $0x61] sm:$0xff] }
 0x120   : > { %9190 = vmatprep.mubr.msk.f32.mxu0 %vm886_vm1, %v986_v42  ;;  %v10725_v56 = vpack.i.bf16 %v983_v37, %v12073_v54  ;;  %v12082_v58 = vld [vmem:[#allocation2 + $0x51] sm:$0xff]  ;;  %v10740_v62 = vpack.i.bf16 %v12073_v54, %v12088_v61  ;;  %v917_v39 = vld [vmem:[#allocation2] sm:$0xff] }
 0x121   : > { %10696 = vrot.lane.b32.xlu0 %v10695_v43, %s15720_s5  ;;  %v988_v47 = vld [vmem:[#allocation2 + $0x82] sm:$0xff]  ;;  %v10730_v60 = vpack.i.bf16 %v12050_v41, %v12082_v58  ;;  %v10745_v63 = vpack.i.bf16 %v12082_v58, %v986_v42 }
 0x122   : > { %10691 = vrot.lane.b32.xlu1 %v10690_v45, %s15720_s5  ;;  %v987_v49 = vld [vmem:[#allocation2 + $0x72] sm:$0xff]  ;;  %v972_v1 = vld [vmem:[#allocation2 + $0x80] sm:$0xff] }
 0x123   : > { %9191 = vmatmul.mubr.msk.f32.gmra.mrb[12].mxu0 %vm886_vm1, %v987_v49  ;;  %v12095_v0 = vld [vmem:[#allocation2 + $0x70] sm:$0xff]  ;;  %v10750_v4 = vpack.i.bf16 %v986_v42, %v972_v1  ;;  %v10765_v7 = vpack.i.bf16 %v12088_v61, %v987_v49  ;;  %v12107_v9 = vld [vmem:[#allocation2 + $0x81] sm:$0xff]  ;;  %v10780_v18 = vpack.i.bf16 %v987_v49, %v973_v14  ;;  %v10785_v19 = vpack.i.bf16 %v972_v1, %v981_v15 }
 0x124   : > { %9193 = vmatprep.mubr.msk.f32.mxu0 %vm886_vm1, %v988_v47  ;;  %v10755_v2 = vpack.i.bf16 %v985_v44, %v12095_v0  ;;  %v12101_v5 = vld [vmem:[#allocation2 + $0x71] sm:$0xff]  ;;  %v10770_v11 = vpack.i.bf16 %v12095_v0, %v12107_v9 }
 0x125   : > { %10706 = vrot.lane.b32.xlu0 %v10705_v48, %s11627_s4  ;;  %v10760_v8 = vpack.i.bf16 %v12076_v55, %v12101_v5  ;;  %v10775_v12 = vpack.i.bf16 %v12101_v5, %v988_v47 }
 0x126   : > { %10701 = vrot.lane.b32.xlu1 %v10700_v50, %s15722_s25 }
 0x127   : > { %9194 = vmatmul.mubr.msk.f32.gmra.mrb[14].mxu0 %vm886_vm1, %v989_v10 }
 0x128   : > { %9212 = vmatprep.mubr.msk.f32.mxu0 %vm11629_vm5, %v15729_v17 }
 0x129   : > { %10711 = vrot.lane.b32.xlu0 %v10710_v52, %s15722_s25 }
 0x12a   : > { %10716 = vrot.lane.b32.xlu1 %v10715_v53, %s11627_s4 }
 0x12d   : > { %10726 = vrot.lane.b32.xlu0 %v10725_v56, %s15720_s5 }
 0x12e   : > { %10721 = vrot.lane.b32.xlu1 %v10720_v57, %s15720_s5 }
 0x131   : > { %10736 = vrot.lane.b32.xlu0 %v10735_v59, %s11627_s4 }
 0x132   : > { %10731 = vrot.lane.b32.xlu1 %v10730_v60, %s15722_s25 }
 0x135   : > { %10741 = vrot.lane.b32.xlu0 %v10740_v62, %s15722_s25 }
 0x136   : > { %10746 = vrot.lane.b32.xlu1 %v10745_v63, %s11627_s4 }
 0x139   : > { %10756 = vrot.lane.b32.xlu0 %v10755_v2, %s15720_s5 }
 0x13a   : > { %10751 = vrot.lane.b32.xlu1 %v10750_v4, %s15720_s5 }
 0x13d   : > { %10766 = vrot.lane.b32.xlu0 %v10765_v7, %s11627_s4 }
 0x13e   : > { %10761 = vrot.lane.b32.xlu1 %v10760_v8, %s15722_s25 }
 0x141   : > { %10771 = vrot.lane.b32.xlu0 %v10770_v11, %s15722_s25 }
 0x142   : > { %10776 = vrot.lane.b32.xlu1 %v10775_v12, %s11627_s4  ;;  %s15747_s4 = smov 48  }
 0x145   : > { %10781 = vrot.lane.b32.xlu0 %v10780_v18, %s15720_s5  ;;  %s15753_s5 = smov 112  }
 0x146   : > { %10786 = vrot.lane.b32.xlu1 %v10785_v19, %s15722_s25  ;;  %s15751_s25 = smov 72  }
 0x164   : > { %1700 = vadd.xlane.f32.xlu0 %v1699_v21 }
 0x168   : > { %1706 = vadd.xlane.f32.xlu0 %v1705_v23 }
 0x16a   : > { %1703 = vadd.xlane.f32.xlu1 %v1702_v26 }
 0x16c   : > { %1709 = vadd.xlane.f32.xlu0 %v1708_v28 }
 0x16e   : > { %1712 = vadd.xlane.f32.xlu1 %v1711_v29 }
 0x170   : > { %1715 = vadd.xlane.f32.xlu0 %v1714_v30 }
 0x172   : > { %1718 = vadd.xlane.f32.xlu1 %v1717_v31 }
 0x174   : > { %1721 = vadd.xlane.f32.xlu0 %v1720_v34 }
 0x18b   : > { %v10672_v35 = vpop.permute.xlu0 %10671 }
 0x18c   : > { %v10682_v37 = vpop.permute.xlu1 %10681  ;;  %v10674_v45 = vunpack.i.h.bf16 %v10672_v35  ;;  %v10673_v47 = vunpack.i.l.bf16 %v10672_v35 }
 0x18d   : > { %v10684_v48 = vunpack.i.h.bf16 %v10682_v37  ;;  %v10683_v49 = vunpack.i.l.bf16 %v10682_v37 }
 0x18f   : > { %v10677_v38 = vpop.permute.xlu0 %10676 }
 0x190   : > { %v10679_v42 = vunpack.i.h.bf16 %v10677_v38  ;;  %v10678_v43 = vunpack.i.l.bf16 %v10677_v38  ;;  %v10687_v44 = vpop.permute.xlu1 %10686 }
 0x191   : > { %v10689_v63 = vunpack.i.h.bf16 %v10687_v44  ;;  %v10688_v1 = vunpack.i.l.bf16 %v10687_v44 }
 0x192   : > { %v1208_v50 = vsel %vm886_vm1, %v12035_v33, %v10678_v43  ;;  %v1182_v52 = vsel %vm886_vm1, %v917_v39, %v10679_v42 }
 0x193   : > { %v10697_v53 = vpop.permute.xlu0 %10696  ;;  %v1216_v56 = vsel %vm1190_vm3, %v1208_v50, %v10673_v47  ;;  %v1191_v57 = vsel %vm1190_vm3, %v1182_v52, %v10674_v45  ;;  %v1209_v14 = vsel %vm886_vm1, %v12020_v25, %v10688_v1  ;;  %v1183_v15 = vsel %vm886_vm1, %v12026_v27, %v10689_v63 }
 0x194   : > { %v10692_v59 = vpop.permute.xlu1 %10691  ;;  %v1224_v60 = vsel %vm1199_vm4, %v1216_v56, %v10683_v49  ;;  %v1200_v62 = vsel %vm1199_vm4, %v1191_v57, %v10684_v48  ;;  %v10699_v2 = vunpack.i.h.bf16 %v10697_v53  ;;  %v10698_v4 = vunpack.i.l.bf16 %v10697_v53 }
 0x195   : > { %1363 = vmatprep.mubr.f32.mxu1 %v1224_v60  ;;  %v10693_v23 = vunpack.i.l.bf16 %v10692_v59  ;;  %v10694_v27 = vunpack.i.h.bf16 %v10692_v59 }
 0x196   : > { %1364 = vmatmul.mubr.f32.vlgmr.msra.gmra.mrb[0].mxu1 %v1200_v62  ;;  %v1217_v18 = vsel %vm1190_vm3, %v1209_v14, %v10698_v4  ;;  %v1192_v19 = vsel %vm1190_vm3, %v1183_v15, %v10699_v2 }
 0x197   : > { %v10707_v7 = vpop.permute.xlu0 %10706 }
 0x198   : > { %v10709_v33 = vunpack.i.h.bf16 %v10707_v7  ;;  %v10708_v8 = vunpack.i.l.bf16 %v10707_v7  ;;  %v10702_v10 = vpop.permute.xlu1 %10701 }
 0x199   : > { %v10704_v11 = vunpack.i.h.bf16 %v10702_v10  ;;  %v10703_v12 = vunpack.i.l.bf16 %v10702_v10 }
 0x19a   : > { %v1210_v21 = vsel %vm886_vm1, %v12057_v46, %v10708_v8  ;;  %v1184_v25 = vsel %vm886_vm1, %v12018_v24, %v10709_v33 }
 0x19b   : > { %v10712_v26 = vpop.permute.xlu0 %10711  ;;  %v1225_v28 = vsel %vm1199_vm4, %v1217_v18, %v10703_v12  ;;  %v1201_v29 = vsel %vm1199_vm4, %v1192_v19, %v10704_v11  ;;  %v1218_v35 = vsel %vm1190_vm3, %v1210_v21, %v10693_v23  ;;  %v1193_v38 = vsel %vm1190_vm3, %v1184_v25, %v10694_v27 }
 0x19c   : > { %v10714_v30 = vunpack.i.h.bf16 %v10712_v26  ;;  %v10713_v31 = vunpack.i.l.bf16 %v10712_v26  ;;  %v10717_v34 = vpop.permute.xlu1 %10716  ;;  %1368 = vmatprep.mubr.f32.mxu1 %v1225_v28 }
 0x19d   : > { %1369 = vmatmul.mubr.f32.gmra.mrb[2].mxu1 %v1201_v29  ;;  %v10719_v43 = vunpack.i.h.bf16 %v10717_v34  ;;  %v10718_v44 = vunpack.i.l.bf16 %v10717_v34 }
 0x19e   : > { %v1226_v37 = vsel %vm1199_vm4, %v1218_v35, %v10713_v31  ;;  %v1202_v42 = vsel %vm1199_vm4, %v1193_v38, %v10714_v30 }
 0x19f   : > { %v10727_v46 = vpop.permute.xlu0 %10726  ;;  %1373 = vmatprep.mubr.f32.mxu1 %v1226_v37  ;;  %v1211_v56 = vsel %vm886_vm1, %v12064_v51, %v10718_v44  ;;  %v1185_v57 = vsel %vm886_vm1, %v12046_v40, %v10719_v43 }
 0x1a0   : > { %v10722_v39 = vpop.permute.xlu1 %10721  ;;  %v10729_v45 = vunpack.i.h.bf16 %v10727_v46  ;;  %v10728_v47 = vunpack.i.l.bf16 %v10727_v46 }
 0x1a1   : > { %1374 = vmatmul.mubr.f32.gmra.mrb[4].mxu1 %v1202_v42  ;;  %v10723_v63 = vunpack.i.l.bf16 %v10722_v39  ;;  %v10724_v51 = vunpack.i.h.bf16 %v10722_v39 }
 0x1a2   : > { %v1219_v59 = vsel %vm1190_vm3, %v1211_v56, %v10728_v47  ;;  %v1194_v60 = vsel %vm1190_vm3, %v1185_v57, %v10729_v45 }
 0x1a3   : > { %v10737_v48 = vpop.permute.xlu0 %10736 }
 0x1a4   : > { %v10739_v24 = vunpack.i.h.bf16 %v10737_v48  ;;  %v10738_v49 = vunpack.i.l.bf16 %v10737_v48  ;;  %v10732_v50 = vpop.permute.xlu1 %10731 }
 0x1a5   : > { %v10734_v52 = vunpack.i.h.bf16 %v10732_v50  ;;  %v10733_v53 = vunpack.i.l.bf16 %v10732_v50 }
 0x1a6   : > { %v1212_v62 = vsel %vm886_vm1, %v12082_v58, %v10738_v49  ;;  %v1186_v40 = vsel %vm886_vm1, %v12050_v41, %v10739_v24 }
 0x1a7   : > { %v10742_v1 = vpop.permute.xlu0 %10741  ;;  %v1227_v2 = vsel %vm1199_vm4, %v1219_v59, %v10733_v53  ;;  %v1203_v4 = vsel %vm1199_vm4, %v1194_v60, %v10734_v52  ;;  %v1220_v10 = vsel %vm1190_vm3, %v1212_v62, %v10723_v63  ;;  %v1195_v12 = vsel %vm1190_vm3, %v1186_v40, %v10724_v51 }
 0x1a8   : > { %v10744_v7 = vunpack.i.h.bf16 %v10742_v1  ;;  %v10743_v33 = vunpack.i.l.bf16 %v10742_v1  ;;  %v10747_v8 = vpop.permute.xlu1 %10746  ;;  %1378 = vmatprep.mubr.f32.mxu1 %v1227_v2 }
 0x1a9   : > { %1379 = vmatmul.mubr.f32.gmra.mrb[6].mxu1 %v1203_v4  ;;  %v10749_v18 = vunpack.i.h.bf16 %v10747_v8  ;;  %v10748_v19 = vunpack.i.l.bf16 %v10747_v8 }
 0x1aa   : > { %v1228_v11 = vsel %vm1199_vm4, %v1220_v10, %v10743_v33  ;;  %v1204_v15 = vsel %vm1199_vm4, %v1195_v12, %v10744_v7 }
 0x1ab   : > { %v10757_v58 = vpop.permute.xlu0 %10756  ;;  %1383 = vmatprep.mubr.f32.mxu1 %v1228_v11  ;;  %v1213_v34 = vsel %vm886_vm1, %v12088_v61, %v10748_v19  ;;  %v1187_v25 = vsel %vm886_vm1, %v12073_v54, %v10749_v18 }
 0x1ac   : > { %v10752_v14 = vpop.permute.xlu1 %10751  ;;  %v10759_v21 = vunpack.i.h.bf16 %v10757_v58  ;;  %v10758_v23 = vunpack.i.l.bf16 %v10757_v58 }
 0x1ad   : > { %1384 = vmatmul.mubr.f32.gmra.mrb[8].mxu1 %v1204_v15  ;;  %v10753_v46 = vunpack.i.l.bf16 %v10752_v14  ;;  %v10754_v61 = vunpack.i.h.bf16 %v10752_v14 }
 0x1ae   : > { %v1221_v27 = vsel %vm1190_vm3, %v1213_v34, %v10758_v23  ;;  %v1196_v35 = vsel %vm1190_vm3, %v1187_v25, %v10759_v21 }
 0x1af   : > { %v10767_v26 = vpop.permute.xlu0 %10766 }
 0x1b0   : > { %v10769_v41 = vunpack.i.h.bf16 %v10767_v26  ;;  %v10768_v28 = vunpack.i.l.bf16 %v10767_v26  ;;  %v10762_v29 = vpop.permute.xlu1 %10761 }
 0x1b1   : > { %v10764_v30 = vunpack.i.h.bf16 %v10762_v29  ;;  %v10763_v31 = vunpack.i.l.bf16 %v10762_v29 }
 0x1b2   : > { %v1214_v37 = vsel %vm886_vm1, %v12101_v5, %v10768_v28  ;;  %v1188_v54 = vsel %vm886_vm1, %v12076_v55, %v10769_v41  ;;  %v15727_v28 = vmov 0.0|0.0  }
 0x1b3   : > { %v10772_v38 = vpop.permute.xlu0 %10771  ;;  %v1229_v39 = vsel %vm1199_vm4, %v1221_v27, %v10763_v31  ;;  %v1205_v42 = vsel %vm1199_vm4, %v1196_v35, %v10764_v30  ;;  %v1222_v24 = vsel %vm1190_vm3, %v1214_v37, %v10753_v46  ;;  %v1197_v50 = vsel %vm1190_vm3, %v1188_v54, %v10754_v61  ;;  %10305 = vmatprep.subr.bf16.mxu0 %v15727_v28 }
 0x1b4   : > { %v10774_v43 = vunpack.i.h.bf16 %v10772_v38  ;;  %v10773_v44 = vunpack.i.l.bf16 %v10772_v38  ;;  %v10777_v45 = vpop.permute.xlu1 %10776  ;;  %1388 = vmatprep.mubr.f32.mxu1 %v1229_v39  ;;  %10329 = vmatprep.subr.bf16.mxu1 %v15727_v28 }
 0x1b5   : > { %v10779_v47 = vunpack.i.h.bf16 %v10777_v45  ;;  %v10778_v48 = vunpack.i.l.bf16 %v10777_v45  ;;  %1389 = vmatmul.mubr.f32.gmra.mrb[10].mxu1 %v1205_v42  ;;  %v8292_v42 = vld [vmem:[%s15809_s30] ss:$0 sm:$0xff]  ;;  %s15812_s30 = sld [smem:[#allocation30_spill]] }
 0x1b6   : > { %v1230_v5 = vsel %vm1199_vm4, %v1222_v24, %v10773_v44  ;;  %v1206_v57 = vsel %vm1199_vm4, %v1197_v50, %v10774_v43 }
 0x1b7   : > { %v10782_v49 = vpop.permute.xlu0 %10781  ;;  %1393 = vmatprep.mubr.f32.mxu1 %v1230_v5  ;;  %v1215_v55 = vsel %vm886_vm1, %v12107_v9, %v10778_v48  ;;  %v1189_v62 = vsel %vm886_vm1, %v12095_v0, %v10779_v47 }
 0x1b8   : > { %v10784_v52 = vunpack.i.h.bf16 %v10782_v49  ;;  %v10783_v53 = vunpack.i.l.bf16 %v10782_v49  ;;  %v10787_v56 = vpop.permute.xlu1 %10786 }
 0x1b9   : > { %v10789_v59 = vunpack.i.h.bf16 %v10787_v56  ;;  %v10788_v60 = vunpack.i.l.bf16 %v10787_v56  ;;  %1394 = vmatmul.mubr.f32.gmra.mrb[12].mxu1 %v1206_v57 }
 0x1ba   : > { %v1223_v63 = vsel %vm1190_vm3, %v1215_v55, %v10783_v53  ;;  %v1198_v1 = vsel %vm1190_vm3, %v1189_v62, %v10784_v52 }
 0x1bb   : > { %v1231_v2 = vsel %vm1199_vm4, %v1223_v63, %v10788_v60  ;;  %v1207_v4 = vsel %vm1199_vm4, %v1198_v1, %v10789_v59 }
 0x1bc   : > { %1398 = vmatprep.mubr.f32.mxu1 %v1231_v2 }
 0x1bd   : > { %1399 = vmatmul.mubr.f32.gmra.mrb[14].mxu1 %v1207_v4 }
 0x1be   : > { %9279 = vmatprep.mubr.msk.f32.mxu1 %vm11629_vm5, %v15729_v17 }
 0x1ee   : > { %v9186_v7 = vpop.f32.mrb[8].mxu0 }
 0x1ef   : > { %v1470_v33 = vpop.f32.mrb[9].mxu0 }
 0x1f1   : > { %v1701_v8 = vpop.xlane.xlu0 %1700 }
 0x1f2   : > { %v1728_v40 = vmul.f32 0.03125, %v1701_v8  ;;  %v12198_v51 = vpop.f32.mrb[10].mxu0 }
 0x1f3   : > { %v1480_v0 = vpop.f32.mrb[11].mxu0 }
 0x1f4   : > { %v12201_v9 = vsub.f32 %v11988_v6, %v1728_v40 }
 0x1f5   : > { %v1707_v10 = vpop.xlane.xlu0 %1706 }
 0x1f6   : > { %v1730_v11 = vmul.f32 0.03125, %v1707_v10  ;;  %v1746_v58 = vmul.f32 %v12201_v9, %v12201_v9  ;;  %v12207_v14 = vpop.f32.mrb[12].mxu0 }
 0x1f7   : > { %v12205_v12 = vpop.xlane.xlu1 %1703  ;;  %v1490_v19 = vpop.f32.mrb[13].mxu0 }
 0x1f8   : > { %v12210_v15 = vsub.f32 %v12008_v16, %v1730_v11  ;;  %v1755_v18 = vsel %vm886_vm1, %v1746_v58, 0.0 }
 0x1f9   : > { %1756 = vadd.xlane.f32.xlu0 %v1755_v18 }
 0x1fa   : > { %v1748_v21 = vmul.f32 %v12210_v15, %v12210_v15  ;;  %v12230_v46 = vpop.f32.mrb[14].mxu0 }
 0x1fb   : > { %v1713_v23 = vpop.xlane.xlu1 %1712  ;;  %v1500_v38 = vpop.f32.mrb[15].mxu0 }
 0x1fc   : > { %v1732_v26 = vmul.f32 0.03125, %v1713_v23  ;;  %v1761_v41 = vsel %vm886_vm1, %v1748_v21, 0.0 }
 0x1fd   : > { %1762 = vadd.xlane.f32.xlu0 %v1761_v41 }
 0x1fe   : > { %v12218_v29 = vsub.f32 %v12016_v22, %v1732_v26 }
 0x1ff   : > { %v1719_v30 = vpop.xlane.xlu1 %1718 }
 0x200   : > { %v1734_v31 = vmul.f32 0.03125, %v1719_v30  ;;  %v1750_v34 = vmul.f32 %v12218_v29, %v12218_v29 }
 0x202   : > { %v12224_v25 = vsub.f32 %v12038_v36, %v1734_v31  ;;  %v1767_v27 = vsel %vm886_vm1, %v1750_v34, 0.0 }
 0x203   : > { %1768 = vadd.xlane.f32.xlu0 %v1767_v27 }
 0x204   : > { %v1752_v35 = vmul.f32 %v12224_v25, %v12224_v25 }
 0x206   : > { %v1773_v37 = vsel %vm886_vm1, %v1752_v35, 0.0 }
 0x207   : > { %1774 = vadd.xlane.f32.xlu0 %v1773_v37 }
 0x269   : > { %v8697_v39 = vpop.f32.mrb[0].mxu1 }
 0x26a   : > { %v8698_v43 = vpop.f32.mrb[1].mxu1 }
 0x26b   : > { %v8699_v44 = vadd.f32 %v8698_v43, %v8697_v39 }
 0x26d   : > { %v1366_v45 = vadd.f32 %v8699_v44, %v8292_v42 }
 0x26f   : > { %v1471_v54 = vadd.f32 %v1470_v33, %v1366_v45 }
 0x270   : > { %v8700_v61 = vpop.f32.mrb[2].mxu1 }
 0x271   : > { %v8701_v47 = vpop.f32.mrb[3].mxu1  ;;  %v1509_v50 = vmul.f32 0.999995, %v1471_v54 }
 0x272   : > { %v8702_v48 = vadd.f32 %v8701_v47, %v8700_v61 }
 0x273   : > { %v1517_v59 = vmax.f32 %v1509_v50, 0.0 }
 0x274   : > { %v1371_v24 = vadd.f32 %v8702_v48, %v8292_v42  ;;  %v8703_v5 = vpop.f32.mrb[4].mxu1 }
 0x275   : > { %v8704_v49 = vpop.f32.mrb[5].mxu1 }
 0x276   : > { %v1476_v52 = vadd.f32 %v9186_v7, %v1371_v24  ;;  %v8705_v53 = vadd.f32 %v8704_v49, %v8703_v5 }
 0x278   : > { %v1510_v56 = vmul.f32 0.999995, %v1476_v52  ;;  %v1376_v57 = vadd.f32 %v8705_v53, %v8292_v42  ;;  %v1599_v53 = vld [vmem:[%s15810_s27] sm:$0xff]  ;;  %s15814_s27 = sld [smem:[#allocation32_spill]] }
 0x27a   : > { %v1518_v60 = vmax.f32 %v1510_v56, 0.0  ;;  %v1481_v55 = vadd.f32 %v1480_v0, %v1376_v57  ;;  %v1600_v56 = vld [vmem:[%s15811_s29 + $0x8] sm:$0xff]  ;;  %v1601_v57 = vld [vmem:[%s15811_s29 + $0x10] sm:$0xff] }
 0x27c   : > { %v8706_v62 = vpop.f32.mrb[6].mxu1  ;;  %v10306_v63 = vpack.c.bf16 %v1518_v60, %v1517_v59  ;;  %v1511_v40 = vmul.f32 0.999995, %v1481_v55  ;;  %v1602_v59 = vld [vmem:[%s15811_s29 + $0x18] sm:$0xff]  ;;  %v1710_v55 = vpop.xlane.xlu0 %1709  ;;  %s15764_s29 = smov 24  }
 0x27d   : > { %v8707_v1 = vpop.f32.mrb[7].mxu1  ;;  %v10321_v60 = vpack.c.bf16 %v1602_v59, %v1601_v57 }
 0x27e   : > { %v8708_v2 = vadd.f32 %v8707_v1, %v8706_v62  ;;  %10307 = vmatpush3.bf16.msra.mxu0 %v10306_v63  ;;  %v1519_v18 = vmax.f32 %v1511_v40, 0.0 }
 0x27f   : > { %10308 = vmatprep.subr.bf16.mxu0 %v15727_v28 }
 0x280   : > { %v1381_v4 = vadd.f32 %v8708_v2, %v8292_v42  ;;  %v8709_v33 = vpop.f32.mrb[8].mxu1  ;;  %v1716_v62 = vpop.xlane.xlu0 %1715 }
 0x281   : > { %v8710_v8 = vpop.f32.mrb[9].mxu1 }
 0x282   : > { %v1486_v10 = vadd.f32 %v12198_v51, %v1381_v4  ;;  %v8711_v7 = vadd.f32 %v8710_v8, %v8709_v33  ;;  %v1848_v33 = vld [vmem:[%s15694_s10] sm:$0xff]  ;;  %v1849_v8 = vld [vmem:[%s15694_s10 + $0x8] sm:$0xff] }
 0x284   : > { %v1512_v11 = vmul.f32 0.999995, %v1486_v10  ;;  %v1386_v58 = vadd.f32 %v8711_v7, %v8292_v42  ;;  %v1722_v63 = vpop.xlane.xlu0 %1721  ;;  %v10324_v10 = vpack.c.bf16 %v1849_v8, %v1848_v33 }
 0x286   : > { %v1520_v21 = vmax.f32 %v1512_v11, 0.0  ;;  %v1491_v23 = vadd.f32 %v1490_v19, %v1386_v58  ;;  %v1850_v11 = vld [vmem:[%s15694_s10 + $0x10] sm:$0xff]  ;;  %v1851_v58 = vld [vmem:[%s15694_s10 + $0x18] sm:$0xff] }
 0x288   : > { %v8712_v0 = vpop.f32.mrb[10].mxu1  ;;  %v10309_v26 = vpack.c.bf16 %v1520_v21, %v1519_v18  ;;  %v1513_v35 = vmul.f32 0.999995, %v1491_v23  ;;  %v1757_v1 = vpop.xlane.xlu0 %1756  ;;  %v12282_v21 = vld [vmem:[%s15813_s0] ss:$0 sm:$0xff] }
 0x289   : > { %v8713_v41 = vpop.f32.mrb[11].mxu1  ;;  %v1782_v2 = vmul.f32 0.03125, %v1757_v1 }
 0x28a   : > { %v8714_v30 = vadd.f32 %v8713_v41, %v8712_v0  ;;  %10310 = vmatpush3.bf16.msra.mxu0 %v10309_v26  ;;  %v1521_v54 = vmax.f32 %v1513_v35, 0.0  ;;  %v10327_v0 = vpack.c.bf16 %v1851_v58, %v1850_v11  ;;  %v12292_v26 = vld [vmem:[%s15693_s9] ss:$0 sm:$0xff] }
 0x28b   : > { %10311 = vmatprep.subr.bf16.mxu0 %v15727_v28  ;;  %v1791_v4 = vadd.f32 1e-06, %v1782_v2 }
 0x28c   : > { %v1391_v31 = vadd.f32 %v8714_v30, %v8292_v42  ;;  %v8715_v34 = vpop.f32.mrb[12].mxu1  ;;  %v8302_v30 = vld [vmem:[%s15814_s27] ss:$0 sm:$0xff]  ;;  %v1763_v1 = vpop.xlane.xlu0 %1762  ;;  %s15820_s27 = smov 64  }
 0x28d   : > { %v8716_v27 = vpop.f32.mrb[13].mxu1  ;;  %11110 = vrsqrt.f32 %v1791_v4  ;;  %v1784_v2 = vmul.f32 0.03125, %v1763_v1 }
 0x28e   : > { %v1496_v37 = vadd.f32 %v12207_v14, %v1391_v31  ;;  %v8717_v51 = vadd.f32 %v8716_v27, %v8715_v34 }
 0x28f   : > { %v1793_v8 = vadd.f32 1e-06, %v1784_v2 }
 0x290   : > { %v1514_v39 = vmul.f32 0.999995, %v1496_v37  ;;  %v8718_v43 = vpop.f32.mrb[14].mxu1  ;;  %v1396_v44 = vadd.f32 %v8717_v51, %v8292_v42 }
 0x291   : > { %v8719_v45 = vpop.f32.mrb[15].mxu1  ;;  %11112 = vrsqrt.f32 %v1793_v8 }
 0x292   : > { %v1522_v19 = vmax.f32 %v1514_v39, 0.0  ;;  %v8720_v61 = vadd.f32 %v8719_v45, %v8718_v43  ;;  %v1501_v47 = vadd.f32 %v1500_v38, %v1396_v44 }
 0x294   : > { %v1401_v48 = vadd.f32 %v8720_v61, %v8292_v42  ;;  %v10312_v24 = vpack.c.bf16 %v1522_v19, %v1521_v54  ;;  %v1515_v49 = vmul.f32 0.999995, %v1501_v47  ;;  %v10318_v42 = vpack.c.bf16 %v1600_v56, %v1599_v53 }
 0x295   : > { %v1729_v61 = vmul.f32 0.03125, %v12205_v12 }
 0x296   : > { %v1506_v5 = vadd.f32 %v12230_v46, %v1401_v48  ;;  %10313 = vmatpush3.bf16.msra.mxu0 %v10312_v24  ;;  %v1523_v52 = vmax.f32 %v1515_v49, 0.0  ;;  %v1525_v46 = vld [vmem:[%s15812_s30] sm:$0xf]  ;;  %s15757_s30 = smov 120  }
 0x297   : > { %10314 = vmatprep.subr.bf16.mxu0 %v15727_v28  ;;  %v11111_v40 = vpop.eup %11110  ;;  %v1738_v24 = vsub.f32 %v11986_v3, %v1729_v61 }
 0x298   : > { %v1516_v50 = vmul.f32 0.999995, %v1506_v5  ;;  %v1809_v7 = vmul.f32 %v11111_v40, %v12201_v9  ;;  %v1731_v5 = vmul.f32 0.03125, %v1710_v55 }
 0x299   : > { %v1747_v56 = vmul.f32 %v1738_v24, %v1738_v24 }
 0x29a   : > { %v1524_v14 = vmax.f32 %v1516_v50, 0.0  ;;  %v1824_v9 = vmul.f32 %v12282_v21, %v1809_v7 }
 0x29c   : > { %v10315_v38 = vpack.c.bf16 %v1524_v14, %v1523_v52  ;;  %v1839_v41 = vadd.f32 %v12292_v26, %v1824_v9  ;;  %v1740_v52 = vsub.f32 %v12006_v13, %v1731_v5  ;;  %v1733_v14 = vmul.f32 0.03125, %v1716_v62 }
 0x29e   : > { %10316 = vmatpush3.bf16.msra.mxu0 %v10315_v38  ;;  %v12312_v12 = vsub.f32 %v12014_v20, %v1733_v14  ;;  %v1735_v38 = vmul.f32 0.03125, %v1722_v63 }
 0x29f   : > { %10317 = vmatprep.subr.bf16.mxu0 %v15727_v28 }
 0x2a0   : > { %v12316_v57 = vsub.f32 %v12033_v32, %v1735_v38 }
 0x2a1   : > { %9213 = vmatmul.mubr.msk.f32.vlgmr.msra.gmra.mrb[16].mxu0 %vm1190_vm3, %v1525_v46  ;;  %v1758_v46 = vsel %vm886_vm1, %v1747_v56, 0.0 }
 0x2a2   : > { %10319 = vmatpush3.bf16.msra.mxu0 %v10318_v42  ;;  %9223 = vmatprep.mubr.msk.f32.mxu0 %vm11629_vm5, %v15729_v17  ;;  %v1749_v42 = vmul.f32 %v1740_v52, %v1740_v52  ;;  %v1753_v62 = vmul.f32 %v12316_v57, %v12316_v57 }
 0x2a3   : > { %10320 = vmatprep.subr.bf16.mxu0 %v15727_v28 }
 0x2a4   : > { %v1764_v59 = vsel %vm886_vm1, %v1749_v42, 0.0  ;;  %v1776_v63 = vsel %vm886_vm1, %v1753_v62, 0.0 }
 0x2a6   : > { %10322 = vmatpush3.bf16.msra.mxu0 %v10321_v60  ;;  %v1751_v60 = vmul.f32 %v12312_v12, %v12312_v12 }
 0x2a7   : > { %10323 = vmatprep.subr.bf16.mxu0 %v15727_v28 }
 0x2a8   : > { %v1770_v55 = vsel %vm886_vm1, %v1751_v60, 0.0 }
 0x374   : > { %v1595_v18 = vpop.f32.mrb[16].mxu0 }
 0x375   : > { %v9214_v23 = vpop.f32.mrb[17].mxu0  ;;  %9224 = vmatmul.mubr.msk.f32.vlgmr.msra.gmra.mrb[18].mxu0 %vm886_vm1, %v1595_v18 }
 0x376   : > { %10325 = vmatpush3.bf16.msra.mxu0 %v10324_v10  ;;  %9234 = vmatprep.mubr.msk.f32.mxu0 %vm11629_vm5, %v15729_v17  ;;  %v1769_v10 = vpop.xlane.xlu0 %1768 }
 0x377   : > { %10326 = vmatprep.subr.bf16.mxu0 %v15727_v28 }
 0x37a   : > { %10328 = vmatpush3.bf16.msra.mxu0 %v10327_v0 }
 0x37b   : > { %10345 = vmatprep.subr.bf16.mxu0 %v15727_v28 }
 0x37d   : > { %9235 = vmatmul.mubr.msk.f32.vlgmr.msra.gmra.mrb[20].mxu0 %vm886_vm1, %v1839_v41 }
 0x37e   : > { %9237 = vmatprep.mubr.msk.f32.mxu0 %vm11629_vm5, %v15729_v17 }
 0x448   : > { %v1679_v31 = vpop.f32.mrb[18].mxu0 }
 0x449   : > { %v1680_v34 = vadd.f32 %v8302_v30, %v1679_v31  ;;  %v9225_v27 = vpop.f32.mrb[19].mxu0 }
 0x44b   : > { %v1683_v35 = vmul.f32 0.999995, %v1680_v34  ;;  %v1775_v34 = vpop.xlane.xlu0 %1774 }
 0x44d   : > { %v1684_v37 = vmax.f32 %v1683_v35, 0.0 }
 0x44f   : > { %v1686_v51 = vsel %vm1685_vm6, %v1684_v37, 0.0  ;;  %v1788_v37 = vmul.f32 0.03125, %v1775_v34 }
 0x450   : > { %v1687_v39 = vrot.slane %v1686_v51, 4  ;;  %v12302_v43 = vpop.f32.mrb[20].mxu0 }
 0x451   : > { %v9236_v44 = vpop.f32.mrb[21].mxu0 }
 0x452   : > { %v1688_v45 = vadd.f32 %v1687_v39, %v1686_v51  ;;  %v11113_v44 = vpop.eup %11112 }
 0x454   : > { %v1689_v54 = vrot.slane %v1688_v45, 2 }
 0x456   : > { %v1690_v19 = vadd.f32 %v1689_v54, %v1688_v45  ;;  %v1797_v54 = vadd.f32 1e-06, %v1788_v37 }
 0x458   : > { %v1691_v47 = vrot.slane %v1690_v19, 1 }
 0x45a   : > { %v1692_v48 = vadd.f32 %v1691_v47, %v1690_v19  ;;  %v1811_v47 = vmul.f32 %v11113_v44, %v12210_v15 }
 0x45c   : > { %v1694_v49 = vmul.f32 0.25, %v1692_v48 }
 0x45e   : > { %v12306_v50 = vsel %vm1695_vm7, %v1595_v18, %v1694_v49  ;;  %v1786_v18 = vmul.f32 0.03125, %v1769_v10 }
 0x45f   : > { %15815 = vst [vmem:[#allocation20_spill] sm:$0xff] %v12306_v50  ;;  %v1724_v53 = vsel %vm1723_vm8, %v12306_v50, 0.0 }
 0x460   : > { %1725 = vadd.xlane.f32.xlu1 %v1724_v53  ;;  %v1795_v30 = vadd.f32 1e-06, %v1786_v18  ;;  %v1826_v53 = vmul.f32 %v12282_v21, %v1811_v47 }
 0x464   : > { %1759 = vadd.xlane.f32.xlu1 %v1758_v46 }
 0x468   : > { %1765 = vadd.xlane.f32.xlu1 %v1764_v59 }
 0x46c   : > { %1771 = vadd.xlane.f32.xlu1 %v1770_v55 }
 0x470   : > { %1777 = vadd.xlane.f32.xlu1 %v1776_v63 }
 0x4ed   : > { %v1726_v4 = vpop.xlane.xlu1 %1725 }
 0x4ee   : > { %v1736_v33 = vmul.f32 0.03125, %v1726_v4 }
 0x4f0   : > { %v12326_v40 = vsub.f32 %v12306_v50, %v1736_v33 }
 0x4f1   : > { %v1760_v7 = vpop.xlane.xlu1 %1759 }
 0x4f2   : > { %v1783_v11 = vmul.f32 0.03125, %v1760_v7  ;;  %v1754_v58 = vmul.f32 %v12326_v40, %v12326_v40 }
 0x4f4   : > { %v1792_v23 = vadd.f32 1e-06, %v1783_v11  ;;  %v1779_v0 = vsel %vm1723_vm8, %v1754_v58, 0.0 }
 0x4f5   : > { %1780 = vadd.xlane.f32.xlu0 %v1779_v0  ;;  %v1766_v9 = vpop.xlane.xlu1 %1765  ;;  %v8306_v0 = vld [vmem:[%s15695_s11] ss:$0 sm:$0xff] }
 0x4f6   : > { %11114 = vrsqrt.f32 %v1792_v23  ;;  %v1785_v41 = vmul.f32 0.03125, %v1766_v9 }
 0x4f8   : > { %v1794_v31 = vadd.f32 1e-06, %v1785_v41  ;;  %v12381_v41 = vadd.f32 %v8306_v0, %v12302_v43 }
 0x4f9   : > { %v1772_v27 = vpop.xlane.xlu1 %1771 }
 0x4fa   : > { %11116 = vrsqrt.f32 %v1794_v31  ;;  %v1787_v35 = vmul.f32 0.03125, %v1772_v27 }
 0x4fb   : > { %11118 = vrsqrt.f32 %v1795_v30 }
 0x4fc   : > { %v1796_v51 = vadd.f32 1e-06, %v1787_v35 }
 0x4fd   : > { %v1778_v39 = vpop.xlane.xlu1 %1777 }
 0x4fe   : > { %11120 = vrsqrt.f32 %v1796_v51  ;;  %v1789_v19 = vmul.f32 0.03125, %v1778_v39 }
 0x4ff   : > { %11122 = vrsqrt.f32 %v1797_v54 }
 0x500   : > { %v11115_v45 = vpop.eup %11114  ;;  %v1798_v49 = vadd.f32 1e-06, %v1789_v19 }
 0x501   : > { %v1810_v61 = vmul.f32 %v11115_v45, %v1738_v24  ;;  %v1841_v24 = vadd.f32 %v12292_v26, %v1826_v53 }
 0x502   : > { %11124 = vrsqrt.f32 %v1798_v49 }
 0x503   : > { %v1825_v48 = vmul.f32 %v12282_v21, %v1810_v61 }
 0x504   : > { %v11117_v5 = vpop.eup %11116 }
 0x505   : > { %v1840_v14 = vadd.f32 %v12292_v26, %v1825_v48  ;;  %v1812_v56 = vmul.f32 %v11117_v5, %v1740_v52  ;;  %v11119_v38 = vpop.eup %11118 }
 0x506   : > { %v1813_v46 = vmul.f32 %v11119_v38, %v12218_v29 }
 0x507   : > { %9238 = vmatmul.mubr.msk.f32.gmra.mrb[22].mxu0 %vm886_vm1, %v1840_v14  ;;  %v1827_v15 = vmul.f32 %v12282_v21, %v1812_v56 }
 0x508   : > { %9240 = vmatprep.mubr.msk.f32.mxu0 %vm11629_vm5, %v15729_v17  ;;  %v11121_v42 = vpop.eup %11120  ;;  %v1828_v59 = vmul.f32 %v12282_v21, %v1813_v46  ;;  %v15817_v46 = vmov 0 }
 0x509   : > { %v1842_v52 = vadd.f32 %v12292_v26, %v1827_v15  ;;  %v1814_v60 = vmul.f32 %v11121_v42, %v12312_v12  ;;  %v11123_v55 = vpop.eup %11122  ;;  %v15818_v46 = vsel %vm12427_vm10, 4294967295, %v15817_v46 }
 0x50a   : > { %v1843_v29 = vadd.f32 %v12292_v26, %v1828_v59  ;;  %v1815_v63 = vmul.f32 %v11123_v55, %v12224_v25  ;;  %15819 = vst [vmem:[#allocation21_spill] sm:$0xff] %v15818_v46 }
 0x50b   : > { %9241 = vmatmul.mubr.msk.f32.gmra.mrb[24].mxu0 %vm886_vm1, %v1841_v24  ;;  %v1829_v62 = vmul.f32 %v12282_v21, %v1814_v60 }
 0x50c   : > { %9243 = vmatprep.mubr.msk.f32.mxu0 %vm11629_vm5, %v15729_v17  ;;  %v11125_v1 = vpop.eup %11124  ;;  %v1830_v2 = vmul.f32 %v12282_v21, %v1815_v63 }
 0x50d   : > { %v1844_v12 = vadd.f32 %v12292_v26, %v1829_v62  ;;  %v1816_v4 = vmul.f32 %v11125_v1, %v12316_v57 }
 0x50e   : > { %v1845_v33 = vadd.f32 %v12292_v26, %v1830_v2 }
 0x50f   : > { %9244 = vmatmul.mubr.msk.f32.gmra.mrb[26].mxu0 %vm886_vm1, %v1842_v52  ;;  %v1831_v25 = vmul.f32 %v12282_v21, %v1816_v4 }
 0x510   : > { %9246 = vmatprep.mubr.msk.f32.mxu0 %vm11629_vm5, %v15729_v17 }
 0x511   : > { %v1846_v8 = vadd.f32 %v12292_v26, %v1831_v25 }
 0x513   : > { %9247 = vmatmul.mubr.msk.f32.gmra.mrb[28].mxu0 %vm886_vm1, %v1843_v29 }
 0x514   : > { %9249 = vmatprep.mubr.msk.f32.mxu0 %vm11629_vm5, %v15729_v17 }
 0x517   : > { %9250 = vmatmul.mubr.msk.f32.gmra.mrb[30].mxu0 %vm886_vm1, %v1844_v12 }
 0x518   : > { %9252 = vmatprep.mubr.msk.f32.mxu0 %vm11629_vm5, %v15729_v17 }
 0x51b   : > { %9253 = vmatmul.mubr.msk.f32.gmra.mrb[32].mxu0 %vm886_vm1, %v1845_v33 }
 0x51c   : > { %9255 = vmatprep.mubr.msk.f32.mxu0 %vm11629_vm5, %v15729_v17 }
 0x51f   : > { %9256 = vmatmul.mubr.msk.f32.gmra.mrb[34].mxu0 %vm886_vm1, %v1846_v8 }
 0x520   : > { %9258 = vmatprep.mubr.msk.f32.mxu0 %vm11629_vm5, %v15729_v17 }
 0x582   : > { %v1781_v57 = vpop.xlane.xlu0 %1780 }
 0x583   : > { %v1790_v10 = vmul.f32 0.03125, %v1781_v57 }
 0x585   : > { %v1799_v7 = vadd.f32 1e-06, %v1790_v10 }
 0x587   : > { %11126 = vrsqrt.f32 %v1799_v7 }
 0x591   : > { %v11127_v11 = vpop.eup %11126 }
 0x592   : > { %v1817_v58 = vmul.f32 %v11127_v11, %v12326_v40 }
 0x594   : > { %v1832_v18 = vmul.f32 %v12282_v21, %v1817_v58 }
 0x596   : > { %v1847_v23 = vadd.f32 %v12292_v26, %v1832_v18 }
 0x598   : > { %9259 = vmatmul.mubr.msk.f32.gmra.mrb[36].mxu0 %vm886_vm1, %v1847_v23 }
 0x599   : > { %9324 = vmatprep.mubr.msk.f32.mxu0 %vm11629_vm5, %v15729_v17 }
 0x5da   : > { %v1957_v9 = vpop.f32.mrb[22].mxu0 }
 0x5db   : > { %v12383_v30 = vadd.f32 %v8306_v0, %v1957_v9  ;;  %v9239_v40 = vpop.f32.mrb[23].mxu0 }
 0x5dd   : > { %v12387_v21 = vpack.i.bf16 %v12383_v30, %v12381_v41 }
 0x5de   : > { %v1962_v26 = vpop.f32.mrb[24].mxu0 }
 0x5df   : > { %10791 = vrot.lane.b32.xlu1 %v12387_v21, %s15816_s1  ;;  %v9242_v31 = vpop.f32.mrb[25].mxu0  ;;  %v12391_v27 = vadd.f32 %v8306_v0, %v1962_v26 }
 0x5e2   : > { %v1967_v34 = vpop.f32.mrb[26].mxu0 }
 0x5e3   : > { %v12393_v35 = vadd.f32 %v8306_v0, %v1967_v34  ;;  %v9245_v37 = vpop.f32.mrb[27].mxu0 }
 0x5e5   : > { %v12397_v43 = vpack.i.bf16 %v12393_v35, %v12391_v27 }
 0x5e6   : > { %v1972_v51 = vpop.f32.mrb[28].mxu0 }
 0x5e7   : > { %10796 = vrot.lane.b32.xlu0 %v12397_v43, %s15816_s1  ;;  %v9248_v39 = vpop.f32.mrb[29].mxu0  ;;  %v12401_v45 = vadd.f32 %v8306_v0, %v1972_v51 }
 0x5ea   : > { %v1977_v44 = vpop.f32.mrb[30].mxu0 }
 0x5eb   : > { %v12403_v54 = vadd.f32 %v8306_v0, %v1977_v44  ;;  %v9251_v19 = vpop.f32.mrb[31].mxu0 }
 0x5ed   : > { %v12407_v61 = vpack.i.bf16 %v12403_v54, %v12401_v45 }
 0x5ee   : > { %v1982_v47 = vpop.f32.mrb[32].mxu0 }
 0x5ef   : > { %10801 = vrot.lane.b32.xlu1 %v12407_v61, %s15816_s1  ;;  %v9254_v48 = vpop.f32.mrb[33].mxu0  ;;  %v12411_v49 = vadd.f32 %v8306_v0, %v1982_v47 }
 0x5f2   : > { %v1987_v5 = vpop.f32.mrb[34].mxu0 }
 0x5f3   : > { %v12413_v14 = vadd.f32 %v8306_v0, %v1987_v5  ;;  %v9257_v53 = vpop.f32.mrb[35].mxu0 }
 0x5f5   : > { %v12417_v56 = vpack.i.bf16 %v12413_v14, %v12411_v49 }
 0x5f7   : > { %10806 = vrot.lane.b32.xlu1 %v12417_v56, %s15816_s1 }
 0x5fb   : > { %10811 = vrot.lane.b32.xlu1 %v12387_v21, %s15759_s2 }
 0x5ff   : > { %10821 = vrot.lane.b32.xlu1 %v12407_v61, %s15759_s2 }
 0x651   : > { %v10792_v38 = vpop.permute.xlu1 %10791 }
 0x652   : > { %v10794_v24 = vunpack.i.h.bf16 %v10792_v38  ;;  %v10793_v15 = vunpack.i.l.bf16 %v10792_v38 }
 0x654   : > { %v10330_v42 = vpack.c.bf16 %v10794_v24, %v10793_v15 }
 0x656   : > { %10332 = vmatpush3.bf16.xpose.msk.msra.mxu1 %vm12427_vm10, %v10330_v42 }
 0x657   : > { %10333 = vmatprep.subr.bf16.mxu1 %v15727_v28 }
 0x659   : > { %v10797_v52 = vpop.permute.xlu0 %10796 }
 0x65a   : > { %v10799_v59 = vunpack.i.h.bf16 %v10797_v52  ;;  %v10798_v60 = vunpack.i.l.bf16 %v10797_v52 }
 0x65c   : > { %v10334_v55 = vpack.c.bf16 %v10799_v59, %v10798_v60 }
 0x65e   : > { %10336 = vmatpush3.bf16.xpose.msk.msra.mxu1 %vm12427_vm10, %v10334_v55 }
 0x65f   : > { %10337 = vmatprep.subr.bf16.mxu1 %v15727_v28 }
 0x661   : > { %v10802_v29 = vpop.permute.xlu1 %10801 }
 0x662   : > { %v10804_v62 = vunpack.i.h.bf16 %v10802_v29  ;;  %v10803_v63 = vunpack.i.l.bf16 %v10802_v29 }
 0x664   : > { %v10338_v1 = vpack.c.bf16 %v10804_v62, %v10803_v63 }
 0x666   : > { %10340 = vmatpush3.bf16.xpose.msk.msra.mxu1 %vm12427_vm10, %v10338_v1 }
 0x667   : > { %10341 = vmatprep.subr.bf16.mxu1 %v15727_v28 }
 0x669   : > { %v10807_v12 = vpop.permute.xlu1 %10806 }
 0x66a   : > { %v10809_v2 = vunpack.i.h.bf16 %v10807_v12  ;;  %v10808_v4 = vunpack.i.l.bf16 %v10807_v12 }
 0x66b   : > { %v1992_v33 = vpop.f32.mrb[36].mxu0 }
 0x66c   : > { %v10342_v25 = vpack.c.bf16 %v10809_v2, %v10808_v4  ;;  %v12440_v8 = vadd.f32 %v8306_v0, %v1992_v33  ;;  %v9260_v57 = vpop.f32.mrb[37].mxu0 }
 0x66d   : > { %v10812_v10 = vpop.permute.xlu1 %10811 }
 0x66e   : > { %10344 = vmatpush3.bf16.xpose.msk.msra.mxu1 %vm12427_vm10, %v10342_v25  ;;  %2480 = vrot.lane.b32.xlu1 %v12440_v8, %s15759_s2  ;;  %v10814_v11 = vunpack.i.h.bf16 %v10812_v10  ;;  %v10813_v58 = vunpack.i.l.bf16 %v10812_v10 }
 0x66f   : > { %2021 = vrot.lane.b32.xlu0 %v12440_v8, %s15816_s1  ;;  %9277 = vmatprep.subr.mxu1 %v15729_v17 }
 0x670   : > { %v10358_v0 = vpack.c.bf16 %v10814_v11, %v10813_v58 }
 0x671   : > { %v10822_v7 = vpop.permute.xlu1 %10821 }
 0x672   : > { %2446 = vrot.lane.b32.xlu1 %v12381_v41, %s15757_s30  ;;  %v10823_v39 = vunpack.i.l.bf16 %v10822_v7 }
 0x673   : > { %10816 = vrot.lane.b32.xlu0 %v12397_v43, %s15759_s2 }
 0x676   : > { %10836 = vrot.lane.b32.xlu1 %v12397_v43, %s15755_s8 }
 0x677   : > { %10826 = vrot.lane.b32.xlu0 %v12417_v56, %s15759_s2  ;;  %s15848_s2 = smov 88  }
 0x67a   : > { %2452 = vrot.lane.b32.xlu1 %v12393_v35, %s15757_s30 }
 0x67b   : > { %10831 = vrot.lane.b32.xlu0 %v12387_v21, %s15755_s8 }
 0x67e   : > { %2454 = vrot.lane.b32.xlu1 %v12401_v45, %s15757_s30 }
 0x67f   : > { %2448 = vrot.lane.b32.xlu0 %v12383_v30, %s15757_s30 }
 0x682   : > { %10846 = vrot.lane.b32.xlu1 %v12417_v56, %s15755_s8 }
 0x683   : > { %2450 = vrot.lane.b32.xlu0 %v12391_v27, %s15757_s30 }
 0x686   : > { %2460 = vrot.lane.b32.xlu1 %v12413_v14, %s15757_s30 }
 0x687   : > { %10841 = vrot.lane.b32.xlu0 %v12407_v61, %s15755_s8 }
 0x68a   : > { %2935 = vrot.lane.b32.xlu1 %v12440_v8, %s15755_s8  ;;  %s15853_s8 = smov 104  }
 0x68b   : > { %2456 = vrot.lane.b32.xlu0 %v12403_v54, %s15757_s30 }
 0x68e   : > { %2901 = vrot.lane.b32.xlu1 %v12381_v41, %s15753_s5 }
 0x68f   : > { %2458 = vrot.lane.b32.xlu0 %v12411_v49, %s15757_s30 }
 0x692   : > { %10856 = vrot.lane.b32.xlu1 %v12397_v43, %s15751_s25 }
 0x693   : > { %2462 = vrot.lane.b32.xlu0 %v12440_v8, %s15757_s30  ;;  %s15849_s30 = smov 120  }
 0x696   : > { %2907 = vrot.lane.b32.xlu1 %v12393_v35, %s15753_s5 }
 0x697   : > { %10851 = vrot.lane.b32.xlu0 %v12387_v21, %s15751_s25 }
 0x69a   : > { %2909 = vrot.lane.b32.xlu1 %v12401_v45, %s15753_s5 }
 0x69b   : > { %2903 = vrot.lane.b32.xlu0 %v12383_v30, %s15753_s5 }
 0x69e   : > { %10866 = vrot.lane.b32.xlu1 %v12417_v56, %s15751_s25 }
 0x69f   : > { %2905 = vrot.lane.b32.xlu0 %v12391_v27, %s15753_s5 }
 0x6a2   : > { %2915 = vrot.lane.b32.xlu1 %v12413_v14, %s15753_s5 }
 0x6a3   : > { %10861 = vrot.lane.b32.xlu0 %v12407_v61, %s15751_s25 }
 0x6a6   : > { %3390 = vrot.lane.b32.xlu1 %v12440_v8, %s15751_s25  ;;  %s15829_s25 = smov 8  }
 0x6a7   : > { %2911 = vrot.lane.b32.xlu0 %v12403_v54, %s15753_s5 }
 0x6aa   : > { %3358 = vrot.lane.b32.xlu1 %v12383_v30, %s15725_s7 }
 0x6ab   : > { %2913 = vrot.lane.b32.xlu0 %v12411_v49, %s15753_s5 }
 0x6ae   : > { %3362 = vrot.lane.b32.xlu1 %v12393_v35, %s15725_s7 }
 0x6af   : > { %2917 = vrot.lane.b32.xlu0 %v12440_v8, %s15753_s5  ;;  %s15855_s5 = smov 56  }
 0x6b2   : > { %3366 = vrot.lane.b32.xlu1 %v12403_v54, %s15725_s7 }
 0x6b3   : > { %3356 = vrot.lane.b32.xlu0 %v12381_v41, %s15725_s7 }
 0x6b6   : > { %3370 = vrot.lane.b32.xlu1 %v12413_v14, %s15725_s7 }
 0x6b7   : > { %3360 = vrot.lane.b32.xlu0 %v12391_v27, %s15725_s7 }
 0x6ba   : > { %10871 = vrot.lane.b32.xlu1 %v12387_v21, %s15820_s27 }
 0x6bb   : > { %3364 = vrot.lane.b32.xlu0 %v12401_v45, %s15725_s7 }
 0x6be   : > { %10881 = vrot.lane.b32.xlu1 %v12407_v61, %s15820_s27 }
 0x6bf   : > { %3368 = vrot.lane.b32.xlu0 %v12411_v49, %s15725_s7 }
 0x6c2   : > { %10886 = vrot.lane.b32.xlu1 %v12417_v56, %s15820_s27 }
 0x6c3   : > { %3372 = vrot.lane.b32.xlu0 %v12440_v8, %s15725_s7  ;;  %s15745_s7 = smov 40  }
 0x6c6   : > { %10896 = vrot.lane.b32.xlu1 %v12397_v43, %s15749_s28 }
 0x6c7   : > { %10876 = vrot.lane.b32.xlu0 %v12397_v43, %s15820_s27 }
 0x6ca   : > { %10906 = vrot.lane.b32.xlu1 %v12417_v56, %s15749_s28 }
 0x6cb   : > { %10891 = vrot.lane.b32.xlu0 %v12387_v21, %s15749_s28 }
 0x6ce   : > { %10911 = vrot.lane.b32.xlu1 %v12387_v21, %s15747_s4 }
 0x6cf   : > { %10901 = vrot.lane.b32.xlu0 %v12407_v61, %s15749_s28 }
 0x6d2   : > { %10921 = vrot.lane.b32.xlu1 %v12407_v61, %s15747_s4 }
 0x6d3   : > { %10916 = vrot.lane.b32.xlu0 %v12397_v43, %s15747_s4 }
 0x6d6   : > { %3207 = vrot.lane.b32.xlu1 %v12440_v8, %s15747_s4 }
 0x6d7   : > { %10926 = vrot.lane.b32.xlu0 %v12417_v56, %s15747_s4  ;;  %s15766_s4 = smov 16  }
 0x6db   : > { %10931 = vrot.lane.b32.xlu0 %v12387_v21, %s15745_s7 }
 0x6df   : > { %2296 = vrot.lane.b32.xlu0 %v12440_v8, %s15820_s27 }
 0x6e0   : > { %v2481_v18 = vpop.permute.xlu1 %2480 }
 0x6e1   : > { %v2022_v23 = vpop.permute.xlu0 %2021 }
 0x6e2   : > { %9278 = vmatpush3.xpose.msk.msra.mxu1 %vm2023_vm9, %v2022_v23 }
 0x6e3   : > { %2752 = vrot.lane.b32.xlu0 %v12440_v8, %s15749_s28  ;;  %10357 = vmatprep.subr.bf16.mxu1 %v15727_v28  ;;  %s15864_s28 = smov 16  }
 0x6e4   : > { %v2447_v9 = vpop.permute.xlu1 %2446 }
 0x6e5   : > { %9280 = vmatmul.mubr.msk.f32.vlgmr.msra.gmra.mrb[16].mxu1 %vm2023_vm9, %v12381_v41  ;;  %v10817_v40 = vpop.permute.xlu0 %10816 }
 0x6e6   : > { %10360 = vmatpush3.bf16.xpose.msk.msra.mxu1 %vm12427_vm10, %v10358_v0  ;;  %9282 = vmatprep.mubr.msk.f32.mxu1 %vm11629_vm5, %v15729_v17  ;;  %v10819_v21 = vunpack.i.h.bf16 %v10817_v40  ;;  %v10818_v26 = vunpack.i.l.bf16 %v10817_v40 }
 0x6e7   : > { %10361 = vmatprep.subr.bf16.mxu1 %v15727_v28 }
 0x6e8   : > { %v12568_v31 = vpop.permute.xlu1 %10836  ;;  %v10362_v41 = vpack.c.bf16 %v10819_v21, %v10818_v26 }
 0x6e9   : > { %9283 = vmatmul.mubr.msk.f32.gmra.mrb[18].mxu1 %vm2023_vm9, %v12383_v30  ;;  %v10827_v34 = vpop.permute.xlu0 %10826  ;;  %v10824_v30 = vunpack.i.h.bf16 %v10822_v7  ;;  %v10839_v62 = vunpack.i.h.bf16 %v12568_v31  ;;  %v10838_v63 = vunpack.i.l.bf16 %v12568_v31 }
 0x6ea   : > { %9285 = vmatprep.mubr.msk.f32.mxu1 %vm11629_vm5, %v15729_v17  ;;  %v10828_v5 = vunpack.i.l.bf16 %v10827_v34 }
 0x6eb   : > { %v10390_v2 = vpack.c.bf16 %v10839_v62, %v10838_v63 }
 0x6ec   : > { %v12574_v37 = vpop.permute.xlu1 %2452 }
 0x6ed   : > { %9286 = vmatmul.mubr.msk.f32.gmra.mrb[20].mxu1 %vm2023_vm9, %v12391_v27  ;;  %v10832_v51 = vpop.permute.xlu0 %10831  ;;  %v10366_v27 = vpack.c.bf16 %v10824_v30, %v10823_v39 }
 0x6ee   : > { %10364 = vmatpush3.bf16.xpose.msk.msra.mxu1 %vm12427_vm10, %v10362_v41  ;;  %9288 = vmatprep.mubr.msk.f32.mxu1 %vm11629_vm5, %v15729_v17  ;;  %v10834_v52 = vunpack.i.h.bf16 %v10832_v51 }
 0x6ef   : > { %10365 = vmatprep.subr.bf16.mxu1 %v15727_v28 }
 0x6f0   : > { %v12583_v44 = vpop.permute.xlu1 %2454 }
 0x6f1   : > { %9289 = vmatmul.mubr.msk.f32.gmra.mrb[22].mxu1 %vm2023_vm9, %v12393_v35  ;;  %v2449_v19 = vpop.permute.xlu0 %2448  ;;  %v10829_v35 = vunpack.i.h.bf16 %v10827_v34 }
 0x6f2   : > { %9291 = vmatprep.mubr.msk.f32.mxu1 %vm11629_vm5, %v15729_v17 }
 0x6f4   : > { %v12589_v47 = vpop.permute.xlu1 %10846 }
 0x6f5   : > { %9292 = vmatmul.mubr.msk.f32.gmra.mrb[24].mxu1 %vm2023_vm9, %v12401_v45  ;;  %v2451_v48 = vpop.permute.xlu0 %2450  ;;  %v10370_v45 = vpack.c.bf16 %v10829_v35, %v10828_v5  ;;  %v10849_v23 = vunpack.i.h.bf16 %v12589_v47  ;;  %v10848_v0 = vunpack.i.l.bf16 %v12589_v47 }
 0x6f6   : > { %10368 = vmatpush3.bf16.xpose.msk.msra.mxu1 %vm12427_vm10, %v10366_v27  ;;  %9294 = vmatprep.mubr.msk.f32.mxu1 %vm11629_vm5, %v15729_v17 }
 0x6f7   : > { %10369 = vmatprep.subr.bf16.mxu1 %v15727_v28  ;;  %v10398_v21 = vpack.c.bf16 %v10849_v23, %v10848_v0 }
 0x6f8   : > { %v12598_v53 = vpop.permute.xlu1 %2460 }
 0x6f9   : > { %9295 = vmatmul.mubr.msk.f32.gmra.mrb[26].mxu1 %vm2023_vm9, %v12403_v54  ;;  %v10842_v38 = vpop.permute.xlu0 %10841 }
 0x6fa   : > { %9297 = vmatprep.mubr.msk.f32.mxu1 %vm11629_vm5, %v15729_v17  ;;  %v10844_v25 = vunpack.i.h.bf16 %v10842_v38  ;;  %v10843_v57 = vunpack.i.l.bf16 %v10842_v38 }
 0x6fc   : > { %v12604_v24 = vpop.permute.xlu1 %2935  ;;  %v10394_v11 = vpack.c.bf16 %v10844_v25, %v10843_v57 }
 0x6fd   : > { %9298 = vmatmul.mubr.msk.f32.gmra.mrb[28].mxu1 %vm2023_vm9, %v12411_v49  ;;  %v2457_v15 = vpop.permute.xlu0 %2456  ;;  %v10833_v49 = vunpack.i.l.bf16 %v10832_v51 }
 0x6fe   : > { %10372 = vmatpush3.bf16.xpose.msk.msra.mxu1 %vm12427_vm10, %v10370_v45  ;;  %9300 = vmatprep.mubr.msk.f32.mxu1 %vm11629_vm5, %v15729_v17 }
 0x6ff   : > { %9367 = vmatprep.subr.mxu1 %v15729_v17 }
 0x700   : > { %v12613_v54 = vpop.permute.xlu1 %2901 }
 0x701   : > { %9301 = vmatmul.mubr.msk.f32.gmra.mrb[30].mxu1 %vm2023_vm9, %v12413_v14  ;;  %v2459_v42 = vpop.permute.xlu0 %2458  ;;  %v10386_v14 = vpack.c.bf16 %v10834_v52, %v10833_v49 }
 0x702   : > { %9303 = vmatprep.mubr.msk.f32.mxu1 %vm11629_vm5, %v15729_v17 }
 0x704   : > { %v12619_v59 = vpop.permute.xlu1 %10856 }
 0x705   : > { %9304 = vmatmul.mubr.msk.f32.gmra.mrb[32].mxu1 %vm2023_vm9, %v12440_v8  ;;  %v2463_v60 = vpop.permute.xlu0 %2462  ;;  %v10859_v5 = vunpack.i.h.bf16 %v12619_v59 }
 0x706   : > { %9368 = vmatpush3.xpose.msk.msra.mxu1 %vm2023_vm9, %v2481_v18  ;;  %9369 = vmatprep.mubr.msk.f32.mxu1 %vm11629_vm5, %v15729_v17 }
 0x707   : > { %10385 = vmatprep.subr.bf16.mxu1 %v15727_v28 }
 0x708   : > { %v12627_v55 = vpop.permute.xlu1 %2907 }
 0x709   : > { %v10852_v29 = vpop.permute.xlu0 %10851  ;;  %9370 = vmatmul.mubr.msk.f32.vlgmr.msra.gmra.mrb[34].mxu1 %vm2023_vm9, %v2447_v9 }
 0x70a   : > { %10388 = vmatpush3.bf16.xpose.msk.msra.mxu1 %vm12427_vm10, %v10386_v14  ;;  %9372 = vmatprep.mubr.msk.f32.mxu1 %vm11629_vm5, %v15729_v17  ;;  %v10853_v51 = vunpack.i.l.bf16 %v10852_v29 }
 0x70b   : > { %10389 = vmatprep.subr.bf16.mxu1 %v15727_v28 }
 0x70c   : > { %v12637_v1 = vpop.permute.xlu1 %2909 }
 0x70d   : > { %v2904_v12 = vpop.permute.xlu0 %2903  ;;  %9373 = vmatmul.mubr.msk.f32.gmra.mrb[36].mxu1 %vm2023_vm9, %v2449_v19 }
 0x70e   : > { %9375 = vmatprep.mubr.msk.f32.mxu1 %vm11629_vm5, %v15729_v17 }
 0x710   : > { %v12642_v4 = vpop.permute.xlu1 %10866 }
 0x711   : > { %v2906_v33 = vpop.permute.xlu0 %2905  ;;  %9376 = vmatmul.mubr.msk.f32.gmra.mrb[38].mxu1 %vm2023_vm9, %v2451_v48 }
 0x712   : > { %10392 = vmatpush3.bf16.xpose.msk.msra.mxu1 %vm12427_vm10, %v10390_v2  ;;  %9378 = vmatprep.mubr.msk.f32.mxu1 %vm11629_vm5, %v15729_v17  ;;  %v10868_v2 = vunpack.i.l.bf16 %v12642_v4 }
 0x713   : > { %10393 = vmatprep.subr.bf16.mxu1 %v15727_v28 }
 0x714   : > { %v12650_v10 = vpop.permute.xlu1 %2915 }
 0x715   : > { %v12652_v7 = vpop.permute.xlu0 %10861  ;;  %9379 = vmatmul.mubr.msk.f32.gmra.mrb[40].mxu1 %vm2023_vm9, %v12574_v37  ;;  %v10854_v37 = vunpack.i.h.bf16 %v10852_v29 }
 0x716   : > { %9381 = vmatprep.mubr.msk.f32.mxu1 %vm11629_vm5, %v15729_v17 }
 0x718   : > { %v12658_v58 = vpop.permute.xlu1 %3390 }
 0x719   : > { %v12660_v18 = vpop.permute.xlu0 %2911  ;;  %9382 = vmatmul.mubr.msk.f32.gmra.mrb[42].mxu1 %vm2023_vm9, %v12583_v44  ;;  %v10414_v44 = vpack.c.bf16 %v10854_v37, %v10853_v51 }
 0x71a   : > { %10396 = vmatpush3.bf16.xpose.msk.msra.mxu1 %vm12427_vm10, %v10394_v11  ;;  %9384 = vmatprep.mubr.msk.f32.mxu1 %vm11629_vm5, %v15729_v17 }
 0x71b   : > { %10397 = vmatprep.subr.bf16.mxu1 %v15727_v28 }
 0x71c   : > { %v12671_v9 = vpop.permute.xlu1 %3358 }
 0x71d   : > { %v12673_v40 = vpop.permute.xlu0 %2913  ;;  %9385 = vmatmul.mubr.msk.f32.gmra.mrb[44].mxu1 %vm2023_vm9, %v2457_v15 }
 0x71e   : > { %9387 = vmatprep.mubr.msk.f32.mxu1 %vm11629_vm5, %v15729_v17 }
 0x720   : > { %v12678_v26 = vpop.permute.xlu1 %3362 }
 0x721   : > { %v12680_v31 = vpop.permute.xlu0 %2917  ;;  %9388 = vmatmul.mubr.msk.f32.gmra.mrb[46].mxu1 %vm2023_vm9, %v2459_v42  ;;  %v10863_v42 = vunpack.i.l.bf16 %v12652_v7 }
 0x722   : > { %10400 = vmatpush3.bf16.xpose.msk.msra.mxu1 %vm12427_vm10, %v10398_v21  ;;  %9390 = vmatprep.mubr.msk.f32.mxu1 %vm11629_vm5, %v15729_v17 }
 0x723   : > { %9457 = vmatprep.subr.mxu1 %v15729_v17 }
 0x724   : > { %v12688_v34 = vpop.permute.xlu1 %3366 }
 0x725   : > { %v12690_v41 = vpop.permute.xlu0 %3356  ;;  %9391 = vmatmul.mubr.msk.f32.gmra.mrb[48].mxu1 %vm2023_vm9, %v12598_v53  ;;  %v10858_v53 = vunpack.i.l.bf16 %v12619_v59 }
 0x726   : > { %9393 = vmatprep.mubr.msk.f32.mxu1 %vm11629_vm5, %v15729_v17 }
 0x727   : > { %v10418_v45 = vpack.c.bf16 %v10859_v5, %v10858_v53 }
 0x728   : > { %v12696_v30 = vpop.permute.xlu1 %3370 }
 0x729   : > { %v12698_v39 = vpop.permute.xlu0 %3360  ;;  %9394 = vmatmul.mubr.msk.f32.gmra.mrb[50].mxu1 %vm2023_vm9, %v2463_v60 }
 0x72a   : > { %9458 = vmatpush3.xpose.msk.msra.mxu1 %vm2023_vm9, %v12604_v24  ;;  %9459 = vmatprep.mubr.msk.f32.mxu1 %vm11629_vm5, %v15729_v17 }
 0x72b   : > { %10413 = vmatprep.subr.bf16.mxu1 %v15727_v28 }
 0x72c   : > { %v10872_v19 = vpop.permute.xlu1 %10871 }
 0x72d   : > { %v10874_v27 = vunpack.i.h.bf16 %v10872_v19  ;;  %v10873_v47 = vunpack.i.l.bf16 %v10872_v19  ;;  %v12706_v48 = vpop.permute.xlu0 %3364  ;;  %9460 = vmatmul.mubr.msk.f32.vlgmr.msra.gmra.mrb[52].mxu1 %vm2023_vm9, %v12613_v54  ;;  %v10864_v54 = vunpack.i.h.bf16 %v12652_v7 }
 0x72e   : > { %10416 = vmatpush3.bf16.xpose.msk.msra.mxu1 %vm12427_vm10, %v10414_v44  ;;  %9462 = vmatprep.mubr.msk.f32.mxu1 %vm11629_vm5, %v15729_v17 }
 0x72f   : > { %v10346_v35 = vpack.c.bf16 %v10874_v27, %v10873_v47  ;;  %10417 = vmatprep.subr.bf16.mxu1 %v15727_v28  ;;  %v10422_v60 = vpack.c.bf16 %v10864_v54, %v10863_v42 }
 0x730   : > { %v10882_v15 = vpop.permute.xlu1 %10881 }
 0x731   : > { %v12717_v38 = vpop.permute.xlu0 %3368  ;;  %9463 = vmatmul.mubr.msk.f32.gmra.mrb[54].mxu1 %vm2023_vm9, %v2904_v12  ;;  %10347 = vmatpush3.bf16.msra.mxu0 %v10346_v35  ;;  %v10884_v14 = vunpack.i.h.bf16 %v10882_v15  ;;  %v10883_v29 = vunpack.i.l.bf16 %v10882_v15 }
 0x732   : > { %9465 = vmatprep.mubr.msk.f32.mxu1 %vm11629_vm5, %v15729_v17  ;;  %10348 = vmatprep.subr.bf16.mxu0 %v15727_v28 }
 0x734   : > { %v10887_v63 = vpop.permute.xlu1 %10886 }
 0x735   : > { %v12723_v24 = vpop.permute.xlu0 %3372  ;;  %9466 = vmatmul.mubr.msk.f32.gmra.mrb[56].mxu1 %vm2023_vm9, %v2906_v33  ;;  %v10352_v33 = vpack.c.bf16 %v10884_v14, %v10883_v29  ;;  %v10889_v25 = vunpack.i.h.bf16 %v10887_v63  ;;  %v10888_v57 = vunpack.i.l.bf16 %v10887_v63 }
 0x736   : > { %10420 = vmatpush3.bf16.xpose.msk.msra.mxu1 %vm12427_vm10, %v10418_v45  ;;  %9468 = vmatprep.mubr.msk.f32.mxu1 %vm11629_vm5, %v15729_v17 }
 0x737   : > { %10421 = vmatprep.subr.bf16.mxu1 %v15727_v28  ;;  %v10355_v11 = vpack.c.bf16 %v10889_v25, %v10888_v57 }
 0x739   : > { %v10877_v52 = vpop.permute.xlu0 %10876  ;;  %9469 = vmatmul.mubr.msk.f32.gmra.mrb[58].mxu1 %vm2023_vm9, %v12627_v55  ;;  %v10869_v55 = vunpack.i.h.bf16 %v12642_v4 }
 0x73a   : > { %v10879_v49 = vunpack.i.h.bf16 %v10877_v52  ;;  %v10878_v59 = vunpack.i.l.bf16 %v10877_v52  ;;  %9471 = vmatprep.mubr.msk.f32.mxu1 %vm11629_vm5, %v15729_v17 }
 0x73c   : > { %v10349_v62 = vpack.c.bf16 %v10879_v49, %v10878_v59 }
 0x73d   : > { %v12737_v12 = vpop.permute.xlu0 %10891  ;;  %9472 = vmatmul.mubr.msk.f32.gmra.mrb[60].mxu1 %vm2023_vm9, %v12637_v1  ;;  %v10426_v1 = vpack.c.bf16 %v10869_v55, %v10868_v2 }
 0x73e   : > { %10350 = vmatpush3.bf16.msra.mxu0 %v10349_v62  ;;  %10424 = vmatpush3.bf16.xpose.msk.msra.mxu1 %vm12427_vm10, %v10422_v60 }
 0x73f   : > { %9474 = vmatprep.mubr.msk.f32.mxu1 %vm11629_vm5, %v15729_v17  ;;  %10351 = vmatprep.subr.bf16.mxu0 %v15727_v28 }
 0x740   : > { %10425 = vmatprep.subr.bf16.mxu1 %v15727_v28 }
 0x741   : > { %v12749_v7 = vpop.permute.xlu0 %10901  ;;  %9475 = vmatmul.mubr.msk.f32.gmra.mrb[62].mxu1 %vm2023_vm9, %v12660_v18 }
 0x742   : > { %10353 = vmatpush3.bf16.msra.mxu0 %v10352_v33  ;;  %9477 = vmatprep.mubr.msk.f32.mxu1 %vm11629_vm5, %v15729_v17 }
 0x743   : > { %10354 = vmatprep.subr.bf16.mxu0 %v15727_v28 }
 0x745   : > { %v12756_v23 = vpop.permute.xlu0 %10916  ;;  %9478 = vmatmul.mubr.msk.f32.gmra.mrb[64].mxu1 %vm2023_vm9, %v12673_v40 }
 0x746   : > { %10356 = vmatpush3.bf16.msra.mxu0 %v10355_v11  ;;  %10428 = vmatpush3.bf16.xpose.msk.msra.mxu1 %vm12427_vm10, %v10426_v1 }
 0x747   : > { %9480 = vmatprep.mubr.msk.f32.mxu1 %vm11629_vm5, %v15729_v17  ;;  %9547 = vmatprep.subr.mxu1 %v15729_v17 }
 0x748   : > { %9322 = vmatprep.subr.mxu0 %v15729_v17 }
 0x749   : > { %v12766_v4 = vpop.permute.xlu0 %10926  ;;  %9481 = vmatmul.mubr.msk.f32.gmra.mrb[66].mxu1 %vm2023_vm9, %v12650_v10 }
 0x74a   : > { %9483 = vmatprep.mubr.msk.f32.mxu1 %vm11629_vm5, %v15729_v17 }
 0x74d   : > { %v12772_v18 = vpop.permute.xlu0 %10931  ;;  %9484 = vmatmul.mubr.msk.f32.gmra.mrb[68].mxu1 %vm2023_vm9, %v12680_v31 }
 0x74e   : > { %15821 = vst [vmem:[#allocation22_spill] sm:$0xff] %v12772_v18  ;;  %9548 = vmatpush3.xpose.msk.msra.mxu1 %vm2023_vm9, %v12658_v58  ;;  %9549 = vmatprep.mubr.msk.f32.mxu1 %vm11629_vm5, %v15729_v17 }
 0x74f   : > { %10441 = vmatprep.subr.bf16.mxu1 %v15727_v28 }
 0x751   : > { %v2297_v0 = vpop.permute.xlu0 %2296  ;;  %9550 = vmatmul.mubr.msk.f32.vlgmr.msra.gmra.mrb[70].mxu1 %vm2023_vm9, %v12690_v41 }
 0x752   : > { %9323 = vmatpush3.msk.msra.mxu0 %vm2333_vm11, %v2297_v0  ;;  %9552 = vmatprep.mubr.msk.f32.mxu1 %vm11629_vm5, %v15729_v17 }
 0x753   : > { %10373 = vmatprep.subr.bf16.mxu0 %v15727_v28 }
 0x755   : > { %9553 = vmatmul.mubr.msk.f32.gmra.mrb[72].mxu1 %vm2023_vm9, %v12671_v9 }
 0x756   : > { %9555 = vmatprep.mubr.msk.f32.mxu1 %vm11629_vm5, %v15729_v17 }
 0x759   : > { %9556 = vmatmul.mubr.msk.f32.gmra.mrb[74].mxu1 %vm2023_vm9, %v12698_v39 }
 0x75a   : > { %9558 = vmatprep.mubr.msk.f32.mxu1 %vm11629_vm5, %v15729_v17 }
 0x75d   : > { %9559 = vmatmul.mubr.msk.f32.gmra.mrb[76].mxu1 %vm2023_vm9, %v12678_v26 }
 0x75e   : > { %9561 = vmatprep.mubr.msk.f32.mxu1 %vm11629_vm5, %v15729_v17 }
 0x761   : > { %9562 = vmatmul.mubr.msk.f32.gmra.mrb[78].mxu1 %vm2023_vm9, %v12706_v48 }
 0x762   : > { %9564 = vmatprep.mubr.msk.f32.mxu1 %vm11629_vm5, %v15729_v17 }
 0x765   : > { %9565 = vmatmul.mubr.msk.f32.gmra.mrb[80].mxu1 %vm2023_vm9, %v12688_v34 }
 0x766   : > { %9567 = vmatprep.mubr.msk.f32.mxu1 %vm11629_vm5, %v15729_v17 }
 0x769   : > { %9568 = vmatmul.mubr.msk.f32.gmra.mrb[82].mxu1 %vm2023_vm9, %v12717_v38 }
 0x76a   : > { %9570 = vmatprep.mubr.msk.f32.mxu1 %vm11629_vm5, %v15729_v17 }
 0x76d   : > { %9571 = vmatmul.mubr.msk.f32.gmra.mrb[84].mxu1 %vm2023_vm9, %v12696_v30 }
 0x76e   : > { %9573 = vmatprep.mubr.msk.f32.mxu1 %vm11629_vm5, %v15729_v17 }
 0x771   : > { %9574 = vmatmul.mubr.msk.f32.gmra.mrb[86].mxu1 %vm2023_vm9, %v12723_v24 }
 0x772   : > { %9629 = vmatprep.mubr.msk.f32.mxu1 %vm11629_vm5, %v15729_v17 }
 0x7b8   : > { %v2126_v10 = vpop.f32.mrb[16].mxu1 }
 0x7b9   : > { %v12819_v58 = vmul.f32 0.35355338, %v2126_v10  ;;  %v9281_v9 = vpop.f32.mrb[17].mxu1 }
 0x7bb   : > { %v2180_v40 = vsel %vm2179_vm12, %v12819_v58, -inf }
 0x7bc   : > { %2181 = vmax.xlane.f32.xlu1 %v2180_v40  ;;  %v2131_v21 = vpop.f32.mrb[18].mxu1 }
 0x7bd   : > { %v12823_v26 = vmul.f32 0.35355338, %v2131_v21  ;;  %v9284_v31 = vpop.f32.mrb[19].mxu1 }
 0x7bf   : > { %v2183_v34 = vsel %vm2179_vm12, %v12823_v26, -inf }
 0x7c0   : > { %2184 = vmax.xlane.f32.xlu0 %v2183_v34  ;;  %v2136_v41 = vpop.f32.mrb[20].mxu1 }
 0x7c1   : > { %v12827_v37 = vmul.f32 0.35355338, %v2136_v41  ;;  %v9287_v51 = vpop.f32.mrb[21].mxu1 }
 0x7c3   : > { %v2186_v30 = vsel %vm2179_vm12, %v12827_v37, -inf }
 0x7c4   : > { %2187 = vmax.xlane.f32.xlu0 %v2186_v30  ;;  %v2141_v39 = vpop.f32.mrb[22].mxu1 }
 0x7c5   : > { %v12831_v44 = vmul.f32 0.35355338, %v2141_v39  ;;  %v9290_v19 = vpop.f32.mrb[23].mxu1 }
 0x7c7   : > { %v2189_v27 = vsel %vm2179_vm12, %v12831_v44, -inf }
 0x7c8   : > { %2190 = vmax.xlane.f32.xlu1 %v2189_v27  ;;  %v2146_v47 = vpop.f32.mrb[24].mxu1 }
 0x7c9   : > { %v12835_v48 = vmul.f32 0.35355338, %v2146_v47  ;;  %v9293_v35 = vpop.f32.mrb[25].mxu1 }
 0x7cb   : > { %v2192_v5 = vsel %vm2179_vm12, %v12835_v48, -inf }
 0x7cc   : > { %2193 = vmax.xlane.f32.xlu0 %v2192_v5  ;;  %v2151_v53 = vpop.f32.mrb[26].mxu1 }
 0x7cd   : > { %v12839_v38 = vmul.f32 0.35355338, %v2151_v53  ;;  %v9296_v45 = vpop.f32.mrb[27].mxu1 }
 0x7cf   : > { %v2195_v24 = vsel %vm2179_vm12, %v12839_v38, -inf }
 0x7d0   : > { %2196 = vmax.xlane.f32.xlu1 %v2195_v24  ;;  %v2156_v15 = vpop.f32.mrb[28].mxu1 }
 0x7d1   : > { %v12843_v54 = vmul.f32 0.35355338, %v2156_v15  ;;  %v9299_v42 = vpop.f32.mrb[29].mxu1 }
 0x7d3   : > { %v2198_v52 = vsel %vm2179_vm12, %v12843_v54, -inf }
 0x7d4   : > { %2199 = vmax.xlane.f32.xlu0 %v2198_v52  ;;  %v2161_v49 = vpop.f32.mrb[30].mxu1 }
 0x7d5   : > { %v12847_v59 = vmul.f32 0.35355338, %v2161_v49  ;;  %v9302_v60 = vpop.f32.mrb[31].mxu1 }
 0x7d7   : > { %v2201_v14 = vsel %vm2179_vm12, %v12847_v59, -inf }
 0x7d8   : > { %2202 = vmax.xlane.f32.xlu1 %v2201_v14  ;;  %v2166_v29 = vpop.f32.mrb[32].mxu1 }
 0x7d9   : > { %v12851_v62 = vmul.f32 0.35355338, %v2166_v29  ;;  %v9305_v63 = vpop.f32.mrb[33].mxu1 }
 0x7db   : > { %v2205_v55 = vsel %vm2204_vm13, %v12851_v62, -inf }
 0x7dc   : > { %2206 = vmax.xlane.f32.xlu0 %v2205_v55  ;;  %v2584_v2 = vpop.f32.mrb[34].mxu1 }
 0x7dd   : > { %v12855_v33 = vmul.f32 0.35355338, %v2584_v2  ;;  %v9371_v25 = vpop.f32.mrb[35].mxu1 }
 0x7df   : > { %v2637_v57 = vsel %vm2179_vm12, %v12855_v33, -inf }
 0x7e0   : > { %2638 = vmax.xlane.f32.xlu1 %v2637_v57  ;;  %v2589_v1 = vpop.f32.mrb[36].mxu1 }
 0x7e1   : > { %v12859_v11 = vmul.f32 0.35355338, %v2589_v1  ;;  %v9374_v0 = vpop.f32.mrb[37].mxu1 }
 0x7e3   : > { %v2640_v10 = vsel %vm2179_vm12, %v12859_v11, -inf }
 0x7e4   : > { %2641 = vmax.xlane.f32.xlu0 %v2640_v10  ;;  %v2594_v9 = vpop.f32.mrb[38].mxu1 }
 0x7e5   : > { %v12863_v40 = vmul.f32 0.35355338, %v2594_v9  ;;  %v9377_v21 = vpop.f32.mrb[39].mxu1 }
 0x7e7   : > { %v2643_v31 = vsel %vm2179_vm12, %v12863_v40, -inf }
 0x7e8   : > { %2644 = vmax.xlane.f32.xlu1 %v2643_v31  ;;  %v2599_v34 = vpop.f32.mrb[40].mxu1 }
 0x7e9   : > { %v12867_v41 = vmul.f32 0.35355338, %v2599_v34  ;;  %v9380_v51 = vpop.f32.mrb[41].mxu1 }
 0x7eb   : > { %v2646_v30 = vsel %vm2179_vm12, %v12867_v41, -inf }
 0x7ec   : > { %2647 = vmax.xlane.f32.xlu0 %v2646_v30  ;;  %v2604_v39 = vpop.f32.mrb[42].mxu1 }
 0x7ed   : > { %v9383_v19 = vpop.f32.mrb[43].mxu1  ;;  %v12889_v30 = vmul.f32 0.35355338, %v2604_v39 }
 0x7f0   : > { %v2609_v27 = vpop.f32.mrb[44].mxu1 }
 0x7f1   : > { %v12871_v47 = vmul.f32 0.35355338, %v2609_v27  ;;  %v9386_v35 = vpop.f32.mrb[45].mxu1 }
 0x7f3   : > { %v2652_v5 = vsel %vm2179_vm12, %v12871_v47, -inf }
 0x7f4   : > { %2653 = vmax.xlane.f32.xlu0 %v2652_v5  ;;  %v2614_v53 = vpop.f32.mrb[46].mxu1 }
 0x7f5   : > { %v9389_v45 = vpop.f32.mrb[47].mxu1 }
 0x7f6   : > { %v12895_v45 = vmul.f32 0.35355338, %v2614_v53 }
 0x7f8   : > { %v2619_v24 = vpop.f32.mrb[48].mxu1 }
 0x7f9   : > { %v12875_v15 = vmul.f32 0.35355338, %v2619_v24  ;;  %10936 = vrot.lane.b32.xlu1 %v12397_v43, %s15745_s7  ;;  %v9392_v42 = vpop.f32.mrb[49].mxu1 }
 0x7fa   : > { %v2649_v42 = vsel %vm2179_vm12, %v12889_v30, -inf }
 0x7fb   : > { %v2658_v52 = vsel %vm2179_vm12, %v12875_v15, -inf }
 0x7fc   : > { %2659 = vmax.xlane.f32.xlu0 %v2658_v52  ;;  %v2624_v49 = vpop.f32.mrb[50].mxu1 }
 0x7fd   : > { %v9395_v60 = vpop.f32.mrb[51].mxu1 }
 0x7fe   : > { %v12899_v60 = vmul.f32 0.35355338, %v2624_v49 }
 0x800   : > { %v3039_v14 = vpop.f32.mrb[52].mxu1 }
 0x801   : > { %v12881_v29 = vmul.f32 0.35355338, %v3039_v14  ;;  %v9461_v63 = vpop.f32.mrb[53].mxu1  ;;  %v2655_v14 = vsel %vm2179_vm12, %v12895_v45, -inf }
 0x803   : > { %v3092_v55 = vsel %vm2179_vm12, %v12881_v29, -inf }
 0x804   : > { %3093 = vmax.xlane.f32.xlu0 %v3092_v55  ;;  %v3044_v2 = vpop.f32.mrb[54].mxu1 }
 0x805   : > { %v9464_v25 = vpop.f32.mrb[55].mxu1 }
 0x806   : > { %v12907_v25 = vmul.f32 0.35355338, %v3044_v2 }
 0x808   : > { %v3049_v57 = vpop.f32.mrb[56].mxu1  ;;  %v3095_v2 = vsel %vm2179_vm12, %v12907_v25, -inf }
 0x809   : > { %v12885_v1 = vmul.f32 0.35355338, %v3049_v57  ;;  %v9467_v43 = vpop.f32.mrb[57].mxu1 }
 0x80a   : > { %v2661_v43 = vsel %vm2204_vm13, %v12899_v60, -inf }
 0x80b   : > { %v3098_v0 = vsel %vm2179_vm12, %v12885_v1, -inf }
 0x80c   : > { %3099 = vmax.xlane.f32.xlu0 %v3098_v0  ;;  %v3054_v10 = vpop.f32.mrb[58].mxu1 }
 0x80d   : > { %v9470_v9 = vpop.f32.mrb[59].mxu1 }
 0x810   : > { %v3059_v21 = vpop.f32.mrb[60].mxu1 }
 0x811   : > { %v9473_v31 = vpop.f32.mrb[61].mxu1 }
 0x812   : > { %v12915_v31 = vmul.f32 0.35355338, %v3054_v10 }
 0x814   : > { %v3064_v34 = vpop.f32.mrb[62].mxu1  ;;  %v3101_v10 = vsel %vm2179_vm12, %v12915_v31, -inf }
 0x815   : > { %v9476_v51 = vpop.f32.mrb[63].mxu1 }
 0x818   : > { %v3069_v19 = vpop.f32.mrb[64].mxu1 }
 0x819   : > { %v12891_v27 = vmul.f32 0.35355338, %v3069_v19  ;;  %v9479_v35 = vpop.f32.mrb[65].mxu1 }
 0x81b   : > { %v3110_v5 = vsel %vm2179_vm12, %v12891_v27, -inf }
 0x81c   : > { %3111 = vmax.xlane.f32.xlu0 %v3110_v5  ;;  %v3074_v24 = vpop.f32.mrb[66].mxu1 }
 0x81d   : > { %2650 = vmax.xlane.f32.xlu1 %v2649_v42  ;;  %v9482_v52 = vpop.f32.mrb[67].mxu1  ;;  %v12923_v42 = vmul.f32 0.35355338, %v3059_v21  ;;  %v12935_v21 = vmul.f32 0.35355338, %v3074_v24 }
 0x820   : > { %v3079_v39 = vpop.f32.mrb[68].mxu1 }
 0x821   : > { %v12903_v63 = vmul.f32 0.35355338, %v3079_v39  ;;  %2656 = vmax.xlane.f32.xlu1 %v2655_v14  ;;  %v9485_v55 = vpop.f32.mrb[69].mxu1  ;;  %v12927_v39 = vpop.permute.xlu1 %10896 }
 0x822   : > { %v12929_v55 = vmul.f32 0.35355338, %v3064_v34 }
 0x823   : > { %v3116_v53 = vsel %vm2204_vm13, %v12903_v63, -inf }
 0x824   : > { %3117 = vmax.xlane.f32.xlu0 %v3116_v53  ;;  %v3494_v57 = vpop.f32.mrb[70].mxu1 }
 0x825   : > { %v12911_v49 = vmul.f32 0.35355338, %v3494_v57  ;;  %2662 = vmax.xlane.f32.xlu1 %v2661_v43  ;;  %v9551_v0 = vpop.f32.mrb[71].mxu1  ;;  %v3104_v57 = vsel %vm2179_vm12, %v12923_v42, -inf }
 0x826   : > { %v12933_v0 = vpop.permute.xlu1 %10906 }
 0x827   : > { %v3547_v9 = vsel %vm2179_vm12, %v12911_v49, -inf }
 0x828   : > { %3548 = vmax.xlane.f32.xlu0 %v3547_v9  ;;  %v3499_v51 = vpop.f32.mrb[72].mxu1 }
 0x829   : > { %v12919_v19 = vmul.f32 0.35355338, %v3499_v51  ;;  %3096 = vmax.xlane.f32.xlu1 %v3095_v2  ;;  %v9554_v35 = vpop.f32.mrb[73].mxu1  ;;  %v3107_v51 = vsel %vm2179_vm12, %v12929_v55, -inf }
 0x82b   : > { %v3550_v5 = vsel %vm2179_vm12, %v12919_v19, -inf }
 0x82c   : > { %3551 = vmax.xlane.f32.xlu0 %v3550_v5  ;;  %v3504_v52 = vpop.f32.mrb[74].mxu1  ;;  %v3113_v5 = vsel %vm2179_vm12, %v12935_v21, -inf }
 0x82d   : > { %3102 = vmax.xlane.f32.xlu1 %v3101_v10  ;;  %v9557_v14 = vpop.f32.mrb[75].mxu1  ;;  %v12939_v35 = vmul.f32 0.35355338, %v3504_v52  ;;  %v12943_v10 = vpop.permute.xlu1 %10911 }
 0x82f   : > { %v3553_v52 = vsel %vm2179_vm12, %v12939_v35, -inf }
 0x830   : > { %v3509_v53 = vpop.f32.mrb[76].mxu1 }
 0x831   : > { %3105 = vmax.xlane.f32.xlu1 %v3104_v57  ;;  %v9560_v43 = vpop.f32.mrb[77].mxu1  ;;  %v12953_v28 = vpop.permute.xlu1 %10921 }
 0x832   : > { %v12949_v43 = vmul.f32 0.35355338, %v3509_v53 }
 0x834   : > { %v3514_v9 = vpop.f32.mrb[78].mxu1 }
 0x835   : > { %3108 = vmax.xlane.f32.xlu1 %v3107_v51  ;;  %v9563_v2 = vpop.f32.mrb[79].mxu1  ;;  %v12955_v17 = vmul.f32 0.35355338, %v3514_v9  ;;  %v12967_v9 = vpop.permute.xlu1 %3207 }
 0x838   : > { %v3519_v34 = vpop.f32.mrb[80].mxu1 }
 0x839   : > { %v12945_v14 = vmul.f32 0.35355338, %v3519_v34  ;;  %3114 = vmax.xlane.f32.xlu1 %v3113_v5  ;;  %v9566_v57 = vpop.f32.mrb[81].mxu1  ;;  %v3556_v5 = vsel %vm2179_vm12, %v12949_v43, -inf }
 0x83b   : > { %v3562_v24 = vsel %vm2179_vm12, %v12945_v14, -inf }
 0x83c   : > { %3563 = vmax.xlane.f32.xlu0 %v3562_v24  ;;  %v3524_v51 = vpop.f32.mrb[82].mxu1 }
 0x83d   : > { %3554 = vmax.xlane.f32.xlu1 %v3553_v52  ;;  %v9569_v2 = vpop.f32.mrb[83].mxu1  ;;  %v12963_v46 = vmul.f32 0.35355338, %v3524_v51  ;;  %v12975_v51 = vpop.permute.xlu0 %2752 }
 0x83e   : > { %v3559_v2 = vsel %vm2179_vm12, %v12955_v17, -inf }
 0x840   : > { %v3529_v34 = vpop.f32.mrb[84].mxu1 }
 0x841   : > { %v12959_v57 = vmul.f32 0.35355338, %v3529_v34  ;;  %3557 = vmax.xlane.f32.xlu1 %v3556_v5  ;;  %v9572_v53 = vpop.f32.mrb[85].mxu1  ;;  %v3565_v5 = vsel %vm2179_vm12, %v12963_v46, -inf }
 0x843   : > { %v3568_v24 = vsel %vm2179_vm12, %v12959_v57, -inf }
 0x844   : > { %3569 = vmax.xlane.f32.xlu0 %v3568_v24  ;;  %v3534_v52 = vpop.f32.mrb[86].mxu1 }
 0x845   : > { %v12969_v50 = vmul.f32 0.35355338, %v3534_v52  ;;  %3560 = vmax.xlane.f32.xlu1 %v3559_v2  ;;  %v9575_v32 = vpop.f32.mrb[87].mxu1 }
 0x847   : > { %15822 = vst [vmem:[#allocation23_spill] sm:$0xff] %v12969_v50  ;;  %v3571_v34 = vsel %vm2204_vm13, %v12969_v50, -inf }
 0x848   : > { %3572 = vmax.xlane.f32.xlu0 %v3571_v34 }
 0x849   : > { %v2182_v53 = vpop.xlane.xlu1 %2181  ;;  %3566 = vmax.xlane.f32.xlu1 %v3565_v5 }
 0x84a   : > { %v2208_v24 = vsub.f32 %v12819_v58, %v2182_v53 }
 0x84c   : > { %v2217_v36 = vmul.f32 1.442695, %v2208_v24 }
 0x84d   : > { %v2185_v20 = vpop.xlane.xlu0 %2184 }
 0x84e   : > { %11128 = vpow2.f32 %v2217_v36  ;;  %v2209_v52 = vsub.f32 %v12823_v26, %v2185_v20 }
 0x850   : > { %v2219_v2 = vmul.f32 1.442695, %v2209_v52 }
 0x851   : > { %v2188_v32 = vpop.xlane.xlu0 %2187 }
 0x852   : > { %11130 = vpow2.f32 %v2219_v2  ;;  %v2210_v22 = vsub.f32 %v12827_v37, %v2188_v32 }
 0x854   : > { %v2221_v34 = vmul.f32 1.442695, %v2210_v22 }
 0x855   : > { %v2191_v13 = vpop.xlane.xlu1 %2190 }
 0x856   : > { %11132 = vpow2.f32 %v2221_v34  ;;  %v2211_v16 = vsub.f32 %v12831_v44, %v2191_v13 }
 0x858   : > { %v12981_v3 = vpop.eup %11128  ;;  %v2223_v5 = vmul.f32 1.442695, %v2211_v16 }
 0x859   : > { %v2194_v6 = vpop.xlane.xlu0 %2193  ;;  %v2235_v58 = vsel %vm2179_vm12, %v12981_v3, 0.0 }
 0x85a   : > { %11134 = vpow2.f32 %v2223_v5  ;;  %v2212_v20 = vsub.f32 %v12835_v48, %v2194_v6  ;;  %2236 = vadd.xlane.f32.xlu0 %v2235_v58 }
 0x85c   : > { %v12986_v36 = vpop.eup %11130  ;;  %v2225_v26 = vmul.f32 1.442695, %v2212_v20 }
 0x85d   : > { %v2197_v37 = vpop.xlane.xlu1 %2196  ;;  %v2238_v22 = vsel %vm2179_vm12, %v12986_v36, 0.0 }
 0x85e   : > { %11136 = vpow2.f32 %v2225_v26  ;;  %v2213_v13 = vsub.f32 %v12839_v38, %v2197_v37  ;;  %2239 = vadd.xlane.f32.xlu0 %v2238_v22 }
 0x860   : > { %v12991_v16 = vpop.eup %11132  ;;  %v2227_v44 = vmul.f32 1.442695, %v2213_v13 }
 0x861   : > { %v2200_v53 = vpop.xlane.xlu0 %2199  ;;  %v2241_v24 = vsel %vm2179_vm12, %v12991_v16, 0.0 }
 0x862   : > { %11138 = vpow2.f32 %v2227_v44  ;;  %v2214_v6 = vsub.f32 %v12843_v54, %v2200_v53  ;;  %2242 = vadd.xlane.f32.xlu0 %v2241_v24 }
 0x864   : > { %v12996_v48 = vpop.eup %11134  ;;  %v2229_v52 = vmul.f32 1.442695, %v2214_v6 }
 0x865   : > { %v2203_v2 = vpop.xlane.xlu1 %2202  ;;  %v2244_v32 = vsel %vm2179_vm12, %v12996_v48, 0.0 }
 0x866   : > { %11140 = vpow2.f32 %v2229_v52  ;;  %v2215_v38 = vsub.f32 %v12847_v59, %v2203_v2  ;;  %2245 = vadd.xlane.f32.xlu0 %v2244_v32 }
 0x868   : > { %v13001_v34 = vpop.eup %11136  ;;  %v2231_v5 = vmul.f32 1.442695, %v2215_v38 }
 0x869   : > { %v2207_v58 = vpop.xlane.xlu0 %2206  ;;  %v2247_v20 = vsel %vm2179_vm12, %v13001_v34, 0.0 }
 0x86a   : > { %11142 = vpow2.f32 %v2231_v5  ;;  %v2216_v54 = vsub.f32 %v12851_v62, %v2207_v58  ;;  %2248 = vadd.xlane.f32.xlu0 %v2247_v20 }
 0x86c   : > { %v13006_v26 = vpop.eup %11138  ;;  %v2233_v37 = vmul.f32 1.442695, %v2216_v54 }
 0x86d   : > { %v2639_v22 = vpop.xlane.xlu1 %2638  ;;  %v2250_v13 = vsel %vm2179_vm12, %v13006_v26, 0.0 }
 0x86e   : > { %11144 = vpow2.f32 %v2233_v37  ;;  %v2664_v59 = vsub.f32 %v12855_v33, %v2639_v22  ;;  %2251 = vadd.xlane.f32.xlu0 %v2250_v13 }
 0x870   : > { %v13011_v44 = vpop.eup %11140  ;;  %v2673_v53 = vmul.f32 1.442695, %v2664_v59 }
 0x871   : > { %v2642_v24 = vpop.xlane.xlu0 %2641  ;;  %v2253_v6 = vsel %vm2179_vm12, %v13011_v44, 0.0 }
 0x872   : > { %11146 = vpow2.f32 %v2673_v53  ;;  %v2665_v62 = vsub.f32 %v12859_v11, %v2642_v24  ;;  %2254 = vadd.xlane.f32.xlu1 %v2253_v6 }
 0x874   : > { %v13016_v52 = vpop.eup %11142  ;;  %v2675_v2 = vmul.f32 1.442695, %v2665_v62 }
 0x875   : > { %v2645_v32 = vpop.xlane.xlu1 %2644  ;;  %v2256_v38 = vsel %vm2179_vm12, %v13016_v52, 0.0 }
 0x876   : > { %11148 = vpow2.f32 %v2675_v2  ;;  %v2666_v33 = vsub.f32 %v12863_v40, %v2645_v32  ;;  %2257 = vadd.xlane.f32.xlu0 %v2256_v38 }
 0x878   : > { %v13021_v5 = vpop.eup %11144  ;;  %v2677_v58 = vmul.f32 1.442695, %v2666_v33 }
 0x879   : > { %v2648_v20 = vpop.xlane.xlu0 %2647  ;;  %v2259_v54 = vsel %vm2204_vm13, %v13021_v5, 0.0  ;;  %v13042_v2 = vpop.permute.xlu1 %10936 }
 0x87a   : > { %11150 = vpow2.f32 %v2677_v58  ;;  %v2667_v11 = vsub.f32 %v12867_v41, %v2648_v20  ;;  %2260 = vadd.xlane.f32.xlu1 %v2259_v54  ;;  %15823 = vst [vmem:[#allocation24_spill] sm:$0xff] %v13042_v2 }
 0x87c   : > { %v13026_v37 = vpop.eup %11146  ;;  %v2679_v22 = vmul.f32 1.442695, %v2667_v11 }
 0x87d   : > { %v2691_v13 = vsel %vm2179_vm12, %v13026_v37, 0.0 }
 0x87e   : > { %11152 = vpow2.f32 %v2679_v22  ;;  %2692 = vadd.xlane.f32.xlu1 %v2691_v13 }
 0x880   : > { %v13030_v40 = vpop.eup %11148 }
 0x881   : > { %v2694_v59 = vsel %vm2179_vm12, %v13030_v40, 0.0  ;;  %v2654_v62 = vpop.xlane.xlu0 %2653 }
 0x882   : > { %2695 = vadd.xlane.f32.xlu1 %v2694_v59  ;;  %v2669_v32 = vsub.f32 %v12871_v47, %v2654_v62 }
 0x884   : > { %v13034_v53 = vpop.eup %11150  ;;  %v2683_v20 = vmul.f32 1.442695, %v2669_v32 }
 0x885   : > { %v2697_v41 = vsel %vm2179_vm12, %v13034_v53, 0.0 }
 0x886   : > { %2698 = vadd.xlane.f32.xlu1 %v2697_v41 }
 0x888   : > { %v13038_v24 = vpop.eup %11152 }
 0x889   : > { %v2700_v6 = vsel %vm2179_vm12, %v13038_v24, 0.0  ;;  %v2660_v38 = vpop.xlane.xlu0 %2659 }
 0x88a   : > { %2701 = vadd.xlane.f32.xlu1 %v2700_v6  ;;  %v2671_v59 = vsub.f32 %v12875_v15, %v2660_v38 }
 0x88c   : > { %v2687_v2 = vmul.f32 1.442695, %v2671_v59 }
 0x891   : > { %v3094_v54 = vpop.xlane.xlu0 %3093 }
 0x899   : > { %v3100_v41 = vpop.xlane.xlu0 %3099 }
 0x8a9   : > { %v3112_v50 = vpop.xlane.xlu0 %3111 }
 0x8aa   : > { %v2651_v33 = vpop.xlane.xlu1 %2650 }
 0x8ab   : > { %v2668_v58 = vsub.f32 %v12889_v30, %v2651_v33  ;;  %v3119_v33 = vsub.f32 %v12881_v29, %v3094_v54 }
 0x8ad   : > { %v2681_v11 = vmul.f32 1.442695, %v2668_v58 }
 0x8ae   : > { %v2657_v22 = vpop.xlane.xlu1 %2656 }
 0x8af   : > { %11154 = vpow2.f32 %v2681_v11  ;;  %v2670_v13 = vsub.f32 %v12895_v45, %v2657_v22 }
 0x8b0   : > { %11156 = vpow2.f32 %v2683_v20 }
 0x8b1   : > { %v2685_v6 = vmul.f32 1.442695, %v2670_v13  ;;  %v3118_v45 = vpop.xlane.xlu0 %3117 }
 0x8b2   : > { %v2663_v18 = vpop.xlane.xlu1 %2662 }
 0x8b3   : > { %11158 = vpow2.f32 %v2685_v6  ;;  %v2672_v47 = vsub.f32 %v12899_v60, %v2663_v18  ;;  %v3121_v18 = vsub.f32 %v12885_v1, %v3100_v41  ;;  %v3128_v60 = vmul.f32 1.442695, %v3119_v33 }
 0x8b4   : > { %11160 = vpow2.f32 %v2687_v2  ;;  %v3127_v6 = vsub.f32 %v12903_v63, %v3118_v45 }
 0x8b5   : > { %v2689_v58 = vmul.f32 1.442695, %v2672_v47  ;;  %v3549_v22 = vpop.xlane.xlu0 %3548  ;;  %v3132_v59 = vmul.f32 1.442695, %v3121_v18 }
 0x8b6   : > { %v3097_v62 = vpop.xlane.xlu1 %3096 }
 0x8b7   : > { %v3120_v30 = vsub.f32 %v12907_v25, %v3097_v62  ;;  %v3125_v25 = vsub.f32 %v12891_v27, %v3112_v50 }
 0x8b9   : > { %v13050_v32 = vpop.eup %11154  ;;  %v3130_v20 = vmul.f32 1.442695, %v3120_v30  ;;  %v3140_v47 = vmul.f32 1.442695, %v3125_v25  ;;  %v3144_v30 = vmul.f32 1.442695, %v3127_v6  ;;  %v3552_v63 = vpop.xlane.xlu0 %3551 }
 0x8ba   : > { %v3103_v15 = vpop.xlane.xlu1 %3102  ;;  %v2703_v38 = vsel %vm2179_vm12, %v13050_v32, 0.0  ;;  %v13055_v11 = vpop.eup %11156  ;;  %v3575_v18 = vsub.f32 %v12919_v19, %v3552_v63 }
 0x8bb   : > { %11162 = vpow2.f32 %v3130_v20  ;;  %2704 = vadd.xlane.f32.xlu1 %v2703_v38  ;;  %v2706_v29 = vsel %vm2179_vm12, %v13055_v11, 0.0  ;;  %v3122_v1 = vsub.f32 %v12915_v31, %v3103_v15 }
 0x8bc   : > { %11164 = vpow2.f32 %v2689_v58 }
 0x8bd   : > { %v13061_v54 = vpop.eup %11158  ;;  %11166 = vpow2.f32 %v3128_v60  ;;  %v3134_v45 = vmul.f32 1.442695, %v3122_v1 }
 0x8be   : > { %v3106_v2 = vpop.xlane.xlu1 %3105  ;;  %v2709_v27 = vsel %vm2179_vm12, %v13061_v54, 0.0  ;;  %v13068_v62 = vpop.eup %11160 }
 0x8bf   : > { %v3123_v13 = vsub.f32 %v12923_v42, %v3106_v2  ;;  %2707 = vadd.xlane.f32.xlu1 %v2706_v29  ;;  %v3574_v42 = vsub.f32 %v12911_v49, %v3549_v22  ;;  %v2712_v20 = vsel %vm2179_vm12, %v13068_v62, 0.0  ;;  %v3585_v22 = vmul.f32 1.442695, %v3575_v18 }
 0x8c1   : > { %v3136_v41 = vmul.f32 1.442695, %v3123_v13  ;;  %v3583_v49 = vmul.f32 1.442695, %v3574_v42 }
 0x8c2   : > { %v3109_v50 = vpop.xlane.xlu1 %3108 }
 0x8c3   : > { %11168 = vpow2.f32 %v3136_v41  ;;  %2710 = vadd.xlane.f32.xlu1 %v2709_v27  ;;  %v3124_v31 = vsub.f32 %v12929_v55, %v3109_v50 }
 0x8c4   : > { %11170 = vpow2.f32 %v3132_v59 }
 0x8c5   : > { %v13071_v33 = vpop.eup %11162  ;;  %11172 = vpow2.f32 %v3140_v47  ;;  %v3138_v60 = vmul.f32 1.442695, %v3124_v31 }
 0x8c6   : > { %v3115_v58 = vpop.xlane.xlu1 %3114  ;;  %v3149_v15 = vsel %vm2179_vm12, %v13071_v33, 0.0  ;;  %v13078_v38 = vpop.eup %11164  ;;  %11174 = vpow2.f32 %v3144_v30 }
 0x8c7   : > { %2713 = vadd.xlane.f32.xlu1 %v2712_v20  ;;  %3150 = vadd.xlane.f32.xlu0 %v3149_v15  ;;  %11176 = vpow2.f32 %v3134_v45  ;;  %v3126_v25 = vsub.f32 %v12935_v21, %v3115_v58  ;;  %v2715_v2 = vsel %vm2204_vm13, %v13078_v38, 0.0  ;;  %v13084_v29 = vpop.eup %11166 }
 0x8c8   : > { %11178 = vpow2.f32 %v3583_v49  ;;  %v3146_v21 = vsel %vm2179_vm12, %v13084_v29, 0.0 }
 0x8c9   : > { %11180 = vpow2.f32 %v3138_v60  ;;  %v3142_v6 = vmul.f32 1.442695, %v3126_v25  ;;  %v13114_v15 = vpop.xlane.xlu0 %3563 }
 0x8ca   : > { %v3555_v55 = vpop.xlane.xlu1 %3554  ;;  %11182 = vpow2.f32 %v3585_v22 }
 0x8cb   : > { %2716 = vadd.xlane.f32.xlu1 %v2715_v2  ;;  %v3576_v13 = vsub.f32 %v12939_v35, %v3555_v55  ;;  %11184 = vpow2.f32 %v3142_v6 }
 0x8cd   : > { %v13087_v59 = vpop.eup %11168  ;;  %v3587_v35 = vmul.f32 1.442695, %v3576_v13 }
 0x8ce   : > { %v13089_v19 = vpop.eup %11170  ;;  %v3558_v47 = vpop.xlane.xlu1 %3557  ;;  %v3158_v1 = vsel %vm2179_vm12, %v13087_v59, 0.0 }
 0x8cf   : > { %v13095_v41 = vpop.eup %11172  ;;  %v3577_v50 = vsub.f32 %v12949_v43, %v3558_v47  ;;  %3147 = vadd.xlane.f32.xlu1 %v3146_v21  ;;  %3159 = vadd.xlane.f32.xlu0 %v3158_v1  ;;  %v3152_v42 = vsel %vm2179_vm12, %v13089_v19, 0.0  ;;  %11186 = vpow2.f32 %v3587_v35 }
 0x8d0   : > { %v13098_v30 = vpop.eup %11174  ;;  %v3164_v63 = vsel %vm2179_vm12, %v13095_v41, 0.0 }
 0x8d1   : > { %v3589_v27 = vmul.f32 1.442695, %v3577_v50  ;;  %v13104_v45 = vpop.eup %11176  ;;  %v3170_v58 = vsel %vm2204_vm13, %v13098_v30, 0.0  ;;  %v13124_v55 = vpop.xlane.xlu0 %3569 }
 0x8d2   : > { %v13106_v43 = vpop.eup %11178  ;;  %v3155_v31 = vsel %vm2179_vm12, %v13104_v45, 0.0 }
 0x8d3   : > { %3153 = vadd.xlane.f32.xlu1 %v3152_v42  ;;  %3165 = vadd.xlane.f32.xlu0 %v3164_v63  ;;  %11188 = vpow2.f32 %v3589_v27  ;;  %v13112_v20 = vpop.eup %11180  ;;  %v3601_v60 = vsel %vm2179_vm12, %v13106_v43, 0.0  ;;  %v10894_v42 = vunpack.i.h.bf16 %v12737_v12  ;;  %v10893_v63 = vunpack.i.l.bf16 %v12737_v12 }
 0x8d4   : > { %v13116_v49 = vpop.eup %11182  ;;  %v3161_v18 = vsel %vm2179_vm12, %v13112_v20, 0.0  ;;  %v15824_v12 = vmov 0.0  }
 0x8d5   : > { %v13122_v25 = vpop.eup %11184  ;;  %v3604_v13 = vsel %vm2179_vm12, %v13116_v49, 0.0  ;;  %v13138_v1 = vpop.xlane.xlu0 %3572 }
 0x8d6   : > { %v3167_v22 = vsel %vm2179_vm12, %v13122_v25, 0.0 }
 0x8d7   : > { %3156 = vadd.xlane.f32.xlu1 %v3155_v31  ;;  %3171 = vadd.xlane.f32.xlu0 %v3170_v58 }
 0x8d9   : > { %v13126_v2 = vpop.eup %11186 }
 0x8da   : > { %v3607_v21 = vsel %vm2179_vm12, %v13126_v2, 0.0 }
 0x8db   : > { %3162 = vadd.xlane.f32.xlu1 %v3161_v18  ;;  %3602 = vadd.xlane.f32.xlu0 %v3601_v60  ;;  %v10899_v60 = vunpack.i.h.bf16 %v12927_v39 }
 0x8dd   : > { %v13132_v6 = vpop.eup %11188 }
 0x8de   : > { %v3610_v47 = vsel %vm2179_vm12, %v13132_v6, 0.0 }
 0x8df   : > { %3168 = vadd.xlane.f32.xlu1 %v3167_v22  ;;  %3605 = vadd.xlane.f32.xlu0 %v3604_v13  ;;  %v10898_v22 = vunpack.i.l.bf16 %v12927_v39  ;;  %v10374_v13 = vpack.c.bf16 %v10894_v42, %v10893_v63  ;;  %v10904_v39 = vunpack.i.h.bf16 %v12749_v7  ;;  %v10903_v42 = vunpack.i.l.bf16 %v12749_v7 }
 0x8e0   : > { %v10908_v7 = vunpack.i.l.bf16 %v12933_v0 }
 0x8e3   : > { %3611 = vadd.xlane.f32.xlu1 %v3610_v47  ;;  %3608 = vadd.xlane.f32.xlu0 %v3607_v21  ;;  %v3561_v47 = vpop.xlane.xlu1 %3560 }
 0x8e7   : > { %v2237_v50 = vpop.xlane.xlu0 %2236  ;;  %v3567_v63 = vpop.xlane.xlu1 %3566 }
 0x8e8   : > { %11190 = vrcp.f32 %v2237_v50 }
 0x8eb   : > { %v2240_v35 = vpop.xlane.xlu0 %2239 }
 0x8ec   : > { %11192 = vrcp.f32 %v2240_v35 }
 0x8ef   : > { %v2243_v27 = vpop.xlane.xlu0 %2242 }
 0x8f0   : > { %11194 = vrcp.f32 %v2243_v27  ;;  %v10377_v27 = vpack.c.bf16 %v10899_v60, %v10898_v22 }
 0x8f2   : > { %v11191_v31 = vpop.eup %11190 }
 0x8f3   : > { %v2271_v58 = vmul.f32 %v11191_v31, %v12981_v3  ;;  %v2246_v18 = vpop.xlane.xlu0 %2245  ;;  %v15825_v3 = vmov 0.0|0.0  }
 0x8f4   : > { %11196 = vrcp.f32 %v2246_v18  ;;  %10941 = vrot.lane.b32.xlu1 %v12407_v61, %s15745_s7  ;;  %v10380_v18 = vpack.c.bf16 %v10904_v39, %v10903_v42  ;;  %v3581_v39 = vsub.f32 %v12959_v57, %v13124_v55 }
 0x8f5   : > { %9325 = vmatmul.mubr.msk.f32.vlgmr.msra.gmra.mrb[38].mxu0 %vm2179_vm12, %v2271_v58  ;;  %v10909_v58 = vunpack.i.h.bf16 %v12933_v0 }
 0x8f6   : > { %v11193_v21 = vpop.eup %11192  ;;  %10375 = vmatpush3.bf16.msra.mxu0 %v10374_v13  ;;  %9327 = vmatprep.mubr.msk.f32.mxu0 %vm11629_vm5, %v15824_v12 }
 0x8f7   : > { %v2249_v50 = vpop.xlane.xlu0 %2248  ;;  %10376 = vmatprep.subr.bf16.mxu0 %v15825_v3  ;;  %v2272_v35 = vmul.f32 %v11193_v21, %v12986_v36  ;;  %v10383_v13 = vpack.c.bf16 %v10909_v58, %v10908_v7  ;;  %v3578_v21 = vsub.f32 %v12955_v17, %v3561_v47  ;;  %v10914_v7 = vunpack.i.h.bf16 %v12943_v10 }
 0x8f8   : > { %11198 = vrcp.f32 %v2249_v50 }
 0x8f9   : > { %10946 = vrot.lane.b32.xlu0 %v12417_v56, %s15745_s7  ;;  %9328 = vmatmul.mubr.msk.f32.gmra.mrb[40].mxu0 %vm2179_vm12, %v2272_v35 }
 0x8fa   : > { %v11195_v61 = vpop.eup %11194  ;;  %10378 = vmatpush3.bf16.msra.mxu0 %v10377_v27  ;;  %9330 = vmatprep.mubr.msk.f32.mxu0 %vm11629_vm5, %v15824_v12 }
 0x8fb   : > { %v2252_v31 = vpop.xlane.xlu0 %2251  ;;  %10379 = vmatprep.subr.bf16.mxu0 %v15825_v3  ;;  %v2273_v36 = vmul.f32 %v11195_v61, %v12991_v16  ;;  %v3579_v16 = vsub.f32 %v12945_v14, %v13114_v15  ;;  %v3591_v14 = vmul.f32 1.442695, %v3578_v21  ;;  %v3580_v15 = vsub.f32 %v12963_v46, %v3567_v63 }
 0x8fc   : > { %11200 = vrcp.f32 %v2252_v31  ;;  %v3597_v61 = vmul.f32 1.442695, %v3581_v39 }
 0x8fd   : > { %9331 = vmatmul.mubr.msk.f32.gmra.mrb[42].mxu0 %vm2179_vm12, %v2273_v36  ;;  %v3595_v46 = vmul.f32 1.442695, %v3580_v15 }
 0x8fe   : > { %v11197_v56 = vpop.eup %11196  ;;  %10381 = vmatpush3.bf16.msra.mxu0 %v10380_v18  ;;  %9333 = vmatprep.mubr.msk.f32.mxu0 %vm11629_vm5, %v15824_v12  ;;  %v10913_v18 = vunpack.i.l.bf16 %v12943_v10  ;;  %v10919_v10 = vunpack.i.h.bf16 %v12756_v23 }
 0x8ff   : > { %v2255_v60 = vpop.xlane.xlu1 %2254  ;;  %10382 = vmatprep.subr.bf16.mxu0 %v15825_v3  ;;  %v2274_v22 = vmul.f32 %v11197_v56, %v12996_v48  ;;  %v3593_v48 = vmul.f32 1.442695, %v3579_v16 }
 0x900   : > { %11202 = vrcp.f32 %v2255_v60  ;;  %v10402_v16 = vpack.c.bf16 %v10914_v7, %v10913_v18 }
 0x901   : > { %9334 = vmatmul.mubr.msk.f32.gmra.mrb[44].mxu0 %vm2179_vm12, %v2274_v22 }
 0x902   : > { %v11199_v0 = vpop.eup %11198  ;;  %10384 = vmatpush3.bf16.msra.mxu0 %v10383_v13  ;;  %9336 = vmatprep.mubr.msk.f32.mxu0 %vm11629_vm5, %v15824_v12 }
 0x903   : > { %v2258_v50 = vpop.xlane.xlu0 %2257  ;;  %9412 = vmatprep.subr.mxu0 %v15824_v12  ;;  %v2275_v35 = vmul.f32 %v11199_v0, %v13001_v34  ;;  %v10918_v0 = vunpack.i.l.bf16 %v12756_v23  ;;  %v10924_v23 = vunpack.i.h.bf16 %v12953_v28 }
 0x904   : > { %11204 = vrcp.f32 %v2258_v50 }
 0x905   : > { %9337 = vmatmul.mubr.msk.f32.gmra.mrb[46].mxu0 %vm2179_vm12, %v2275_v35 }
 0x906   : > { %v11201_v27 = vpop.eup %11200  ;;  %9413 = vmatpush3.msk.msra.mxu0 %vm2333_vm11, %v12975_v51  ;;  %9339 = vmatprep.mubr.msk.f32.mxu0 %vm11629_vm5, %v15824_v12 }
 0x907   : > { %v2261_v17 = vpop.xlane.xlu1 %2260  ;;  %v2276_v47 = vmul.f32 %v11201_v27, %v13006_v26  ;;  %10401 = vmatprep.subr.bf16.mxu0 %v15825_v3  ;;  %v10405_v27 = vpack.c.bf16 %v10919_v10, %v10918_v0  ;;  %v15827_v0 = vld [vmem:[#allocation22_spill] sm:$0xff] }
 0x908   : > { %11206 = vrcp.f32 %v2261_v17 }
 0x909   : > { %11208 = vpow2.f32 %v3593_v48  ;;  %9340 = vmatmul.mubr.msk.f32.gmra.mrb[48].mxu0 %vm2179_vm12, %v2276_v47  ;;  %v10923_v48 = vunpack.i.l.bf16 %v12953_v28  ;;  %v10929_v47 = vunpack.i.h.bf16 %v12766_v4  ;;  %v10928_v28 = vunpack.i.l.bf16 %v12766_v4  ;;  %v15826_v4 = vld [vmem:[#allocation23_spill] sm:$0xff] }
 0x90a   : > { %v11203_v34 = vpop.eup %11202  ;;  %11210 = vpow2.f32 %v3591_v14  ;;  %9342 = vmatprep.mubr.msk.f32.mxu0 %vm11629_vm5, %v15824_v12 }
 0x90b   : > { %v2693_v51 = vpop.xlane.xlu1 %2692  ;;  %v2277_v42 = vmul.f32 %v11203_v34, %v13011_v44  ;;  %v10408_v17 = vpack.c.bf16 %v10924_v23, %v10923_v48 }
 0x90c   : > { %11212 = vrcp.f32 %v2693_v51 }
 0x90d   : > { %9343 = vmatmul.mubr.msk.f32.gmra.mrb[50].mxu0 %vm2179_vm12, %v2277_v42  ;;  %11214 = vpow2.f32 %v3595_v46  ;;  %v10411_v46 = vpack.c.bf16 %v10929_v47, %v10928_v28 }
 0x90e   : > { %v11205_v26 = vpop.eup %11204  ;;  %9345 = vmatprep.mubr.msk.f32.mxu0 %vm11629_vm5, %v15824_v12 }
 0x90f   : > { %v2696_v63 = vpop.xlane.xlu1 %2695  ;;  %v2278_v57 = vmul.f32 %v11205_v26, %v13016_v52 }
 0x910   : > { %11216 = vrcp.f32 %v2696_v63 }
 0x911   : > { %9346 = vmatmul.mubr.msk.f32.gmra.mrb[52].mxu0 %vm2179_vm12, %v2278_v57  ;;  %11218 = vpow2.f32 %v3597_v61 }
 0x912   : > { %v11207_v55 = vpop.eup %11206  ;;  %9348 = vmatprep.mubr.msk.f32.mxu0 %vm11629_vm5, %v15824_v12 }
 0x913   : > { %v13197_v44 = vpop.eup %11208  ;;  %v2699_v31 = vpop.xlane.xlu1 %2698  ;;  %v2279_v36 = vmul.f32 %v11207_v55, %v13021_v5 }
 0x914   : > { %v13200_v58 = vpop.eup %11210  ;;  %11220 = vrcp.f32 %v2699_v31  ;;  %v3616_v22 = vsel %vm2179_vm12, %v13197_v44, 0.0 }
 0x915   : > { %9349 = vmatmul.mubr.msk.f32.gmra.mrb[54].mxu0 %vm2179_vm12, %v2279_v36  ;;  %v3613_v5 = vsel %vm2179_vm12, %v13200_v58, 0.0 }
 0x916   : > { %v11213_v52 = vpop.eup %11212  ;;  %9414 = vmatprep.mubr.msk.f32.mxu0 %vm11629_vm5, %v15824_v12 }
 0x917   : > { %v2727_v56 = vmul.f32 %v11213_v52, %v13026_v37  ;;  %v2702_v60 = vpop.xlane.xlu1 %2701  ;;  %v13212_v13 = vpop.eup %11214 }
 0x918   : > { %11222 = vrcp.f32 %v2702_v60  ;;  %3617 = vadd.xlane.f32.xlu1 %v3616_v22  ;;  %3614 = vadd.xlane.f32.xlu0 %v3613_v5  ;;  %v3619_v21 = vsel %vm2179_vm12, %v13212_v13, 0.0 }
 0x919   : > { %9415 = vmatmul.mubr.msk.f32.vlgmr.msra.gmra.mrb[56].mxu0 %vm2179_vm12, %v2727_v56 }
 0x91a   : > { %v11217_v37 = vpop.eup %11216  ;;  %10403 = vmatpush3.bf16.msra.mxu0 %v10402_v16  ;;  %9417 = vmatprep.mubr.msk.f32.mxu0 %vm11629_vm5, %v15824_v12 }
 0x91b   : > { %10404 = vmatprep.subr.bf16.mxu0 %v15825_v3  ;;  %v2728_v50 = vmul.f32 %v11217_v37, %v13030_v40  ;;  %v13223_v35 = vpop.eup %11218  ;;  %v10934_v37 = vunpack.i.h.bf16 %v15827_v0 }
 0x91c   : > { %3620 = vadd.xlane.f32.xlu1 %v3619_v21  ;;  %v3622_v15 = vsel %vm2179_vm12, %v13223_v35, 0.0  ;;  %v10933_v21 = vunpack.i.l.bf16 %v15827_v0 }
 0x91d   : > { %9418 = vmatmul.mubr.msk.f32.gmra.mrb[58].mxu0 %vm2179_vm12, %v2728_v50 }
 0x91e   : > { %v11221_v14 = vpop.eup %11220  ;;  %10406 = vmatpush3.bf16.msra.mxu0 %v10405_v27  ;;  %9420 = vmatprep.mubr.msk.f32.mxu0 %vm11629_vm5, %v15824_v12 }
 0x91f   : > { %10407 = vmatprep.subr.bf16.mxu0 %v15825_v3  ;;  %v2729_v40 = vmul.f32 %v11221_v14, %v13034_v53  ;;  %v3582_v53 = vsub.f32 %v15826_v4, %v13138_v1  ;;  %v10430_v14 = vpack.c.bf16 %v10934_v37, %v10933_v21 }
 0x920   : > { %3623 = vadd.xlane.f32.xlu1 %v3622_v15  ;;  %v15828_v15 = vld [vmem:[#allocation24_spill] sm:$0xff] }
 0x921   : > { %9421 = vmatmul.mubr.msk.f32.gmra.mrb[60].mxu0 %vm2179_vm12, %v2729_v40  ;;  %v10938_v40 = vunpack.i.l.bf16 %v15828_v15 }
 0x922   : > { %v11223_v34 = vpop.eup %11222  ;;  %10409 = vmatpush3.bf16.msra.mxu0 %v10408_v17  ;;  %9423 = vmatprep.mubr.msk.f32.mxu0 %vm11629_vm5, %v15824_v12 }
 0x923   : > { %10410 = vmatprep.subr.bf16.mxu0 %v15825_v3  ;;  %v2730_v39 = vmul.f32 %v11223_v34, %v13038_v24  ;;  %v3599_v24 = vmul.f32 1.442695, %v3582_v53 }
 0x925   : > { %9424 = vmatmul.mubr.msk.f32.gmra.mrb[62].mxu0 %vm2179_vm12, %v2730_v39  ;;  %11224 = vpow2.f32 %v3599_v24 }
 0x926   : > { %10412 = vmatpush3.bf16.msra.mxu0 %v10411_v46  ;;  %9426 = vmatprep.mubr.msk.f32.mxu0 %vm11629_vm5, %v15824_v12 }
 0x927   : > { %9502 = vmatprep.subr.mxu0 %v15824_v12 }
 0x92a   : > { %9503 = vmatpush3.msk.msra.mxu0 %vm2333_vm11, %v12967_v9 }
 0x92b   : > { %10429 = vmatprep.subr.bf16.mxu0 %v15825_v3 }
 0x92e   : > { %3662 = vrot.lane.b32.xlu0 %v12440_v8, %s15745_s7  ;;  %s15761_s7 = smov 8  }
 0x92f   : > { %v13252_v42 = vpop.eup %11224 }
 0x930   : > { %v3625_v61 = vsel %vm2204_vm13, %v13252_v42, 0.0 }
 0x948   : > { %v2705_v51 = vpop.xlane.xlu1 %2704 }
 0x949   : > { %11226 = vrcp.f32 %v2705_v51 }
 0x94c   : > { %v2708_v26 = vpop.xlane.xlu1 %2707 }
 0x94d   : > { %11228 = vrcp.f32 %v2708_v26  ;;  %3626 = vadd.xlane.f32.xlu0 %v3625_v61 }
 0x950   : > { %v2711_v9 = vpop.xlane.xlu1 %2710 }
 0x951   : > { %11230 = vrcp.f32 %v2711_v9 }
 0x953   : > { %v11227_v63 = vpop.eup %11226 }
 0x954   : > { %v2714_v57 = vpop.xlane.xlu1 %2713  ;;  %v2731_v8 = vmul.f32 %v11227_v63, %v13050_v32  ;;  %v3151_v55 = vpop.xlane.xlu0 %3150 }
 0x955   : > { %11232 = vrcp.f32 %v2714_v57 }
 0x956   : > { %9427 = vmatmul.mubr.msk.f32.gmra.mrb[64].mxu0 %vm2179_vm12, %v2731_v8 }
 0x957   : > { %v11229_v1 = vpop.eup %11228  ;;  %9429 = vmatprep.mubr.msk.f32.mxu0 %vm11629_vm5, %v15824_v12 }
 0x958   : > { %v2717_v31 = vpop.xlane.xlu1 %2716  ;;  %v2732_v36 = vmul.f32 %v11229_v1, %v13055_v11 }
 0x959   : > { %11234 = vrcp.f32 %v2717_v31 }
 0x95a   : > { %9430 = vmatmul.mubr.msk.f32.gmra.mrb[66].mxu0 %vm2179_vm12, %v2732_v36 }
 0x95b   : > { %v11231_v7 = vpop.eup %11230  ;;  %9432 = vmatprep.mubr.msk.f32.mxu0 %vm11629_vm5, %v15824_v12 }
 0x95c   : > { %v3148_v18 = vpop.xlane.xlu1 %3147  ;;  %v3160_v32 = vpop.xlane.xlu0 %3159  ;;  %v2733_v52 = vmul.f32 %v11231_v7, %v13061_v54 }
 0x95d   : > { %11236 = vrcp.f32 %v3148_v18 }
 0x95e   : > { %9433 = vmatmul.mubr.msk.f32.gmra.mrb[68].mxu0 %vm2179_vm12, %v2733_v52  ;;  %11238 = vrcp.f32 %v3151_v55 }
 0x95f   : > { %v11233_v56 = vpop.eup %11232  ;;  %9435 = vmatprep.mubr.msk.f32.mxu0 %vm11629_vm5, %v15824_v12 }
 0x960   : > { %v3154_v11 = vpop.xlane.xlu1 %3153  ;;  %v3166_v60 = vpop.xlane.xlu0 %3165  ;;  %v2734_v22 = vmul.f32 %v11233_v56, %v13068_v62 }
 0x961   : > { %11240 = vrcp.f32 %v3154_v11 }
 0x962   : > { %9436 = vmatmul.mubr.msk.f32.gmra.mrb[70].mxu0 %vm2179_vm12, %v2734_v22 }
 0x963   : > { %v11235_v5 = vpop.eup %11234  ;;  %9438 = vmatprep.mubr.msk.f32.mxu0 %vm11629_vm5, %v15824_v12 }
 0x964   : > { %v3157_v54 = vpop.xlane.xlu1 %3156  ;;  %v3172_v16 = vpop.xlane.xlu0 %3171  ;;  %v2735_v10 = vmul.f32 %v11235_v5, %v13078_v38  ;;  %v10939_v38 = vunpack.i.h.bf16 %v15828_v15 }
 0x965   : > { %11242 = vrcp.f32 %v3157_v54 }
 0x966   : > { %9439 = vmatmul.mubr.msk.f32.gmra.mrb[72].mxu0 %vm2179_vm12, %v2735_v10  ;;  %11244 = vrcp.f32 %v3160_v32  ;;  %v10433_v34 = vpack.c.bf16 %v10939_v38, %v10938_v40 }
 0x967   : > { %v11237_v50 = vpop.eup %11236  ;;  %9504 = vmatprep.mubr.msk.f32.mxu0 %vm11629_vm5, %v15824_v12 }
 0x968   : > { %v3182_v62 = vmul.f32 %v11237_v50, %v13084_v29  ;;  %v3163_v23 = vpop.xlane.xlu1 %3162  ;;  %v13279_v48 = vpop.xlane.xlu0 %3602 }
 0x969   : > { %v11239_v27 = vpop.eup %11238  ;;  %11246 = vrcp.f32 %v3163_v23 }
 0x96a   : > { %9505 = vmatmul.mubr.msk.f32.vlgmr.msra.gmra.mrb[74].mxu0 %vm2179_vm12, %v3182_v62  ;;  %v3183_v29 = vmul.f32 %v11239_v27, %v13071_v33  ;;  %11248 = vrcp.f32 %v3166_v60 }
 0x96b   : > { %10431 = vmatpush3.bf16.msra.mxu0 %v10430_v14  ;;  %9507 = vmatprep.mubr.msk.f32.mxu0 %vm11629_vm5, %v15824_v12  ;;  %v11241_v28 = vpop.eup %11240 }
 0x96c   : > { %v3169_v17 = vpop.xlane.xlu1 %3168  ;;  %v3606_v47 = vpop.xlane.xlu0 %3605  ;;  %10432 = vmatprep.subr.bf16.mxu0 %v15825_v3  ;;  %v3184_v4 = vmul.f32 %v11241_v28, %v13089_v19 }
 0x96d   : > { %11250 = vrcp.f32 %v3169_v17 }
 0x96e   : > { %9508 = vmatmul.mubr.msk.f32.gmra.mrb[76].mxu0 %vm2179_vm12, %v3183_v29  ;;  %11252 = vrcp.f32 %v3172_v16 }
 0x96f   : > { %10434 = vmatpush3.bf16.msra.mxu0 %v10433_v34  ;;  %9510 = vmatprep.mubr.msk.f32.mxu0 %vm11629_vm5, %v15824_v12  ;;  %v11243_v53 = vpop.eup %11242  ;;  %11254 = vrcp.f32 %v13279_v48 }
 0x970   : > { %v3612_v39 = vpop.xlane.xlu1 %3611  ;;  %v3609_v46 = vpop.xlane.xlu0 %3608  ;;  %10435 = vmatprep.subr.bf16.mxu0 %v15825_v3  ;;  %v3185_v51 = vmul.f32 %v11243_v53, %v13104_v45  ;;  %11256 = vrcp.f32 %v3606_v47 }
 0x971   : > { %v11245_v26 = vpop.eup %11244  ;;  %11258 = vrcp.f32 %v3609_v46 }
 0x972   : > { %9511 = vmatmul.mubr.msk.f32.gmra.mrb[78].mxu0 %vm2179_vm12, %v3184_v4  ;;  %v3186_v8 = vmul.f32 %v11245_v26, %v13087_v59  ;;  %11260 = vrcp.f32 %v3612_v39 }
 0x973   : > { %9513 = vmatprep.mubr.msk.f32.mxu0 %vm11629_vm5, %v15824_v12  ;;  %v11247_v1 = vpop.eup %11246 }
 0x974   : > { %v10942_v33 = vpop.permute.xlu1 %10941  ;;  %v10947_v24 = vpop.permute.xlu0 %10946  ;;  %v3187_v55 = vmul.f32 %v11247_v1, %v13112_v20 }
 0x975   : > { %v10944_v61 = vunpack.i.h.bf16 %v10942_v33  ;;  %v10943_v9 = vunpack.i.l.bf16 %v10942_v33  ;;  %v10949_v63 = vunpack.i.h.bf16 %v10947_v24  ;;  %v10948_v57 = vunpack.i.l.bf16 %v10947_v24  ;;  %v11249_v31 = vpop.eup %11248 }
 0x976   : > { %9514 = vmatmul.mubr.msk.f32.gmra.mrb[80].mxu0 %vm2179_vm12, %v3185_v51  ;;  %v3188_v59 = vmul.f32 %v11249_v31, %v13095_v41 }
 0x977   : > { %v10436_v19 = vpack.c.bf16 %v10944_v61, %v10943_v9  ;;  %9516 = vmatprep.mubr.msk.f32.mxu0 %vm11629_vm5, %v15824_v12  ;;  %v10439_v45 = vpack.c.bf16 %v10949_v63, %v10948_v57  ;;  %v11251_v36 = vpop.eup %11250 }
 0x978   : > { %v3189_v7 = vmul.f32 %v11251_v36, %v13122_v25  ;;  %v11253_v20 = vpop.eup %11252 }
 0x979   : > { %10437 = vmatpush3.bf16.msra.mxu0 %v10436_v19  ;;  %v3190_v18 = vmul.f32 %v11253_v20, %v13098_v30  ;;  %v11255_v32 = vpop.eup %11254 }
 0x97a   : > { %9517 = vmatmul.mubr.msk.f32.gmra.mrb[82].mxu0 %vm2179_vm12, %v3186_v8  ;;  %10438 = vmatprep.subr.bf16.mxu0 %v15825_v3  ;;  %v3637_v25 = vmul.f32 %v11255_v32, %v13106_v43  ;;  %v11257_v11 = vpop.eup %11256  ;;  %v3948_v32 = vld [vmem:[%s15696_s12] sm:$0xff] }
 0x97b   : > { %9519 = vmatprep.mubr.msk.f32.mxu0 %vm11629_vm5, %v15824_v12  ;;  %v3638_v30 = vmul.f32 %v11257_v11, %v13116_v49  ;;  %v11259_v60 = vpop.eup %11258 }
 0x97c   : > { %v3639_v43 = vmul.f32 %v11259_v60, %v13126_v2  ;;  %v11261_v5 = vpop.eup %11260 }
 0x97d   : > { %10440 = vmatpush3.bf16.msra.mxu0 %v10439_v45  ;;  %v3640_v49 = vmul.f32 %v11261_v5, %v13132_v6 }
 0x97e   : > { %9520 = vmatmul.mubr.msk.f32.gmra.mrb[84].mxu0 %vm2179_vm12, %v3187_v55  ;;  %9592 = vmatprep.subr.mxu0 %v15824_v12 }
 0x97f   : > { %9522 = vmatprep.mubr.msk.f32.mxu0 %vm11629_vm5, %v15824_v12 }
 0x982   : > { %9523 = vmatmul.mubr.msk.f32.gmra.mrb[86].mxu0 %vm2179_vm12, %v3188_v59 }
 0x983   : > { %9525 = vmatprep.mubr.msk.f32.mxu0 %vm11629_vm5, %v15824_v12 }
 0x986   : > { %9526 = vmatmul.mubr.msk.f32.gmra.mrb[88].mxu0 %vm2179_vm12, %v3189_v7 }
 0x987   : > { %9528 = vmatprep.mubr.msk.f32.mxu0 %vm11629_vm5, %v15824_v12 }
 0x98a   : > { %9529 = vmatmul.mubr.msk.f32.gmra.mrb[90].mxu0 %vm2179_vm12, %v3190_v18 }
 0x98b   : > { %9594 = vmatprep.mubr.msk.f32.mxu0 %vm11629_vm5, %v15824_v12 }
 0x9a5   : > { %v3615_v41 = vpop.xlane.xlu0 %3614  ;;  %v3618_v52 = vpop.xlane.xlu1 %3617 }
 0x9a6   : > { %11262 = vrcp.f32 %v3615_v41 }
 0x9a7   : > { %11264 = vrcp.f32 %v3618_v52  ;;  %v3950_v52 = vld [vmem:[%s15696_s12 + $0x10] sm:$0xff] }
 0x9a9   : > { %v3663_v56 = vpop.permute.xlu0 %3662  ;;  %v3621_v22 = vpop.xlane.xlu1 %3620 }
 0x9aa   : > { %9593 = vmatpush3.msk.msra.mxu0 %vm2333_vm11, %v3663_v56  ;;  %11266 = vrcp.f32 %v3621_v22 }
 0x9ab   : > { %9595 = vmatmul.mubr.msk.f32.vlgmr.msra.gmra.mrb[92].mxu0 %vm2179_vm12, %v3637_v25  ;;  %10447 = vmatprep.subr.bf16.mxu0 %v15825_v3  ;;  %v3949_v25 = vld [vmem:[%s15696_s12 + $0x8] sm:$0xff] }
 0x9ac   : > { %9597 = vmatprep.mubr.msk.f32.mxu0 %vm11629_vm5, %v15824_v12  ;;  %v10442_v11 = vpack.c.bf16 %v3949_v25, %v3948_v32 }
 0x9ad   : > { %v3624_v54 = vpop.xlane.xlu1 %3623 }
 0x9ae   : > { %11268 = vrcp.f32 %v3624_v54  ;;  %10443 = vmatpush3.bf16.msra.mxu1 %v10442_v11 }
 0x9af   : > { %9598 = vmatmul.mubr.msk.f32.gmra.mrb[94].mxu0 %vm2179_vm12, %v3638_v30  ;;  %v3951_v30 = vld [vmem:[%s15696_s12 + $0x18] sm:$0xff]  ;;  %10444 = vmatprep.subr.bf16.mxu1 %v15825_v3 }
 0x9b0   : > { %9600 = vmatprep.mubr.msk.f32.mxu0 %vm11629_vm5, %v15824_v12  ;;  %v11263_v16 = vpop.eup %11262  ;;  %v10445_v60 = vpack.c.bf16 %v3951_v30, %v3950_v52 }
 0x9b1   : > { %v3641_v10 = vmul.f32 %v11263_v16, %v13200_v58  ;;  %v11265_v2 = vpop.eup %11264 }
 0x9b2   : > { %v3642_v0 = vmul.f32 %v11265_v2, %v13197_v44  ;;  %10446 = vmatpush3.bf16.msra.mxu1 %v10445_v60 }
 0x9b3   : > { %9601 = vmatmul.mubr.msk.f32.gmra.mrb[96].mxu0 %vm2179_vm12, %v3639_v43  ;;  %10453 = vmatprep.subr.bf16.mxu1 %v15825_v3 }
 0x9b4   : > { %9603 = vmatprep.mubr.msk.f32.mxu0 %vm11629_vm5, %v15824_v12  ;;  %v11267_v37 = vpop.eup %11266 }
 0x9b5   : > { %v3643_v6 = vmul.f32 %v11267_v37, %v13212_v13 }
 0x9b7   : > { %9604 = vmatmul.mubr.msk.f32.gmra.mrb[98].mxu0 %vm2179_vm12, %v3640_v49 }
 0x9b8   : > { %9606 = vmatprep.mubr.msk.f32.mxu0 %vm11629_vm5, %v15824_v12  ;;  %v11269_v21 = vpop.eup %11268 }
 0x9b9   : > { %v3644_v58 = vmul.f32 %v11269_v21, %v13223_v35 }
 0x9bb   : > { %9607 = vmatmul.mubr.msk.f32.gmra.mrb[100].mxu0 %vm2179_vm12, %v3641_v10 }
 0x9bc   : > { %9609 = vmatprep.mubr.msk.f32.mxu0 %vm11629_vm5, %v15824_v12 }
 0x9bf   : > { %9610 = vmatmul.mubr.msk.f32.gmra.mrb[102].mxu0 %vm2179_vm12, %v3642_v0 }
 0x9c0   : > { %9612 = vmatprep.mubr.msk.f32.mxu0 %vm11629_vm5, %v15824_v12 }
 0x9c3   : > { %9613 = vmatmul.mubr.msk.f32.gmra.mrb[104].mxu0 %vm2179_vm12, %v3643_v6 }
 0x9c4   : > { %9615 = vmatprep.mubr.msk.f32.mxu0 %vm11629_vm5, %v15824_v12 }
 0x9c7   : > { %9616 = vmatmul.mubr.msk.f32.gmra.mrb[106].mxu0 %vm2179_vm12, %v3644_v58 }
 0x9c8   : > { %v13355_v50 = vpop.f32.mrb[38].mxu0  ;;  %9618 = vmatprep.mubr.msk.f32.mxu0 %vm11629_vm5, %v15824_v12 }
 0x9c9   : > { %v9326_v44 = vpop.f32.mrb[39].mxu0 }
 0x9cc   : > { %v13359_v62 = vpop.f32.mrb[40].mxu0 }
 0x9cd   : > { %v9329_v23 = vpop.f32.mrb[41].mxu0 }
 0x9d0   : > { %v13361_v13 = vpop.f32.mrb[42].mxu0 }
 0x9d1   : > { %v9332_v48 = vpop.f32.mrb[43].mxu0 }
 0x9d4   : > { %v13363_v27 = vpop.f32.mrb[44].mxu0 }
 0x9d5   : > { %v9335_v14 = vpop.f32.mrb[45].mxu0 }
 0x9d8   : > { %v13365_v15 = vpop.f32.mrb[46].mxu0 }
 0x9d9   : > { %v9338_v35 = vpop.f32.mrb[47].mxu0 }
 0x9da   : > { %v3627_v38 = vpop.xlane.xlu0 %3626 }
 0x9db   : > { %11270 = vrcp.f32 %v3627_v38 }
 0x9dc   : > { %v13367_v40 = vpop.f32.mrb[48].mxu0 }
 0x9dd   : > { %v9341_v17 = vpop.f32.mrb[49].mxu0 }
 0x9e0   : > { %v13369_v47 = vpop.f32.mrb[50].mxu0 }
 0x9e1   : > { %v9344_v29 = vpop.f32.mrb[51].mxu0 }
 0x9e4   : > { %v13371_v28 = vpop.f32.mrb[52].mxu0 }
 0x9e5   : > { %v11271_v34 = vpop.eup %11270  ;;  %v9347_v39 = vpop.f32.mrb[53].mxu0 }
 0x9e6   : > { %v3645_v46 = vmul.f32 %v11271_v34, %v13252_v42 }
 0x9e8   : > { %v13374_v4 = vpop.f32.mrb[54].mxu0  ;;  %9619 = vmatmul.mubr.msk.f32.gmra.mrb[108].mxu0 %vm2179_vm12, %v3645_v46 }
 0x9e9   : > { %v9350_v53 = vpop.f32.mrb[55].mxu0  ;;  %9664 = vmatprep.mubr.msk.f32.mxu0 %vm11629_vm5, %v15824_v12 }
 0x9ec   : > { %v2857_v33 = vpop.f32.mrb[56].mxu0 }
 0x9ed   : > { %3820 = vrot.lane.b32.xlu1 %v2857_v33, %s15761_s7  ;;  %v9416_v24 = vpop.f32.mrb[57].mxu0 }
 0x9f0   : > { %v2862_v51 = vpop.f32.mrb[58].mxu0 }
 0x9f1   : > { %3822 = vrot.lane.b32.xlu1 %v2862_v51, %s15761_s7  ;;  %v9419_v26 = vpop.f32.mrb[59].mxu0 }
 0x9f4   : > { %v2867_v61 = vpop.f32.mrb[60].mxu0 }
 0x9f5   : > { %3824 = vrot.lane.b32.xlu1 %v2867_v61, %s15761_s7  ;;  %v9422_v42 = vpop.f32.mrb[61].mxu0 }
 0x9f8   : > { %v2872_v9 = vpop.f32.mrb[62].mxu0 }
 0x9f9   : > { %3826 = vrot.lane.b32.xlu1 %v2872_v9, %s15761_s7  ;;  %v9425_v19 = vpop.f32.mrb[63].mxu0 }
 0xa29   : > { %v2877_v63 = vpop.f32.mrb[64].mxu0 }
 0xa2a   : > { %3828 = vrot.lane.b32.xlu1 %v2877_v63, %s15761_s7  ;;  %v9428_v57 = vpop.f32.mrb[65].mxu0  ;;  %s15856_s7 = smov 48  }
 0xa2d   : > { %v2882_v8 = vpop.f32.mrb[66].mxu0 }
 0xa2e   : > { %v9431_v1 = vpop.f32.mrb[67].mxu0 }
 0xa31   : > { %v2887_v45 = vpop.f32.mrb[68].mxu0 }
 0xa32   : > { %v9434_v55 = vpop.f32.mrb[69].mxu0 }
 0xa35   : > { %v2892_v31 = vpop.f32.mrb[70].mxu0 }
 0xa36   : > { %v9437_v59 = vpop.f32.mrb[71].mxu0 }
 0xa39   : > { %v13384_v36 = vpop.f32.mrb[72].mxu0 }
 0xa3a   : > { %v9440_v7 = vpop.f32.mrb[73].mxu0 }
 0xa3d   : > { %v3312_v20 = vpop.f32.mrb[74].mxu0 }
 0xa3e   : > { %3856 = vrot.lane.b32.xlu1 %v3312_v20, %s15766_s4  ;;  %v9506_v18 = vpop.f32.mrb[75].mxu0 }
 0xa41   : > { %v3317_v41 = vpop.f32.mrb[76].mxu0 }
 0xa42   : > { %3858 = vrot.lane.b32.xlu0 %v3317_v41, %s15766_s4  ;;  %v9509_v56 = vpop.f32.mrb[77].mxu0 }
 0xa45   : > { %v3322_v22 = vpop.f32.mrb[78].mxu0 }
 0xa46   : > { %3830 = vrot.lane.b32.xlu0 %v2882_v8, %s15829_s25  ;;  %3860 = vrot.lane.b32.xlu1 %v3322_v22, %s15766_s4  ;;  %v9512_v43 = vpop.f32.mrb[79].mxu0 }
 0xa49   : > { %v3327_v5 = vpop.f32.mrb[80].mxu0 }
 0xa4a   : > { %3862 = vrot.lane.b32.xlu1 %v3327_v5, %s15766_s4  ;;  %v9515_v54 = vpop.f32.mrb[81].mxu0 }
 0xa4d   : > { %v3332_v49 = vpop.f32.mrb[82].mxu0 }
 0xa4e   : > { %3864 = vrot.lane.b32.xlu0 %v3332_v49, %s15766_s4  ;;  %v9518_v16 = vpop.f32.mrb[83].mxu0 }
 0xa51   : > { %v3337_v10 = vpop.f32.mrb[84].mxu0 }
 0xa52   : > { %v9521_v2 = vpop.f32.mrb[85].mxu0 }
 0xa55   : > { %v3342_v0 = vpop.f32.mrb[86].mxu0 }
 0xa56   : > { %v9524_v37 = vpop.f32.mrb[87].mxu0 }
 0xa59   : > { %v3347_v6 = vpop.f32.mrb[88].mxu0 }
 0xa5a   : > { %v9527_v21 = vpop.f32.mrb[89].mxu0 }
 0xa5d   : > { %v3352_v58 = vpop.f32.mrb[90].mxu0 }
 0xa5e   : > { %v9530_v44 = vpop.f32.mrb[91].mxu0 }
 0xa5f   : > { %v3821_v19 = vpop.permute.xlu1 %3820 }
 0xa63   : > { %v3823_v63 = vpop.permute.xlu1 %3822 }
 0xa64   : > { %v3920_v41 = vsel %vm2023_vm9, %v13359_v62, %v3823_v63 }
 0xa67   : > { %v3825_v57 = vpop.permute.xlu1 %3824 }
 0xa6b   : > { %v3827_v8 = vpop.permute.xlu1 %3826 }
 0xa6c   : > { %v3922_v22 = vsel %vm2023_vm9, %v13363_v27, %v3827_v8 }
 0xa7e   : > { %v3767_v23 = vpop.f32.mrb[92].mxu0 }
 0xa7f   : > { %3892 = vrot.lane.b32.xlu1 %v3767_v23, %s15764_s29  ;;  %v9596_v48 = vpop.f32.mrb[93].mxu0 }
 0xa82   : > { %v3772_v14 = vpop.f32.mrb[94].mxu0 }
 0xa83   : > { %3894 = vrot.lane.b32.xlu1 %v3772_v14, %s15764_s29  ;;  %v9599_v35 = vpop.f32.mrb[95].mxu0 }
 0xa86   : > { %v3777_v38 = vpop.f32.mrb[96].mxu0 }
 0xa87   : > { %3896 = vrot.lane.b32.xlu1 %v3777_v38, %s15764_s29  ;;  %v9602_v17 = vpop.f32.mrb[97].mxu0 }
 0xa8a   : > { %v3782_v29 = vpop.f32.mrb[98].mxu0 }
 0xa8b   : > { %3866 = vrot.lane.b32.xlu1 %v3337_v10, %s15766_s4  ;;  %3898 = vrot.lane.b32.xlu0 %v3782_v29, %s15764_s29  ;;  %v9605_v34 = vpop.f32.mrb[99].mxu0 }
 0xa8e   : > { %v3787_v39 = vpop.f32.mrb[100].mxu0 }
 0xa8f   : > { %3868 = vrot.lane.b32.xlu0 %v3342_v0, %s15766_s4  ;;  %3900 = vrot.lane.b32.xlu1 %v3787_v39, %s15764_s29  ;;  %v9608_v46 = vpop.f32.mrb[101].mxu0 }
 0xa92   : > { %v3792_v53 = vpop.f32.mrb[102].mxu0 }
 0xa93   : > { %3832 = vrot.lane.b32.xlu1 %v2887_v45, %s15829_s25  ;;  %3902 = vrot.lane.b32.xlu0 %v3792_v53, %s15764_s29  ;;  %v9611_v33 = vpop.f32.mrb[103].mxu0 }
 0xa96   : > { %v3797_v24 = vpop.f32.mrb[104].mxu0 }
 0xa97   : > { %3834 = vrot.lane.b32.xlu0 %v2892_v31, %s15829_s25  ;;  %3904 = vrot.lane.b32.xlu1 %v3797_v24, %s15764_s29  ;;  %v9614_v51 = vpop.f32.mrb[105].mxu0  ;;  %v8437_v24 = vld [vmem:[%s15697_s13] ss:$0 sm:$0xff] }
 0xa98   : > { %v15830_v51 = vld [vmem:[#allocation13_spill] sm:$0xff] }
 0xa9a   : > { %v3802_v26 = vpop.f32.mrb[106].mxu0 }
 0xa9b   : > { %3870 = vrot.lane.b32.xlu1 %v3347_v6, %s15766_s4  ;;  %3906 = vrot.lane.b32.xlu0 %v3802_v26, %s15764_s29  ;;  %v9617_v61 = vpop.f32.mrb[107].mxu0 }
 0xa9c   : > { %v3829_v1 = vpop.permute.xlu1 %3828 }
 0xa9d   : > { %v3923_v49 = vsel %vm2023_vm9, %v13365_v15, %v3829_v1 }
 0xa9f   : > { %3836 = vrot.lane.b32.xlu1 %v13384_v36, %s15829_s25  ;;  %3872 = vrot.lane.b32.xlu0 %v3352_v58, %s15766_s4  ;;  %v3919_v36 = vsel %vm2023_vm9, %v13355_v50, %v3821_v19  ;;  %v3921_v50 = vsel %vm2023_vm9, %v13361_v13, %v3825_v57  ;;  %s15850_s4 = smov 80  }
 0xab0   : > { %v3857_v45 = vpop.permute.xlu1 %3856 }
 0xab1   : > { %v3929_v7 = vsel %vm3928_vm14, %v3919_v36, %v3857_v45  ;;  %v15832_v45 = vld [vmem:[#allocation15_spill] sm:$0xff] }
 0xab4   : > { %v3859_v59 = vpop.permute.xlu0 %3858 }
 0xab5   : > { %v3930_v32 = vsel %vm3928_vm14, %v3920_v41, %v3859_v59 }
 0xab8   : > { %v3861_v55 = vpop.permute.xlu1 %3860  ;;  %v3831_v25 = vpop.permute.xlu0 %3830 }
 0xab9   : > { %v3931_v11 = vsel %vm3928_vm14, %v3921_v50, %v3861_v55  ;;  %v3924_v0 = vsel %vm2023_vm9, %v13367_v40, %v3831_v25 }
 0xabb   : > { %v3807_v42 = vpop.f32.mrb[108].mxu0 }
 0xabc   : > { %3908 = vrot.lane.b32.xlu1 %v3807_v42, %s15764_s29  ;;  %v9620_v9 = vpop.f32.mrb[109].mxu0  ;;  %v3863_v31 = vpop.permute.xlu1 %3862  ;;  %s15852_s29 = smov 72  }
 0xabd   : > { %v3932_v43 = vsel %vm3928_vm14, %v3922_v22, %v3863_v31  ;;  %v15831_v9 = vld [vmem:[#allocation12_spill] sm:$0xff] }
 0xabe   : > { %v15835_v22 = vld [vmem:[#allocation16_spill] sm:$0xff] }
 0xac0   : > { %v3865_v62 = vpop.permute.xlu0 %3864 }
 0xac1   : > { %v3933_v16 = vsel %vm3928_vm14, %v3923_v49, %v3865_v62 }
 0xaf1   : > { %v3893_v20 = vpop.permute.xlu1 %3892 }
 0xaf2   : > { %v3939_v18 = vsel %vm3938_vm15, %v3929_v7, %v3893_v20  ;;  %v15833_v20 = vld [vmem:[#allocation14_spill] sm:$0xff] }
 0xaf3   : > { %9630 = vmatmul.mubr.msk.f32.vlgmr.msra.gmra.mrb[88].mxu1 %vm886_vm1, %v3939_v18 }
 0xaf4   : > { %9632 = vmatprep.mubr.msk.f32.mxu1 %vm11629_vm5, %v15824_v12 }
 0xaf5   : > { %v3895_v52 = vpop.permute.xlu1 %3894 }
 0xaf6   : > { %v3940_v56 = vsel %vm3938_vm15, %v3930_v32, %v3895_v52 }
 0xaf7   : > { %9633 = vmatmul.mubr.msk.f32.gmra.mrb[90].mxu1 %vm886_vm1, %v3940_v56  ;;  %v15834_v56 = vld [vmem:[#allocation17_spill] sm:$0xff] }
 0xaf8   : > { %9635 = vmatprep.mubr.msk.f32.mxu1 %vm11629_vm5, %v15824_v12 }
 0xaf9   : > { %v3897_v30 = vpop.permute.xlu1 %3896 }
 0xafa   : > { %v3941_v60 = vsel %vm3938_vm15, %v3931_v11, %v3897_v30 }
 0xafb   : > { %9636 = vmatmul.mubr.msk.f32.gmra.mrb[92].mxu1 %vm886_vm1, %v3941_v60 }
 0xafc   : > { %9638 = vmatprep.mubr.msk.f32.mxu1 %vm11629_vm5, %v15824_v12 }
 0xafd   : > { %v3867_v13 = vpop.permute.xlu1 %3866  ;;  %v3899_v5 = vpop.permute.xlu0 %3898 }
 0xafe   : > { %v3942_v54 = vsel %vm3938_vm15, %v3932_v43, %v3899_v5  ;;  %v3934_v37 = vsel %vm3928_vm14, %v3924_v0, %v3867_v13 }
 0xaff   : > { %9639 = vmatmul.mubr.msk.f32.gmra.mrb[94].mxu1 %vm886_vm1, %v3942_v54 }
 0xb00   : > { %9641 = vmatprep.mubr.msk.f32.mxu1 %vm11629_vm5, %v15824_v12 }
 0xb01   : > { %v3869_v27 = vpop.permute.xlu0 %3868  ;;  %v3901_v10 = vpop.permute.xlu1 %3900 }
 0xb02   : > { %v3943_v2 = vsel %vm3938_vm15, %v3933_v16, %v3901_v10  ;;  %v15836_v16 = vld [vmem:[#allocation19_spill] sm:$0xff] }
 0xb03   : > { %9642 = vmatmul.mubr.msk.f32.gmra.mrb[96].mxu1 %vm886_vm1, %v3943_v2 }
 0xb04   : > { %9644 = vmatprep.mubr.msk.f32.mxu1 %vm11629_vm5, %v15824_v12 }
 0xb05   : > { %v3833_v15 = vpop.permute.xlu1 %3832  ;;  %v3903_v6 = vpop.permute.xlu0 %3902 }
 0xb06   : > { %v3925_v21 = vsel %vm2023_vm9, %v13369_v47, %v3833_v15  ;;  %v3944_v58 = vsel %vm3938_vm15, %v3934_v37, %v3903_v6  ;;  %v15837_v6 = vld [vmem:[#allocation18_spill] sm:$0xff] }
 0xb07   : > { %9645 = vmatmul.mubr.msk.f32.gmra.mrb[98].mxu1 %vm886_vm1, %v3944_v58  ;;  %v3935_v40 = vsel %vm3928_vm14, %v3925_v21, %v3869_v27 }
 0xb08   : > { %9647 = vmatprep.mubr.msk.f32.mxu1 %vm11629_vm5, %v15824_v12 }
 0xb09   : > { %v3835_v44 = vpop.permute.xlu0 %3834  ;;  %v3905_v23 = vpop.permute.xlu1 %3904 }
 0xb0a   : > { %v3945_v48 = vsel %vm3938_vm15, %v3935_v40, %v3905_v23  ;;  %v3926_v47 = vsel %vm2023_vm9, %v13371_v28, %v3835_v44 }
 0xb0b   : > { %9648 = vmatmul.mubr.msk.f32.gmra.mrb[100].mxu1 %vm886_vm1, %v3945_v48  ;;  %v15838_v48 = vld [vmem:[#allocation20_spill] sm:$0xff] }
 0xb0c   : > { %9650 = vmatprep.mubr.msk.f32.mxu1 %vm11629_vm5, %v15824_v12 }
 0xb0d   : > { %v3871_v14 = vpop.permute.xlu1 %3870  ;;  %v3907_v35 = vpop.permute.xlu0 %3906 }
 0xb0e   : > { %v3936_v38 = vsel %vm3928_vm14, %v3926_v47, %v3871_v14 }
 0xb0f   : > { %v3946_v17 = vsel %vm3938_vm15, %v3936_v38, %v3907_v35 }
 0xb10   : > { %9651 = vmatmul.mubr.msk.f32.gmra.mrb[102].mxu1 %vm886_vm1, %v3946_v17 }
 0xb11   : > { %9653 = vmatprep.mubr.msk.f32.mxu1 %vm11629_vm5, %v15824_v12  ;;  %v3837_v29 = vpop.permute.xlu1 %3836  ;;  %v3873_v39 = vpop.permute.xlu0 %3872 }
 0xb12   : > { %v3927_v34 = vsel %vm2023_vm9, %v13374_v4, %v3837_v29 }
 0xb13   : > { %v3937_v46 = vsel %vm3928_vm14, %v3927_v34, %v3873_v39 }
 0xb2e   : > { %v3909_v53 = vpop.permute.xlu1 %3908 }
 0xb2f   : > { %v3947_v28 = vsel %vm3938_vm15, %v3937_v46, %v3909_v53 }
 0xb30   : > { %9654 = vmatmul.mubr.msk.f32.gmra.mrb[104].mxu1 %vm886_vm1, %v3947_v28 }
 0xb31   : > { %9707 = vmatprep.mubr.msk.f32.mxu1 %vm11629_vm5, %v15824_v12 }
 0xbc6   : > { %v4045_v33 = vpop.f32.mrb[88].mxu1 }
 0xbc7   : > { %v4089_v26 = vadd.f32 %v4045_v33, %v15830_v51  ;;  %v9631_v61 = vpop.f32.mrb[89].mxu1 }
 0xbc9   : > { %v13490_v4 = vadd.f32 %v8437_v24, %v4089_v26 }
 0xbca   : > { %v4050_v42 = vpop.f32.mrb[90].mxu1 }
 0xbcb   : > { %v4090_v19 = vadd.f32 %v4050_v42, %v15831_v9  ;;  %v9634_v63 = vpop.f32.mrb[91].mxu1  ;;  %v4116_v57 = vsel %vm886_vm1, %v13490_v4, 0.0 }
 0xbcc   : > { %4117 = vadd.xlane.f32.xlu0 %v4116_v57 }
 0xbcd   : > { %v13495_v8 = vadd.f32 %v8437_v24, %v4090_v19 }
 0xbce   : > { %v4055_v1 = vpop.f32.mrb[92].mxu1 }
 0xbcf   : > { %v4091_v55 = vadd.f32 %v4055_v1, %v15832_v45  ;;  %v9637_v31 = vpop.f32.mrb[93].mxu1  ;;  %v4119_v59 = vsel %vm886_vm1, %v13495_v8, 0.0 }
 0xbd0   : > { %4120 = vadd.xlane.f32.xlu1 %v4119_v59 }
 0xbd1   : > { %v13500_v36 = vadd.f32 %v8437_v24, %v4091_v55 }
 0xbd2   : > { %v4060_v7 = vpop.f32.mrb[94].mxu1 }
 0xbd3   : > { %v4092_v18 = vadd.f32 %v4060_v7, %v15833_v20  ;;  %v9640_v41 = vpop.f32.mrb[95].mxu1  ;;  %v4122_v32 = vsel %vm886_vm1, %v13500_v36, 0.0 }
 0xbd4   : > { %4123 = vadd.xlane.f32.xlu0 %v4122_v32 }
 0xbd5   : > { %v13505_v25 = vadd.f32 %v8437_v24, %v4092_v18 }
 0xbd6   : > { %v4065_v52 = vpop.f32.mrb[96].mxu1 }
 0xbd7   : > { %v4093_v50 = vadd.f32 %v4065_v52, %v15834_v56  ;;  %v9643_v11 = vpop.f32.mrb[97].mxu1  ;;  %v4125_v62 = vsel %vm886_vm1, %v13505_v25, 0.0 }
 0xbd8   : > { %4126 = vadd.xlane.f32.xlu0 %v4125_v62 }
 0xbd9   : > { %v13510_v30 = vadd.f32 %v8437_v24, %v4093_v50 }
 0xbda   : > { %v4070_v60 = vpop.f32.mrb[98].mxu1 }
 0xbdb   : > { %v4094_v43 = vadd.f32 %v4070_v60, %v15835_v22  ;;  %v9646_v13 = vpop.f32.mrb[99].mxu1  ;;  %v4128_v5 = vsel %vm886_vm1, %v13510_v30, 0.0 }
 0xbdc   : > { %4129 = vadd.xlane.f32.xlu0 %v4128_v5 }
 0xbdd   : > { %v13515_v54 = vadd.f32 %v8437_v24, %v4094_v43 }
 0xbde   : > { %v4075_v49 = vpop.f32.mrb[100].mxu1 }
 0xbdf   : > { %v4095_v27 = vadd.f32 %v4075_v49, %v15836_v16  ;;  %v9649_v10 = vpop.f32.mrb[101].mxu1  ;;  %v4131_v2 = vsel %vm886_vm1, %v13515_v54, 0.0 }
 0xbe0   : > { %4132 = vadd.xlane.f32.xlu1 %v4131_v2  ;;  %v4264_v10 = vld [vmem:[%s15700_s16 + $0x8] sm:$0xff] }
 0xbe1   : > { %v13520_v0 = vadd.f32 %v8437_v24, %v4095_v27  ;;  %v4263_v27 = vld [vmem:[%s15700_s16] sm:$0xff] }
 0xbe2   : > { %v10448_v2 = vpack.c.bf16 %v4264_v10, %v4263_v27 }
 0xbe3   : > { %v4080_v37 = vpop.f32.mrb[102].mxu1  ;;  %v4134_v15 = vsel %vm886_vm1, %v13520_v0, 0.0 }
 0xbe4   : > { %v4096_v21 = vadd.f32 %v4080_v37, %v15837_v6  ;;  %4135 = vadd.xlane.f32.xlu0 %v4134_v15  ;;  %v9652_v58 = vpop.f32.mrb[103].mxu1  ;;  %10449 = vmatpush3.bf16.msra.mxu0 %v10448_v2  ;;  %v4265_v15 = vld [vmem:[%s15700_s16 + $0x10] sm:$0xff]  ;;  %v4266_v6 = vld [vmem:[%s15700_s16 + $0x18] sm:$0xff] }
 0xbe5   : > { %10450 = vmatprep.subr.bf16.mxu0 %v15825_v3 }
 0xbe6   : > { %v13525_v44 = vadd.f32 %v8437_v24, %v4096_v21  ;;  %v10451_v21 = vpack.c.bf16 %v4266_v6, %v4265_v15 }
 0xbe8   : > { %v4137_v40 = vsel %vm886_vm1, %v13525_v44, 0.0  ;;  %10452 = vmatpush3.bf16.msra.mxu0 %v10451_v21 }
 0xbe9   : > { %4138 = vadd.xlane.f32.xlu1 %v4137_v40  ;;  %10465 = vmatprep.subr.bf16.mxu0 %v15825_v3 }
 0xc03   : > { %v4085_v23 = vpop.f32.mrb[104].mxu1 }
 0xc04   : > { %v4097_v47 = vadd.f32 %v4085_v23, %v15838_v48  ;;  %v9655_v14 = vpop.f32.mrb[105].mxu1 }
 0xc06   : > { %v13530_v35 = vadd.f32 %v8437_v24, %v4097_v47 }
 0xc08   : > { %v4140_v38 = vsel %vm1723_vm8, %v13530_v35, 0.0 }
 0xc09   : > { %4141 = vadd.xlane.f32.xlu0 %v4140_v38 }
 0xc59   : > { %v4118_v17 = vpop.xlane.xlu0 %4117 }
 0xc5a   : > { %v4143_v29 = vmul.f32 0.03125, %v4118_v17 }
 0xc5c   : > { %v13535_v34 = vsub.f32 %v13490_v4, %v4143_v29 }
 0xc5d   : > { %v4121_v39 = vpop.xlane.xlu1 %4120 }
 0xc5e   : > { %v4144_v46 = vmul.f32 0.03125, %v4121_v39  ;;  %v4161_v53 = vmul.f32 %v13535_v34, %v13535_v34 }
 0xc60   : > { %v13540_v28 = vsub.f32 %v13495_v8, %v4144_v46  ;;  %v4170_v33 = vsel %vm886_vm1, %v4161_v53, 0.0 }
 0xc61   : > { %v4124_v24 = vpop.xlane.xlu0 %4123  ;;  %4171 = vadd.xlane.f32.xlu1 %v4170_v33 }
 0xc62   : > { %v4145_v51 = vmul.f32 0.03125, %v4124_v24  ;;  %v4162_v26 = vmul.f32 %v13540_v28, %v13540_v28 }
 0xc64   : > { %v13546_v61 = vsub.f32 %v13500_v36, %v4145_v51  ;;  %v4173_v42 = vsel %vm886_vm1, %v4162_v26, 0.0 }
 0xc65   : > { %v4127_v9 = vpop.xlane.xlu0 %4126  ;;  %4174 = vadd.xlane.f32.xlu0 %v4173_v42 }
 0xc66   : > { %v4146_v19 = vmul.f32 0.03125, %v4127_v9  ;;  %v4163_v63 = vmul.f32 %v13546_v61, %v13546_v61  ;;  %v13605_v9 = vld [vmem:[%s15698_s14] ss:$0 sm:$0xff] }
 0xc68   : > { %v13552_v57 = vsub.f32 %v13505_v25, %v4146_v19  ;;  %v4176_v1 = vsel %vm886_vm1, %v4163_v63, 0.0 }
 0xc69   : > { %v4130_v45 = vpop.xlane.xlu0 %4129  ;;  %4177 = vadd.xlane.f32.xlu1 %v4176_v1 }
 0xc6a   : > { %v4147_v55 = vmul.f32 0.03125, %v4130_v45  ;;  %v4164_v31 = vmul.f32 %v13552_v57, %v13552_v57 }
 0xc6c   : > { %v13558_v59 = vsub.f32 %v13510_v30, %v4147_v55  ;;  %v4179_v7 = vsel %vm886_vm1, %v4164_v31, 0.0  ;;  %v13611_v55 = vld [vmem:[%s15699_s15] ss:$0 sm:$0xff] }
 0xc6d   : > { %4180 = vadd.xlane.f32.xlu0 %v4179_v7  ;;  %v4133_v20 = vpop.xlane.xlu1 %4132 }
 0xc6e   : > { %v4148_v18 = vmul.f32 0.03125, %v4133_v20  ;;  %v4165_v41 = vmul.f32 %v13558_v59, %v13558_v59 }
 0xc70   : > { %v13564_v32 = vsub.f32 %v13515_v54, %v4148_v18  ;;  %v4182_v52 = vsel %vm886_vm1, %v4165_v41, 0.0 }
 0xc71   : > { %v4136_v56 = vpop.xlane.xlu0 %4135  ;;  %4183 = vadd.xlane.f32.xlu1 %v4182_v52 }
 0xc72   : > { %v4149_v50 = vmul.f32 0.03125, %v4136_v56  ;;  %v4166_v11 = vmul.f32 %v13564_v32, %v13564_v32 }
 0xc74   : > { %v13570_v62 = vsub.f32 %v13520_v0, %v4149_v50  ;;  %v4185_v60 = vsel %vm886_vm1, %v4166_v11, 0.0 }
 0xc75   : > { %4186 = vadd.xlane.f32.xlu0 %v4185_v60 }
 0xc76   : > { %v4139_v22 = vpop.xlane.xlu1 %4138  ;;  %v4167_v43 = vmul.f32 %v13570_v62, %v13570_v62 }
 0xc77   : > { %v4150_v13 = vmul.f32 0.03125, %v4139_v22 }
 0xc78   : > { %v4188_v5 = vsel %vm886_vm1, %v4167_v43, 0.0 }
 0xc79   : > { %v13577_v49 = vsub.f32 %v13525_v44, %v4150_v13  ;;  %4189 = vadd.xlane.f32.xlu1 %v4188_v5 }
 0xc7b   : > { %v4168_v16 = vmul.f32 %v13577_v49, %v13577_v49 }
 0xc7d   : > { %v4191_v37 = vsel %vm886_vm1, %v4168_v16, 0.0 }
 0xc7e   : > { %4192 = vadd.xlane.f32.xlu0 %v4191_v37 }
 0xc96   : > { %v4142_v58 = vpop.xlane.xlu0 %4141 }
 0xc97   : > { %v4151_v40 = vmul.f32 0.03125, %v4142_v58 }
 0xc99   : > { %v13597_v23 = vsub.f32 %v13530_v35, %v4151_v40 }
 0xc9b   : > { %v4169_v48 = vmul.f32 %v13597_v23, %v13597_v23 }
 0xc9d   : > { %v4194_v47 = vsel %vm1723_vm8, %v4169_v48, 0.0 }
 0xc9e   : > { %4195 = vadd.xlane.f32.xlu1 %v4194_v47 }
 0xcee   : > { %v4172_v14 = vpop.xlane.xlu1 %4171 }
 0xcef   : > { %v4197_v38 = vmul.f32 0.03125, %v4172_v14 }
 0xcf1   : > { %v4206_v17 = vadd.f32 1e-06, %v4197_v38 }
 0xcf2   : > { %v4175_v29 = vpop.xlane.xlu0 %4174 }
 0xcf3   : > { %11272 = vrsqrt.f32 %v4206_v17  ;;  %v4198_v39 = vmul.f32 0.03125, %v4175_v29 }
 0xcf5   : > { %v4207_v46 = vadd.f32 1e-06, %v4198_v39 }
 0xcf6   : > { %v4178_v53 = vpop.xlane.xlu1 %4177 }
 0xcf7   : > { %11274 = vrsqrt.f32 %v4207_v46  ;;  %v4199_v33 = vmul.f32 0.03125, %v4178_v53 }
 0xcf9   : > { %v4208_v24 = vadd.f32 1e-06, %v4199_v33 }
 0xcfa   : > { %v4181_v51 = vpop.xlane.xlu0 %4180 }
 0xcfb   : > { %11276 = vrsqrt.f32 %v4208_v24  ;;  %v4200_v26 = vmul.f32 0.03125, %v4181_v51 }
 0xcfd   : > { %v11273_v42 = vpop.eup %11272  ;;  %v4209_v19 = vadd.f32 1e-06, %v4200_v26 }
 0xcfe   : > { %v4224_v63 = vmul.f32 %v11273_v42, %v13535_v34  ;;  %v4184_v1 = vpop.xlane.xlu1 %4183 }
 0xcff   : > { %11278 = vrsqrt.f32 %v4209_v19  ;;  %v4201_v45 = vmul.f32 0.03125, %v4184_v1  ;;  %v4655_v1 = vld [vmem:[%s15702_s18 + $0x8] sm:$0xff] }
 0xd00   : > { %v4239_v31 = vmul.f32 %v13605_v9, %v4224_v63  ;;  %v4654_v63 = vld [vmem:[%s15702_s18] sm:$0xff] }
 0xd01   : > { %v11275_v7 = vpop.eup %11274  ;;  %v4210_v20 = vadd.f32 1e-06, %v4201_v45  ;;  %v10454_v45 = vpack.c.bf16 %v4655_v1, %v4654_v63 }
 0xd02   : > { %v4187_v18 = vpop.xlane.xlu0 %4186  ;;  %v4254_v41 = vadd.f32 %v13611_v55, %v4239_v31  ;;  %v4225_v52 = vmul.f32 %v11275_v7, %v13540_v28  ;;  %v4658_v31 = vld [vmem:[%s15702_s18 + $0x20] sm:$0xff]  ;;  %v4659_v7 = vld [vmem:[%s15702_s18 + $0x28] sm:$0xff] }
 0xd03   : > { %11280 = vrsqrt.f32 %v4210_v20  ;;  %v4202_v56 = vmul.f32 0.03125, %v4187_v18  ;;  %10455 = vmatpush3.bf16.msra.mxu1 %v10454_v45  ;;  %v10460_v20 = vpack.c.bf16 %v4659_v7, %v4658_v31  ;;  %v4660_v18 = vld [vmem:[%s15702_s18 + $0x30] sm:$0xff] }
 0xd04   : > { %9665 = vmatmul.mubr.msk.f32.vlgmr.msra.gmra.mrb[110].mxu0 %vm886_vm1, %v4254_v41  ;;  %v4240_v34 = vmul.f32 %v13605_v9, %v4225_v52  ;;  %10456 = vmatprep.subr.bf16.mxu1 %v15825_v3  ;;  %v4661_v41 = vld [vmem:[%s15702_s18 + $0x38] sm:$0xff] }
 0xd05   : > { %v11277_v50 = vpop.eup %11276  ;;  %v4211_v11 = vadd.f32 1e-06, %v4202_v56  ;;  %9667 = vmatprep.mubr.msk.f32.mxu0 %vm11629_vm5, %v15824_v12  ;;  %v10463_v52 = vpack.c.bf16 %v4661_v41, %v4660_v18  ;;  %v13697_v56 = vld [vmem:[%s15701_s17] ss:$0 sm:$0xff] }
 0xd06   : > { %v4190_v60 = vpop.xlane.xlu1 %4189  ;;  %v4255_v22 = vadd.f32 %v13611_v55, %v4240_v34  ;;  %v4226_v43 = vmul.f32 %v11277_v50, %v13546_v61 }
 0xd07   : > { %11282 = vrsqrt.f32 %v4211_v11  ;;  %v4203_v13 = vmul.f32 0.03125, %v4190_v60 }
 0xd08   : > { %9668 = vmatmul.mubr.msk.f32.gmra.mrb[112].mxu0 %vm886_vm1, %v4255_v22  ;;  %v4241_v28 = vmul.f32 %v13605_v9, %v4226_v43 }
 0xd09   : > { %v11279_v5 = vpop.eup %11278  ;;  %v4212_v16 = vadd.f32 1e-06, %v4203_v13  ;;  %9670 = vmatprep.mubr.msk.f32.mxu0 %vm11629_vm5, %v15824_v12 }
 0xd0a   : > { %v4256_v27 = vadd.f32 %v13611_v55, %v4241_v28  ;;  %v4227_v10 = vmul.f32 %v11279_v5, %v13552_v57 }
 0xd0b   : > { %11284 = vrsqrt.f32 %v4212_v16  ;;  %v4193_v2 = vpop.xlane.xlu0 %4192 }
 0xd0c   : > { %v4204_v37 = vmul.f32 0.03125, %v4193_v2  ;;  %9671 = vmatmul.mubr.msk.f32.gmra.mrb[114].mxu0 %vm886_vm1, %v4256_v27  ;;  %v4242_v61 = vmul.f32 %v13605_v9, %v4227_v10 }
 0xd0d   : > { %v11281_v15 = vpop.eup %11280  ;;  %9673 = vmatprep.mubr.msk.f32.mxu0 %vm11629_vm5, %v15824_v12 }
 0xd0e   : > { %v4213_v6 = vadd.f32 1e-06, %v4204_v37  ;;  %v4257_v21 = vadd.f32 %v13611_v55, %v4242_v61  ;;  %v4228_v58 = vmul.f32 %v11281_v15, %v13558_v59 }
 0xd10   : > { %11286 = vrsqrt.f32 %v4213_v6  ;;  %9674 = vmatmul.mubr.msk.f32.gmra.mrb[116].mxu0 %vm886_vm1, %v4257_v21  ;;  %v4243_v57 = vmul.f32 %v13605_v9, %v4228_v58 }
 0xd11   : > { %v11283_v40 = vpop.eup %11282  ;;  %9676 = vmatprep.mubr.msk.f32.mxu0 %vm11629_vm5, %v15824_v12 }
 0xd12   : > { %v4258_v48 = vadd.f32 %v13611_v55, %v4243_v57  ;;  %v4229_v47 = vmul.f32 %v11283_v40, %v13564_v32 }
 0xd14   : > { %9677 = vmatmul.mubr.msk.f32.gmra.mrb[118].mxu0 %vm886_vm1, %v4258_v48  ;;  %v4244_v14 = vmul.f32 %v13605_v9, %v4229_v47 }
 0xd15   : > { %v11285_v38 = vpop.eup %11284  ;;  %9679 = vmatprep.mubr.msk.f32.mxu0 %vm11629_vm5, %v15824_v12 }
 0xd16   : > { %v4259_v59 = vadd.f32 %v13611_v55, %v4244_v14  ;;  %v4230_v17 = vmul.f32 %v11285_v38, %v13570_v62 }
 0xd18   : > { %9680 = vmatmul.mubr.msk.f32.gmra.mrb[120].mxu0 %vm886_vm1, %v4259_v59  ;;  %v4245_v29 = vmul.f32 %v13605_v9, %v4230_v17 }
 0xd19   : > { %9682 = vmatprep.mubr.msk.f32.mxu0 %vm11629_vm5, %v15824_v12 }
 0xd1a   : > { %v11287_v32 = vpop.eup %11286  ;;  %v4260_v39 = vadd.f32 %v13611_v55, %v4245_v29 }
 0xd1b   : > { %v4231_v46 = vmul.f32 %v11287_v32, %v13577_v49 }
 0xd1c   : > { %9683 = vmatmul.mubr.msk.f32.gmra.mrb[122].mxu0 %vm886_vm1, %v4260_v39 }
 0xd1d   : > { %9685 = vmatprep.mubr.msk.f32.mxu0 %vm11629_vm5, %v15824_v12  ;;  %v4246_v53 = vmul.f32 %v13605_v9, %v4231_v46 }
 0xd1f   : > { %v4261_v62 = vadd.f32 %v13611_v55, %v4246_v53 }
 0xd21   : > { %9686 = vmatmul.mubr.msk.f32.gmra.mrb[124].mxu0 %vm886_vm1, %v4261_v62 }
 0xd22   : > { %9688 = vmatprep.mubr.msk.f32.mxu0 %vm11629_vm5, %v15824_v12 }
 0xd2b   : > { %v4196_v33 = vpop.xlane.xlu1 %4195 }
 0xd2c   : > { %v4205_v24 = vmul.f32 0.03125, %v4196_v33 }
 0xd2e   : > { %v4214_v51 = vadd.f32 1e-06, %v4205_v24 }
 0xd30   : > { %11288 = vrsqrt.f32 %v4214_v51 }
 0xd3a   : > { %v11289_v26 = vpop.eup %11288 }
 0xd3b   : > { %v4232_v49 = vmul.f32 %v11289_v26, %v13597_v23  ;;  %v4656_v23 = vld [vmem:[%s15702_s18 + $0x10] sm:$0xff] }
 0xd3d   : > { %v4247_v42 = vmul.f32 %v13605_v9, %v4232_v49  ;;  %v4657_v9 = vld [vmem:[%s15702_s18 + $0x18] sm:$0xff] }
 0xd3f   : > { %v4262_v19 = vadd.f32 %v13611_v55, %v4247_v42  ;;  %v10457_v55 = vpack.c.bf16 %v4657_v9, %v4656_v23 }
 0xd41   : > { %9689 = vmatmul.mubr.msk.f32.gmra.mrb[126].mxu0 %vm886_vm1, %v4262_v19  ;;  %10458 = vmatpush3.bf16.msra.mxu1 %v10457_v55 }
 0xd42   : > { %9742 = vmatprep.mubr.msk.f32.mxu0 %vm11629_vm5, %v15824_v12  ;;  %10459 = vmatprep.subr.bf16.mxu1 %v15825_v3 }
 0xd45   : > { %10461 = vmatpush3.bf16.msra.mxu1 %v10460_v20 }
 0xd46   : > { %10462 = vmatprep.subr.bf16.mxu1 %v15825_v3 }
 0xd49   : > { %10464 = vmatpush3.bf16.msra.mxu1 %v10463_v52 }
 0xd4a   : > { %10471 = vmatprep.subr.bf16.mxu1 %v15825_v3 }
 0xdd7   : > { %v4367_v34 = vpop.f32.mrb[110].mxu0 }
 0xdd8   : > { %v13700_v50 = vadd.f32 %v13697_v56, %v4367_v34  ;;  %v9666_v11 = vpop.f32.mrb[111].mxu0 }
 0xdda   : > { %v13703_v60 = vmul.f32 0.70710677, %v13700_v50 }
 0xddb   : > { %v4372_v22 = vpop.f32.mrb[112].mxu0 }
 0xddc   : > { %v4429_v43 = vand.u32 2147483647, %v13703_v60  ;;  %v13707_v13 = vadd.f32 %v13697_v56, %v4372_v22  ;;  %v9669_v28 = vpop.f32.mrb[113].mxu0  ;;  %vm4609_vm0 = vcmp.ge.f32.partialorder %v13703_v60, 0.0 }
 0xdde   : > { %v4438_v5 = vmul.f32 0.3275911, %v4429_v43  ;;  %v13710_v16 = vmul.f32 0.70710677, %v13707_v13  ;;  %v4555_v47 = vsub.f32 0.0, %v4429_v43 }
 0xddf   : > { %v4377_v27 = vpop.f32.mrb[114].mxu0 }
 0xde0   : > { %v4447_v10 = vadd.f32 1.0, %v4438_v5  ;;  %v4430_v2 = vand.u32 2147483647, %v13710_v16  ;;  %v9672_v37 = vpop.f32.mrb[115].mxu0  ;;  %v13714_v61 = vadd.f32 %v13697_v56, %v4377_v27  ;;  %v4564_v53 = vmul.f32 %v4555_v47, %v4429_v43 }
 0xde1   : > { %vm4610_vm2 = vcmp.ge.f32.partialorder %v13710_v16, 0.0 }
 0xde2   : > { %11290 = vrcp.f32 %v4447_v10  ;;  %v4439_v15 = vmul.f32 0.3275911, %v4430_v2  ;;  %v13717_v6 = vmul.f32 0.70710677, %v13714_v61  ;;  %v4556_v17 = vsub.f32 0.0, %v4430_v2 }
 0xde3   : > { %v4382_v21 = vpop.f32.mrb[116].mxu0  ;;  %v4573_v45 = vmul.f32 1.442695, %v4564_v53 }
 0xde4   : > { %v4448_v58 = vadd.f32 1.0, %v4439_v15  ;;  %v13720_v57 = vadd.f32 %v13697_v56, %v4382_v21  ;;  %v9675_v40 = vpop.f32.mrb[117].mxu0  ;;  %v4431_v48 = vand.u32 2147483647, %v13717_v6  ;;  %v4565_v26 = vmul.f32 %v4556_v17, %v4430_v2 }
 0xde5   : > { %vm4611_vm4 = vcmp.ge.f32.partialorder %v13717_v6, 0.0 }
 0xde6   : > { %11292 = vrcp.f32 %v4448_v58  ;;  %v13724_v14 = vmul.f32 0.70710677, %v13720_v57  ;;  %v4440_v38 = vmul.f32 0.3275911, %v4431_v48  ;;  %v4557_v23 = vsub.f32 0.0, %v4431_v48 }
 0xde7   : > { %v4387_v59 = vpop.f32.mrb[118].mxu0  ;;  %v4575_v18 = vmul.f32 1.442695, %v4565_v26 }
 0xde8   : > { %v4432_v29 = vand.u32 2147483647, %v13724_v14  ;;  %v13728_v32 = vadd.f32 %v13697_v56, %v4387_v59  ;;  %v9678_v39 = vpop.f32.mrb[119].mxu0  ;;  %v4449_v46 = vadd.f32 1.0, %v4440_v38  ;;  %v4566_v5 = vmul.f32 %v4557_v23, %v4431_v48 }
 0xde9   : > { %vm4612_vm6 = vcmp.ge.f32.partialorder %v13724_v14, 0.0 }
 0xdea   : > { %v4441_v62 = vmul.f32 0.3275911, %v4432_v29  ;;  %v13731_v33 = vmul.f32 0.70710677, %v13728_v32  ;;  %11294 = vrcp.f32 %v4449_v46  ;;  %v4558_v41 = vsub.f32 0.0, %v4432_v29 }
 0xdeb   : > { %v4392_v24 = vpop.f32.mrb[120].mxu0  ;;  %v4577_v53 = vmul.f32 1.442695, %v4566_v5 }
 0xdec   : > { %v13733_v51 = vpop.eup %11290  ;;  %v4450_v49 = vadd.f32 1.0, %v4441_v62  ;;  %v4433_v42 = vand.u32 2147483647, %v13731_v33  ;;  %v9681_v19 = vpop.f32.mrb[121].mxu0  ;;  %v13738_v1 = vadd.f32 %v13697_v56, %v4392_v24  ;;  %v4567_v21 = vmul.f32 %v4558_v41, %v4432_v29 }
 0xded   : > { %v4474_v63 = vmul.f32 1.0614054, %v13733_v51  ;;  %vm4613_vm7 = vcmp.ge.f32.partialorder %v13731_v33, 0.0  ;;  %v4415_v33 = vmul.f32 0.5, %v13728_v32 }
 0xdee   : > { %11296 = vrcp.f32 %v4450_v49  ;;  %v4442_v9 = vmul.f32 0.3275911, %v4433_v42  ;;  %v13741_v31 = vmul.f32 0.70710677, %v13738_v1  ;;  %v4559_v27 = vsub.f32 0.0, %v4433_v42 }
 0xdef   : > { %v4483_v55 = vadd.f32 -1.4531521, %v4474_v63  ;;  %v4397_v7 = vpop.f32.mrb[122].mxu0  ;;  %v4579_v63 = vmul.f32 1.442695, %v4567_v21 }
 0xdf0   : > { %v13743_v20 = vpop.eup %11292  ;;  %v4451_v52 = vadd.f32 1.0, %v4442_v9  ;;  %v13746_v34 = vadd.f32 %v13697_v56, %v4397_v7  ;;  %v9684_v11 = vpop.f32.mrb[123].mxu0  ;;  %v4434_v28 = vand.u32 2147483647, %v13741_v31  ;;  %v4568_v62 = vmul.f32 %v4559_v27, %v4433_v42 }
 0xdf1   : > { %v4492_v22 = vmul.f32 %v13733_v51, %v4483_v55  ;;  %v4475_v43 = vmul.f32 1.0614054, %v13743_v20  ;;  %v13775_v42 = vmul.f32 0.5, %v13700_v50 }
 0xdf2   : > { %11298 = vrcp.f32 %v4451_v52  ;;  %v13752_v10 = vmul.f32 0.70710677, %v13746_v34  ;;  %v4443_v15 = vmul.f32 0.3275911, %v4434_v28  ;;  %v4581_v52 = vmul.f32 1.442695, %v4568_v62 }
 0xdf3   : > { %v4501_v2 = vadd.f32 1.4214138, %v4492_v22  ;;  %11300 = vpow2.f32 %v4573_v45  ;;  %v4484_v37 = vadd.f32 -1.4531521, %v4475_v43  ;;  %v4560_v45 = vsub.f32 0.0, %v4434_v28 }
 0xdf4   : > { %11302 = vpow2.f32 %v4575_v18  ;;  %v13755_v58 = vand.u32 2147483647, %v13752_v10  ;;  %v4402_v40 = vpop.f32.mrb[124].mxu0  ;;  %v13757_v47 = vpop.eup %11294  ;;  %v4452_v59 = vadd.f32 1.0, %v4443_v15 }
 0xdf5   : > { %v4510_v38 = vmul.f32 %v13733_v51, %v4501_v2  ;;  %v4493_v48 = vmul.f32 %v13743_v20, %v4484_v37  ;;  %v13762_v17 = vadd.f32 %v13697_v56, %v4402_v40  ;;  %v9687_v39 = vpop.f32.mrb[125].mxu0  ;;  %v4476_v46 = vmul.f32 1.0614054, %v13757_v47 }
 0xdf6   : > { %v4444_v29 = vmul.f32 0.3275911, %v13755_v58  ;;  %11304 = vrcp.f32 %v4452_v59  ;;  %v4569_v2 = vmul.f32 %v4560_v45, %v4434_v28  ;;  %v13789_v59 = vmul.f32 0.5, %v13707_v13 }
 0xdf7   : > { %v4519_v24 = vadd.f32 -0.28449672, %v4510_v38  ;;  %v4502_v26 = vadd.f32 1.4214138, %v4493_v48  ;;  %v4485_v19 = vadd.f32 -1.4531521, %v4476_v46  ;;  %11306 = vpow2.f32 %v4577_v53 }
 0xdf8   : > { %v13766_v49 = vpop.eup %11296  ;;  %v4453_v23 = vadd.f32 1.0, %v4444_v29  ;;  %v13772_v18 = vmul.f32 0.70710677, %v13762_v17 }
 0xdf9   : > { %v4528_v9 = vmul.f32 %v13733_v51, %v4519_v24  ;;  %v4511_v55 = vmul.f32 %v13743_v20, %v4502_v26  ;;  %v4477_v7 = vmul.f32 1.0614054, %v13766_v49  ;;  %v4494_v41 = vmul.f32 %v13757_v47, %v4485_v19 }
 0xdfa   : > { %11308 = vrcp.f32 %v4453_v23  ;;  %v13782_v37 = vand.u32 2147483647, %v13772_v18  ;;  %v4583_v24 = vmul.f32 1.442695, %v4569_v2  ;;  %v4561_v26 = vsub.f32 0.0, %v13755_v58 }
 0xdfb   : > { %v4537_v11 = vadd.f32 0.2548296, %v4528_v9  ;;  %v4520_v22 = vadd.f32 -0.28449672, %v4511_v55  ;;  %v4486_v43 = vadd.f32 -1.4531521, %v4477_v7  ;;  %11310 = vpow2.f32 %v4579_v63 }
 0xdfc   : > { %v13778_v5 = vpop.eup %11298  ;;  %v4503_v27 = vadd.f32 1.4214138, %v4494_v41  ;;  %11312 = vpow2.f32 %v4581_v52  ;;  %v4445_v28 = vmul.f32 0.3275911, %v13782_v37  ;;  %v13801_v55 = vmul.f32 0.5, %v13714_v61 }
 0xdfd   : > { %v11301_v50 = vpop.eup %11300  ;;  %v4546_v15 = vmul.f32 %v13733_v51, %v4537_v11  ;;  %v4529_v21 = vmul.f32 %v13743_v20, %v4520_v22  ;;  %v4495_v40 = vmul.f32 %v13766_v49, %v4486_v43  ;;  %v4478_v38 = vmul.f32 1.0614054, %v13778_v5 }
 0xdfe   : > { %v11303_v48 = vpop.eup %11302  ;;  %v4512_v39 = vmul.f32 %v13757_v47, %v4503_v27  ;;  %v4454_v19 = vadd.f32 1.0, %v4445_v28 }
 0xdff   : > { %v4591_v46 = vmul.f32 %v11301_v50, %v4546_v15  ;;  %v4538_v53 = vadd.f32 0.2548296, %v4529_v21  ;;  %v4504_v62 = vadd.f32 1.4214138, %v4495_v40  ;;  %v4487_v29 = vadd.f32 -1.4531521, %v4478_v38 }
 0xe00   : > { %v4521_v51 = vadd.f32 -0.28449672, %v4512_v39  ;;  %v13795_v63 = vpop.eup %11304  ;;  %11314 = vrcp.f32 %v4454_v19 }
 0xe01   : > { %v4600_v13 = vsub.f32 1.0, %v4591_v46  ;;  %v4547_v45 = vmul.f32 %v13743_v20, %v4538_v53  ;;  %v4513_v23 = vmul.f32 %v13766_v49, %v4504_v62  ;;  %v4496_v9 = vmul.f32 %v13778_v5, %v4487_v29  ;;  %v11307_v27 = vpop.eup %11306 }
 0xe02   : > { %v4530_v7 = vmul.f32 %v13757_v47, %v4521_v51  ;;  %v4479_v41 = vmul.f32 1.0614054, %v13795_v63  ;;  %11316 = vpow2.f32 %v4583_v24  ;;  %v4570_v20 = vmul.f32 %v4561_v26, %v13755_v58 }
 0xe03   : > { %v4618_v52 = vsub.f32 0.0, %v4600_v13  ;;  %v4592_v11 = vmul.f32 %v11303_v48, %v4547_v45  ;;  %v4522_v22 = vadd.f32 -0.28449672, %v4513_v23  ;;  %v4505_v43 = vadd.f32 1.4214138, %v4496_v9 }
 0xe04   : > { %v4539_v2 = vadd.f32 0.2548296, %v4530_v7  ;;  %v4488_v50 = vadd.f32 -1.4531521, %v4479_v41  ;;  %v13806_v15 = vpop.eup %11308  ;;  %v4562_v51 = vsub.f32 0.0, %v13782_v37 }
 0xe05   : > { %v4627_v61 = vsel %vm4609_vm0, %v4600_v13, %v4618_v52  ;;  %v4601_v21 = vsub.f32 1.0, %v4592_v11  ;;  %v4531_v40 = vmul.f32 %v13766_v49, %v4522_v22  ;;  %v4514_v38 = vmul.f32 %v13778_v5, %v4505_v43  ;;  %v11311_v39 = vpop.eup %11310 }
 0xe06   : > { %v4636_v48 = vadd.f32 1.0, %v4627_v61  ;;  %v4548_v28 = vmul.f32 %v13757_v47, %v4539_v2  ;;  %v4497_v46 = vmul.f32 %v13795_v63, %v4488_v50  ;;  %v4480_v53 = vmul.f32 1.0614054, %v13806_v15  ;;  %v11313_v60 = vpop.eup %11312 }
 0xe07   : > { %v4619_v62 = vsub.f32 0.0, %v4601_v21  ;;  %v4540_v58 = vadd.f32 0.2548296, %v4531_v40  ;;  %v4523_v29 = vadd.f32 -0.28449672, %v4514_v38  ;;  %v4571_v16 = vmul.f32 %v4562_v51, %v13782_v37 }
 0xe08   : > { %v4645_v24 = vmul.f32 %v4636_v48, %v13775_v42  ;;  %v4593_v26 = vmul.f32 %v11307_v27, %v4548_v28  ;;  %v4506_v19 = vadd.f32 1.4214138, %v4497_v46  ;;  %v4489_v13 = vadd.f32 -1.4531521, %v4480_v53 }
 0xe09   : > { %v4628_v45 = vsel %vm4610_vm2, %v4601_v21, %v4619_v62  ;;  %v4549_v47 = vmul.f32 %v13766_v49, %v4540_v58  ;;  %v4532_v23 = vmul.f32 %v13778_v5, %v4523_v29  ;;  %v4585_v9 = vmul.f32 1.442695, %v4570_v20 }
 0xe0a   : > { %v4637_v7 = vadd.f32 1.0, %v4628_v45  ;;  %v4602_v41 = vsub.f32 1.0, %v4593_v26  ;;  %v4515_v52 = vmul.f32 %v13795_v63, %v4506_v19  ;;  %v4498_v11 = vmul.f32 %v13806_v15, %v4489_v13  ;;  %9708 = vmatmul.mubr.msk.f32.vlgmr.msra.gmra.mrb[106].mxu1 %vm1190_vm3, %v4645_v24  ;;  %v13828_v49 = vpop.eup %11314 }
 0xe0b   : > { %v4594_v42 = vmul.f32 %v11311_v39, %v4549_v47  ;;  %v4541_v22 = vadd.f32 0.2548296, %v4532_v23  ;;  %9710 = vmatprep.mubr.msk.f32.mxu1 %vm11629_vm5, %v15824_v12  ;;  %11318 = vpow2.f32 %v4585_v9  ;;  %v4481_v6 = vmul.f32 1.0614054, %v13828_v49 }
 0xe0c   : > { %v4646_v43 = vmul.f32 %v4637_v7, %v13789_v59  ;;  %v4620_v27 = vsub.f32 0.0, %v4602_v41  ;;  %v4524_v2 = vadd.f32 -0.28449672, %v4515_v52  ;;  %v4507_v50 = vadd.f32 1.4214138, %v4498_v11  ;;  %v11317_v21 = vpop.eup %11316 }
 0xe0d   : > { %v4603_v20 = vsub.f32 1.0, %v4594_v42  ;;  %v4550_v61 = vmul.f32 %v13778_v5, %v4541_v22  ;;  %v4490_v28 = vadd.f32 -1.4531521, %v4481_v6  ;;  %v4587_v53 = vmul.f32 1.442695, %v4571_v16 }
 0xe0e   : > { %v4629_v40 = vsel %vm4611_vm4, %v4602_v41, %v4620_v27  ;;  %v4533_v37 = vmul.f32 %v13795_v63, %v4524_v2  ;;  %v4516_v38 = vmul.f32 %v13806_v15, %v4507_v50  ;;  %9711 = vmatmul.mubr.msk.f32.gmra.mrb[108].mxu1 %vm1190_vm3, %v4646_v43  ;;  %v4414_v51 = vmul.f32 0.5, %v13720_v57 }
 0xe0f   : > { %v4638_v59 = vadd.f32 1.0, %v4629_v40  ;;  %v4621_v39 = vsub.f32 0.0, %v4603_v20  ;;  %v4595_v48 = vmul.f32 %v11313_v60, %v4550_v61  ;;  %9713 = vmatprep.mubr.msk.f32.mxu1 %vm11629_vm5, %v15824_v12  ;;  %v4499_v29 = vmul.f32 %v13828_v49, %v4490_v28 }
 0xe10   : > { %v4542_v5 = vadd.f32 0.2548296, %v4533_v37  ;;  %v4525_v46 = vadd.f32 -0.28449672, %v4516_v38  ;;  %11320 = vpow2.f32 %v4587_v53  ;;  %vm4614_vm0 = vcmp.ge.f32.partialorder %v13741_v31, 0.0 }
 0xe11   : > { %v4647_v62 = vmul.f32 %v4638_v59, %v13801_v55  ;;  %v4630_v58 = vsel %vm4612_vm6, %v4603_v20, %v4621_v39  ;;  %v4604_v14 = vsub.f32 1.0, %v4595_v48  ;;  %v4508_v13 = vadd.f32 1.4214138, %v4499_v29 }
 0xe12   : > { %v4639_v24 = vadd.f32 1.0, %v4630_v58  ;;  %v4551_v26 = vmul.f32 %v13795_v63, %v4542_v5  ;;  %v4534_v60 = vmul.f32 %v13806_v15, %v4525_v46  ;;  %v4416_v20 = vmul.f32 0.5, %v13738_v1 }
 0xe13   : > { %v4622_v19 = vsub.f32 0.0, %v4604_v14  ;;  %9714 = vmatmul.mubr.msk.f32.gmra.mrb[110].mxu1 %vm1190_vm3, %v4647_v62  ;;  %v4517_v9 = vmul.f32 %v13828_v49, %v4508_v13  ;;  %vm4615_vm2 = vcmp.ge.f32.partialorder %v13752_v10, 0.0  ;;  %v4417_v48 = vmul.f32 0.5, %v13746_v34 }
 0xe14   : > { %v4648_v45 = vmul.f32 %v4639_v24, %v4414_v51  ;;  %v4596_v47 = vmul.f32 %v11317_v21, %v4551_v26  ;;  %v4543_v55 = vadd.f32 0.2548296, %v4534_v60  ;;  %v4407_v23 = vpop.f32.mrb[126].mxu0  ;;  %9716 = vmatprep.mubr.msk.f32.mxu1 %vm11629_vm5, %v15824_v12  ;;  %vm4616_vm4 = vcmp.ge.f32.partialorder %v13772_v18, 0.0 }
 0xe15   : > { %v4631_v57 = vsel %vm4613_vm7, %v4604_v14, %v4622_v19  ;;  %v13850_v63 = vadd.f32 %v13697_v56, %v4407_v23  ;;  %v9690_v7 = vpop.f32.mrb[127].mxu0  ;;  %v11319_v42 = vpop.eup %11318  ;;  %v4526_v22 = vadd.f32 -0.28449672, %v4517_v9 }
 0xe16   : > { %v4640_v41 = vadd.f32 1.0, %v4631_v57  ;;  %v4605_v52 = vsub.f32 1.0, %v4596_v47  ;;  %v4552_v11 = vmul.f32 %v13806_v15, %v4543_v55 }
 0xe17   : > { %v13855_v16 = vmul.f32 0.70710677, %v13850_v63  ;;  %9717 = vmatmul.mubr.msk.f32.gmra.mrb[112].mxu1 %vm1190_vm3, %v4648_v45  ;;  %v4535_v56 = vmul.f32 %v13828_v49, %v4526_v22 }
 0xe18   : > { %v4649_v43 = vmul.f32 %v4640_v41, %v4415_v33  ;;  %v4623_v27 = vsub.f32 0.0, %v4605_v52  ;;  %v4597_v2 = vmul.f32 %v11319_v42, %v4552_v11  ;;  %9719 = vmatprep.mubr.msk.f32.mxu1 %vm11629_vm5, %v15824_v12  ;;  %v4419_v33 = vmul.f32 0.5, %v13850_v63  ;;  %v8459_v42 = vld [vmem:[%s15703_s19] ss:$0 sm:$0xff] }
 0xe19   : > { %v4437_v32 = vand.u32 2147483647, %v13855_v16  ;;  %v4544_v6 = vadd.f32 0.2548296, %v4535_v56  ;;  %vm4617_vm6 = vcmp.ge.f32.partialorder %v13855_v16, 0.0 }
 0xe1a   : > { %v4632_v15 = vsel %vm4614_vm0, %v4605_v52, %v4623_v27  ;;  %v4606_v50 = vsub.f32 1.0, %v4597_v2  ;;  %v11321_v59 = vpop.eup %11320 }
 0xe1b   : > { %v4641_v61 = vadd.f32 1.0, %v4632_v15  ;;  %v4446_v21 = vmul.f32 0.3275911, %v4437_v32  ;;  %9720 = vmatmul.mubr.msk.f32.gmra.mrb[114].mxu1 %vm1190_vm3, %v4649_v43  ;;  %v4553_v31 = vmul.f32 %v13828_v49, %v4544_v6  ;;  %v4563_v34 = vsub.f32 0.0, %v4437_v32 }
 0xe1c   : > { %v4624_v40 = vsub.f32 0.0, %v4606_v50  ;;  %9722 = vmatprep.mubr.msk.f32.mxu1 %vm11629_vm5, %v15824_v12  ;;  %v4418_v49 = vmul.f32 0.5, %v13762_v17 }
 0xe1d   : > { %v4650_v37 = vmul.f32 %v4641_v61, %v4416_v20  ;;  %v4455_v38 = vadd.f32 1.0, %v4446_v21  ;;  %v4598_v28 = vmul.f32 %v11321_v59, %v4553_v31  ;;  %v4572_v29 = vmul.f32 %v4563_v34, %v4437_v32 }
 0xe1e   : > { %v4633_v39 = vsel %vm4615_vm2, %v4606_v50, %v4624_v40 }
 0xe1f   : > { %v4642_v1 = vadd.f32 1.0, %v4633_v39  ;;  %11322 = vrcp.f32 %v4455_v38  ;;  %9723 = vmatmul.mubr.msk.f32.gmra.mrb[116].mxu1 %vm1190_vm3, %v4650_v37  ;;  %v4607_v46 = vsub.f32 1.0, %v4598_v28  ;;  %v4589_v26 = vmul.f32 1.442695, %v4572_v29 }
 0xe20   : > { %9725 = vmatprep.mubr.msk.f32.mxu1 %vm11629_vm5, %v15824_v12 }
 0xe21   : > { %v4651_v5 = vmul.f32 %v4642_v1, %v4417_v48  ;;  %v4625_v53 = vsub.f32 0.0, %v4607_v46  ;;  %11324 = vpow2.f32 %v4589_v26 }
 0xe23   : > { %9726 = vmatmul.mubr.msk.f32.gmra.mrb[118].mxu1 %vm1190_vm3, %v4651_v5  ;;  %v4634_v10 = vsel %vm4616_vm4, %v4607_v46, %v4625_v53 }
 0xe24   : > { %9728 = vmatprep.mubr.msk.f32.mxu1 %vm11629_vm5, %v15824_v12  ;;  %v4643_v62 = vadd.f32 1.0, %v4634_v10 }
 0xe26   : > { %v4652_v58 = vmul.f32 %v4643_v62, %v4418_v49 }
 0xe28   : > { %9729 = vmatmul.mubr.msk.f32.gmra.mrb[120].mxu1 %vm1190_vm3, %v4652_v58 }
 0xe29   : > { %v11323_v14 = vpop.eup %11322  ;;  %9731 = vmatprep.mubr.msk.f32.mxu1 %vm11629_vm5, %v15824_v12 }
 0xe2a   : > { %v4482_v51 = vmul.f32 1.0614054, %v11323_v14 }
 0xe2b   : > { %v11325_v55 = vpop.eup %11324 }
 0xe2c   : > { %v4491_v24 = vadd.f32 -1.4531521, %v4482_v51 }
 0xe2e   : > { %v4500_v18 = vmul.f32 %v11323_v14, %v4491_v24 }
 0xe30   : > { %v4509_v60 = vadd.f32 1.4214138, %v4500_v18 }
 0xe32   : > { %v4518_v19 = vmul.f32 %v11323_v14, %v4509_v60 }
 0xe34   : > { %v4527_v13 = vadd.f32 -0.28449672, %v4518_v19 }
 0xe36   : > { %v4536_v45 = vmul.f32 %v11323_v14, %v4527_v13 }
 0xe38   : > { %v4545_v47 = vadd.f32 0.2548296, %v4536_v45 }
 0xe3a   : > { %v4554_v17 = vmul.f32 %v11323_v14, %v4545_v47 }
 0xe3c   : > { %v4599_v23 = vmul.f32 %v11325_v55, %v4554_v17 }
 0xe3e   : > { %v4608_v57 = vsub.f32 1.0, %v4599_v23 }
 0xe40   : > { %v4626_v9 = vsub.f32 0.0, %v4608_v57 }
 0xe42   : > { %v4635_v7 = vsel %vm4617_vm6, %v4608_v57, %v4626_v9 }
 0xe43   : > { %v4644_v41 = vadd.f32 1.0, %v4635_v7 }
 0xe45   : > { %v4653_v52 = vmul.f32 %v4644_v41, %v4419_v33 }
 0xe47   : > { %9732 = vmatmul.mubr.msk.f32.gmra.mrb[122].mxu1 %vm1190_vm3, %v4653_v52 }
 0xe48   : > { %9787 = vmatprep.mubr.msk.f32.mxu1 %vm11629_vm5, %v15824_v12 }
 0xedd   : > { %v4755_v11 = vpop.f32.mrb[106].mxu1 }
 0xede   : > { %v4799_v22 = vadd.f32 %v4755_v11, %v13490_v4  ;;  %v9709_v43 = vpop.f32.mrb[107].mxu1 }
 0xee0   : > { %v13890_v27 = vadd.f32 %v8459_v42, %v4799_v22 }
 0xee1   : > { %v4760_v16 = vpop.f32.mrb[108].mxu1 }
 0xee2   : > { %15839 = vst [vmem:[#allocation23_spill] sm:$0xff] %v13890_v27  ;;  %v4800_v63 = vadd.f32 %v4760_v16, %v13495_v8  ;;  %v9712_v2 = vpop.f32.mrb[109].mxu1  ;;  %v4828_v56 = vsel %vm886_vm1, %v13890_v27, 0.0 }
 0xee3   : > { %4829 = vadd.xlane.f32.xlu0 %v4828_v56 }
 0xee4   : > { %v13895_v32 = vadd.f32 %v8459_v42, %v4800_v63 }
 0xee6   : > { %15840 = vst [vmem:[#allocation22_spill] sm:$0xff] %v13895_v32  ;;  %v4765_v15 = vpop.f32.mrb[110].mxu1  ;;  %v4831_v50 = vsel %vm886_vm1, %v13895_v32, 0.0 }
 0xee7   : > { %v4801_v20 = vadd.f32 %v4765_v15, %v13500_v36  ;;  %v9715_v4 = vpop.f32.mrb[111].mxu1  ;;  %4832 = vadd.xlane.f32.xlu1 %v4831_v50 }
 0xee9   : > { %v13900_v61 = vadd.f32 %v8459_v42, %v4801_v20 }
 0xeea   : > { %v4770_v6 = vpop.f32.mrb[112].mxu1 }
 0xeeb   : > { %15841 = vst [vmem:[#allocation24_spill] sm:$0xff] %v13900_v61  ;;  %v4802_v8 = vadd.f32 %v4770_v6, %v13505_v25  ;;  %v9718_v21 = vpop.f32.mrb[113].mxu1  ;;  %v4834_v40 = vsel %vm886_vm1, %v13900_v61, 0.0 }
 0xeec   : > { %4835 = vadd.xlane.f32.xlu0 %v4834_v40 }
 0xeed   : > { %v13905_v37 = vadd.f32 %v8459_v42, %v4802_v8 }
 0xeee   : > { %v4775_v31 = vpop.f32.mrb[114].mxu1 }
 0xeef   : > { %15842 = vst [vmem:[#allocation13_spill] sm:$0xff] %v13905_v37  ;;  %v4803_v38 = vadd.f32 %v4775_v31, %v13510_v30  ;;  %v9721_v59 = vpop.f32.mrb[115].mxu1  ;;  %v4837_v36 = vsel %vm886_vm1, %v13905_v37, 0.0 }
 0xef0   : > { %4838 = vadd.xlane.f32.xlu1 %v4837_v36 }
 0xef1   : > { %v13910_v39 = vadd.f32 %v8459_v42, %v4803_v38 }
 0xef2   : > { %v4780_v48 = vpop.f32.mrb[116].mxu1 }
 0xef3   : > { %15843 = vst [vmem:[#allocation12_spill] sm:$0xff] %v13910_v39  ;;  %v4804_v25 = vadd.f32 %v4780_v48, %v13515_v54  ;;  %v9724_v1 = vpop.f32.mrb[117].mxu1  ;;  %v4840_v28 = vsel %vm886_vm1, %v13910_v39, 0.0 }
 0xef4   : > { %4841 = vadd.xlane.f32.xlu0 %v4840_v28  ;;  %v8464_v1 = vld [vmem:[%s15694_s10 + $0x20] sm:$0xff]  ;;  %v8465_v28 = vld [vmem:[%s15694_s10 + $0x28] sm:$0xff] }
 0xef5   : > { %v13915_v5 = vadd.f32 %v8459_v42, %v4804_v25 }
 0xef6   : > { %v4785_v46 = vpop.f32.mrb[118].mxu1 }
 0xef7   : > { %15844 = vst [vmem:[#allocation15_spill] sm:$0xff] %v13915_v5  ;;  %v4805_v30 = vadd.f32 %v4785_v46, %v13520_v0  ;;  %v9727_v53 = vpop.f32.mrb[119].mxu1  ;;  %v4843_v10 = vsel %vm886_vm1, %v13915_v5, 0.0 }
 0xef8   : > { %4844 = vadd.xlane.f32.xlu1 %v4843_v10  ;;  %v8466_v10 = vld [vmem:[%s15694_s10 + $0x30] sm:$0xff] }
 0xef9   : > { %v13920_v34 = vadd.f32 %v8459_v42, %v4805_v30  ;;  %v10466_v30 = vpack.c.bf16 %v8465_v28, %v8464_v1 }
 0xefb   : > { %15845 = vst [vmem:[#allocation14_spill] sm:$0xff] %v13920_v34  ;;  %v4846_v54 = vsel %vm886_vm1, %v13920_v34, 0.0  ;;  %v4790_v49 = vpop.f32.mrb[120].mxu1  ;;  %10467 = vmatpush3.bf16.msra.mxu0 %v10466_v30 }
 0xefc   : > { %4847 = vadd.xlane.f32.xlu0 %v4846_v54  ;;  %v4806_v62 = vadd.f32 %v4790_v49, %v13525_v44  ;;  %v9730_v58 = vpop.f32.mrb[121].mxu1  ;;  %10468 = vmatprep.subr.bf16.mxu0 %v15825_v3  ;;  %v8467_v54 = vld [vmem:[%s15694_s10 + $0x38] sm:$0xff] }
 0xefd   : > { %v10469_v49 = vpack.c.bf16 %v8467_v54, %v8466_v10 }
 0xefe   : > { %v13925_v14 = vadd.f32 %v8459_v42, %v4806_v62 }
 0xeff   : > { %10470 = vmatpush3.bf16.msra.mxu0 %v10469_v49 }
 0xf00   : > { %15846 = vst [vmem:[#allocation17_spill] sm:$0xff] %v13925_v14  ;;  %v4849_v0 = vsel %vm886_vm1, %v13925_v14, 0.0  ;;  %10487 = vmatprep.subr.bf16.mxu0 %v15825_v3 }
 0xf01   : > { %4850 = vadd.xlane.f32.xlu1 %v4849_v0 }
 0xf1a   : > { %v4795_v29 = vpop.f32.mrb[122].mxu1 }
 0xf1b   : > { %v4807_v51 = vadd.f32 %v4795_v29, %v13530_v35  ;;  %v9733_v24 = vpop.f32.mrb[123].mxu1 }
 0xf1d   : > { %v13930_v26 = vadd.f32 %v8459_v42, %v4807_v51 }
 0xf1f   : > { %15847 = vst [vmem:[#allocation16_spill] sm:$0xff] %v13930_v26  ;;  %v4852_v18 = vsel %vm1723_vm8, %v13930_v26, 0.0 }
 0xf20   : > { %4853 = vadd.xlane.f32.xlu0 %v4852_v18 }
 0xf70   : > { %v4830_v60 = vpop.xlane.xlu0 %4829 }
 0xf71   : > { %v4855_v19 = vmul.f32 0.03125, %v4830_v60 }
 0xf73   : > { %v13935_v44 = vsub.f32 %v13890_v27, %v4855_v19 }
 0xf74   : > { %v4833_v13 = vpop.xlane.xlu1 %4832 }
 0xf75   : > { %v4856_v45 = vmul.f32 0.03125, %v4833_v13  ;;  %v4873_v47 = vmul.f32 %v13935_v44, %v13935_v44 }
 0xf77   : > { %v13940_v17 = vsub.f32 %v13895_v32, %v4856_v45  ;;  %v4882_v35 = vsel %vm886_vm1, %v4873_v47, 0.0 }
 0xf78   : > { %4883 = vadd.xlane.f32.xlu1 %v4882_v35 }
 0xf79   : > { %v4836_v55 = vpop.xlane.xlu0 %4835  ;;  %v4874_v23 = vmul.f32 %v13940_v17, %v13940_v17 }
 0xf7a   : > { %v4857_v57 = vmul.f32 0.03125, %v4836_v55 }
 0xf7b   : > { %v4885_v9 = vsel %vm886_vm1, %v4874_v23, 0.0 }
 0xf7c   : > { %v13947_v7 = vsub.f32 %v13900_v61, %v4857_v57  ;;  %4886 = vadd.xlane.f32.xlu0 %v4885_v9 }
 0xf7d   : > { %v4839_v33 = vpop.xlane.xlu1 %4838 }
 0xf7e   : > { %v4858_v41 = vmul.f32 0.03125, %v4839_v33  ;;  %v4875_v52 = vmul.f32 %v13947_v7, %v13947_v7  ;;  %v14005_v33 = vld [vmem:[%s15813_s0 + $0x1] ss:$0 sm:$0xff] }
 0xf80   : > { %v13952_v11 = vsub.f32 %v13905_v37, %v4858_v41  ;;  %v4888_v42 = vsel %vm886_vm1, %v4875_v52, 0.0 }
 0xf81   : > { %v4842_v22 = vpop.xlane.xlu0 %4841  ;;  %4889 = vadd.xlane.f32.xlu1 %v4888_v42 }
 0xf82   : > { %v4859_v43 = vmul.f32 0.03125, %v4842_v22  ;;  %v4876_v16 = vmul.f32 %v13952_v11, %v13952_v11  ;;  %v14011_v22 = vld [vmem:[%s15693_s9 + $0x1] ss:$0 sm:$0xff] }
 0xf84   : > { %v13958_v63 = vsub.f32 %v13910_v39, %v4859_v43  ;;  %v4891_v2 = vsel %vm886_vm1, %v4876_v16, 0.0 }
 0xf85   : > { %v4845_v56 = vpop.xlane.xlu1 %4844  ;;  %4892 = vadd.xlane.f32.xlu0 %v4891_v2 }
 0xf86   : > { %v4860_v15 = vmul.f32 0.03125, %v4845_v56  ;;  %v4877_v50 = vmul.f32 %v13958_v63, %v13958_v63 }
 0xf88   : > { %v13964_v20 = vsub.f32 %v13915_v5, %v4860_v15  ;;  %v4894_v4 = vsel %vm886_vm1, %v4877_v50, 0.0 }
 0xf89   : > { %v4848_v6 = vpop.xlane.xlu0 %4847  ;;  %4895 = vadd.xlane.f32.xlu1 %v4894_v4 }
 0xf8a   : > { %v4861_v8 = vmul.f32 0.03125, %v4848_v6  ;;  %v4878_v21 = vmul.f32 %v13964_v20, %v13964_v20 }
 0xf8c   : > { %v13970_v40 = vsub.f32 %v13920_v34, %v4861_v8  ;;  %v4897_v31 = vsel %vm886_vm1, %v4878_v21, 0.0 }
 0xf8d   : > { %4898 = vadd.xlane.f32.xlu0 %v4897_v31 }
 0xf8e   : > { %v4879_v38 = vmul.f32 %v13970_v40, %v13970_v40  ;;  %v4851_v59 = vpop.xlane.xlu1 %4850 }
 0xf8f   : > { %v4862_v48 = vmul.f32 0.03125, %v4851_v59 }
 0xf90   : > { %v4900_v36 = vsel %vm886_vm1, %v4879_v38, 0.0 }
 0xf91   : > { %4901 = vadd.xlane.f32.xlu1 %v4900_v36  ;;  %v13977_v25 = vsub.f32 %v13925_v14, %v4862_v48 }
 0xf93   : > { %v4880_v46 = vmul.f32 %v13977_v25, %v13977_v25 }
 0xf95   : > { %v4903_v53 = vsel %vm886_vm1, %v4880_v46, 0.0 }
 0xf96   : > { %4904 = vadd.xlane.f32.xlu0 %v4903_v53 }
 0xfad   : > { %v4854_v62 = vpop.xlane.xlu0 %4853 }
 0xfae   : > { %v4863_v58 = vmul.f32 0.03125, %v4854_v62 }
 0xfb0   : > { %v13997_v0 = vsub.f32 %v13930_v26, %v4863_v58 }
 0xfb2   : > { %v4881_v29 = vmul.f32 %v13997_v0, %v13997_v0 }
 0xfb4   : > { %v4906_v51 = vsel %vm1723_vm8, %v4881_v29, 0.0 }
 0xfb5   : > { %4907 = vadd.xlane.f32.xlu1 %v4906_v51 }
0x1005   : > { %v4884_v24 = vpop.xlane.xlu1 %4883 }
0x1006   : > { %v4909_v18 = vmul.f32 0.03125, %v4884_v24 }
0x1008   : > { %v4918_v60 = vadd.f32 1e-06, %v4909_v18 }
0x1009   : > { %v4887_v19 = vpop.xlane.xlu0 %4886 }
0x100a   : > { %11326 = vrsqrt.f32 %v4918_v60  ;;  %v4910_v13 = vmul.f32 0.03125, %v4887_v19 }
0x100c   : > { %v4919_v45 = vadd.f32 1e-06, %v4910_v13 }
0x100e   : > { %11328 = vrsqrt.f32 %v4919_v45  ;;  %v4890_v47 = vpop.xlane.xlu1 %4889 }
0x100f   : > { %v4911_v35 = vmul.f32 0.03125, %v4890_v47 }
0x1011   : > { %v4920_v55 = vadd.f32 1e-06, %v4911_v35 }
0x1012   : > { %v4893_v23 = vpop.xlane.xlu0 %4892 }
0x1013   : > { %11330 = vrsqrt.f32 %v4920_v55  ;;  %v4912_v57 = vmul.f32 0.03125, %v4893_v23 }
0x1014   : > { %v11327_v9 = vpop.eup %11326 }
0x1015   : > { %v4936_v41 = vmul.f32 %v11327_v9, %v13935_v44  ;;  %v4921_v52 = vadd.f32 1e-06, %v4912_v57 }
0x1016   : > { %v4896_v42 = vpop.xlane.xlu1 %4895 }
0x1017   : > { %v4951_v43 = vmul.f32 %v14005_v33, %v4936_v41  ;;  %11332 = vrsqrt.f32 %v4921_v52  ;;  %v4913_v16 = vmul.f32 0.03125, %v4896_v42 }
0x1018   : > { %v11329_v2 = vpop.eup %11328 }
0x1019   : > { %v4922_v56 = vadd.f32 1e-06, %v4913_v16  ;;  %v4966_v15 = vadd.f32 %v14011_v22, %v4951_v43  ;;  %v4937_v50 = vmul.f32 %v11329_v2, %v13940_v17  ;;  %v8469_v43 = vld [vmem:[%s15695_s11 + $0x1] ss:$0 sm:$0xff] }
0x101a   : > { %v4899_v4 = vpop.xlane.xlu0 %4898 }
0x101b   : > { %11334 = vrsqrt.f32 %v4922_v56  ;;  %v4914_v44 = vmul.f32 0.03125, %v4899_v4  ;;  %9743 = vmatmul.mubr.msk.f32.vlgmr.msra.gmra.mrb[128].mxu0 %vm886_vm1, %v4966_v15  ;;  %v4952_v6 = vmul.f32 %v14005_v33, %v4937_v50 }
0x101c   : > { %9745 = vmatprep.mubr.msk.f32.mxu0 %vm11629_vm5, %v15824_v12 }
0x101d   : > { %v11331_v8 = vpop.eup %11330  ;;  %v4923_v21 = vadd.f32 1e-06, %v4914_v44  ;;  %v4967_v31 = vadd.f32 %v14011_v22, %v4952_v6 }
0x101e   : > { %v4902_v38 = vpop.xlane.xlu1 %4901  ;;  %v4938_v59 = vmul.f32 %v11331_v8, %v13947_v7 }
0x101f   : > { %11336 = vrsqrt.f32 %v4923_v21  ;;  %v4915_v36 = vmul.f32 0.03125, %v4902_v38  ;;  %9746 = vmatmul.mubr.msk.f32.gmra.mrb[130].mxu0 %vm886_vm1, %v4967_v31 }
0x1020   : > { %9748 = vmatprep.mubr.msk.f32.mxu0 %vm11629_vm5, %v15824_v12  ;;  %v4953_v17 = vmul.f32 %v14005_v33, %v4938_v59 }
0x1021   : > { %v11333_v48 = vpop.eup %11332  ;;  %v4924_v1 = vadd.f32 1e-06, %v4915_v36 }
0x1022   : > { %v4968_v28 = vadd.f32 %v14011_v22, %v4953_v17  ;;  %v4939_v46 = vmul.f32 %v11333_v48, %v13952_v11 }
0x1023   : > { %11338 = vrsqrt.f32 %v4924_v1  ;;  %v4905_v53 = vpop.xlane.xlu0 %4904 }
0x1024   : > { %9749 = vmatmul.mubr.msk.f32.gmra.mrb[132].mxu0 %vm886_vm1, %v4968_v28  ;;  %v4954_v7 = vmul.f32 %v14005_v33, %v4939_v46  ;;  %v4916_v10 = vmul.f32 0.03125, %v4905_v53 }
0x1025   : > { %v11335_v30 = vpop.eup %11334  ;;  %9751 = vmatprep.mubr.msk.f32.mxu0 %vm11629_vm5, %v15824_v12 }
0x1026   : > { %v4969_v54 = vadd.f32 %v14011_v22, %v4954_v7  ;;  %v4940_v49 = vmul.f32 %v11335_v30, %v13958_v63  ;;  %v4925_v62 = vadd.f32 1e-06, %v4916_v10 }
0x1028   : > { %9752 = vmatmul.mubr.msk.f32.gmra.mrb[134].mxu0 %vm886_vm1, %v4969_v54  ;;  %v4955_v11 = vmul.f32 %v14005_v33, %v4940_v49  ;;  %11340 = vrsqrt.f32 %v4925_v62 }
0x1029   : > { %v11337_v58 = vpop.eup %11336  ;;  %9754 = vmatprep.mubr.msk.f32.mxu0 %vm11629_vm5, %v15824_v12 }
0x102a   : > { %v4970_v29 = vadd.f32 %v14011_v22, %v4955_v11  ;;  %v4941_v51 = vmul.f32 %v11337_v58, %v13964_v20 }
0x102c   : > { %9755 = vmatmul.mubr.msk.f32.gmra.mrb[136].mxu0 %vm886_vm1, %v4970_v29  ;;  %v4956_v24 = vmul.f32 %v14005_v33, %v4941_v51 }
0x102d   : > { %v11339_v18 = vpop.eup %11338  ;;  %9757 = vmatprep.mubr.msk.f32.mxu0 %vm11629_vm5, %v15824_v12 }
0x102e   : > { %v4971_v63 = vadd.f32 %v14011_v22, %v4956_v24  ;;  %v4942_v60 = vmul.f32 %v11339_v18, %v13970_v40 }
0x1030   : > { %9758 = vmatmul.mubr.msk.f32.gmra.mrb[138].mxu0 %vm886_vm1, %v4971_v63  ;;  %v4957_v19 = vmul.f32 %v14005_v33, %v4942_v60 }
0x1031   : > { %9760 = vmatprep.mubr.msk.f32.mxu0 %vm11629_vm5, %v15824_v12 }
0x1032   : > { %v4972_v20 = vadd.f32 %v14011_v22, %v4957_v19  ;;  %v11341_v13 = vpop.eup %11340 }
0x1033   : > { %v4943_v45 = vmul.f32 %v11341_v13, %v13977_v25 }
0x1034   : > { %9761 = vmatmul.mubr.msk.f32.gmra.mrb[140].mxu0 %vm886_vm1, %v4972_v20 }
0x1035   : > { %9763 = vmatprep.mubr.msk.f32.mxu0 %vm11629_vm5, %v15824_v12  ;;  %v4958_v47 = vmul.f32 %v14005_v33, %v4943_v45 }
0x1037   : > { %v4973_v40 = vadd.f32 %v14011_v22, %v4958_v47 }
0x1039   : > { %9764 = vmatmul.mubr.msk.f32.gmra.mrb[142].mxu0 %vm886_vm1, %v4973_v40 }
0x103a   : > { %9766 = vmatprep.mubr.msk.f32.mxu0 %vm11629_vm5, %v15824_v12 }
0x1042   : > { %v4908_v35 = vpop.xlane.xlu1 %4907 }
0x1043   : > { %v4917_v55 = vmul.f32 0.03125, %v4908_v35 }
0x1045   : > { %v4926_v23 = vadd.f32 1e-06, %v4917_v55 }
0x1047   : > { %11342 = vrsqrt.f32 %v4926_v23 }
0x1051   : > { %v11343_v57 = vpop.eup %11342 }
0x1052   : > { %v4944_v9 = vmul.f32 %v11343_v57, %v13997_v0 }
0x1054   : > { %v4959_v41 = vmul.f32 %v14005_v33, %v4944_v9 }
0x1056   : > { %v4974_v25 = vadd.f32 %v14011_v22, %v4959_v41 }
0x1058   : > { %9767 = vmatmul.mubr.msk.f32.gmra.mrb[144].mxu0 %vm886_vm1, %v4974_v25 }
0x1059   : > { %9832 = vmatprep.mubr.msk.f32.mxu0 %vm11629_vm5, %v15824_v12 }
0x10ee   : > { %v5081_v52 = vpop.f32.mrb[128].mxu0 }
0x10ef   : > { %v9744_v42 = vpop.f32.mrb[129].mxu0  ;;  %v14069_v2 = vadd.f32 %v8469_v43, %v5081_v52 }
0x10f2   : > { %v5086_v16 = vpop.f32.mrb[130].mxu0 }
0x10f3   : > { %v14071_v56 = vadd.f32 %v8469_v43, %v5086_v16  ;;  %v9747_v0 = vpop.f32.mrb[131].mxu0 }
0x10f5   : > { %v14075_v33 = vpack.i.bf16 %v14071_v56, %v14069_v2 }
0x10f7   : > { %v5091_v22 = vpop.f32.mrb[132].mxu0  ;;  %10951 = vrot.lane.b32.xlu0 %v14075_v33, %s15816_s1 }
0x10f8   : > { %v9750_v15 = vpop.f32.mrb[133].mxu0  ;;  %v14079_v4 = vadd.f32 %v8469_v43, %v5091_v22 }
0x10fb   : > { %v5096_v50 = vpop.f32.mrb[134].mxu0 }
0x10fc   : > { %v14081_v44 = vadd.f32 %v8469_v43, %v5096_v50  ;;  %v9753_v6 = vpop.f32.mrb[135].mxu0 }
0x10fe   : > { %v14085_v8 = vpack.i.bf16 %v14081_v44, %v14079_v4 }
0x10ff   : > { %v5101_v21 = vpop.f32.mrb[136].mxu0 }
0x1100   : > { %10956 = vrot.lane.b32.xlu1 %v14085_v8, %s15816_s1  ;;  %v9756_v31 = vpop.f32.mrb[137].mxu0  ;;  %v14089_v59 = vadd.f32 %v8469_v43, %v5101_v21 }
0x1103   : > { %v5106_v38 = vpop.f32.mrb[138].mxu0 }
0x1104   : > { %v14091_v36 = vadd.f32 %v8469_v43, %v5106_v38  ;;  %v9759_v17 = vpop.f32.mrb[139].mxu0 }
0x1106   : > { %v14095_v48 = vpack.i.bf16 %v14091_v36, %v14089_v59 }
0x1107   : > { %v5111_v1 = vpop.f32.mrb[140].mxu0 }
0x1108   : > { %10961 = vrot.lane.b32.xlu1 %v14095_v48, %s15816_s1  ;;  %v9762_v28 = vpop.f32.mrb[141].mxu0  ;;  %v14099_v7 = vadd.f32 %v8469_v43, %v5111_v1 }
0x110c   : > { %v5116_v46 = vpop.f32.mrb[142].mxu0 }
0x110d   : > { %v14101_v30 = vadd.f32 %v8469_v43, %v5116_v46  ;;  %v9765_v53 = vpop.f32.mrb[143].mxu0 }
0x110f   : > { %v14105_v10 = vpack.i.bf16 %v14101_v30, %v14099_v7 }
0x1111   : > { %10966 = vrot.lane.b32.xlu1 %v14105_v10, %s15816_s1 }
0x1115   : > { %10971 = vrot.lane.b32.xlu1 %v14075_v33, %s15848_s2 }
0x1119   : > { %10981 = vrot.lane.b32.xlu1 %v14095_v48, %s15848_s2 }
0x112b   : > { %v5121_v54 = vpop.f32.mrb[144].mxu0 }
0x112c   : > { %v14113_v49 = vadd.f32 %v8469_v43, %v5121_v54  ;;  %v9768_v62 = vpop.f32.mrb[145].mxu0 }
0x112e   : > { %5605 = vrot.lane.b32.xlu1 %v14113_v49, %s15848_s2  ;;  %5150 = vrot.lane.b32.xlu0 %v14113_v49, %s15816_s1  ;;  %s15851_s1 = smov 112  }
0x1132   : > { %5571 = vrot.lane.b32.xlu1 %v14069_v2, %s15849_s30  ;;  %10976 = vrot.lane.b32.xlu0 %v14085_v8, %s15848_s2 }
0x1136   : > { %10996 = vrot.lane.b32.xlu1 %v14085_v8, %s15850_s4  ;;  %10986 = vrot.lane.b32.xlu0 %v14105_v10, %s15848_s2  ;;  %s728_s2 = sand.u32 1, %s11614_s26  }
0x113a   : > { %5577 = vrot.lane.b32.xlu1 %v14081_v44, %s15849_s30  ;;  %10991 = vrot.lane.b32.xlu0 %v14075_v33, %s15850_s4 }
0x113e   : > { %5579 = vrot.lane.b32.xlu1 %v14089_v59, %s15849_s30  ;;  %5573 = vrot.lane.b32.xlu0 %v14071_v56, %s15849_s30 }
0x1142   : > { %11006 = vrot.lane.b32.xlu1 %v14105_v10, %s15850_s4  ;;  %5575 = vrot.lane.b32.xlu0 %v14079_v4, %s15849_s30 }
0x1146   : > { %5585 = vrot.lane.b32.xlu1 %v14101_v30, %s15849_s30  ;;  %11001 = vrot.lane.b32.xlu0 %v14095_v48, %s15850_s4 }
0x114a   : > { %6060 = vrot.lane.b32.xlu1 %v14113_v49, %s15850_s4  ;;  %5581 = vrot.lane.b32.xlu0 %v14091_v36, %s15849_s30 }
0x114e   : > { %6026 = vrot.lane.b32.xlu1 %v14069_v2, %s15851_s1  ;;  %5583 = vrot.lane.b32.xlu0 %v14099_v7, %s15849_s30 }
0x1152   : > { %11016 = vrot.lane.b32.xlu1 %v14085_v8, %s15852_s29  ;;  %5587 = vrot.lane.b32.xlu0 %v14113_v49, %s15849_s30 }
0x1156   : > { %6032 = vrot.lane.b32.xlu1 %v14081_v44, %s15851_s1  ;;  %11011 = vrot.lane.b32.xlu0 %v14075_v33, %s15852_s29 }
0x115a   : > { %6034 = vrot.lane.b32.xlu1 %v14089_v59, %s15851_s1  ;;  %6028 = vrot.lane.b32.xlu0 %v14071_v56, %s15851_s1 }
0x115e   : > { %11026 = vrot.lane.b32.xlu1 %v14105_v10, %s15852_s29  ;;  %6030 = vrot.lane.b32.xlu0 %v14079_v4, %s15851_s1 }
0x1162   : > { %6040 = vrot.lane.b32.xlu1 %v14101_v30, %s15851_s1  ;;  %11021 = vrot.lane.b32.xlu0 %v14095_v48, %s15852_s29 }
0x1166   : > { %6515 = vrot.lane.b32.xlu1 %v14113_v49, %s15852_s29  ;;  %6036 = vrot.lane.b32.xlu0 %v14091_v36, %s15851_s1  ;;  %s729_s29 = scalar_lea.vmem [#allocation3], %s728_s2 }
0x1169   : > { %v10952_v11 = vpop.permute.xlu0 %10951 }
0x116a   : > { %v10954_v58 = vunpack.i.h.bf16 %v10952_v11  ;;  %v10953_v29 = vunpack.i.l.bf16 %v10952_v11  ;;  %6483 = vrot.lane.b32.xlu1 %v14071_v56, %s15853_s8  ;;  %6038 = vrot.lane.b32.xlu0 %v14099_v7, %s15851_s1 }
0x116c   : > { %v10472_v51 = vpack.c.bf16 %v10954_v58, %v10953_v29 }
0x116e   : > { %10474 = vmatpush3.bf16.xpose.msk.msra.mxu1 %vm12427_vm10, %v10472_v51  ;;  %6487 = vrot.lane.b32.xlu1 %v14081_v44, %s15853_s8 }
0x116f   : > { %6042 = vrot.lane.b32.xlu0 %v14113_v49, %s15851_s1  ;;  %10475 = vmatprep.subr.bf16.mxu1 %v15825_v3  ;;  %s8647_s1 = sshll.u32 %s11789_s6, 4  ;;  %s11642_s6 = smov [#allocation3]  }
0x1170   : > { %s11564_s30 = sshll.u32 %s11642_s6, 4  ;;  %s11565_s30 = int_to_ptr.vmem [resolvable:$false] %s11564_s30 }
0x1171   : > { %s11566_s4 = scalar_lea.vmem %s11565_s30, 32 }
0x1172   : > { %v10957_v18 = vpop.permute.xlu1 %10956  ;;  %6491 = vrot.lane.b32.xlu1 %v14091_v36, %s15853_s8 }
0x1173   : > { %v10959_v63 = vunpack.i.h.bf16 %v10957_v18  ;;  %v10958_v60 = vunpack.i.l.bf16 %v10957_v18  ;;  %6481 = vrot.lane.b32.xlu0 %v14069_v2, %s15853_s8 }
0x1175   : > { %v10476_v19 = vpack.c.bf16 %v10959_v63, %v10958_v60 }
0x1176   : > { %6495 = vrot.lane.b32.xlu1 %v14101_v30, %s15853_s8 }
0x1177   : > { %10478 = vmatpush3.bf16.xpose.msk.msra.mxu1 %vm12427_vm10, %v10476_v19  ;;  %6485 = vrot.lane.b32.xlu0 %v14079_v4, %s15853_s8 }
0x1178   : > { %10479 = vmatprep.subr.bf16.mxu1 %v15825_v3 }
0x117a   : > { %v10962_v20 = vpop.permute.xlu1 %10961  ;;  %11036 = vrot.lane.b32.xlu1 %v14085_v8, %s15820_s27 }
0x117b   : > { %v10964_v13 = vunpack.i.h.bf16 %v10962_v20  ;;  %v10963_v45 = vunpack.i.l.bf16 %v10962_v20  ;;  %6489 = vrot.lane.b32.xlu0 %v14089_v59, %s15853_s8 }
0x117d   : > { %v10480_v47 = vpack.c.bf16 %v10964_v13, %v10963_v45 }
0x117e   : > { %11046 = vrot.lane.b32.xlu1 %v14105_v10, %s15820_s27 }
0x117f   : > { %10482 = vmatpush3.bf16.xpose.msk.msra.mxu1 %vm12427_vm10, %v10480_v47  ;;  %6493 = vrot.lane.b32.xlu0 %v14099_v7, %s15853_s8 }
0x1180   : > { %10483 = vmatprep.subr.bf16.mxu1 %v15825_v3 }
0x1182   : > { %11051 = vrot.lane.b32.xlu1 %v14075_v33, %s15855_s5 }
0x1183   : > { %6497 = vrot.lane.b32.xlu0 %v14113_v49, %s15853_s8  ;;  %v10967_v40 = vpop.permute.xlu1 %10966  ;;  %s8222_s8 = sshll.u32 %s729_s29, 4  ;;  %s15644_s8 = int_to_ptr.vmem [resolvable:$true] %s8222_s8 }
0x1184   : > { %v10969_v35 = vunpack.i.h.bf16 %v10967_v40  ;;  %v10968_v55 = vunpack.i.l.bf16 %v10967_v40  ;;  %p11567_p0 = scmp.lt.s32.totalorder %s15644_s8, %s11565_s30 }
0x1186   : > { %11061 = vrot.lane.b32.xlu1 %v14095_v48, %s15855_s5  ;;  %v10484_v23 = vpack.c.bf16 %v10969_v35, %v10968_v55 }
0x1187   : > { %11031 = vrot.lane.b32.xlu0 %v14075_v33, %s15820_s27  ;;  %v10972_v57 = vpop.permute.xlu1 %10971 }
0x1188   : > { %10486 = vmatpush3.bf16.xpose.msk.msra.mxu1 %vm12427_vm10, %v10484_v23  ;;  %v10974_v41 = vunpack.i.h.bf16 %v10972_v57  ;;  %v10973_v25 = vunpack.i.l.bf16 %v10972_v57 }
0x1189   : > { %9785 = vmatprep.subr.mxu1 %v15824_v12 }
0x118a   : > { %11076 = vrot.lane.b32.xlu1 %v14085_v8, %s15856_s7  ;;  %v10500_v43 = vpack.c.bf16 %v10974_v41, %v10973_v25 }
0x118b   : > { %11041 = vrot.lane.b32.xlu0 %v14095_v48, %s15820_s27  ;;  %v10982_v9 = vpop.permute.xlu1 %10981 }
0x118c   : > { %v10983_v38 = vunpack.i.l.bf16 %v10982_v9 }
0x118e   : > { %11081 = vrot.lane.b32.xlu1 %v14095_v48, %s15856_s7 }
0x118f   : > { %11056 = vrot.lane.b32.xlu0 %v14085_v8, %s15855_s5 }
0x1192   : > { %5877 = vrot.lane.b32.xlu1 %v14113_v49, %s15855_s5 }
0x1193   : > { %11066 = vrot.lane.b32.xlu0 %v14105_v10, %s15855_s5 }
0x1196   : > { %6332 = vrot.lane.b32.xlu1 %v14113_v49, %s15856_s7 }
0x1197   : > { %11071 = vrot.lane.b32.xlu0 %v14075_v33, %s15856_s7 }
0x119b   : > { %11086 = vrot.lane.b32.xlu0 %v14105_v10, %s15856_s7 }
0x119f   : > { %5422 = vrot.lane.b32.xlu0 %v14113_v49, %s15820_s27  ;;  %s15857_s27 = smov 40  }
0x11a0   : > { %v5606_v52 = vpop.permute.xlu1 %5605  ;;  %v5151_v42 = vpop.permute.xlu0 %5150 }
0x11a1   : > { %9786 = vmatpush3.xpose.msk.msra.mxu1 %vm2023_vm9, %v5151_v42 }
0x11a2   : > { %10499 = vmatprep.subr.bf16.mxu1 %v15825_v3 }
0x11a4   : > { %v5572_v16 = vpop.permute.xlu1 %5571  ;;  %9788 = vmatmul.mubr.msk.f32.vlgmr.msra.gmra.mrb[124].mxu1 %vm2023_vm9, %v14069_v2  ;;  %v10977_v0 = vpop.permute.xlu0 %10976 }
0x11a5   : > { %10502 = vmatpush3.bf16.xpose.msk.msra.mxu1 %vm12427_vm10, %v10500_v43  ;;  %9790 = vmatprep.mubr.msk.f32.mxu1 %vm11629_vm5, %v15824_v12  ;;  %v10979_v22 = vunpack.i.h.bf16 %v10977_v0  ;;  %v10978_v15 = vunpack.i.l.bf16 %v10977_v0 }
0x11a6   : > { %10503 = vmatprep.subr.bf16.mxu1 %v15825_v3 }
0x11a7   : > { %v10504_v2 = vpack.c.bf16 %v10979_v22, %v10978_v15 }
0x11a8   : > { %v14248_v50 = vpop.permute.xlu1 %10996  ;;  %9791 = vmatmul.mubr.msk.f32.gmra.mrb[126].mxu1 %vm2023_vm9, %v14071_v56  ;;  %v10987_v6 = vpop.permute.xlu0 %10986  ;;  %v10984_v56 = vunpack.i.h.bf16 %v10982_v9 }
0x11a9   : > { %9793 = vmatprep.mubr.msk.f32.mxu1 %vm11629_vm5, %v15824_v12  ;;  %v10988_v53 = vunpack.i.l.bf16 %v10987_v6  ;;  %v10999_v20 = vunpack.i.h.bf16 %v14248_v50  ;;  %v10998_v13 = vunpack.i.l.bf16 %v14248_v50 }
0x11ab   : > { %v10532_v40 = vpack.c.bf16 %v10999_v20, %v10998_v13 }
0x11ac   : > { %v14254_v21 = vpop.permute.xlu1 %5577  ;;  %9794 = vmatmul.mubr.msk.f32.gmra.mrb[128].mxu1 %vm2023_vm9, %v14079_v4  ;;  %v10992_v31 = vpop.permute.xlu0 %10991  ;;  %v10508_v4 = vpack.c.bf16 %v10984_v56, %v10983_v38 }
0x11ad   : > { %10506 = vmatpush3.bf16.xpose.msk.msra.mxu1 %vm12427_vm10, %v10504_v2  ;;  %9796 = vmatprep.mubr.msk.f32.mxu1 %vm11629_vm5, %v15824_v12  ;;  %v10994_v51 = vunpack.i.h.bf16 %v10992_v31 }
0x11ae   : > { %10507 = vmatprep.subr.bf16.mxu1 %v15825_v3 }
0x11b0   : > { %v14263_v17 = vpop.permute.xlu1 %5579  ;;  %9797 = vmatmul.mubr.msk.f32.gmra.mrb[130].mxu1 %vm2023_vm9, %v14081_v44  ;;  %v5574_v1 = vpop.permute.xlu0 %5573  ;;  %v10989_v44 = vunpack.i.h.bf16 %v10987_v6 }
0x11b1   : > { %9799 = vmatprep.mubr.msk.f32.mxu1 %vm11629_vm5, %v15824_v12 }
0x11b4   : > { %v14269_v28 = vpop.permute.xlu1 %11006  ;;  %9800 = vmatmul.mubr.msk.f32.gmra.mrb[132].mxu1 %vm2023_vm9, %v14089_v59  ;;  %v5576_v46 = vpop.permute.xlu0 %5575  ;;  %v10512_v59 = vpack.c.bf16 %v10989_v44, %v10988_v53 }
0x11b5   : > { %10510 = vmatpush3.bf16.xpose.msk.msra.mxu1 %vm12427_vm10, %v10508_v4  ;;  %9802 = vmatprep.mubr.msk.f32.mxu1 %vm11629_vm5, %v15824_v12  ;;  %v11009_v42 = vunpack.i.h.bf16 %v14269_v28  ;;  %v11008_v43 = vunpack.i.l.bf16 %v14269_v28 }
0x11b6   : > { %10511 = vmatprep.subr.bf16.mxu1 %v15825_v3 }
0x11b7   : > { %v10540_v22 = vpack.c.bf16 %v11009_v42, %v11008_v43 }
0x11b8   : > { %v14278_v54 = vpop.permute.xlu1 %5585  ;;  %9803 = vmatmul.mubr.msk.f32.gmra.mrb[134].mxu1 %vm2023_vm9, %v14091_v36  ;;  %v11002_v62 = vpop.permute.xlu0 %11001 }
0x11b9   : > { %9805 = vmatprep.mubr.msk.f32.mxu1 %vm11629_vm5, %v15824_v12  ;;  %v11004_v23 = vunpack.i.h.bf16 %v11002_v62  ;;  %v11003_v57 = vunpack.i.l.bf16 %v11002_v62 }
0x11bb   : > { %v10536_v25 = vpack.c.bf16 %v11004_v23, %v11003_v57 }
0x11bc   : > { %v14284_v11 = vpop.permute.xlu1 %6060  ;;  %9806 = vmatmul.mubr.msk.f32.gmra.mrb[136].mxu1 %vm2023_vm9, %v14099_v7  ;;  %v5582_v58 = vpop.permute.xlu0 %5581  ;;  %v10993_v7 = vunpack.i.l.bf16 %v10992_v31 }
0x11bd   : > { %10514 = vmatpush3.bf16.xpose.msk.msra.mxu1 %vm12427_vm10, %v10512_v59  ;;  %9808 = vmatprep.mubr.msk.f32.mxu1 %vm11629_vm5, %v15824_v12 }
0x11be   : > { %9875 = vmatprep.subr.mxu1 %v15824_v12 }
0x11c0   : > { %v14293_v36 = vpop.permute.xlu1 %6026  ;;  %9809 = vmatmul.mubr.msk.f32.gmra.mrb[138].mxu1 %vm2023_vm9, %v14101_v30  ;;  %v5584_v29 = vpop.permute.xlu0 %5583  ;;  %v10528_v30 = vpack.c.bf16 %v10994_v51, %v10993_v7 }
0x11c1   : > { %9811 = vmatprep.mubr.msk.f32.mxu1 %vm11629_vm5, %v15824_v12 }
0x11c4   : > { %v14299_v18 = vpop.permute.xlu1 %11016  ;;  %9812 = vmatmul.mubr.msk.f32.gmra.mrb[140].mxu1 %vm2023_vm9, %v14113_v49  ;;  %v5588_v63 = vpop.permute.xlu0 %5587 }
0x11c5   : > { %9876 = vmatpush3.xpose.msk.msra.mxu1 %vm2023_vm9, %v5606_v52  ;;  %9877 = vmatprep.mubr.msk.f32.mxu1 %vm11629_vm5, %v15824_v12  ;;  %v11019_v4 = vunpack.i.h.bf16 %v14299_v18  ;;  %v11018_v28 = vunpack.i.l.bf16 %v14299_v18 }
0x11c6   : > { %10527 = vmatprep.subr.bf16.mxu1 %v15825_v3 }
0x11c7   : > { %v10560_v44 = vpack.c.bf16 %v11019_v4, %v11018_v28 }
0x11c8   : > { %v14307_v60 = vpop.permute.xlu1 %6032  ;;  %v11012_v19 = vpop.permute.xlu0 %11011  ;;  %9878 = vmatmul.mubr.msk.f32.vlgmr.msra.gmra.mrb[142].mxu1 %vm2023_vm9, %v5572_v16 }
0x11c9   : > { %10530 = vmatpush3.bf16.xpose.msk.msra.mxu1 %vm12427_vm10, %v10528_v30  ;;  %9880 = vmatprep.mubr.msk.f32.mxu1 %vm11629_vm5, %v15824_v12  ;;  %v11014_v2 = vunpack.i.h.bf16 %v11012_v19 }
0x11ca   : > { %10531 = vmatprep.subr.bf16.mxu1 %v15825_v3 }
0x11cc   : > { %v14317_v45 = vpop.permute.xlu1 %6034  ;;  %v6029_v47 = vpop.permute.xlu0 %6028  ;;  %9881 = vmatmul.mubr.msk.f32.gmra.mrb[144].mxu1 %vm2023_vm9, %v5574_v1 }
0x11cd   : > { %9883 = vmatprep.mubr.msk.f32.mxu1 %vm11629_vm5, %v15824_v12 }
0x11d0   : > { %v14322_v35 = vpop.permute.xlu1 %11026  ;;  %v6031_v55 = vpop.permute.xlu0 %6030  ;;  %9884 = vmatmul.mubr.msk.f32.gmra.mrb[146].mxu1 %vm2023_vm9, %v5576_v46 }
0x11d1   : > { %10534 = vmatpush3.bf16.xpose.msk.msra.mxu1 %vm12427_vm10, %v10532_v40  ;;  %9886 = vmatprep.mubr.msk.f32.mxu1 %vm11629_vm5, %v15824_v12 }
0x11d2   : > { %10535 = vmatprep.subr.bf16.mxu1 %v15825_v3 }
0x11d4   : > { %v11022_v9 = vpop.permute.xlu0 %11021  ;;  %9887 = vmatmul.mubr.msk.f32.gmra.mrb[148].mxu1 %vm2023_vm9, %v14254_v21  ;;  %v14332_v41 = vpop.permute.xlu1 %6040  ;;  %v11013_v21 = vunpack.i.l.bf16 %v11012_v19  ;;  %v11028_v19 = vunpack.i.l.bf16 %v14322_v35 }
0x11d5   : > { %9889 = vmatprep.mubr.msk.f32.mxu1 %vm11629_vm5, %v15824_v12  ;;  %v11024_v62 = vunpack.i.h.bf16 %v11022_v9  ;;  %v11023_v59 = vunpack.i.l.bf16 %v11022_v9 }
0x11d6   : > { %v10556_v38 = vpack.c.bf16 %v11014_v2, %v11013_v21 }
0x11d7   : > { %v10564_v51 = vpack.c.bf16 %v11024_v62, %v11023_v59 }
0x11d8   : > { %v14336_v52 = vpop.permute.xlu0 %6036  ;;  %9890 = vmatmul.mubr.msk.f32.gmra.mrb[150].mxu1 %vm2023_vm9, %v14263_v17  ;;  %v14347_v16 = vpop.permute.xlu1 %6515 }
0x11d9   : > { %10538 = vmatpush3.bf16.xpose.msk.msra.mxu1 %vm12427_vm10, %v10536_v25  ;;  %9892 = vmatprep.mubr.msk.f32.mxu1 %vm11629_vm5, %v15824_v12 }
0x11da   : > { %10539 = vmatprep.subr.bf16.mxu1 %v15825_v3 }
0x11dc   : > { %v14349_v0 = vpop.permute.xlu0 %6038  ;;  %9893 = vmatmul.mubr.msk.f32.gmra.mrb[152].mxu1 %vm2023_vm9, %v5582_v58  ;;  %v14355_v15 = vpop.permute.xlu1 %6483 }
0x11dd   : > { %9895 = vmatprep.mubr.msk.f32.mxu1 %vm11629_vm5, %v15824_v12 }
0x11e0   : > { %9896 = vmatmul.mubr.msk.f32.gmra.mrb[154].mxu1 %vm2023_vm9, %v5584_v29  ;;  %v14370_v31 = vpop.permute.xlu1 %6487 }
0x11e1   : > { %v14357_v50 = vpop.permute.xlu0 %6042  ;;  %10542 = vmatpush3.bf16.xpose.msk.msra.mxu1 %vm12427_vm10, %v10540_v22  ;;  %9898 = vmatprep.mubr.msk.f32.mxu1 %vm11629_vm5, %v15824_v12 }
0x11e2   : > { %9965 = vmatprep.subr.mxu1 %v15824_v12 }
0x11e4   : > { %9899 = vmatmul.mubr.msk.f32.gmra.mrb[156].mxu1 %vm2023_vm9, %v14278_v54  ;;  %v14382_v17 = vpop.permute.xlu1 %6491 }
0x11e5   : > { %v14366_v6 = vpop.permute.xlu0 %6481  ;;  %9901 = vmatprep.mubr.msk.f32.mxu1 %vm11629_vm5, %v15824_v12 }
0x11e8   : > { %9902 = vmatmul.mubr.msk.f32.gmra.mrb[158].mxu1 %vm2023_vm9, %v5588_v63  ;;  %v14398_v53 = vpop.permute.xlu1 %6495 }
0x11e9   : > { %v14373_v56 = vpop.permute.xlu0 %6485  ;;  %9966 = vmatpush3.xpose.msk.msra.mxu1 %vm2023_vm9, %v14284_v11  ;;  %9967 = vmatprep.mubr.msk.f32.mxu1 %vm11629_vm5, %v15824_v12 }
0x11ea   : > { %10555 = vmatprep.subr.bf16.mxu1 %v15825_v3 }
0x11ec   : > { %9968 = vmatmul.mubr.msk.f32.vlgmr.msra.gmra.mrb[160].mxu1 %vm2023_vm9, %v14293_v36  ;;  %v11037_v11 = vpop.permute.xlu1 %11036 }
0x11ed   : > { %v14384_v1 = vpop.permute.xlu0 %6489  ;;  %10558 = vmatpush3.bf16.xpose.msk.msra.mxu1 %vm12427_vm10, %v10556_v38  ;;  %9970 = vmatprep.mubr.msk.f32.mxu1 %vm11629_vm5, %v15824_v12  ;;  %v11039_v7 = vunpack.i.h.bf16 %v11037_v11  ;;  %v11038_v18 = vunpack.i.l.bf16 %v11037_v11 }
0x11ee   : > { %10559 = vmatprep.subr.bf16.mxu1 %v15825_v3 }
0x11ef   : > { %v10491_v20 = vpack.c.bf16 %v11039_v7, %v11038_v18 }
0x11f0   : > { %9971 = vmatmul.mubr.msk.f32.gmra.mrb[162].mxu1 %vm2023_vm9, %v6029_v47 }
0x11f1   : > { %v14394_v46 = vpop.permute.xlu0 %6493  ;;  %9973 = vmatprep.mubr.msk.f32.mxu1 %vm11629_vm5, %v15824_v12 }
0x11f4   : > { %9974 = vmatmul.mubr.msk.f32.gmra.mrb[164].mxu1 %vm2023_vm9, %v6031_v55 }
0x11f5   : > { %v14401_v54 = vpop.permute.xlu0 %6497  ;;  %10562 = vmatpush3.bf16.xpose.msk.msra.mxu1 %vm12427_vm10, %v10560_v44  ;;  %9976 = vmatprep.mubr.msk.f32.mxu1 %vm11629_vm5, %v15824_v12 }
0x11f6   : > { %10563 = vmatprep.subr.bf16.mxu1 %v15825_v3 }
0x11f8   : > { %9977 = vmatmul.mubr.msk.f32.gmra.mrb[166].mxu1 %vm2023_vm9, %v14307_v60  ;;  %v11029_v60 = vunpack.i.h.bf16 %v14322_v35 }
0x11f9   : > { %v11032_v58 = vpop.permute.xlu0 %11031  ;;  %9979 = vmatprep.mubr.msk.f32.mxu1 %vm11629_vm5, %v15824_v12 }
0x11fa   : > { %v11034_v36 = vunpack.i.h.bf16 %v11032_v58  ;;  %v11033_v29 = vunpack.i.l.bf16 %v11032_v58  ;;  %v10568_v55 = vpack.c.bf16 %v11029_v60, %v11028_v19 }
0x11fc   : > { %v10488_v63 = vpack.c.bf16 %v11034_v36, %v11033_v29  ;;  %9980 = vmatmul.mubr.msk.f32.gmra.mrb[168].mxu1 %vm2023_vm9, %v14317_v45  ;;  %v11047_v45 = vpop.permute.xlu1 %11046 }
0x11fd   : > { %v11042_v30 = vpop.permute.xlu0 %11041  ;;  %10566 = vmatpush3.bf16.xpose.msk.msra.mxu1 %vm12427_vm10, %v10564_v51  ;;  %9982 = vmatprep.mubr.msk.f32.mxu1 %vm11629_vm5, %v15824_v12  ;;  %v11049_v23 = vunpack.i.h.bf16 %v11047_v45  ;;  %v11048_v35 = vunpack.i.l.bf16 %v11047_v45 }
0x11fe   : > { %10489 = vmatpush3.bf16.msra.mxu0 %v10488_v63  ;;  %10567 = vmatprep.subr.bf16.mxu1 %v15825_v3  ;;  %v11044_v13 = vunpack.i.h.bf16 %v11042_v30  ;;  %v11043_v47 = vunpack.i.l.bf16 %v11042_v30 }
0x11ff   : > { %10490 = vmatprep.subr.bf16.mxu0 %v15825_v3  ;;  %v10497_v25 = vpack.c.bf16 %v11049_v23, %v11048_v35 }
0x1200   : > { %9983 = vmatmul.mubr.msk.f32.gmra.mrb[170].mxu1 %vm2023_vm9, %v14336_v52  ;;  %v10494_v57 = vpack.c.bf16 %v11044_v13, %v11043_v47 }
0x1201   : > { %v14424_v40 = vpop.permute.xlu0 %11056  ;;  %9985 = vmatprep.mubr.msk.f32.mxu1 %vm11629_vm5, %v15824_v12 }
0x1202   : > { %10492 = vmatpush3.bf16.msra.mxu0 %v10491_v20 }
0x1203   : > { %10493 = vmatprep.subr.bf16.mxu0 %v15825_v3 }
0x1204   : > { %9986 = vmatmul.mubr.msk.f32.gmra.mrb[172].mxu1 %vm2023_vm9, %v14349_v0 }
0x1205   : > { %v14431_v9 = vpop.permute.xlu0 %11066  ;;  %10570 = vmatpush3.bf16.xpose.msk.msra.mxu1 %vm12427_vm10, %v10568_v55  ;;  %9988 = vmatprep.mubr.msk.f32.mxu1 %vm11629_vm5, %v15824_v12 }
0x1206   : > { %10495 = vmatpush3.bf16.msra.mxu0 %v10494_v57  ;;  %10055 = vmatprep.subr.mxu1 %v15824_v12 }
0x1207   : > { %10496 = vmatprep.subr.bf16.mxu0 %v15825_v3 }
0x1208   : > { %9989 = vmatmul.mubr.msk.f32.gmra.mrb[174].mxu1 %vm2023_vm9, %v14332_v41 }
0x1209   : > { %v14441_v52 = vpop.permute.xlu0 %11071  ;;  %9991 = vmatprep.mubr.msk.f32.mxu1 %vm11629_vm5, %v15824_v12 }
0x120a   : > { %10498 = vmatpush3.bf16.msra.mxu0 %v10497_v25 }
0x120b   : > { %9830 = vmatprep.subr.mxu0 %v15824_v12 }
0x120c   : > { %9992 = vmatmul.mubr.msk.f32.gmra.mrb[176].mxu1 %vm2023_vm9, %v14357_v50 }
0x120d   : > { %v14448_v24 = vpop.permute.xlu0 %11086  ;;  %10056 = vmatpush3.xpose.msk.msra.mxu1 %vm2023_vm9, %v14347_v16  ;;  %10057 = vmatprep.mubr.msk.f32.mxu1 %vm11629_vm5, %v15824_v12 }
0x120e   : > { %10583 = vmatprep.subr.bf16.mxu1 %v15825_v3 }
0x1210   : > { %10058 = vmatmul.mubr.msk.f32.vlgmr.msra.gmra.mrb[178].mxu1 %vm2023_vm9, %v14366_v6 }
0x1211   : > { %v5423_v41 = vpop.permute.xlu0 %5422  ;;  %10060 = vmatprep.mubr.msk.f32.mxu1 %vm11629_vm5, %v15824_v12 }
0x1212   : > { %9831 = vmatpush3.msk.msra.mxu0 %vm2333_vm11, %v5423_v41 }
0x1213   : > { %10515 = vmatprep.subr.bf16.mxu0 %v15825_v3 }
0x1214   : > { %10061 = vmatmul.mubr.msk.f32.gmra.mrb[180].mxu1 %vm2023_vm9, %v14355_v15 }
0x1215   : > { %10063 = vmatprep.mubr.msk.f32.mxu1 %vm11629_vm5, %v15824_v12 }
0x1218   : > { %10064 = vmatmul.mubr.msk.f32.gmra.mrb[182].mxu1 %vm2023_vm9, %v14373_v56 }
0x1219   : > { %10066 = vmatprep.mubr.msk.f32.mxu1 %vm11629_vm5, %v15824_v12 }
0x121c   : > { %10067 = vmatmul.mubr.msk.f32.gmra.mrb[184].mxu1 %vm2023_vm9, %v14370_v31 }
0x121d   : > { %10069 = vmatprep.mubr.msk.f32.mxu1 %vm11629_vm5, %v15824_v12 }
0x1220   : > { %10070 = vmatmul.mubr.msk.f32.gmra.mrb[186].mxu1 %vm2023_vm9, %v14384_v1 }
0x1221   : > { %10072 = vmatprep.mubr.msk.f32.mxu1 %vm11629_vm5, %v15824_v12 }
0x1224   : > { %10073 = vmatmul.mubr.msk.f32.gmra.mrb[188].mxu1 %vm2023_vm9, %v14382_v17 }
0x1225   : > { %10075 = vmatprep.mubr.msk.f32.mxu1 %vm11629_vm5, %v15824_v12 }
0x1228   : > { %10076 = vmatmul.mubr.msk.f32.gmra.mrb[190].mxu1 %vm2023_vm9, %v14394_v46 }
0x1229   : > { %10078 = vmatprep.mubr.msk.f32.mxu1 %vm11629_vm5, %v15824_v12 }
0x122c   : > { %10079 = vmatmul.mubr.msk.f32.gmra.mrb[192].mxu1 %vm2023_vm9, %v14398_v53 }
0x122d   : > { %10081 = vmatprep.mubr.msk.f32.mxu1 %vm11629_vm5, %v15824_v12 }
0x1230   : > { %10082 = vmatmul.mubr.msk.f32.gmra.mrb[194].mxu1 %vm2023_vm9, %v14401_v54 }
0x1231   : > { %10137 = vmatprep.mubr.msk.f32.mxu1 %vm11629_vm5, %v15824_v12 }
0x1277   : > { %v5254_v42 = vpop.f32.mrb[124].mxu1 }
0x1278   : > { %v14493_v43 = vmul.f32 0.35355338, %v5254_v42  ;;  %v9789_v16 = vpop.f32.mrb[125].mxu1 }
0x127a   : > { %v5307_v0 = vsel %vm2179_vm12, %v14493_v43, -inf }
0x127b   : > { %5308 = vmax.xlane.f32.xlu1 %v5307_v0  ;;  %v5259_v22 = vpop.f32.mrb[126].mxu1 }
0x127c   : > { %v14497_v15 = vmul.f32 0.35355338, %v5259_v22  ;;  %v9792_v50 = vpop.f32.mrb[127].mxu1 }
0x127e   : > { %v5310_v6 = vsel %vm2179_vm12, %v14497_v15, -inf }
0x127f   : > { %5311 = vmax.xlane.f32.xlu0 %v5310_v6  ;;  %v5264_v2 = vpop.f32.mrb[128].mxu1 }
0x1280   : > { %v14501_v21 = vmul.f32 0.35355338, %v5264_v2  ;;  %v9795_v31 = vpop.f32.mrb[129].mxu1 }
0x1282   : > { %v5313_v56 = vsel %vm2179_vm12, %v14501_v21, -inf }
0x1283   : > { %5314 = vmax.xlane.f32.xlu0 %v5313_v56  ;;  %v5269_v38 = vpop.f32.mrb[130].mxu1 }
0x1284   : > { %v14505_v17 = vmul.f32 0.35355338, %v5269_v38  ;;  %v9798_v1 = vpop.f32.mrb[131].mxu1 }
0x1286   : > { %v5316_v4 = vsel %vm2179_vm12, %v14505_v17, -inf }
0x1287   : > { %5317 = vmax.xlane.f32.xlu0 %v5316_v4  ;;  %v5274_v28 = vpop.f32.mrb[132].mxu1 }
0x1288   : > { %v14509_v46 = vmul.f32 0.35355338, %v5274_v28  ;;  %v9801_v44 = vpop.f32.mrb[133].mxu1 }
0x128a   : > { %v5319_v53 = vsel %vm2179_vm12, %v14509_v46, -inf }
0x128b   : > { %5320 = vmax.xlane.f32.xlu1 %v5319_v53  ;;  %v5279_v54 = vpop.f32.mrb[134].mxu1 }
0x128c   : > { %v14513_v62 = vmul.f32 0.35355338, %v5279_v54  ;;  %v9804_v59 = vpop.f32.mrb[135].mxu1 }
0x128e   : > { %v5322_v11 = vsel %vm2179_vm12, %v14513_v62, -inf }
0x128f   : > { %5323 = vmax.xlane.f32.xlu0 %v5322_v11  ;;  %v5284_v58 = vpop.f32.mrb[136].mxu1 }
0x1290   : > { %v14517_v36 = vmul.f32 0.35355338, %v5284_v58  ;;  %v9807_v29 = vpop.f32.mrb[137].mxu1 }
0x1292   : > { %v5325_v51 = vsel %vm2179_vm12, %v14517_v36, -inf }
0x1293   : > { %5326 = vmax.xlane.f32.xlu1 %v5325_v51  ;;  %v5289_v7 = vpop.f32.mrb[138].mxu1 }
0x1294   : > { %v14521_v18 = vmul.f32 0.35355338, %v5289_v7  ;;  %v9810_v63 = vpop.f32.mrb[139].mxu1 }
0x1296   : > { %v5328_v30 = vsel %vm2179_vm12, %v14521_v18, -inf }
0x1297   : > { %5329 = vmax.xlane.f32.xlu0 %v5328_v30  ;;  %v5294_v60 = vpop.f32.mrb[140].mxu1 }
0x1298   : > { %v14525_v19 = vmul.f32 0.35355338, %v5294_v60  ;;  %v9813_v20 = vpop.f32.mrb[141].mxu1 }
0x129a   : > { %v5331_v13 = vsel %vm2204_vm13, %v14525_v19, -inf }
0x129b   : > { %5332 = vmax.xlane.f32.xlu1 %v5331_v13  ;;  %v5709_v47 = vpop.f32.mrb[142].mxu1 }
0x129c   : > { %v14529_v45 = vmul.f32 0.35355338, %v5709_v47  ;;  %v9879_v55 = vpop.f32.mrb[143].mxu1 }
0x129e   : > { %v5762_v23 = vsel %vm2179_vm12, %v14529_v45, -inf }
0x129f   : > { %5763 = vmax.xlane.f32.xlu0 %v5762_v23  ;;  %v5714_v35 = vpop.f32.mrb[144].mxu1 }
0x12a0   : > { %v14533_v57 = vmul.f32 0.35355338, %v5714_v35  ;;  %v9882_v25 = vpop.f32.mrb[145].mxu1 }
0x12a2   : > { %v5765_v41 = vsel %vm2179_vm12, %v14533_v57, -inf }
0x12a3   : > { %5766 = vmax.xlane.f32.xlu1 %v5765_v41  ;;  %v5719_v42 = vpop.f32.mrb[146].mxu1 }
0x12a4   : > { %v14537_v16 = vmul.f32 0.35355338, %v5719_v42  ;;  %v9885_v0 = vpop.f32.mrb[147].mxu1 }
0x12a6   : > { %v5768_v22 = vsel %vm2179_vm12, %v14537_v16, -inf }
0x12a7   : > { %5769 = vmax.xlane.f32.xlu0 %v5768_v22  ;;  %v5724_v50 = vpop.f32.mrb[148].mxu1 }
0x12a8   : > { %v14541_v6 = vmul.f32 0.35355338, %v5724_v50  ;;  %v9888_v2 = vpop.f32.mrb[149].mxu1 }
0x12aa   : > { %v5771_v31 = vsel %vm2179_vm12, %v14541_v6, -inf }
0x12ab   : > { %5772 = vmax.xlane.f32.xlu1 %v5771_v31  ;;  %v5729_v56 = vpop.f32.mrb[150].mxu1 }
0x12ac   : > { %v14545_v38 = vmul.f32 0.35355338, %v5729_v56  ;;  %v9891_v1 = vpop.f32.mrb[151].mxu1 }
0x12ae   : > { %v5774_v4 = vsel %vm2179_vm12, %v14545_v38, -inf }
0x12af   : > { %5775 = vmax.xlane.f32.xlu0 %v5774_v4  ;;  %v5734_v28 = vpop.f32.mrb[152].mxu1 }
0x12b0   : > { %v14549_v44 = vmul.f32 0.35355338, %v5734_v28  ;;  %v9894_v53 = vpop.f32.mrb[153].mxu1 }
0x12b2   : > { %v5777_v54 = vsel %vm2179_vm12, %v14549_v44, -inf }
0x12b3   : > { %5778 = vmax.xlane.f32.xlu1 %v5777_v54  ;;  %v5739_v59 = vpop.f32.mrb[154].mxu1 }
0x12b4   : > { %v14553_v11 = vmul.f32 0.35355338, %v5739_v59  ;;  %v9897_v58 = vpop.f32.mrb[155].mxu1 }
0x12b6   : > { %v5780_v29 = vsel %vm2179_vm12, %v14553_v11, -inf }
0x12b7   : > { %5781 = vmax.xlane.f32.xlu0 %v5780_v29  ;;  %v5744_v51 = vpop.f32.mrb[156].mxu1 }
0x12b8   : > { %v14557_v7 = vmul.f32 0.35355338, %v5744_v51  ;;  %v9900_v63 = vpop.f32.mrb[157].mxu1 }
0x12ba   : > { %v5783_v30 = vsel %vm2179_vm12, %v14557_v7, -inf }
0x12bb   : > { %5784 = vmax.xlane.f32.xlu1 %v5783_v30  ;;  %v5749_v60 = vpop.f32.mrb[158].mxu1 }
0x12bc   : > { %v14561_v20 = vmul.f32 0.35355338, %v5749_v60  ;;  %v9903_v13 = vpop.f32.mrb[159].mxu1 }
0x12bd   : > { %v14577_v13 = vpop.permute.xlu1 %11051 }
0x12be   : > { %v5786_v47 = vsel %vm2204_vm13, %v14561_v20, -inf }
0x12bf   : > { %5787 = vmax.xlane.f32.xlu0 %v5786_v47  ;;  %v6164_v55 = vpop.f32.mrb[160].mxu1 }
0x12c0   : > { %v14565_v23 = vmul.f32 0.35355338, %v6164_v55  ;;  %v9969_v35 = vpop.f32.mrb[161].mxu1 }
0x12c2   : > { %v6217_v25 = vsel %vm2179_vm12, %v14565_v23, -inf }
0x12c3   : > { %6218 = vmax.xlane.f32.xlu1 %v6217_v25  ;;  %v6169_v41 = vpop.f32.mrb[162].mxu1  ;;  %v14579_v25 = vpop.permute.xlu1 %11061 }
0x12c4   : > { %v14569_v42 = vmul.f32 0.35355338, %v6169_v41  ;;  %v9972_v0 = vpop.f32.mrb[163].mxu1 }
0x12c6   : > { %v6220_v22 = vsel %vm2179_vm12, %v14569_v42, -inf }
0x12c7   : > { %6221 = vmax.xlane.f32.xlu0 %v6220_v22  ;;  %v6174_v50 = vpop.f32.mrb[164].mxu1  ;;  %v14581_v22 = vpop.permute.xlu1 %11076 }
0x12c8   : > { %v9975_v2 = vpop.f32.mrb[165].mxu1 }
0x12c9   : > { %v14583_v2 = vmul.f32 0.35355338, %v6174_v50 }
0x12cb   : > { %v6179_v31 = vpop.f32.mrb[166].mxu1 }
0x12cc   : > { %v9978_v56 = vpop.f32.mrb[167].mxu1 }
0x12cf   : > { %v6184_v1 = vpop.f32.mrb[168].mxu1 }
0x12d0   : > { %v9981_v4 = vpop.f32.mrb[169].mxu1 }
0x12d1   : > { %v14585_v4 = vmul.f32 0.35355338, %v6179_v31 }
0x12d3   : > { %v6189_v28 = vpop.f32.mrb[170].mxu1 }
0x12d4   : > { %11096 = vrot.lane.b32.xlu1 %v14085_v8, %s15857_s27  ;;  %v9984_v53 = vpop.f32.mrb[171].mxu1  ;;  %v14603_v26 = vmul.f32 0.35355338, %v6189_v28 }
0x12d7   : > { %v6194_v54 = vpop.f32.mrb[172].mxu1 }
0x12d8   : > { %v9987_v59 = vpop.f32.mrb[173].mxu1  ;;  %v14587_v53 = vmul.f32 0.35355338, %v6194_v54 }
0x12da   : > { %v6235_v31 = vsel %vm2179_vm12, %v14587_v53, -inf }
0x12db   : > { %v6199_v58 = vpop.f32.mrb[174].mxu1 }
0x12dc   : > { %v9990_v29 = vpop.f32.mrb[175].mxu1 }
0x12dd   : > { %11091 = vrot.lane.b32.xlu0 %v14075_v33, %s15857_s27  ;;  %v6223_v29 = vsel %vm2179_vm12, %v14583_v2, -inf }
0x12df   : > { %v6204_v51 = vpop.f32.mrb[176].mxu1 }
0x12e0   : > { %v9993_v63 = vpop.f32.mrb[177].mxu1  ;;  %v14597_v50 = vmul.f32 0.35355338, %v6204_v51 }
0x12e1   : > { %v14591_v63 = vpop.permute.xlu1 %11081 }
0x12e2   : > { %v6241_v51 = vsel %vm2204_vm13, %v14597_v50, -inf }
0x12e3   : > { %v6619_v30 = vpop.f32.mrb[178].mxu1 }
0x12e4   : > { %v10059_v60 = vpop.f32.mrb[179].mxu1  ;;  %v14621_v39 = vmul.f32 0.35355338, %v6619_v30 }
0x12e6   : > { %v6672_v30 = vsel %vm2179_vm12, %v14621_v39, -inf }
0x12e7   : > { %v6624_v47 = vpop.f32.mrb[180].mxu1 }
0x12e8   : > { %v10062_v55 = vpop.f32.mrb[181].mxu1  ;;  %v14630_v37 = vmul.f32 0.35355338, %v6624_v47 }
0x12e9   : > { %v6226_v55 = vsel %vm2179_vm12, %v14585_v4, -inf }
0x12ea   : > { %v6675_v47 = vsel %vm2179_vm12, %v14630_v37, -inf }
0x12eb   : > { %v6629_v35 = vpop.f32.mrb[182].mxu1 }
0x12ec   : > { %v10065_v8 = vpop.f32.mrb[183].mxu1 }
0x12ed   : > { %v14595_v8 = vmul.f32 0.35355338, %v6184_v1 }
0x12ef   : > { %v6634_v41 = vpop.f32.mrb[184].mxu1  ;;  %v6229_v1 = vsel %vm2179_vm12, %v14595_v8, -inf }
0x12f0   : > { %v10068_v0 = vpop.f32.mrb[185].mxu1 }
0x12f3   : > { %v6639_v56 = vpop.f32.mrb[186].mxu1 }
0x12f4   : > { %v10071_v33 = vpop.f32.mrb[187].mxu1 }
0x12f5   : > { %v14601_v33 = vpop.permute.xlu1 %5877 }
0x12f7   : > { %v6644_v59 = vpop.f32.mrb[188].mxu1 }
0x12f8   : > { %6224 = vmax.xlane.f32.xlu1 %v6223_v29  ;;  %v10074_v60 = vpop.f32.mrb[189].mxu1  ;;  %v14605_v29 = vmul.f32 0.35355338, %v6629_v35 }
0x12f9   : > { %v14619_v34 = vpop.permute.xlu1 %6332 }
0x12fa   : > { %v6678_v35 = vsel %vm2179_vm12, %v14605_v29, -inf }
0x12fb   : > { %v6649_v0 = vpop.f32.mrb[190].mxu1 }
0x12fc   : > { %6227 = vmax.xlane.f32.xlu0 %v6226_v55  ;;  %6236 = vmax.xlane.f32.xlu1 %v6235_v31  ;;  %v10077_v54 = vpop.f32.mrb[191].mxu1  ;;  %v6232_v55 = vsel %vm2179_vm12, %v14603_v26, -inf  ;;  %v14613_v31 = vmul.f32 0.35355338, %v6199_v58 }
0x12fd   : > { %v14615_v54 = vmul.f32 0.35355338, %v6639_v56 }
0x12ff   : > { %v6654_v60 = vpop.f32.mrb[192].mxu1  ;;  %v6684_v58 = vsel %vm2179_vm12, %v14615_v54, -inf }
0x1300   : > { %6230 = vmax.xlane.f32.xlu0 %v6229_v1  ;;  %6242 = vmax.xlane.f32.xlu1 %v6241_v51  ;;  %v10080_v14 = vpop.f32.mrb[193].mxu1  ;;  %v14623_v1 = vmul.f32 0.35355338, %v6644_v59 }
0x1301   : > { %v6238_v14 = vsel %vm2179_vm12, %v14613_v31, -inf }
0x1302   : > { %v6687_v59 = vsel %vm2179_vm12, %v14623_v1, -inf }
0x1303   : > { %v6659_v28 = vpop.f32.mrb[194].mxu1 }
0x1304   : > { %6233 = vmax.xlane.f32.xlu0 %v6232_v55  ;;  %6679 = vmax.xlane.f32.xlu1 %v6678_v35  ;;  %v10083_v5 = vpop.f32.mrb[195].mxu1  ;;  %v14632_v55 = vmul.f32 0.35355338, %v6654_v60 }
0x1306   : > { %v6693_v60 = vsel %vm2179_vm12, %v14632_v55, -inf }
0x1308   : > { %v5309_v56 = vpop.xlane.xlu1 %5308  ;;  %6239 = vmax.xlane.f32.xlu0 %v6238_v14  ;;  %6685 = vmax.xlane.f32.xlu1 %v6684_v58  ;;  %v14639_v58 = vmul.f32 0.35355338, %v6634_v41 }
0x1309   : > { %v5334_v51 = vsub.f32 %v14493_v43, %v5309_v56 }
0x130b   : > { %v5343_v5 = vmul.f32 1.442695, %v5334_v51 }
0x130c   : > { %v5312_v35 = vpop.xlane.xlu0 %5311  ;;  %6673 = vmax.xlane.f32.xlu0 %v6672_v30  ;;  %6688 = vmax.xlane.f32.xlu1 %v6687_v59  ;;  %v14646_v30 = vmul.f32 0.35355338, %v6649_v0 }
0x130d   : > { %11344 = vpow2.f32 %v5343_v5  ;;  %v5335_v14 = vsub.f32 %v14497_v15, %v5312_v35  ;;  %v6681_v15 = vsel %vm2179_vm12, %v14639_v58, -inf }
0x130f   : > { %v5345_v43 = vmul.f32 1.442695, %v5335_v14  ;;  %v14653_v14 = vmul.f32 0.35355338, %v6659_v28 }
0x1310   : > { %v5315_v56 = vpop.xlane.xlu0 %5314  ;;  %6676 = vmax.xlane.f32.xlu0 %v6675_v47  ;;  %6694 = vmax.xlane.f32.xlu1 %v6693_v60 }
0x1311   : > { %11346 = vpow2.f32 %v5345_v43  ;;  %v5336_v51 = vsub.f32 %v14501_v21, %v5315_v56  ;;  %v6690_v43 = vsel %vm2179_vm12, %v14646_v30, -inf  ;;  %v6696_v28 = vsel %vm2204_vm13, %v14653_v14, -inf }
0x1313   : > { %v5347_v5 = vmul.f32 1.442695, %v5336_v51 }
0x1314   : > { %v5318_v41 = vpop.xlane.xlu0 %5317  ;;  %6682 = vmax.xlane.f32.xlu0 %v6681_v15 }
0x1315   : > { %11348 = vpow2.f32 %v5347_v5  ;;  %v5337_v59 = vsub.f32 %v14505_v17, %v5318_v41 }
0x1317   : > { %v14651_v35 = vpop.eup %11344  ;;  %v5349_v47 = vmul.f32 1.442695, %v5337_v59 }
0x1318   : > { %v5321_v21 = vpop.xlane.xlu1 %5320  ;;  %6691 = vmax.xlane.f32.xlu0 %v6690_v43  ;;  %v5361_v0 = vsel %vm2179_vm12, %v14651_v35, 0.0 }
0x1319   : > { %11350 = vpow2.f32 %v5349_v47  ;;  %v5338_v60 = vsub.f32 %v14509_v46, %v5321_v21  ;;  %5362 = vadd.xlane.f32.xlu1 %v5361_v0 }
0x131b   : > { %v14660_v56 = vpop.eup %11346  ;;  %v5351_v17 = vmul.f32 1.442695, %v5338_v60 }
0x131c   : > { %v5324_v51 = vpop.xlane.xlu0 %5323  ;;  %6697 = vmax.xlane.f32.xlu0 %v6696_v28  ;;  %v5364_v5 = vsel %vm2179_vm12, %v14660_v56, 0.0 }
0x131d   : > { %11352 = vpow2.f32 %v5351_v17  ;;  %v5339_v15 = vsub.f32 %v14513_v62, %v5324_v51  ;;  %5365 = vadd.xlane.f32.xlu1 %v5364_v5 }
0x131f   : > { %v14667_v41 = vpop.eup %11348  ;;  %v5353_v59 = vmul.f32 1.442695, %v5339_v15 }
0x1320   : > { %v5327_v46 = vpop.xlane.xlu1 %5326  ;;  %v5367_v47 = vsel %vm2179_vm12, %v14667_v41, 0.0 }
0x1321   : > { %11354 = vpow2.f32 %v5353_v59  ;;  %v5340_v43 = vsub.f32 %v14517_v36, %v5327_v46  ;;  %5368 = vadd.xlane.f32.xlu1 %v5367_v47 }
0x1323   : > { %v14672_v21 = vpop.eup %11350  ;;  %v5355_v0 = vmul.f32 1.442695, %v5340_v43 }
0x1324   : > { %v5330_v60 = vpop.xlane.xlu0 %5329  ;;  %v5370_v17 = vsel %vm2179_vm12, %v14672_v21, 0.0 }
0x1325   : > { %11356 = vpow2.f32 %v5355_v0  ;;  %v5341_v62 = vsub.f32 %v14521_v18, %v5330_v60  ;;  %5371 = vadd.xlane.f32.xlu1 %v5370_v17 }
0x1327   : > { %v14677_v28 = vpop.eup %11352  ;;  %v5357_v51 = vmul.f32 1.442695, %v5341_v62 }
0x1328   : > { %v5333_v5 = vpop.xlane.xlu1 %5332  ;;  %v5373_v15 = vsel %vm2179_vm12, %v14677_v28, 0.0 }
0x1329   : > { %11358 = vpow2.f32 %v5357_v51  ;;  %v5342_v36 = vsub.f32 %v14525_v19, %v5333_v5  ;;  %5374 = vadd.xlane.f32.xlu1 %v5373_v15 }
0x132b   : > { %v14682_v59 = vpop.eup %11354  ;;  %v5359_v46 = vmul.f32 1.442695, %v5342_v36 }
0x132c   : > { %v5764_v47 = vpop.xlane.xlu0 %5763  ;;  %v5376_v43 = vsel %vm2179_vm12, %v14682_v59, 0.0 }
0x132d   : > { %11360 = vpow2.f32 %v5359_v46  ;;  %v5789_v18 = vsub.f32 %v14529_v45, %v5764_v47  ;;  %5377 = vadd.xlane.f32.xlu1 %v5376_v43 }
0x132f   : > { %v14687_v0 = vpop.eup %11356  ;;  %v5798_v60 = vmul.f32 1.442695, %v5789_v18 }
0x1330   : > { %v5767_v17 = vpop.xlane.xlu1 %5766  ;;  %v5379_v62 = vsel %vm2179_vm12, %v14687_v0, 0.0 }
0x1331   : > { %11362 = vpow2.f32 %v5798_v60  ;;  %v5790_v19 = vsub.f32 %v14533_v57, %v5767_v17  ;;  %5380 = vadd.xlane.f32.xlu1 %v5379_v62 }
0x1333   : > { %v14692_v51 = vpop.eup %11358  ;;  %v5800_v5 = vmul.f32 1.442695, %v5790_v19 }
0x1334   : > { %v5770_v15 = vpop.xlane.xlu0 %5769  ;;  %v5382_v36 = vsel %vm2179_vm12, %v14692_v51, 0.0 }
0x1335   : > { %11364 = vpow2.f32 %v5800_v5  ;;  %v5791_v45 = vsub.f32 %v14537_v16, %v5770_v15  ;;  %5383 = vadd.xlane.f32.xlu1 %v5382_v36 }
0x1337   : > { %v14697_v46 = vpop.eup %11360  ;;  %v5802_v47 = vmul.f32 1.442695, %v5791_v45 }
0x1338   : > { %v5773_v43 = vpop.xlane.xlu1 %5772  ;;  %v5385_v18 = vsel %vm2204_vm13, %v14697_v46, 0.0 }
0x1339   : > { %11366 = vpow2.f32 %v5802_v47  ;;  %v5792_v57 = vsub.f32 %v14541_v6, %v5773_v43  ;;  %5386 = vadd.xlane.f32.xlu1 %v5385_v18 }
0x133b   : > { %v14702_v60 = vpop.eup %11362  ;;  %v5804_v17 = vmul.f32 1.442695, %v5792_v57 }
0x133c   : > { %v5776_v62 = vpop.xlane.xlu0 %5775  ;;  %v5816_v19 = vsel %vm2179_vm12, %v14702_v60, 0.0 }
0x133d   : > { %11368 = vpow2.f32 %v5804_v17  ;;  %v5793_v16 = vsub.f32 %v14545_v38, %v5776_v62  ;;  %5817 = vadd.xlane.f32.xlu1 %v5816_v19 }
0x133f   : > { %v14707_v5 = vpop.eup %11364  ;;  %v5806_v15 = vmul.f32 1.442695, %v5793_v16 }
0x1340   : > { %v5779_v36 = vpop.xlane.xlu1 %5778  ;;  %v5819_v45 = vsel %vm2179_vm12, %v14707_v5, 0.0 }
0x1341   : > { %11370 = vpow2.f32 %v5806_v15  ;;  %v5794_v6 = vsub.f32 %v14549_v44, %v5779_v36  ;;  %5820 = vadd.xlane.f32.xlu1 %v5819_v45 }
0x1343   : > { %v14712_v47 = vpop.eup %11366  ;;  %v5808_v43 = vmul.f32 1.442695, %v5794_v6 }
0x1344   : > { %v5782_v18 = vpop.xlane.xlu0 %5781  ;;  %v5822_v57 = vsel %vm2179_vm12, %v14712_v47, 0.0 }
0x1345   : > { %11372 = vpow2.f32 %v5808_v43  ;;  %v5795_v38 = vsub.f32 %v14553_v11, %v5782_v18  ;;  %5823 = vadd.xlane.f32.xlu1 %v5822_v57 }
0x1347   : > { %v14717_v17 = vpop.eup %11368  ;;  %v5810_v62 = vmul.f32 1.442695, %v5795_v38 }
0x1348   : > { %v5825_v19 = vsel %vm2179_vm12, %v14717_v17, 0.0  ;;  %v5785_v16 = vpop.xlane.xlu1 %5784 }
0x1349   : > { %11374 = vpow2.f32 %v5810_v62  ;;  %5826 = vadd.xlane.f32.xlu0 %v5825_v19 }
0x134b   : > { %v14721_v44 = vpop.eup %11370 }
0x134c   : > { %v5788_v15 = vpop.xlane.xlu0 %5787  ;;  %v5828_v36 = vsel %vm2179_vm12, %v14721_v44, 0.0 }
0x134d   : > { %v5797_v45 = vsub.f32 %v14561_v20, %v5788_v15  ;;  %5829 = vadd.xlane.f32.xlu0 %v5828_v36 }
0x134f   : > { %v14726_v11 = vpop.eup %11372  ;;  %v5814_v6 = vmul.f32 1.442695, %v5797_v45 }
0x1350   : > { %v6219_v43 = vpop.xlane.xlu1 %6218  ;;  %v5831_v18 = vsel %vm2179_vm12, %v14726_v11, 0.0 }
0x1351   : > { %11376 = vpow2.f32 %v5814_v6  ;;  %v6244_v57 = vsub.f32 %v14565_v23, %v6219_v43  ;;  %5832 = vadd.xlane.f32.xlu1 %v5831_v18 }
0x1353   : > { %v14731_v38 = vpop.eup %11374  ;;  %v6253_v62 = vmul.f32 1.442695, %v6244_v57 }
0x1354   : > { %v6222_v19 = vpop.xlane.xlu0 %6221  ;;  %v5834_v61 = vsel %vm2179_vm12, %v14731_v38, 0.0  ;;  %v14751_v57 = vpop.permute.xlu1 %11096 }
0x1355   : > { %11378 = vpow2.f32 %v6253_v62  ;;  %v6245_v20 = vsub.f32 %v14569_v42, %v6222_v19  ;;  %5835 = vadd.xlane.f32.xlu0 %v5834_v61  ;;  %v5796_v42 = vsub.f32 %v14557_v7, %v5785_v16  ;;  %15860 = vst [vmem:[#allocation20_spill] sm:$0xff] %v14751_v57 }
0x1357   : > { %v6255_v15 = vmul.f32 1.442695, %v6245_v20  ;;  %v5812_v18 = vmul.f32 1.442695, %v5796_v42 }
0x1358   : > { %v14755_v19 = vpop.permute.xlu0 %11091 }
0x1359   : > { %11380 = vpow2.f32 %v6255_v15 }
0x135a   : > { %11382 = vpow2.f32 %v5812_v18 }
0x135b   : > { %v14736_v36 = vpop.eup %11376 }
0x135c   : > { %v5840_v45 = vsel %vm2204_vm13, %v14736_v36, 0.0 }
0x135d   : > { %5841 = vadd.xlane.f32.xlu0 %v5840_v45 }
0x135f   : > { %v14740_v23 = vpop.eup %11378 }
0x1360   : > { %15858 = vst [vmem:[#allocation19_spill] sm:$0xff] %v14740_v23  ;;  %v6271_v6 = vsel %vm2179_vm12, %v14740_v23, 0.0 }
0x1361   : > { %6272 = vadd.xlane.f32.xlu0 %v6271_v6 }
0x1362   : > { %11101 = vrot.lane.b32.xlu1 %v14095_v48, %s15857_s27 }
0x1363   : > { %v14746_v43 = vpop.eup %11380 }
0x1364   : > { %15859 = vst [vmem:[#allocation18_spill] sm:$0xff] %v14746_v43  ;;  %v6274_v61 = vsel %vm2179_vm12, %v14746_v43, 0.0  ;;  %v14753_v62 = vpop.eup %11382 }
0x1365   : > { %6275 = vadd.xlane.f32.xlu0 %v6274_v61  ;;  %v5837_v48 = vsel %vm2179_vm12, %v14753_v62, 0.0 }
0x1385   : > { %v6225_v20 = vpop.xlane.xlu1 %6224 }
0x1386   : > { %v6246_v15 = vsub.f32 %v14583_v2, %v6225_v20  ;;  %5838 = vadd.xlane.f32.xlu1 %v5837_v48 }
0x1388   : > { %v6257_v45 = vmul.f32 1.442695, %v6246_v15 }
0x1389   : > { %v6228_v6 = vpop.xlane.xlu0 %6227  ;;  %v6237_v61 = vpop.xlane.xlu1 %6236 }
0x138a   : > { %11384 = vpow2.f32 %v6257_v45  ;;  %v6247_v7 = vsub.f32 %v14585_v4, %v6228_v6  ;;  %v6250_v42 = vsub.f32 %v14587_v53, %v6237_v61 }
0x138c   : > { %v6259_v16 = vmul.f32 1.442695, %v6247_v7  ;;  %v6265_v43 = vmul.f32 1.442695, %v6250_v42 }
0x138d   : > { %v6231_v18 = vpop.xlane.xlu0 %6230  ;;  %v6243_v32 = vpop.xlane.xlu1 %6242 }
0x138e   : > { %11386 = vpow2.f32 %v6259_v16  ;;  %v6248_v27 = vsub.f32 %v14595_v8, %v6231_v18  ;;  %v6252_v23 = vsub.f32 %v14597_v50, %v6243_v32 }
0x1390   : > { %v6261_v57 = vmul.f32 1.442695, %v6248_v27  ;;  %v6269_v4 = vmul.f32 1.442695, %v6252_v23 }
0x1391   : > { %v6234_v2 = vpop.xlane.xlu0 %6233  ;;  %v6680_v20 = vpop.xlane.xlu1 %6679 }
0x1392   : > { %11388 = vpow2.f32 %v6261_v57  ;;  %v6249_v48 = vsub.f32 %v14603_v26, %v6234_v2  ;;  %v6701_v61 = vsub.f32 %v14605_v29, %v6680_v20 }
0x1393   : > { %11390 = vpow2.f32 %v6265_v43 }
0x1394   : > { %v14765_v15 = vpop.eup %11384  ;;  %v6263_v45 = vmul.f32 1.442695, %v6249_v48 }
0x1395   : > { %v6240_v53 = vpop.xlane.xlu0 %6239  ;;  %v6277_v6 = vsel %vm2179_vm12, %v14765_v15, 0.0  ;;  %v6686_v27 = vpop.xlane.xlu1 %6685 }
0x1396   : > { %11392 = vpow2.f32 %v6263_v45  ;;  %v6251_v8 = vsub.f32 %v14613_v31, %v6240_v53  ;;  %6278 = vadd.xlane.f32.xlu0 %v6277_v6  ;;  %v6703_v16 = vsub.f32 %v14615_v54, %v6686_v27 }
0x1397   : > { %11394 = vpow2.f32 %v6269_v4  ;;  %v6712_v4 = vmul.f32 1.442695, %v6701_v61 }
0x1398   : > { %v14770_v32 = vpop.eup %11386  ;;  %v6267_v50 = vmul.f32 1.442695, %v6251_v8  ;;  %v6716_v20 = vmul.f32 1.442695, %v6703_v16 }
0x1399   : > { %v6674_v57 = vpop.xlane.xlu0 %6673  ;;  %v6280_v26 = vsel %vm2179_vm12, %v14770_v32, 0.0  ;;  %v6689_v31 = vpop.xlane.xlu1 %6688 }
0x139a   : > { %11396 = vpow2.f32 %v6267_v50  ;;  %v6699_v23 = vsub.f32 %v14621_v39, %v6674_v57  ;;  %6281 = vadd.xlane.f32.xlu1 %v6280_v26  ;;  %v6704_v45 = vsub.f32 %v14623_v1, %v6689_v31 }
0x139c   : > { %v14775_v43 = vpop.eup %11388  ;;  %v6708_v7 = vmul.f32 1.442695, %v6699_v23  ;;  %v6718_v1 = vmul.f32 1.442695, %v6704_v45 }
0x139d   : > { %v6677_v42 = vpop.xlane.xlu0 %6676  ;;  %v6283_v18 = vsel %vm2179_vm12, %v14775_v43, 0.0  ;;  %v14781_v2 = vpop.eup %11390 }
0x139e   : > { %11398 = vpow2.f32 %v6708_v7  ;;  %v6700_v48 = vsub.f32 %v14630_v37, %v6677_v42  ;;  %6284 = vadd.xlane.f32.xlu0 %v6283_v18  ;;  %v6289_v6 = vsel %vm2179_vm12, %v14781_v2, 0.0  ;;  %v14793_v27 = vpop.xlane.xlu1 %6694 }
0x13a0   : > { %v14784_v39 = vpop.eup %11392  ;;  %v6710_v29 = vmul.f32 1.442695, %v6700_v48 }
0x13a1   : > { %v6683_v53 = vpop.xlane.xlu0 %6682  ;;  %v6286_v54 = vsel %vm2179_vm12, %v14784_v39, 0.0  ;;  %v14791_v8 = vpop.eup %11394 }
0x13a2   : > { %11400 = vpow2.f32 %v6710_v29  ;;  %v6702_v37 = vsub.f32 %v14639_v58, %v6683_v53  ;;  %6287 = vadd.xlane.f32.xlu1 %v6286_v54  ;;  %6290 = vadd.xlane.f32.xlu0 %v6289_v6  ;;  %v6295_v61 = vsel %vm2204_vm13, %v14791_v8, 0.0  ;;  %v11053_v53 = vunpack.i.l.bf16 %v14577_v13 }
0x13a3   : > { %11402 = vpow2.f32 %v6712_v4 }
0x13a4   : > { %v14796_v50 = vpop.eup %11396  ;;  %v6714_v57 = vmul.f32 1.442695, %v6702_v37  ;;  %11404 = vpow2.f32 %v6716_v20  ;;  %v11054_v20 = vunpack.i.h.bf16 %v14577_v13  ;;  %v11059_v13 = vunpack.i.h.bf16 %v14424_v40 }
0x13a5   : > { %v6692_v26 = vpop.xlane.xlu0 %6691  ;;  %v6292_v23 = vsel %vm2179_vm12, %v14796_v50, 0.0 }
0x13a6   : > { %11406 = vpow2.f32 %v6714_v57  ;;  %v6705_v7 = vsub.f32 %v14646_v30, %v6692_v26  ;;  %6293 = vadd.xlane.f32.xlu1 %v6292_v23  ;;  %v5363_v58 = vpop.xlane.xlu1 %5362  ;;  %6296 = vadd.xlane.f32.xlu0 %v6295_v61  ;;  %v10516_v61 = vpack.c.bf16 %v11054_v20, %v11053_v53 }
0x13a7   : > { %11408 = vrcp.f32 %v5363_v58 }
0x13a8   : > { %v14803_v31 = vpop.eup %11398  ;;  %11410 = vpow2.f32 %v6718_v1  ;;  %v6720_v16 = vmul.f32 1.442695, %v6705_v7  ;;  %v11058_v7 = vunpack.i.l.bf16 %v14424_v40 }
0x13a9   : > { %v6726_v42 = vsel %vm2179_vm12, %v14803_v31, 0.0 }
0x13aa   : > { %v5366_v18 = vpop.xlane.xlu1 %5365  ;;  %6727 = vadd.xlane.f32.xlu0 %v6726_v42  ;;  %v10519_v20 = vpack.c.bf16 %v11059_v13, %v11058_v7 }
0x13ab   : > { %11412 = vrcp.f32 %v5366_v18 }
0x13ac   : > { %v14807_v48 = vpop.eup %11400  ;;  %11414 = vpow2.f32 %v6720_v16 }
0x13ad   : > { %v6729_v30 = vsel %vm2179_vm12, %v14807_v48, 0.0  ;;  %v14811_v4 = vpop.eup %11402 }
0x13ae   : > { %v5369_v45 = vpop.xlane.xlu1 %5368  ;;  %6730 = vadd.xlane.f32.xlu0 %v6729_v30  ;;  %v14813_v29 = vpop.eup %11404  ;;  %v6732_v1 = vsel %vm2179_vm12, %v14811_v4, 0.0  ;;  %v11064_v30 = vunpack.i.h.bf16 %v14579_v25 }
0x13af   : > { %11416 = vrcp.f32 %v5369_v45  ;;  %v6738_v42 = vsel %vm2179_vm12, %v14813_v29, 0.0  ;;  %v11063_v45 = vunpack.i.l.bf16 %v14579_v25 }
0x13b0   : > { %v14817_v54 = vpop.eup %11406 }
0x13b1   : > { %v11409_v6 = vpop.eup %11408  ;;  %v6735_v37 = vsel %vm2179_vm12, %v14817_v54, 0.0 }
0x13b2   : > { %v14823_v57 = vpop.eup %11410  ;;  %v5397_v26 = vmul.f32 %v11409_v6, %v14651_v35  ;;  %6736 = vadd.xlane.f32.xlu1 %v6735_v37  ;;  %v5372_v23 = vpop.xlane.xlu1 %5371  ;;  %6733 = vadd.xlane.f32.xlu0 %v6732_v1  ;;  %v10522_v37 = vpack.c.bf16 %v11064_v30, %v11063_v45  ;;  %v11069_v1 = vunpack.i.h.bf16 %v14431_v9 }
0x13b3   : > { %11418 = vrcp.f32 %v5372_v23  ;;  %v6741_v16 = vsel %vm2179_vm12, %v14823_v57, 0.0 }
0x13b4   : > { %9833 = vmatmul.mubr.msk.f32.vlgmr.msra.gmra.mrb[146].mxu0 %vm2179_vm12, %v5397_v26  ;;  %v11068_v26 = vunpack.i.l.bf16 %v14431_v9 }
0x13b5   : > { %v11413_v58 = vpop.eup %11412  ;;  %10517 = vmatpush3.bf16.msra.mxu0 %v10516_v61  ;;  %9835 = vmatprep.mubr.msk.f32.mxu0 %vm11629_vm5, %v15824_v12 }
0x13b6   : > { %v14835_v35 = vpop.eup %11414  ;;  %6742 = vadd.xlane.f32.xlu1 %v6741_v16  ;;  %v5375_v18 = vpop.xlane.xlu1 %5374  ;;  %6739 = vadd.xlane.f32.xlu0 %v6738_v42  ;;  %v5398_v40 = vmul.f32 %v11413_v58, %v14660_v56  ;;  %v10525_v7 = vpack.c.bf16 %v11069_v1, %v11068_v26 }
0x13b7   : > { %11420 = vrcp.f32 %v5375_v18  ;;  %10518 = vmatprep.subr.bf16.mxu0 %v15825_v3  ;;  %v6744_v6 = vsel %vm2179_vm12, %v14835_v35, 0.0 }
0x13b8   : > { %9836 = vmatmul.mubr.msk.f32.gmra.mrb[148].mxu0 %vm2179_vm12, %v5398_v40 }
0x13b9   : > { %v11417_v53 = vpop.eup %11416  ;;  %10520 = vmatpush3.bf16.msra.mxu0 %v10519_v20  ;;  %9838 = vmatprep.mubr.msk.f32.mxu0 %vm11629_vm5, %v15824_v12 }
0x13ba   : > { %6745 = vadd.xlane.f32.xlu1 %v6744_v6  ;;  %v5378_v56 = vpop.xlane.xlu1 %5377  ;;  %10521 = vmatprep.subr.bf16.mxu0 %v15825_v3  ;;  %v5399_v25 = vmul.f32 %v11417_v53, %v14667_v41  ;;  %v11073_v53 = vunpack.i.l.bf16 %v14441_v52 }
0x13bb   : > { %11422 = vrcp.f32 %v5378_v56 }
0x13bc   : > { %9839 = vmatmul.mubr.msk.f32.gmra.mrb[150].mxu0 %vm2179_vm12, %v5399_v25 }
0x13bd   : > { %v11419_v23 = vpop.eup %11418  ;;  %10523 = vmatpush3.bf16.msra.mxu0 %v10522_v37  ;;  %9841 = vmatprep.mubr.msk.f32.mxu0 %vm11629_vm5, %v15824_v12  ;;  %v11079_v37 = vunpack.i.h.bf16 %v14581_v22 }
0x13be   : > { %v5381_v61 = vpop.xlane.xlu1 %5380  ;;  %10524 = vmatprep.subr.bf16.mxu0 %v15825_v3  ;;  %v5400_v13 = vmul.f32 %v11419_v23, %v14672_v21 }
0x13bf   : > { %11424 = vrcp.f32 %v5381_v61  ;;  %v11083_v61 = vunpack.i.l.bf16 %v14591_v63 }
0x13c0   : > { %9842 = vmatmul.mubr.msk.f32.gmra.mrb[152].mxu0 %vm2179_vm12, %v5400_v13 }
0x13c1   : > { %v11421_v41 = vpop.eup %11420  ;;  %10526 = vmatpush3.bf16.msra.mxu0 %v10525_v7  ;;  %9844 = vmatprep.mubr.msk.f32.mxu0 %vm11629_vm5, %v15824_v12 }
0x13c2   : > { %v5384_v9 = vpop.xlane.xlu1 %5383  ;;  %9920 = vmatprep.subr.mxu0 %v15824_v12  ;;  %v5401_v58 = vmul.f32 %v11421_v41, %v14677_v28 }
0x13c3   : > { %11426 = vrcp.f32 %v5384_v9  ;;  %v11089_v9 = vunpack.i.h.bf16 %v14448_v24 }
0x13c4   : > { %9845 = vmatmul.mubr.msk.f32.gmra.mrb[154].mxu0 %vm2179_vm12, %v5401_v58 }
0x13c5   : > { %v11423_v16 = vpop.eup %11422  ;;  %9921 = vmatpush3.msk.msra.mxu0 %vm2333_vm11, %v14601_v33  ;;  %9847 = vmatprep.mubr.msk.f32.mxu0 %vm11629_vm5, %v15824_v12 }
0x13c6   : > { %v5387_v21 = vpop.xlane.xlu1 %5386  ;;  %v5402_v42 = vmul.f32 %v11423_v16, %v14682_v59  ;;  %10543 = vmatprep.subr.bf16.mxu0 %v15825_v3 }
0x13c7   : > { %11428 = vrcp.f32 %v5387_v21 }
0x13c8   : > { %9848 = vmatmul.mubr.msk.f32.gmra.mrb[156].mxu0 %vm2179_vm12, %v5402_v42 }
0x13c9   : > { %v11425_v18 = vpop.eup %11424  ;;  %9850 = vmatprep.mubr.msk.f32.mxu0 %vm11629_vm5, %v15824_v12 }
0x13ca   : > { %v5818_v28 = vpop.xlane.xlu1 %5817  ;;  %v5403_v40 = vmul.f32 %v11425_v18, %v14687_v0 }
0x13cb   : > { %11430 = vrcp.f32 %v5818_v28  ;;  %6787 = vrot.lane.b32.xlu1 %v14113_v49, %s15857_s27  ;;  %v6698_v49 = vpop.xlane.xlu0 %6697 }
0x13cc   : > { %9851 = vmatmul.mubr.msk.f32.gmra.mrb[158].mxu0 %vm2179_vm12, %v5403_v40  ;;  %11106 = vrot.lane.b32.xlu0 %v14105_v10, %s15857_s27  ;;  %v11074_v10 = vunpack.i.h.bf16 %v14441_v52  ;;  %v6707_v23 = vsub.f32 %v14653_v14, %v6698_v49  ;;  %s15865_s27 = smov 24  }
0x13cd   : > { %v11427_v33 = vpop.eup %11426  ;;  %9853 = vmatprep.mubr.msk.f32.mxu0 %vm11629_vm5, %v15824_v12 }
0x13ce   : > { %v5821_v59 = vpop.xlane.xlu1 %5820  ;;  %v5404_v30 = vmul.f32 %v11427_v33, %v14692_v51  ;;  %v6706_v51 = vsub.f32 %v14632_v55, %v14793_v27  ;;  %v10544_v1 = vpack.c.bf16 %v11074_v10, %v11073_v53  ;;  %v6724_v14 = vmul.f32 1.442695, %v6707_v23 }
0x13cf   : > { %11432 = vrcp.f32 %v5821_v59 }
0x13d0   : > { %9854 = vmatmul.mubr.msk.f32.gmra.mrb[160].mxu0 %vm2179_vm12, %v5404_v30  ;;  %v6722_v26 = vmul.f32 1.442695, %v6706_v51 }
0x13d1   : > { %v11429_v0 = vpop.eup %11428  ;;  %9856 = vmatprep.mubr.msk.f32.mxu0 %vm11629_vm5, %v15824_v12 }
0x13d2   : > { %v5824_v45 = vpop.xlane.xlu1 %5823  ;;  %v5405_v20 = vmul.f32 %v11429_v0, %v14697_v46  ;;  %v11078_v46 = vunpack.i.l.bf16 %v14581_v22  ;;  %v11084_v22 = vunpack.i.h.bf16 %v14591_v63  ;;  %v11088_v63 = vunpack.i.l.bf16 %v14448_v24 }
0x13d3   : > { %11434 = vrcp.f32 %v5824_v45 }
0x13d4   : > { %9857 = vmatmul.mubr.msk.f32.gmra.mrb[162].mxu0 %vm2179_vm12, %v5405_v20  ;;  %v10547_v27 = vpack.c.bf16 %v11079_v37, %v11078_v46  ;;  %v10550_v41 = vpack.c.bf16 %v11084_v22, %v11083_v61 }
0x13d5   : > { %v11431_v6 = vpop.eup %11430  ;;  %9922 = vmatprep.mubr.msk.f32.mxu0 %vm11629_vm5, %v15824_v12 }
0x13d6   : > { %v5852_v56 = vmul.f32 %v11431_v6, %v14702_v60  ;;  %v5827_v25 = vpop.xlane.xlu0 %5826 }
0x13d7   : > { %11436 = vrcp.f32 %v5827_v25  ;;  %v11093_v25 = vunpack.i.l.bf16 %v14755_v19 }
0x13d8   : > { %9923 = vmatmul.mubr.msk.f32.vlgmr.msra.gmra.mrb[164].mxu0 %vm2179_vm12, %v5852_v56  ;;  %v11094_v56 = vunpack.i.h.bf16 %v14755_v19 }
0x13d9   : > { %v11433_v52 = vpop.eup %11432  ;;  %10545 = vmatpush3.bf16.msra.mxu0 %v10544_v1  ;;  %9925 = vmatprep.mubr.msk.f32.mxu0 %vm11629_vm5, %v15824_v12 }
0x13da   : > { %v5830_v55 = vpop.xlane.xlu0 %5829  ;;  %10546 = vmatprep.subr.bf16.mxu0 %v15825_v3  ;;  %v5853_v60 = vmul.f32 %v11433_v52, %v14707_v5  ;;  %v15862_v52 = vld [vmem:[#allocation20_spill] sm:$0xff] }
0x13db   : > { %11438 = vrcp.f32 %v5830_v55  ;;  %v11098_v23 = vunpack.i.l.bf16 %v15862_v52  ;;  %v15863_v55 = vld [vmem:[#allocation18_spill] sm:$0xff] }
0x13dc   : > { %9926 = vmatmul.mubr.msk.f32.gmra.mrb[166].mxu0 %vm2179_vm12, %v5853_v60  ;;  %11440 = vpow2.f32 %v6722_v26  ;;  %v11099_v26 = vunpack.i.h.bf16 %v15862_v52 }
0x13dd   : > { %v11435_v13 = vpop.eup %11434  ;;  %10548 = vmatpush3.bf16.msra.mxu0 %v10547_v27  ;;  %9928 = vmatprep.mubr.msk.f32.mxu0 %vm11629_vm5, %v15824_v12 }
0x13de   : > { %v5833_v7 = vpop.xlane.xlu1 %5832  ;;  %10549 = vmatprep.subr.bf16.mxu0 %v15825_v3  ;;  %v5854_v5 = vmul.f32 %v11435_v13, %v14712_v47  ;;  %v10553_v47 = vpack.c.bf16 %v11089_v9, %v11088_v63  ;;  %v10575_v27 = vpack.c.bf16 %v11099_v26, %v11098_v23 }
0x13df   : > { %11442 = vrcp.f32 %v5833_v7 }
0x13e0   : > { %9929 = vmatmul.mubr.msk.f32.gmra.mrb[168].mxu0 %vm2179_vm12, %v5854_v5  ;;  %11444 = vpow2.f32 %v6724_v14 }
0x13e1   : > { %v11437_v58 = vpop.eup %11436  ;;  %10551 = vmatpush3.bf16.msra.mxu0 %v10550_v41  ;;  %9931 = vmatprep.mubr.msk.f32.mxu0 %vm11629_vm5, %v15824_v12 }
0x13e2   : > { %v5836_v16 = vpop.xlane.xlu0 %5835  ;;  %10552 = vmatprep.subr.bf16.mxu0 %v15825_v3  ;;  %v5855_v21 = vmul.f32 %v11437_v58, %v14717_v17 }
0x13e3   : > { %11446 = vrcp.f32 %v5836_v16 }
0x13e4   : > { %9932 = vmatmul.mubr.msk.f32.gmra.mrb[170].mxu0 %vm2179_vm12, %v5855_v21 }
0x13e5   : > { %v11439_v42 = vpop.eup %11438  ;;  %10554 = vmatpush3.bf16.msra.mxu0 %v10553_v47  ;;  %9934 = vmatprep.mubr.msk.f32.mxu0 %vm11629_vm5, %v15824_v12 }
0x13e6   : > { %10010 = vmatprep.subr.mxu0 %v15824_v12  ;;  %v5856_v24 = vmul.f32 %v11439_v42, %v14721_v44  ;;  %v14918_v18 = vpop.eup %11440 }
0x13e7   : > { %v6747_v17 = vsel %vm2179_vm12, %v14918_v18, 0.0 }
0x13e8   : > { %9935 = vmatmul.mubr.msk.f32.gmra.mrb[172].mxu0 %vm2179_vm12, %v5856_v24 }
0x13e9   : > { %v11443_v28 = vpop.eup %11442  ;;  %10011 = vmatpush3.msk.msra.mxu0 %vm2333_vm11, %v14619_v34  ;;  %9937 = vmatprep.mubr.msk.f32.mxu0 %vm11629_vm5, %v15824_v12 }
0x13ea   : > { %v5857_v40 = vmul.f32 %v11443_v28, %v14726_v11  ;;  %10571 = vmatprep.subr.bf16.mxu0 %v15825_v3  ;;  %v14929_v33 = vpop.eup %11444  ;;  %v11102_v11 = vpop.permute.xlu1 %11101 }
0x13eb   : > { %6748 = vadd.xlane.f32.xlu0 %v6747_v17  ;;  %v6750_v34 = vsel %vm2204_vm13, %v14929_v33, 0.0  ;;  %v5842_v30 = vpop.xlane.xlu0 %5841  ;;  %v11104_v22 = vunpack.i.h.bf16 %v11102_v11  ;;  %v11103_v61 = vunpack.i.l.bf16 %v11102_v11 }
0x13ec   : > { %9938 = vmatmul.mubr.msk.f32.gmra.mrb[174].mxu0 %vm2179_vm12, %v5857_v40 }
0x13ed   : > { %v11447_v44 = vpop.eup %11446  ;;  %9940 = vmatprep.mubr.msk.f32.mxu0 %vm11629_vm5, %v15824_v12  ;;  %v10578_v41 = vpack.c.bf16 %v11104_v22, %v11103_v61 }
0x13ee   : > { %v5858_v59 = vmul.f32 %v11447_v44, %v14731_v38 }
0x13ef   : > { %6751 = vadd.xlane.f32.xlu1 %v6750_v34  ;;  %v6273_v49 = vpop.xlane.xlu0 %6272 }
0x13f0   : > { %9941 = vmatmul.mubr.msk.f32.gmra.mrb[176].mxu0 %vm2179_vm12, %v5858_v59 }
0x13f1   : > { %9943 = vmatprep.mubr.msk.f32.mxu0 %vm11629_vm5, %v15824_v12 }
0x13f3   : > { %v6276_v45 = vpop.xlane.xlu0 %6275 }
0x1413   : > { %v5839_v0 = vpop.xlane.xlu1 %5838 }
0x1414   : > { %11448 = vrcp.f32 %v5839_v0 }
0x1415   : > { %11450 = vrcp.f32 %v5842_v30 }
0x1416   : > { %11452 = vrcp.f32 %v6273_v49 }
0x1417   : > { %11454 = vrcp.f32 %v6276_v45 }
0x141e   : > { %v11449_v20 = vpop.eup %11448 }
0x141f   : > { %v5859_v10 = vmul.f32 %v11449_v20, %v14753_v62  ;;  %v11451_v53 = vpop.eup %11450  ;;  %v15861_v62 = vld [vmem:[#allocation19_spill] sm:$0xff] }
0x1420   : > { %v5860_v6 = vmul.f32 %v11451_v53, %v14736_v36  ;;  %v11453_v51 = vpop.eup %11452  ;;  %v10572_v36 = vpack.c.bf16 %v11094_v56, %v11093_v25 }
0x1421   : > { %9944 = vmatmul.mubr.msk.f32.gmra.mrb[178].mxu0 %vm2179_vm12, %v5859_v10  ;;  %v6307_v37 = vmul.f32 %v11453_v51, %v15861_v62  ;;  %v11455_v1 = vpop.eup %11454 }
0x1422   : > { %9946 = vmatprep.mubr.msk.f32.mxu0 %vm11629_vm5, %v15824_v12  ;;  %v6308_v60 = vmul.f32 %v11455_v1, %v15863_v55 }
0x1423   : > { %v6279_v38 = vpop.xlane.xlu0 %6278 }
0x1424   : > { %11456 = vrcp.f32 %v6279_v38 }
0x1425   : > { %9947 = vmatmul.mubr.msk.f32.gmra.mrb[180].mxu0 %vm2179_vm12, %v5860_v6 }
0x1426   : > { %10012 = vmatprep.mubr.msk.f32.mxu0 %vm11629_vm5, %v15824_v12 }
0x1427   : > { %v6282_v46 = vpop.xlane.xlu1 %6281 }
0x1428   : > { %11458 = vrcp.f32 %v6282_v46 }
0x1429   : > { %10013 = vmatmul.mubr.msk.f32.vlgmr.msra.gmra.mrb[182].mxu0 %vm2179_vm12, %v6307_v37 }
0x142a   : > { %10573 = vmatpush3.bf16.msra.mxu0 %v10572_v36  ;;  %10015 = vmatprep.mubr.msk.f32.mxu0 %vm11629_vm5, %v15824_v12 }
0x142b   : > { %v6285_v19 = vpop.xlane.xlu0 %6284  ;;  %10574 = vmatprep.subr.bf16.mxu0 %v15825_v3 }
0x142c   : > { %11460 = vrcp.f32 %v6285_v19 }
0x142d   : > { %10016 = vmatmul.mubr.msk.f32.gmra.mrb[184].mxu0 %vm2179_vm12, %v6308_v60 }
0x142e   : > { %v11457_v13 = vpop.eup %11456  ;;  %10576 = vmatpush3.bf16.msra.mxu0 %v10575_v27  ;;  %10018 = vmatprep.mubr.msk.f32.mxu0 %vm11629_vm5, %v15824_v12 }
0x142f   : > { %v6288_v14 = vpop.xlane.xlu1 %6287  ;;  %v6291_v7 = vpop.xlane.xlu0 %6290  ;;  %10577 = vmatprep.subr.bf16.mxu0 %v15825_v3  ;;  %v6309_v5 = vmul.f32 %v11457_v13, %v14765_v15 }
0x1430   : > { %11462 = vrcp.f32 %v6288_v14 }
0x1431   : > { %10019 = vmatmul.mubr.msk.f32.gmra.mrb[186].mxu0 %vm2179_vm12, %v6309_v5  ;;  %11464 = vrcp.f32 %v6291_v7 }
0x1432   : > { %v11459_v9 = vpop.eup %11458  ;;  %10579 = vmatpush3.bf16.msra.mxu0 %v10578_v41  ;;  %10021 = vmatprep.mubr.msk.f32.mxu0 %vm11629_vm5, %v15824_v12 }
0x1433   : > { %v6294_v63 = vpop.xlane.xlu1 %6293  ;;  %v6297_v58 = vpop.xlane.xlu0 %6296  ;;  %v6310_v16 = vmul.f32 %v11459_v9, %v14770_v32  ;;  %10580 = vmatprep.subr.bf16.mxu0 %v15825_v3 }
0x1434   : > { %11466 = vrcp.f32 %v6294_v63 }
0x1435   : > { %10022 = vmatmul.mubr.msk.f32.gmra.mrb[188].mxu0 %vm2179_vm12, %v6310_v16  ;;  %11468 = vrcp.f32 %v6297_v58 }
0x1436   : > { %v11461_v21 = vpop.eup %11460  ;;  %10024 = vmatprep.mubr.msk.f32.mxu0 %vm11629_vm5, %v15824_v12 }
0x1437   : > { %v6728_v15 = vpop.xlane.xlu0 %6727  ;;  %v6311_v47 = vmul.f32 %v11461_v21, %v14775_v43 }
0x1438   : > { %11470 = vrcp.f32 %v6728_v15 }
0x1439   : > { %10025 = vmatmul.mubr.msk.f32.gmra.mrb[190].mxu0 %vm2179_vm12, %v6311_v47 }
0x143a   : > { %v11463_v42 = vpop.eup %11462  ;;  %10027 = vmatprep.mubr.msk.f32.mxu0 %vm11629_vm5, %v15824_v12 }
0x143b   : > { %v6731_v32 = vpop.xlane.xlu0 %6730  ;;  %v6312_v24 = vmul.f32 %v11463_v42, %v14784_v39  ;;  %v11465_v28 = vpop.eup %11464 }
0x143c   : > { %v6313_v43 = vmul.f32 %v11465_v28, %v14781_v2  ;;  %11472 = vrcp.f32 %v6731_v32 }
0x143d   : > { %10028 = vmatmul.mubr.msk.f32.gmra.mrb[192].mxu0 %vm2179_vm12, %v6312_v24 }
0x143e   : > { %10030 = vmatprep.mubr.msk.f32.mxu0 %vm11629_vm5, %v15824_v12  ;;  %v11467_v44 = vpop.eup %11466 }
0x143f   : > { %v6737_v17 = vpop.xlane.xlu1 %6736  ;;  %v6734_v40 = vpop.xlane.xlu0 %6733  ;;  %v6314_v39 = vmul.f32 %v11467_v44, %v14796_v50 }
0x1440   : > { %v11469_v11 = vpop.eup %11468  ;;  %11474 = vrcp.f32 %v6734_v40 }
0x1441   : > { %10031 = vmatmul.mubr.msk.f32.gmra.mrb[194].mxu0 %vm2179_vm12, %v6313_v43  ;;  %v6315_v2 = vmul.f32 %v11469_v11, %v14791_v8  ;;  %11476 = vrcp.f32 %v6737_v17 }
0x1442   : > { %10033 = vmatprep.mubr.msk.f32.mxu0 %vm11629_vm5, %v15824_v12  ;;  %v11471_v50 = vpop.eup %11470 }
0x1443   : > { %v6743_v34 = vpop.xlane.xlu1 %6742  ;;  %v6740_v59 = vpop.xlane.xlu0 %6739  ;;  %v6762_v10 = vmul.f32 %v11471_v50, %v14803_v31  ;;  %v8592_v50 = vld [vmem:[%s15696_s12 + $0x28] sm:$0xff] }
0x1444   : > { %11478 = vrcp.f32 %v6740_v59 }
0x1445   : > { %10034 = vmatmul.mubr.msk.f32.gmra.mrb[196].mxu0 %vm2179_vm12, %v6314_v39  ;;  %11480 = vrcp.f32 %v6743_v34 }
0x1446   : > { %10036 = vmatprep.mubr.msk.f32.mxu0 %vm11629_vm5, %v15824_v12  ;;  %v11473_v38 = vpop.eup %11472 }
0x1447   : > { %v11107_v30 = vpop.permute.xlu0 %11106  ;;  %v6746_v45 = vpop.xlane.xlu1 %6745  ;;  %v6763_v8 = vmul.f32 %v11473_v38, %v14807_v48 }
0x1448   : > { %v11109_v0 = vunpack.i.h.bf16 %v11107_v30  ;;  %v11108_v49 = vunpack.i.l.bf16 %v11107_v30  ;;  %11482 = vrcp.f32 %v6746_v45 }
0x1449   : > { %10037 = vmatmul.mubr.msk.f32.gmra.mrb[198].mxu0 %vm2179_vm12, %v6315_v2 }
0x144a   : > { %v10581_v20 = vpack.c.bf16 %v11109_v0, %v11108_v49  ;;  %10102 = vmatprep.mubr.msk.f32.mxu0 %vm11629_vm5, %v15824_v12  ;;  %v11475_v6 = vpop.eup %11474 }
0x144b   : > { %v6788_v53 = vpop.permute.xlu1 %6787  ;;  %v6764_v31 = vmul.f32 %v11475_v6, %v14811_v4  ;;  %v11477_v51 = vpop.eup %11476 }
0x144c   : > { %10582 = vmatpush3.bf16.msra.mxu0 %v10581_v20  ;;  %v6765_v56 = vmul.f32 %v11477_v51, %v14817_v54  ;;  %v8591_v20 = vld [vmem:[%s15696_s12 + $0x20] sm:$0xff] }
0x144d   : > { %10100 = vmatprep.subr.mxu0 %v15824_v12  ;;  %v10584_v38 = vpack.c.bf16 %v8592_v50, %v8591_v20 }
0x144e   : > { %v11479_v25 = vpop.eup %11478 }
0x144f   : > { %v6766_v48 = vmul.f32 %v11479_v25, %v14813_v29  ;;  %v11481_v62 = vpop.eup %11480  ;;  %10585 = vmatpush3.bf16.msra.mxu1 %v10584_v38 }
0x1450   : > { %10101 = vmatpush3.msk.msra.mxu0 %vm2333_vm11, %v6788_v53  ;;  %v6767_v4 = vmul.f32 %v11481_v62, %v14823_v57  ;;  %10586 = vmatprep.subr.bf16.mxu1 %v15825_v3 }
0x1451   : > { %10103 = vmatmul.mubr.msk.f32.vlgmr.msra.gmra.mrb[200].mxu0 %vm2179_vm12, %v6762_v10  ;;  %10589 = vmatprep.subr.bf16.mxu0 %v15825_v3  ;;  %v8593_v10 = vld [vmem:[%s15696_s12 + $0x30] sm:$0xff] }
0x1452   : > { %10105 = vmatprep.mubr.msk.f32.mxu0 %vm11629_vm5, %v15824_v12  ;;  %v11483_v37 = vpop.eup %11482 }
0x1453   : > { %v6768_v54 = vmul.f32 %v11483_v37, %v14835_v35 }
0x1455   : > { %10106 = vmatmul.mubr.msk.f32.gmra.mrb[202].mxu0 %vm2179_vm12, %v6763_v8  ;;  %v8594_v8 = vld [vmem:[%s15696_s12 + $0x38] sm:$0xff] }
0x1456   : > { %10108 = vmatprep.mubr.msk.f32.mxu0 %vm11629_vm5, %v15824_v12 }
0x1459   : > { %10109 = vmatmul.mubr.msk.f32.gmra.mrb[204].mxu0 %vm2179_vm12, %v6764_v31  ;;  %v10587_v31 = vpack.c.bf16 %v8594_v8, %v8593_v10 }
0x145a   : > { %10111 = vmatprep.mubr.msk.f32.mxu0 %vm11629_vm5, %v15824_v12 }
0x145b   : > { %10588 = vmatpush3.bf16.msra.mxu1 %v10587_v31 }
0x145c   : > { %10595 = vmatprep.subr.bf16.mxu1 %v15825_v3 }
0x145d   : > { %10112 = vmatmul.mubr.msk.f32.gmra.mrb[206].mxu0 %vm2179_vm12, %v6765_v56 }
0x145e   : > { %10114 = vmatprep.mubr.msk.f32.mxu0 %vm11629_vm5, %v15824_v12 }
0x1461   : > { %10115 = vmatmul.mubr.msk.f32.gmra.mrb[208].mxu0 %vm2179_vm12, %v6766_v48 }
0x1462   : > { %10117 = vmatprep.mubr.msk.f32.mxu0 %vm11629_vm5, %v15824_v12 }
0x1465   : > { %10118 = vmatmul.mubr.msk.f32.gmra.mrb[210].mxu0 %vm2179_vm12, %v6767_v4 }
0x1466   : > { %10120 = vmatprep.mubr.msk.f32.mxu0 %vm11629_vm5, %v15824_v12 }
0x1469   : > { %10121 = vmatmul.mubr.msk.f32.gmra.mrb[212].mxu0 %vm2179_vm12, %v6768_v54 }
0x146a   : > { %10123 = vmatprep.mubr.msk.f32.mxu0 %vm11629_vm5, %v15824_v12 }
0x1478   : > { %v6749_v29 = vpop.xlane.xlu0 %6748 }
0x1479   : > { %11484 = vrcp.f32 %v6749_v29 }
0x147c   : > { %v6752_v46 = vpop.xlane.xlu1 %6751 }
0x147d   : > { %11486 = vrcp.f32 %v6752_v46 }
0x1483   : > { %v11485_v1 = vpop.eup %11484 }
0x1484   : > { %v6769_v57 = vmul.f32 %v11485_v1, %v14918_v18 }
0x1486   : > { %10124 = vmatmul.mubr.msk.f32.gmra.mrb[214].mxu0 %vm2179_vm12, %v6769_v57 }
0x1487   : > { %v11487_v52 = vpop.eup %11486  ;;  %v15024_v26 = vpop.f32.mrb[146].mxu0  ;;  %10126 = vmatprep.mubr.msk.f32.mxu0 %vm11629_vm5, %v15824_v12 }
0x1488   : > { %v9834_v35 = vpop.f32.mrb[147].mxu0  ;;  %v6770_v23 = vmul.f32 %v11487_v52, %v14929_v33 }
0x148a   : > { %10127 = vmatmul.mubr.msk.f32.gmra.mrb[216].mxu0 %vm2179_vm12, %v6770_v23 }
0x148b   : > { %v15030_v36 = vpop.f32.mrb[148].mxu0  ;;  %10172 = vmatprep.mubr.msk.f32.mxu0 %vm11629_vm5, %v15824_v12 }
0x148c   : > { %v9837_v19 = vpop.f32.mrb[149].mxu0 }
0x148f   : > { %v15034_v18 = vpop.f32.mrb[150].mxu0 }
0x1490   : > { %v9840_v55 = vpop.f32.mrb[151].mxu0 }
0x1493   : > { %v15036_v60 = vpop.f32.mrb[152].mxu0 }
0x1494   : > { %v9843_v27 = vpop.f32.mrb[153].mxu0 }
0x1497   : > { %v15038_v22 = vpop.f32.mrb[154].mxu0 }
0x1498   : > { %v9846_v61 = vpop.f32.mrb[155].mxu0 }
0x149b   : > { %v15040_v13 = vpop.f32.mrb[156].mxu0 }
0x149c   : > { %v9849_v33 = vpop.f32.mrb[157].mxu0 }
0x149f   : > { %v15042_v14 = vpop.f32.mrb[158].mxu0 }
0x14a0   : > { %v9852_v7 = vpop.f32.mrb[159].mxu0 }
0x14a3   : > { %v15044_v5 = vpop.f32.mrb[160].mxu0 }
0x14a4   : > { %v9855_v41 = vpop.f32.mrb[161].mxu0 }
0x14a7   : > { %v15046_v9 = vpop.f32.mrb[162].mxu0 }
0x14a8   : > { %v9858_v63 = vpop.f32.mrb[163].mxu0 }
0x14ab   : > { %v5982_v58 = vpop.f32.mrb[164].mxu0 }
0x14ac   : > { %6945 = vrot.lane.b32.xlu0 %v5982_v58, %s15829_s25  ;;  %v9924_v16 = vpop.f32.mrb[165].mxu0 }
0x14af   : > { %v5987_v21 = vpop.f32.mrb[166].mxu0 }
0x14b0   : > { %6947 = vrot.lane.b32.xlu0 %v5987_v21, %s15829_s25  ;;  %v9927_v15 = vpop.f32.mrb[167].mxu0 }
0x14b3   : > { %v5992_v47 = vpop.f32.mrb[168].mxu0 }
0x14b4   : > { %6949 = vrot.lane.b32.xlu1 %v5992_v47, %s15829_s25  ;;  %v9930_v42 = vpop.f32.mrb[169].mxu0 }
0x14b7   : > { %v5997_v32 = vpop.f32.mrb[170].mxu0 }
0x14b8   : > { %6951 = vrot.lane.b32.xlu0 %v5997_v32, %s15829_s25  ;;  %v9933_v24 = vpop.f32.mrb[171].mxu0 }
0x14bb   : > { %v6002_v28 = vpop.f32.mrb[172].mxu0 }
0x14bc   : > { %6953 = vrot.lane.b32.xlu1 %v6002_v28, %s15829_s25  ;;  %v9936_v17 = vpop.f32.mrb[173].mxu0 }
0x14bf   : > { %v6007_v40 = vpop.f32.mrb[174].mxu0 }
0x14c0   : > { %v9939_v43 = vpop.f32.mrb[175].mxu0 }
0x14c3   : > { %v6012_v44 = vpop.f32.mrb[176].mxu0 }
0x14c4   : > { %v9942_v34 = vpop.f32.mrb[177].mxu0 }
0x14f4   : > { %v6017_v59 = vpop.f32.mrb[178].mxu0 }
0x14f5   : > { %v9945_v39 = vpop.f32.mrb[179].mxu0 }
0x14f8   : > { %v6022_v11 = vpop.f32.mrb[180].mxu0 }
0x14f9   : > { %v9948_v30 = vpop.f32.mrb[181].mxu0 }
0x14fc   : > { %v6437_v2 = vpop.f32.mrb[182].mxu0 }
0x14fd   : > { %6981 = vrot.lane.b32.xlu1 %v6437_v2, %s15864_s28  ;;  %v10014_v0 = vpop.f32.mrb[183].mxu0 }
0x1500   : > { %v6442_v49 = vpop.f32.mrb[184].mxu0 }
0x1501   : > { %6983 = vrot.lane.b32.xlu0 %v6442_v49, %s15864_s28  ;;  %v10017_v45 = vpop.f32.mrb[185].mxu0 }
0x1504   : > { %v6447_v53 = vpop.f32.mrb[186].mxu0 }
0x1505   : > { %6985 = vrot.lane.b32.xlu0 %v6447_v53, %s15864_s28  ;;  %v10020_v6 = vpop.f32.mrb[187].mxu0 }
0x1508   : > { %v6452_v51 = vpop.f32.mrb[188].mxu0 }
0x1509   : > { %6987 = vrot.lane.b32.xlu1 %v6452_v51, %s15864_s28  ;;  %v10023_v56 = vpop.f32.mrb[189].mxu0 }
0x150c   : > { %v6457_v25 = vpop.f32.mrb[190].mxu0 }
0x150d   : > { %6989 = vrot.lane.b32.xlu0 %v6457_v25, %s15864_s28  ;;  %v10026_v48 = vpop.f32.mrb[191].mxu0 }
0x1510   : > { %v6462_v62 = vpop.f32.mrb[192].mxu0 }
0x1511   : > { %6991 = vrot.lane.b32.xlu1 %v6462_v62, %s15864_s28  ;;  %v10029_v4 = vpop.f32.mrb[193].mxu0 }
0x1514   : > { %v6467_v37 = vpop.f32.mrb[194].mxu0 }
0x1515   : > { %v10032_v54 = vpop.f32.mrb[195].mxu0 }
0x1518   : > { %v6472_v29 = vpop.f32.mrb[196].mxu0 }
0x1519   : > { %v10035_v46 = vpop.f32.mrb[197].mxu0 }
0x151c   : > { %v6477_v1 = vpop.f32.mrb[198].mxu0 }
0x151d   : > { %v10038_v57 = vpop.f32.mrb[199].mxu0 }
0x151e   : > { %v6946_v24 = vpop.permute.xlu0 %6945 }
0x1522   : > { %v6948_v28 = vpop.permute.xlu0 %6947 }
0x1523   : > { %v7045_v45 = vsel %vm2023_vm9, %v15030_v36, %v6948_v28 }
0x1524   : > { %v6892_v52 = vpop.f32.mrb[200].mxu0 }
0x1525   : > { %7017 = vrot.lane.b32.xlu0 %v6892_v52, %s15865_s27  ;;  %v10104_v35 = vpop.f32.mrb[201].mxu0 }
0x1526   : > { %v6950_v43 = vpop.permute.xlu1 %6949 }
0x1527   : > { %v7046_v53 = vsel %vm2023_vm9, %v15034_v18, %v6950_v43 }
0x1528   : > { %v6897_v23 = vpop.f32.mrb[202].mxu0 }
0x1529   : > { %7019 = vrot.lane.b32.xlu0 %v6897_v23, %s15865_s27  ;;  %v10107_v19 = vpop.f32.mrb[203].mxu0 }
0x152a   : > { %v6952_v17 = vpop.permute.xlu0 %6951 }
0x152b   : > { %v7047_v31 = vsel %vm2023_vm9, %v15036_v60, %v6952_v17 }
0x152c   : > { %v6902_v55 = vpop.f32.mrb[204].mxu0 }
0x152d   : > { %6955 = vrot.lane.b32.xlu0 %v6007_v40, %s15829_s25  ;;  %7021 = vrot.lane.b32.xlu1 %v6902_v55, %s15865_s27  ;;  %v10110_v27 = vpop.f32.mrb[205].mxu0 }
0x1530   : > { %v6907_v61 = vpop.f32.mrb[206].mxu0 }
0x1531   : > { %6957 = vrot.lane.b32.xlu1 %v6012_v44, %s15829_s25  ;;  %7023 = vrot.lane.b32.xlu0 %v6907_v61, %s15865_s27  ;;  %v10113_v33 = vpop.f32.mrb[207].mxu0  ;;  %v6954_v44 = vpop.permute.xlu1 %6953 }
0x1532   : > { %v7048_v48 = vsel %vm2023_vm9, %v15038_v22, %v6954_v44  ;;  %v15868_v44 = vld [vmem:[#allocation24_spill] sm:$0xff] }
0x1534   : > { %v6912_v7 = vpop.f32.mrb[208].mxu0 }
0x1535   : > { %6993 = vrot.lane.b32.xlu0 %v6467_v37, %s15864_s28  ;;  %7025 = vrot.lane.b32.xlu1 %v6912_v7, %s15865_s27  ;;  %v10116_v41 = vpop.f32.mrb[209].mxu0 }
0x1538   : > { %v6917_v63 = vpop.f32.mrb[210].mxu0 }
0x1539   : > { %6995 = vrot.lane.b32.xlu1 %v6472_v29, %s15864_s28  ;;  %7027 = vrot.lane.b32.xlu0 %v6917_v63, %s15865_s27  ;;  %v10119_v58 = vpop.f32.mrb[211].mxu0 }
0x153c   : > { %v6922_v16 = vpop.f32.mrb[212].mxu0 }
0x153d   : > { %6959 = vrot.lane.b32.xlu0 %v6017_v59, %s15829_s25  ;;  %7029 = vrot.lane.b32.xlu1 %v6922_v16, %s15865_s27  ;;  %v10122_v21 = vpop.f32.mrb[213].mxu0  ;;  %v8605_v16 = vld [vmem:[%s15697_s13 + $0x1] ss:$0 sm:$0xff] }
0x153e   : > { %v15866_v21 = vld [vmem:[#allocation23_spill] sm:$0xff] }
0x1541   : > { %6961 = vrot.lane.b32.xlu1 %v6022_v11, %s15829_s25  ;;  %v7044_v11 = vsel %vm2023_vm9, %v15024_v26, %v6946_v24  ;;  %s8210_s25 = scalar_lea.sflag [#allocation4], %s728_s2 }
0x1559   : > { %v6927_v15 = vpop.f32.mrb[214].mxu0 }
0x155a   : > { %7031 = vrot.lane.b32.xlu0 %v6927_v15, %s15865_s27  ;;  %v10125_v47 = vpop.f32.mrb[215].mxu0 }
0x155d   : > { %v6932_v42 = vpop.f32.mrb[216].mxu0 }
0x155e   : > { %6997 = vrot.lane.b32.xlu0 %v6477_v1, %s15864_s28  ;;  %7033 = vrot.lane.b32.xlu1 %v6932_v42, %s15865_s27  ;;  %v10128_v32 = vpop.f32.mrb[217].mxu0  ;;  %s15642_s27 = scalar_lea.hbm %s15708_s24, %s8647_s1  ;;  %s11560_s28 = scalar_lea.vmem %s15644_s8, 16 }
0x155f   : > { %v15867_v32 = vld [vmem:[#allocation22_spill] sm:$0xff]  ;;  %p11561_p11 = scmp.ne.s32.totalorder %s15644_s8, %s11560_s28  ;;  %p11568_p1 = scmp.lt.s32.totalorder %s11566_s4, %s11560_s28 }
0x1561   : > { %p11562_p12 = pnand %p11561_p11, %p11806_p5  ;;  %p11569_p2 = por %p11568_p1, %p11567_p0 }
0x1563   : > { %p11563_p13 = pneg %p11562_p12 }
0x1565   : > { %p11570_p3 = pnand %p11569_p2, %p11563_p13 }
0x156f   : > { %v6982_v59 = vpop.permute.xlu1 %6981 }
0x1570   : > { %v7053_v30 = vsel %vm3928_vm14, %v7044_v11, %v6982_v59 }
0x1573   : > { %v6984_v40 = vpop.permute.xlu0 %6983 }
0x1574   : > { %v7054_v20 = vsel %vm3928_vm14, %v7045_v45, %v6984_v40 }
0x1577   : > { %v6986_v34 = vpop.permute.xlu0 %6985 }
0x1578   : > { %v7055_v38 = vsel %vm3928_vm14, %v7046_v53, %v6986_v34 }
0x157b   : > { %v6988_v2 = vpop.permute.xlu1 %6987 }
0x157c   : > { %v7056_v51 = vsel %vm3928_vm14, %v7047_v31, %v6988_v2  ;;  %v15869_v2 = vld [vmem:[#allocation13_spill] sm:$0xff] }
0x157f   : > { %v6990_v39 = vpop.permute.xlu0 %6989 }
0x1580   : > { %v7057_v62 = vsel %vm3928_vm14, %v7048_v48, %v6990_v39  ;;  %v15872_v48 = vld [vmem:[#allocation14_spill] sm:$0xff] }
0x1583   : > { %v6992_v50 = vpop.permute.xlu1 %6991 }
0x1597   : > { %v7018_v0 = vpop.permute.xlu0 %7017 }
0x1598   : > { %v7062_v49 = vsel %vm3938_vm15, %v7053_v30, %v7018_v0 }
0x1599   : > { %10138 = vmatmul.mubr.msk.f32.vlgmr.msra.gmra.mrb[196].mxu1 %vm886_vm1, %v7062_v49 }
0x159a   : > { %10140 = vmatprep.mubr.msk.f32.mxu1 %vm11629_vm5, %v15824_v12 }
0x159b   : > { %v7020_v10 = vpop.permute.xlu0 %7019 }
0x159c   : > { %v7063_v26 = vsel %vm3938_vm15, %v7054_v20, %v7020_v10  ;;  %v15870_v10 = vld [vmem:[#allocation12_spill] sm:$0xff] }
0x159d   : > { %10141 = vmatmul.mubr.msk.f32.gmra.mrb[198].mxu1 %vm886_vm1, %v7063_v26 }
0x159e   : > { %10143 = vmatprep.mubr.msk.f32.mxu1 %vm11629_vm5, %v15824_v12 }
0x159f   : > { %v6956_v36 = vpop.permute.xlu0 %6955  ;;  %v7022_v8 = vpop.permute.xlu1 %7021 }
0x15a0   : > { %v7064_v6 = vsel %vm3938_vm15, %v7055_v38, %v7022_v8  ;;  %v7049_v37 = vsel %vm2023_vm9, %v15040_v13, %v6956_v36 }
0x15a1   : > { %10144 = vmatmul.mubr.msk.f32.gmra.mrb[200].mxu1 %vm886_vm1, %v7064_v6  ;;  %v7058_v22 = vsel %vm3928_vm14, %v7049_v37, %v6992_v50  ;;  %v15871_v6 = vld [vmem:[#allocation15_spill] sm:$0xff] }
0x15a2   : > { %10146 = vmatprep.mubr.msk.f32.mxu1 %vm11629_vm5, %v15824_v12 }
0x15a3   : > { %v6958_v18 = vpop.permute.xlu1 %6957  ;;  %v7024_v56 = vpop.permute.xlu0 %7023 }
0x15a4   : > { %v7065_v25 = vsel %vm3938_vm15, %v7056_v51, %v7024_v56  ;;  %v7050_v57 = vsel %vm2023_vm9, %v15042_v14, %v6958_v18 }
0x15a5   : > { %10147 = vmatmul.mubr.msk.f32.gmra.mrb[202].mxu1 %vm886_vm1, %v7065_v25 }
0x15a6   : > { %10149 = vmatprep.mubr.msk.f32.mxu1 %vm11629_vm5, %v15824_v12 }
0x15a7   : > { %v6994_v60 = vpop.permute.xlu0 %6993  ;;  %v7026_v4 = vpop.permute.xlu1 %7025 }
0x15a8   : > { %v7066_v54 = vsel %vm3938_vm15, %v7057_v62, %v7026_v4  ;;  %v7059_v13 = vsel %vm3928_vm14, %v7050_v57, %v6994_v60 }
0x15a9   : > { %10150 = vmatmul.mubr.msk.f32.gmra.mrb[204].mxu1 %vm886_vm1, %v7066_v54 }
0x15aa   : > { %10152 = vmatprep.mubr.msk.f32.mxu1 %vm11629_vm5, %v15824_v12 }
0x15ab   : > { %v6996_v29 = vpop.permute.xlu1 %6995  ;;  %v7028_v46 = vpop.permute.xlu0 %7027 }
0x15ac   : > { %v7067_v1 = vsel %vm3938_vm15, %v7058_v22, %v7028_v46  ;;  %v15873_v22 = vld [vmem:[#allocation17_spill] sm:$0xff] }
0x15ad   : > { %10153 = vmatmul.mubr.msk.f32.gmra.mrb[206].mxu1 %vm886_vm1, %v7067_v1 }
0x15ae   : > { %10155 = vmatprep.mubr.msk.f32.mxu1 %vm11629_vm5, %v15824_v12 }
0x15af   : > { %v7030_v52 = vpop.permute.xlu1 %7029  ;;  %v6960_v23 = vpop.permute.xlu0 %6959 }
0x15b0   : > { %v7068_v35 = vsel %vm3938_vm15, %v7059_v13, %v7030_v52  ;;  %v7051_v19 = vsel %vm2023_vm9, %v15044_v5, %v6960_v23 }
0x15b1   : > { %10156 = vmatmul.mubr.msk.f32.gmra.mrb[208].mxu1 %vm886_vm1, %v7068_v35  ;;  %v7060_v14 = vsel %vm3928_vm14, %v7051_v19, %v6996_v29  ;;  %v15874_v35 = vld [vmem:[#allocation16_spill] sm:$0xff] }
0x15b2   : > { %10158 = vmatprep.mubr.msk.f32.mxu1 %vm11629_vm5, %v15824_v12 }
0x15b3   : > { %v6962_v55 = vpop.permute.xlu1 %6961 }
0x15b4   : > { %v7052_v33 = vsel %vm2023_vm9, %v15046_v9, %v6962_v55 }
0x15cc   : > { %v7032_v27 = vpop.permute.xlu0 %7031 }
0x15cd   : > { %v7069_v61 = vsel %vm3938_vm15, %v7060_v14, %v7032_v27 }
0x15ce   : > { %10159 = vmatmul.mubr.msk.f32.gmra.mrb[210].mxu1 %vm886_vm1, %v7069_v61 }
0x15cf   : > { %10161 = vmatprep.mubr.msk.f32.mxu1 %vm11629_vm5, %v15824_v12 }
0x15d0   : > { %v6998_v7 = vpop.permute.xlu0 %6997  ;;  %v7034_v41 = vpop.permute.xlu1 %7033 }
0x15d1   : > { %v7061_v63 = vsel %vm3928_vm14, %v7052_v33, %v6998_v7 }
0x15d2   : > { %v7070_v5 = vsel %vm3938_vm15, %v7061_v63, %v7034_v41 }
0x15d3   : > { %10162 = vmatmul.mubr.msk.f32.gmra.mrb[212].mxu1 %vm886_vm1, %v7070_v5 }
0x15d4   : > { %10215 = vmatprep.mubr.msk.f32.mxu1 %vm11629_vm5, %v15824_v12 }
0x166c   : > { %v7169_v58 = vpop.f32.mrb[196].mxu1 }
0x166d   : > { %v7213_v15 = vadd.f32 %v7169_v58, %v15866_v21  ;;  %v10139_v47 = vpop.f32.mrb[197].mxu1 }
0x166f   : > { %v15156_v9 = vadd.f32 %v8605_v16, %v7213_v15 }
0x1670   : > { %v7174_v42 = vpop.f32.mrb[198].mxu1 }
0x1671   : > { %v7214_v24 = vadd.f32 %v7174_v42, %v15867_v32  ;;  %v10142_v28 = vpop.f32.mrb[199].mxu1  ;;  %v7243_v17 = vsel %vm886_vm1, %v15156_v9, 0.0 }
0x1672   : > { %7244 = vadd.xlane.f32.xlu0 %v7243_v17 }
0x1673   : > { %v15161_v40 = vadd.f32 %v8605_v16, %v7214_v24 }
0x1674   : > { %v7179_v43 = vpop.f32.mrb[200].mxu1 }
0x1675   : > { %v7215_v34 = vadd.f32 %v7179_v43, %v15868_v44  ;;  %v10145_v59 = vpop.f32.mrb[201].mxu1  ;;  %v7246_v39 = vsel %vm886_vm1, %v15161_v40, 0.0 }
0x1676   : > { %7247 = vadd.xlane.f32.xlu1 %v7246_v39 }
0x1677   : > { %v15166_v11 = vadd.f32 %v8605_v16, %v7215_v34 }
0x1678   : > { %v7184_v30 = vpop.f32.mrb[202].mxu1 }
0x1679   : > { %v7216_v0 = vadd.f32 %v7184_v30, %v15869_v2  ;;  %v10148_v49 = vpop.f32.mrb[203].mxu1  ;;  %v7249_v45 = vsel %vm886_vm1, %v15166_v11, 0.0 }
0x167a   : > { %7250 = vadd.xlane.f32.xlu0 %v7249_v45 }
0x167b   : > { %v15171_v20 = vadd.f32 %v8605_v16, %v7216_v0 }
0x167c   : > { %v7189_v50 = vpop.f32.mrb[204].mxu1 }
0x167d   : > { %v7217_v26 = vadd.f32 %v7189_v50, %v15870_v10  ;;  %v10151_v53 = vpop.f32.mrb[205].mxu1  ;;  %v7252_v38 = vsel %vm886_vm1, %v15171_v20, 0.0 }
0x167e   : > { %7253 = vadd.xlane.f32.xlu0 %v7252_v38 }
0x167f   : > { %v15176_v36 = vadd.f32 %v8605_v16, %v7217_v26 }
0x1680   : > { %v7194_v8 = vpop.f32.mrb[206].mxu1 }
0x1681   : > { %v7218_v31 = vadd.f32 %v7194_v8, %v15871_v6  ;;  %v10154_v51 = vpop.f32.mrb[207].mxu1  ;;  %v7255_v18 = vsel %vm886_vm1, %v15176_v36, 0.0 }
0x1682   : > { %7256 = vadd.xlane.f32.xlu0 %v7255_v18  ;;  %v8610_v51 = vld [vmem:[%s15700_s16 + $0x20] sm:$0xff]  ;;  %v8611_v18 = vld [vmem:[%s15700_s16 + $0x28] sm:$0xff] }
0x1683   : > { %v15181_v56 = vadd.f32 %v8605_v16, %v7218_v31 }
0x1684   : > { %v7199_v25 = vpop.f32.mrb[208].mxu1 }
0x1685   : > { %v7219_v62 = vadd.f32 %v7199_v25, %v15872_v48  ;;  %v10157_v60 = vpop.f32.mrb[209].mxu1  ;;  %v7258_v4 = vsel %vm886_vm1, %v15181_v56, 0.0  ;;  %v10590_v25 = vpack.c.bf16 %v8611_v18, %v8610_v51  ;;  %v8612_v48 = vld [vmem:[%s15700_s16 + $0x30] sm:$0xff] }
0x1686   : > { %7259 = vadd.xlane.f32.xlu1 %v7258_v4 }
0x1687   : > { %v15186_v37 = vadd.f32 %v8605_v16, %v7219_v62  ;;  %10591 = vmatpush3.bf16.msra.mxu0 %v10590_v25  ;;  %v8613_v62 = vld [vmem:[%s15700_s16 + $0x38] sm:$0xff] }
0x1688   : > { %10592 = vmatprep.subr.bf16.mxu0 %v15825_v3  ;;  %v10593_v60 = vpack.c.bf16 %v8613_v62, %v8612_v48 }
0x1689   : > { %v7261_v54 = vsel %vm886_vm1, %v15186_v37, 0.0 }
0x168a   : > { %7262 = vadd.xlane.f32.xlu0 %v7261_v54 }
0x168b   : > { %10594 = vmatpush3.bf16.msra.mxu0 %v10593_v60 }
0x168c   : > { %10607 = vmatprep.subr.bf16.mxu0 %v15825_v3 }
0x16a1   : > { %v7204_v29 = vpop.f32.mrb[210].mxu1 }
0x16a2   : > { %v7220_v46 = vadd.f32 %v7204_v29, %v15873_v22  ;;  %v10160_v1 = vpop.f32.mrb[211].mxu1 }
0x16a4   : > { %v15191_v57 = vadd.f32 %v8605_v16, %v7220_v46 }
0x16a6   : > { %v7209_v13 = vpop.f32.mrb[212].mxu1  ;;  %v7264_v52 = vsel %vm886_vm1, %v15191_v57, 0.0 }
0x16a7   : > { %v7221_v23 = vadd.f32 %v7209_v13, %v15874_v35  ;;  %7265 = vadd.xlane.f32.xlu1 %v7264_v52  ;;  %v10163_v19 = vpop.f32.mrb[213].mxu1 }
0x16a9   : > { %v15196_v55 = vadd.f32 %v8605_v16, %v7221_v23 }
0x16ab   : > { %v7267_v14 = vsel %vm1723_vm8, %v15196_v55, 0.0 }
0x16ac   : > { %7268 = vadd.xlane.f32.xlu0 %v7267_v14 }
0x16ff   : > { %v7245_v27 = vpop.xlane.xlu0 %7244 }
0x1700   : > { %v7270_v61 = vmul.f32 0.03125, %v7245_v27 }
0x1702   : > { %v15201_v33 = vsub.f32 %v15156_v9, %v7270_v61 }
0x1703   : > { %v7248_v7 = vpop.xlane.xlu1 %7247 }
0x1704   : > { %v7271_v41 = vmul.f32 0.03125, %v7248_v7  ;;  %v7288_v63 = vmul.f32 %v15201_v33, %v15201_v33 }
0x1706   : > { %v15206_v5 = vsub.f32 %v15161_v40, %v7271_v41  ;;  %v7297_v58 = vsel %vm886_vm1, %v7288_v63, 0.0 }
0x1707   : > { %v7251_v16 = vpop.xlane.xlu0 %7250  ;;  %7298 = vadd.xlane.f32.xlu1 %v7297_v58 }
0x1708   : > { %v7272_v21 = vmul.f32 0.03125, %v7251_v16  ;;  %v7289_v15 = vmul.f32 %v15206_v5, %v15206_v5 }
0x170a   : > { %v15212_v47 = vsub.f32 %v15166_v11, %v7272_v21  ;;  %v7300_v42 = vsel %vm886_vm1, %v7289_v15, 0.0 }
0x170b   : > { %v7254_v32 = vpop.xlane.xlu0 %7253  ;;  %7301 = vadd.xlane.f32.xlu0 %v7300_v42 }
0x170c   : > { %v7273_v24 = vmul.f32 0.03125, %v7254_v32  ;;  %v7290_v28 = vmul.f32 %v15212_v47, %v15212_v47  ;;  %v15271_v32 = vld [vmem:[%s15698_s14 + $0x1] ss:$0 sm:$0xff] }
0x170e   : > { %v15218_v17 = vsub.f32 %v15171_v20, %v7273_v24  ;;  %v7303_v43 = vsel %vm886_vm1, %v7290_v28, 0.0 }
0x170f   : > { %v7257_v44 = vpop.xlane.xlu0 %7256  ;;  %7304 = vadd.xlane.f32.xlu1 %v7303_v43 }
0x1710   : > { %v7274_v34 = vmul.f32 0.03125, %v7257_v44  ;;  %v7291_v59 = vmul.f32 %v15218_v17, %v15218_v17  ;;  %v15277_v44 = vld [vmem:[%s15699_s15 + $0x1] ss:$0 sm:$0xff] }
0x1712   : > { %v15224_v39 = vsub.f32 %v15176_v36, %v7274_v34  ;;  %v7306_v30 = vsel %vm886_vm1, %v7291_v59, 0.0 }
0x1713   : > { %7307 = vadd.xlane.f32.xlu0 %v7306_v30  ;;  %v7260_v2 = vpop.xlane.xlu1 %7259 }
0x1714   : > { %v7275_v0 = vmul.f32 0.03125, %v7260_v2  ;;  %v7292_v49 = vmul.f32 %v15224_v39, %v15224_v39 }
0x1716   : > { %v15230_v45 = vsub.f32 %v15181_v56, %v7275_v0  ;;  %v7309_v50 = vsel %vm886_vm1, %v7292_v49, 0.0 }
0x1717   : > { %v7263_v10 = vpop.xlane.xlu0 %7262  ;;  %7310 = vadd.xlane.f32.xlu1 %v7309_v50 }
0x1718   : > { %v7276_v26 = vmul.f32 0.03125, %v7263_v10  ;;  %v7293_v53 = vmul.f32 %v15230_v45, %v15230_v45 }
0x171a   : > { %v15236_v38 = vsub.f32 %v15186_v37, %v7276_v26  ;;  %v7312_v8 = vsel %vm886_vm1, %v7293_v53, 0.0 }
0x171b   : > { %7313 = vadd.xlane.f32.xlu0 %v7312_v8 }
0x171c   : > { %v7294_v6 = vmul.f32 %v15236_v38, %v15236_v38 }
0x171e   : > { %v7315_v31 = vsel %vm886_vm1, %v7294_v6, 0.0 }
0x171f   : > { %7316 = vadd.xlane.f32.xlu1 %v7315_v31 }
0x1734   : > { %v7266_v4 = vpop.xlane.xlu1 %7265 }
0x1735   : > { %v7277_v54 = vmul.f32 0.03125, %v7266_v4 }
0x1737   : > { %v15257_v29 = vsub.f32 %v15191_v57, %v7277_v54 }
0x1739   : > { %v7269_v22 = vpop.xlane.xlu0 %7268  ;;  %v7295_v46 = vmul.f32 %v15257_v29, %v15257_v29 }
0x173a   : > { %v7278_v1 = vmul.f32 0.03125, %v7269_v22 }
0x173b   : > { %v7318_v13 = vsel %vm886_vm1, %v7295_v46, 0.0 }
0x173c   : > { %v15263_v52 = vsub.f32 %v15196_v55, %v7278_v1  ;;  %7319 = vadd.xlane.f32.xlu0 %v7318_v13 }
0x173e   : > { %v7296_v35 = vmul.f32 %v15263_v52, %v15263_v52 }
0x1740   : > { %v7321_v23 = vsel %vm1723_vm8, %v7296_v35, 0.0 }
0x1741   : > { %7322 = vadd.xlane.f32.xlu1 %v7321_v23 }
0x1794   : > { %v7299_v19 = vpop.xlane.xlu1 %7298 }
0x1795   : > { %v7324_v14 = vmul.f32 0.03125, %v7299_v19 }
0x1797   : > { %v7333_v27 = vadd.f32 1e-06, %v7324_v14 }
0x1798   : > { %v7302_v61 = vpop.xlane.xlu0 %7301 }
0x1799   : > { %11488 = vrsqrt.f32 %v7333_v27  ;;  %v7325_v7 = vmul.f32 0.03125, %v7302_v61 }
0x179b   : > { %v7334_v41 = vadd.f32 1e-06, %v7325_v7 }
0x179c   : > { %v7305_v63 = vpop.xlane.xlu1 %7304 }
0x179d   : > { %11490 = vrsqrt.f32 %v7334_v41  ;;  %v7326_v58 = vmul.f32 0.03125, %v7305_v63 }
0x179f   : > { %v7335_v16 = vadd.f32 1e-06, %v7326_v58 }
0x17a0   : > { %v7308_v21 = vpop.xlane.xlu0 %7307 }
0x17a1   : > { %11492 = vrsqrt.f32 %v7335_v16  ;;  %v7327_v15 = vmul.f32 0.03125, %v7308_v21 }
0x17a3   : > { %v11489_v42 = vpop.eup %11488  ;;  %v7336_v24 = vadd.f32 1e-06, %v7327_v15 }
0x17a4   : > { %v7351_v28 = vmul.f32 %v11489_v42, %v15201_v33  ;;  %v7311_v43 = vpop.xlane.xlu1 %7310 }
0x17a5   : > { %11494 = vrsqrt.f32 %v7336_v24  ;;  %v7328_v34 = vmul.f32 0.03125, %v7311_v43 }
0x17a6   : > { %v7366_v59 = vmul.f32 %v15271_v32, %v7351_v28 }
0x17a7   : > { %v11491_v30 = vpop.eup %11490  ;;  %v7337_v2 = vadd.f32 1e-06, %v7328_v34 }
0x17a8   : > { %v7381_v0 = vadd.f32 %v15277_v44, %v7366_v59  ;;  %v7314_v49 = vpop.xlane.xlu0 %7313  ;;  %v7352_v50 = vmul.f32 %v11491_v30, %v15206_v5  ;;  %v8629_v59 = vld [vmem:[%s15702_s18 + $0x60] sm:$0xff]  ;;  %v8630_v30 = vld [vmem:[%s15702_s18 + $0x68] sm:$0xff] }
0x17a9   : > { %11496 = vrsqrt.f32 %v7337_v2  ;;  %v7329_v10 = vmul.f32 0.03125, %v7314_v49  ;;  %v10602_v2 = vpack.c.bf16 %v8630_v30, %v8629_v59  ;;  %v8632_v49 = vld [vmem:[%s15702_s18 + $0x78] sm:$0xff] }
0x17aa   : > { %10173 = vmatmul.mubr.msk.f32.vlgmr.msra.gmra.mrb[218].mxu0 %vm886_vm1, %v7381_v0  ;;  %v7367_v33 = vmul.f32 %v15271_v32, %v7352_v50  ;;  %v8631_v0 = vld [vmem:[%s15702_s18 + $0x70] sm:$0xff] }
0x17ab   : > { %v11493_v26 = vpop.eup %11492  ;;  %v7338_v53 = vadd.f32 1e-06, %v7329_v10  ;;  %10175 = vmatprep.mubr.msk.f32.mxu0 %vm11629_vm5, %v15824_v12  ;;  %v10605_v50 = vpack.c.bf16 %v8632_v49, %v8631_v0  ;;  %v15362_v10 = vld [vmem:[%s15701_s17 + $0x1] ss:$0 sm:$0xff] }
0x17ac   : > { %v7317_v8 = vpop.xlane.xlu1 %7316  ;;  %v7382_v6 = vadd.f32 %v15277_v44, %v7367_v33  ;;  %v7353_v31 = vmul.f32 %v11493_v26, %v15212_v47 }
0x17ad   : > { %11498 = vrsqrt.f32 %v7338_v53  ;;  %v7330_v51 = vmul.f32 0.03125, %v7317_v8 }
0x17ae   : > { %10176 = vmatmul.mubr.msk.f32.gmra.mrb[220].mxu0 %vm886_vm1, %v7382_v6  ;;  %v7368_v5 = vmul.f32 %v15271_v32, %v7353_v31 }
0x17af   : > { %v11495_v18 = vpop.eup %11494  ;;  %v7339_v25 = vadd.f32 1e-06, %v7330_v51  ;;  %10178 = vmatprep.mubr.msk.f32.mxu0 %vm11629_vm5, %v15824_v12 }
0x17b0   : > { %v7383_v48 = vadd.f32 %v15277_v44, %v7368_v5  ;;  %v7354_v62 = vmul.f32 %v11495_v18, %v15218_v17 }
0x17b1   : > { %11500 = vrsqrt.f32 %v7339_v25 }
0x17b2   : > { %10179 = vmatmul.mubr.msk.f32.gmra.mrb[222].mxu0 %vm886_vm1, %v7383_v48  ;;  %v7369_v47 = vmul.f32 %v15271_v32, %v7354_v62 }
0x17b3   : > { %v11497_v60 = vpop.eup %11496  ;;  %10181 = vmatprep.mubr.msk.f32.mxu0 %vm11629_vm5, %v15824_v12 }
0x17b4   : > { %v7384_v4 = vadd.f32 %v15277_v44, %v7369_v47  ;;  %v7355_v54 = vmul.f32 %v11497_v60, %v15224_v39 }
0x17b6   : > { %10182 = vmatmul.mubr.msk.f32.gmra.mrb[224].mxu0 %vm886_vm1, %v7384_v4  ;;  %v7370_v22 = vmul.f32 %v15271_v32, %v7355_v54 }
0x17b7   : > { %v11499_v46 = vpop.eup %11498  ;;  %10184 = vmatprep.mubr.msk.f32.mxu0 %vm11629_vm5, %v15824_v12 }
0x17b8   : > { %v7385_v17 = vadd.f32 %v15277_v44, %v7370_v22  ;;  %v7356_v1 = vmul.f32 %v11499_v46, %v15230_v45 }
0x17ba   : > { %10185 = vmatmul.mubr.msk.f32.gmra.mrb[226].mxu0 %vm886_vm1, %v7385_v17  ;;  %v7371_v13 = vmul.f32 %v15271_v32, %v7356_v1 }
0x17bb   : > { %v11501_v35 = vpop.eup %11500  ;;  %10187 = vmatprep.mubr.msk.f32.mxu0 %vm11629_vm5, %v15824_v12 }
0x17bc   : > { %v7386_v39 = vadd.f32 %v15277_v44, %v7371_v13  ;;  %v7357_v23 = vmul.f32 %v11501_v35, %v15236_v38 }
0x17be   : > { %10188 = vmatmul.mubr.msk.f32.gmra.mrb[228].mxu0 %vm886_vm1, %v7386_v39  ;;  %v7372_v19 = vmul.f32 %v15271_v32, %v7357_v23 }
0x17bf   : > { %10190 = vmatprep.mubr.msk.f32.mxu0 %vm11629_vm5, %v15824_v12 }
0x17c0   : > { %v7387_v45 = vadd.f32 %v15277_v44, %v7372_v19 }
0x17c2   : > { %10191 = vmatmul.mubr.msk.f32.gmra.mrb[230].mxu0 %vm886_vm1, %v7387_v45 }
0x17c3   : > { %10193 = vmatprep.mubr.msk.f32.mxu0 %vm11629_vm5, %v15824_v12 }
0x17c9   : > { %v7320_v14 = vpop.xlane.xlu0 %7319 }
0x17ca   : > { %v7331_v27 = vmul.f32 0.03125, %v7320_v14 }
0x17cc   : > { %v7340_v61 = vadd.f32 1e-06, %v7331_v27 }
0x17ce   : > { %11502 = vrsqrt.f32 %v7340_v61  ;;  %v7323_v7 = vpop.xlane.xlu1 %7322 }
0x17cf   : > { %v7332_v38 = vmul.f32 0.03125, %v7323_v7 }
0x17d1   : > { %v7341_v41 = vadd.f32 1e-06, %v7332_v38 }
0x17d3   : > { %11504 = vrsqrt.f32 %v7341_v41 }
0x17d8   : > { %v11503_v63 = vpop.eup %11502 }
0x17d9   : > { %v7358_v58 = vmul.f32 %v11503_v63, %v15257_v29  ;;  %v8625_v29 = vld [vmem:[%s15702_s18 + $0x40] sm:$0xff] }
0x17db   : > { %v7373_v16 = vmul.f32 %v15271_v32, %v7358_v58 }
0x17dd   : > { %v11505_v21 = vpop.eup %11504  ;;  %v7388_v15 = vadd.f32 %v15277_v44, %v7373_v16 }
0x17de   : > { %v7359_v42 = vmul.f32 %v11505_v21, %v15263_v52  ;;  %v8626_v52 = vld [vmem:[%s15702_s18 + $0x48] sm:$0xff] }
0x17df   : > { %10194 = vmatmul.mubr.msk.f32.gmra.mrb[232].mxu0 %vm886_vm1, %v7388_v15  ;;  %v10596_v43 = vpack.c.bf16 %v8626_v52, %v8625_v29 }
0x17e0   : > { %10196 = vmatprep.mubr.msk.f32.mxu0 %vm11629_vm5, %v15824_v12  ;;  %v7374_v24 = vmul.f32 %v15271_v32, %v7359_v42  ;;  %v8627_v32 = vld [vmem:[%s15702_s18 + $0x50] sm:$0xff] }
0x17e1   : > { %10597 = vmatpush3.bf16.msra.mxu1 %v10596_v43 }
0x17e2   : > { %v7389_v28 = vadd.f32 %v15277_v44, %v7374_v24  ;;  %10598 = vmatprep.subr.bf16.mxu1 %v15825_v3  ;;  %v8628_v44 = vld [vmem:[%s15702_s18 + $0x58] sm:$0xff] }
0x17e3   : > { %v10599_v34 = vpack.c.bf16 %v8628_v44, %v8627_v32 }
0x17e4   : > { %10197 = vmatmul.mubr.msk.f32.gmra.mrb[234].mxu0 %vm886_vm1, %v7389_v28 }
0x17e5   : > { %10250 = vmatprep.mubr.msk.f32.mxu0 %vm11629_vm5, %v15824_v12  ;;  %10600 = vmatpush3.bf16.msra.mxu1 %v10599_v34 }
0x17e6   : > { %10601 = vmatprep.subr.bf16.mxu1 %v15825_v3 }
0x17e9   : > { %10603 = vmatpush3.bf16.msra.mxu1 %v10602_v2 }
0x17ea   : > { %10604 = vmatprep.subr.bf16.mxu1 %v15825_v3 }
0x17ed   : > { %10606 = vmatpush3.bf16.msra.mxu1 %v10605_v50 }
0x187d   : > { %v7496_v33 = vpop.f32.mrb[218].mxu0 }
0x187e   : > { %v15365_v26 = vadd.f32 %v15362_v10, %v7496_v33  ;;  %v10174_v53 = vpop.f32.mrb[219].mxu0 }
0x1880   : > { %v15368_v8 = vmul.f32 0.70710677, %v15365_v26 }
0x1881   : > { %v7501_v6 = vpop.f32.mrb[220].mxu0 }
0x1882   : > { %v7558_v31 = vand.u32 2147483647, %v15368_v8  ;;  %v15372_v51 = vadd.f32 %v15362_v10, %v7501_v6  ;;  %v10177_v5 = vpop.f32.mrb[221].mxu0  ;;  %vm7738_vm9 = vcmp.ge.f32.partialorder %v15368_v8, 0.0 }
0x1884   : > { %v7567_v18 = vmul.f32 0.3275911, %v7558_v31  ;;  %v15375_v25 = vmul.f32 0.70710677, %v15372_v51  ;;  %v7684_v45 = vsub.f32 0.0, %v7558_v31 }
0x1885   : > { %v7506_v48 = vpop.f32.mrb[222].mxu0 }
0x1886   : > { %v7576_v62 = vadd.f32 1.0, %v7567_v18  ;;  %v7559_v47 = vand.u32 2147483647, %v15375_v25  ;;  %v10180_v60 = vpop.f32.mrb[223].mxu0  ;;  %v15379_v4 = vadd.f32 %v15362_v10, %v7506_v48  ;;  %v7693_v21 = vmul.f32 %v7684_v45, %v7558_v31 }
0x1887   : > { %vm7739_vm10 = vcmp.ge.f32.partialorder %v15375_v25, 0.0 }
0x1888   : > { %11506 = vrcp.f32 %v7576_v62  ;;  %v7568_v54 = vmul.f32 0.3275911, %v7559_v47  ;;  %v15382_v22 = vmul.f32 0.70710677, %v15379_v4  ;;  %v7685_v38 = vsub.f32 0.0, %v7559_v47 }
0x1889   : > { %v7511_v46 = vpop.f32.mrb[224].mxu0  ;;  %v7702_v2 = vmul.f32 1.442695, %v7693_v21 }
0x188a   : > { %v7577_v17 = vadd.f32 1.0, %v7568_v54  ;;  %v15385_v1 = vadd.f32 %v15362_v10, %v7511_v46  ;;  %v10183_v13 = vpop.f32.mrb[225].mxu0  ;;  %v7560_v35 = vand.u32 2147483647, %v15382_v22  ;;  %v7694_v52 = vmul.f32 %v7685_v38, %v7559_v47 }
0x188b   : > { %vm7740_vm11 = vcmp.ge.f32.partialorder %v15382_v22, 0.0 }
0x188c   : > { %11508 = vrcp.f32 %v7577_v17  ;;  %v15389_v39 = vmul.f32 0.70710677, %v15385_v1  ;;  %v7569_v23 = vmul.f32 0.3275911, %v7560_v35  ;;  %v7686_v44 = vsub.f32 0.0, %v7560_v35 }
0x188d   : > { %v7516_v19 = vpop.f32.mrb[226].mxu0  ;;  %v7704_v31 = vmul.f32 1.442695, %v7694_v52 }
0x188e   : > { %v7561_v14 = vand.u32 2147483647, %v15389_v39  ;;  %v15393_v27 = vadd.f32 %v15362_v10, %v7516_v19  ;;  %v10186_v61 = vpop.f32.mrb[227].mxu0  ;;  %v7578_v7 = vadd.f32 1.0, %v7569_v23  ;;  %v7695_v62 = vmul.f32 %v7686_v44, %v7560_v35 }
0x188f   : > { %vm7741_vm12 = vcmp.ge.f32.partialorder %v15389_v39, 0.0 }
0x1890   : > { %v7570_v41 = vmul.f32 0.3275911, %v7561_v14  ;;  %v15396_v63 = vmul.f32 0.70710677, %v15393_v27  ;;  %11510 = vrcp.f32 %v7578_v7  ;;  %v7687_v60 = vsub.f32 0.0, %v7561_v14 }
0x1891   : > { %v7521_v58 = vpop.f32.mrb[228].mxu0  ;;  %v7706_v7 = vmul.f32 1.442695, %v7695_v62 }
0x1892   : > { %v15398_v16 = vpop.eup %11506  ;;  %v7579_v15 = vadd.f32 1.0, %v7570_v41  ;;  %v7562_v42 = vand.u32 2147483647, %v15396_v63  ;;  %v10189_v24 = vpop.f32.mrb[229].mxu0  ;;  %v15403_v29 = vadd.f32 %v15362_v10, %v7521_v58  ;;  %v7696_v58 = vmul.f32 %v7687_v60, %v7561_v14 }
0x1893   : > { %v7603_v28 = vmul.f32 1.0614054, %v15398_v16  ;;  %vm7742_vm13 = vcmp.ge.f32.partialorder %v15396_v63, 0.0 }
0x1894   : > { %11512 = vrcp.f32 %v7579_v15  ;;  %v7571_v43 = vmul.f32 0.3275911, %v7562_v42  ;;  %v15406_v34 = vmul.f32 0.70710677, %v15403_v29  ;;  %v7688_v21 = vsub.f32 0.0, %v7562_v42 }
0x1895   : > { %v7612_v32 = vadd.f32 -1.4531521, %v7603_v28  ;;  %v7526_v59 = vpop.f32.mrb[230].mxu0 }
0x1896   : > { %v15408_v30 = vpop.eup %11508  ;;  %v7580_v0 = vadd.f32 1.0, %v7571_v43  ;;  %v15411_v49 = vadd.f32 %v15362_v10, %v7526_v59  ;;  %v10192_v50 = vpop.f32.mrb[231].mxu0  ;;  %v7563_v6 = vand.u32 2147483647, %v15406_v34  ;;  %v7540_v43 = vmul.f32 0.5, %v15365_v26 }
0x1897   : > { %v7621_v33 = vmul.f32 %v15398_v16, %v7612_v32  ;;  %v7604_v53 = vmul.f32 1.0614054, %v15408_v30  ;;  %vm7743_vm14 = vcmp.ge.f32.partialorder %v15406_v34, 0.0 }
0x1898   : > { %11514 = vrcp.f32 %v7580_v0  ;;  %v15417_v5 = vmul.f32 0.70710677, %v15411_v49  ;;  %v7572_v47 = vmul.f32 0.3275911, %v7563_v6  ;;  %v7689_v44 = vsub.f32 0.0, %v7563_v6 }
0x1899   : > { %v7630_v18 = vadd.f32 1.4214138, %v7621_v33  ;;  %v7613_v48 = vadd.f32 -1.4531521, %v7604_v53  ;;  %11516 = vpow2.f32 %v7702_v2  ;;  %v7708_v33 = vmul.f32 1.442695, %v7696_v58 }
0x189a   : > { %v15420_v54 = vand.u32 2147483647, %v15417_v5  ;;  %v15422_v46 = vpop.eup %11510  ;;  %v7581_v23 = vadd.f32 1.0, %v7572_v47  ;;  %11518 = vpow2.f32 %v7704_v31  ;;  %v7697_v53 = vmul.f32 %v7688_v21, %v7562_v42 }
0x189b   : > { %v7639_v17 = vmul.f32 %v15398_v16, %v7630_v18  ;;  %v7622_v13 = vmul.f32 %v15408_v30, %v7613_v48  ;;  %v7605_v19 = vmul.f32 1.0614054, %v15422_v46  ;;  %v7541_v47 = vmul.f32 0.5, %v15372_v51 }
0x189c   : > { %v7573_v45 = vmul.f32 0.3275911, %v15420_v54  ;;  %11520 = vrcp.f32 %v7581_v23  ;;  %vm7744_vm15 = vcmp.ge.f32.partialorder %v15417_v5, 0.0  ;;  %v7546_v34 = vmul.f32 0.5, %v15411_v49 }
0x189d   : > { %v7648_v61 = vadd.f32 -0.28449672, %v7639_v17  ;;  %v7631_v35 = vadd.f32 1.4214138, %v7622_v13  ;;  %v7614_v41 = vadd.f32 -1.4531521, %v7605_v19  ;;  %v7698_v17 = vmul.f32 %v7689_v44, %v7563_v6 }
0x189e   : > { %v15428_v38 = vpop.eup %11512  ;;  %v7582_v15 = vadd.f32 1.0, %v7573_v45 }
0x189f   : > { %v7657_v24 = vmul.f32 %v15398_v16, %v7648_v61  ;;  %v7640_v28 = vmul.f32 %v15408_v30, %v7631_v35  ;;  %v7606_v52 = vmul.f32 1.0614054, %v15428_v38  ;;  %v7623_v32 = vmul.f32 %v15422_v46, %v7614_v41 }
0x18a0   : > { %11522 = vrcp.f32 %v7582_v15  ;;  %v7710_v61 = vmul.f32 1.442695, %v7697_v53  ;;  %v7690_v35 = vsub.f32 0.0, %v15420_v54 }
0x18a1   : > { %v7666_v59 = vadd.f32 0.2548296, %v7657_v24  ;;  %v7649_v2 = vadd.f32 -0.28449672, %v7640_v28  ;;  %v7615_v0 = vadd.f32 -1.4531521, %v7606_v52  ;;  %11524 = vpow2.f32 %v7706_v7 }
0x18a2   : > { %v15435_v50 = vpop.eup %11514  ;;  %v7632_v14 = vadd.f32 1.4214138, %v7623_v32  ;;  %11526 = vpow2.f32 %v7708_v33  ;;  %v7712_v24 = vmul.f32 1.442695, %v7698_v17 }
0x18a3   : > { %v7675_v31 = vmul.f32 %v15398_v16, %v7666_v59  ;;  %v7658_v18 = vmul.f32 %v15408_v30, %v7649_v2  ;;  %v7624_v48 = vmul.f32 %v15428_v38, %v7615_v0  ;;  %v7607_v26 = vmul.f32 1.0614054, %v15435_v50  ;;  %v11517_v62 = vpop.eup %11516 }
0x18a4   : > { %v7641_v60 = vmul.f32 %v15422_v46, %v7632_v14  ;;  %v11519_v45 = vpop.eup %11518  ;;  %11528 = vpow2.f32 %v7710_v61 }
0x18a5   : > { %v7720_v13 = vmul.f32 %v11517_v62, %v7675_v31  ;;  %v7667_v23 = vadd.f32 0.2548296, %v7658_v18  ;;  %v7633_v19 = vadd.f32 1.4214138, %v7624_v48  ;;  %v7616_v42 = vadd.f32 -1.4531521, %v7607_v26 }
0x18a6   : > { %v7650_v16 = vadd.f32 -0.28449672, %v7641_v60  ;;  %v15445_v7 = vpop.eup %11520  ;;  %11530 = vpow2.f32 %v7712_v24 }
0x18a7   : > { %v7729_v41 = vsub.f32 1.0, %v7720_v13  ;;  %v7676_v58 = vmul.f32 %v15408_v30, %v7667_v23  ;;  %v7642_v51 = vmul.f32 %v15428_v38, %v7633_v19  ;;  %v7625_v21 = vmul.f32 %v15435_v50, %v7616_v42 }
0x18a8   : > { %v7659_v6 = vmul.f32 %v15422_v46, %v7650_v16  ;;  %v7608_v15 = vmul.f32 1.0614054, %v15445_v7  ;;  %v7699_v30 = vmul.f32 %v7690_v35, %v15420_v54 }
0x18a9   : > { %v7747_v28 = vsub.f32 0.0, %v7729_v41  ;;  %v7721_v52 = vmul.f32 %v11519_v45, %v7676_v58  ;;  %v7651_v32 = vadd.f32 -0.28449672, %v7642_v51  ;;  %v7634_v44 = vadd.f32 1.4214138, %v7625_v21 }
0x18aa   : > { %v7668_v59 = vadd.f32 0.2548296, %v7659_v6  ;;  %v7617_v2 = vadd.f32 -1.4531521, %v7608_v15  ;;  %v15454_v0 = vpop.eup %11522 }
0x18ab   : > { %v7756_v14 = vsel %vm7738_vm9, %v7729_v41, %v7747_v28  ;;  %v7730_v33 = vsub.f32 1.0, %v7721_v52  ;;  %v7660_v53 = vmul.f32 %v15428_v38, %v7651_v32  ;;  %v7643_v31 = vmul.f32 %v15435_v50, %v7634_v44  ;;  %v11525_v18 = vpop.eup %11524 }
0x18ac   : > { %v7765_v48 = vadd.f32 1.0, %v7756_v14  ;;  %v7677_v26 = vmul.f32 %v15422_v46, %v7668_v59  ;;  %v7626_v62 = vmul.f32 %v15445_v7, %v7617_v2  ;;  %v7609_v60 = vmul.f32 1.0614054, %v15454_v0  ;;  %v11527_v35 = vpop.eup %11526 }
0x18ad   : > { %v7748_v17 = vsub.f32 0.0, %v7730_v33  ;;  %v7669_v54 = vadd.f32 0.2548296, %v7660_v53  ;;  %v7652_v13 = vadd.f32 -0.28449672, %v7643_v31 }
0x18ae   : > { %v7774_v23 = vmul.f32 %v7765_v48, %v7540_v43  ;;  %v7722_v8 = vmul.f32 %v11525_v18, %v7677_v26  ;;  %v7635_v19 = vadd.f32 1.4214138, %v7626_v62  ;;  %v7618_v42 = vadd.f32 -1.4531521, %v7609_v60  ;;  %v11529_v2 = vpop.eup %11528 }
0x18af   : > { %v7757_v45 = vsel %vm7739_vm10, %v7730_v33, %v7748_v17  ;;  %v7678_v16 = vmul.f32 %v15428_v38, %v7669_v54  ;;  %v7661_v61 = vmul.f32 %v15435_v50, %v7652_v13  ;;  %v7714_v46 = vmul.f32 1.442695, %v7699_v30 }
0x18b0   : > { %v7766_v41 = vadd.f32 1.0, %v7757_v45  ;;  %v7731_v58 = vsub.f32 1.0, %v7722_v8  ;;  %v7644_v51 = vmul.f32 %v15445_v7, %v7635_v19  ;;  %v7627_v21 = vmul.f32 %v15454_v0, %v7618_v42  ;;  %10216 = vmatmul.mubr.msk.f32.vlgmr.msra.gmra.mrb[214].mxu1 %vm1190_vm3, %v7774_v23  ;;  %v11531_v22 = vpop.eup %11530 }
0x18b1   : > { %v7723_v43 = vmul.f32 %v11527_v35, %v7678_v16  ;;  %v7670_v6 = vadd.f32 0.2548296, %v7661_v61  ;;  %10218 = vmatprep.mubr.msk.f32.mxu1 %vm11629_vm5, %v15824_v12  ;;  %11532 = vpow2.f32 %v7714_v46  ;;  %v7542_v30 = vmul.f32 0.5, %v15379_v4 }
0x18b2   : > { %v7775_v25 = vmul.f32 %v7766_v41, %v7541_v47  ;;  %v7749_v38 = vsub.f32 0.0, %v7731_v58  ;;  %v7653_v15 = vadd.f32 -0.28449672, %v7644_v51  ;;  %v7636_v24 = vadd.f32 1.4214138, %v7627_v21  ;;  %v7531_v28 = vpop.f32.mrb[232].mxu0 }
0x18b3   : > { %v7732_v52 = vsub.f32 1.0, %v7723_v43  ;;  %v7679_v32 = vmul.f32 %v15435_v50, %v7670_v6  ;;  %v15475_v44 = vadd.f32 %v15362_v10, %v7531_v28  ;;  %v10195_v59 = vpop.f32.mrb[233].mxu0  ;;  %v7543_v62 = vmul.f32 0.5, %v15385_v1 }
0x18b4   : > { %v7758_v14 = vsel %vm7740_vm11, %v7731_v58, %v7749_v38  ;;  %v7662_v47 = vmul.f32 %v15445_v7, %v7653_v15  ;;  %v7645_v33 = vmul.f32 %v15454_v0, %v7636_v24  ;;  %10219 = vmatmul.mubr.msk.f32.gmra.mrb[216].mxu1 %vm1190_vm3, %v7775_v25 }
0x18b5   : > { %v7767_v53 = vadd.f32 1.0, %v7758_v14  ;;  %v7750_v50 = vsub.f32 0.0, %v7732_v52  ;;  %v7724_v31 = vmul.f32 %v11529_v2, %v7679_v32  ;;  %10221 = vmatprep.mubr.msk.f32.mxu1 %vm11629_vm5, %v15824_v12  ;;  %v15487_v4 = vmul.f32 0.70710677, %v15475_v44 }
0x18b6   : > { %v7671_v18 = vadd.f32 0.2548296, %v7662_v47  ;;  %v7654_v48 = vadd.f32 -0.28449672, %v7645_v33 }
0x18b7   : > { %v7776_v26 = vmul.f32 %v7767_v53, %v7542_v30  ;;  %v7759_v60 = vsel %vm7741_vm12, %v7732_v52, %v7750_v50  ;;  %v7733_v17 = vsub.f32 1.0, %v7724_v31  ;;  %v7536_v54 = vpop.f32.mrb[234].mxu0  ;;  %v7565_v8 = vand.u32 2147483647, %v15487_v4 }
0x18b8   : > { %v7768_v13 = vadd.f32 1.0, %v7759_v60  ;;  %v7680_v39 = vmul.f32 %v15445_v7, %v7671_v18  ;;  %v7663_v23 = vmul.f32 %v15454_v0, %v7654_v48  ;;  %v10198_v19 = vpop.f32.mrb[235].mxu0  ;;  %v15495_v45 = vadd.f32 %v15362_v10, %v7536_v54 }
0x18b9   : > { %v7751_v42 = vsub.f32 0.0, %v7733_v17  ;;  %10222 = vmatmul.mubr.msk.f32.gmra.mrb[218].mxu1 %vm1190_vm3, %v7776_v26  ;;  %v7574_v46 = vmul.f32 0.3275911, %v7565_v8  ;;  %v7544_v7 = vmul.f32 0.5, %v15393_v27  ;;  %v7691_v30 = vsub.f32 0.0, %v7565_v8 }
0x18ba   : > { %v7777_v1 = vmul.f32 %v7768_v13, %v7543_v62  ;;  %v7725_v16 = vmul.f32 %v11531_v22, %v7680_v39  ;;  %v7672_v61 = vadd.f32 0.2548296, %v7663_v23  ;;  %10224 = vmatprep.mubr.msk.f32.mxu1 %vm11629_vm5, %v15824_v12  ;;  %v15502_v41 = vmul.f32 0.70710677, %v15495_v45 }
0x18bb   : > { %v7760_v35 = vsel %vm7742_vm13, %v7733_v17, %v7751_v42  ;;  %v7583_v51 = vadd.f32 1.0, %v7574_v46  ;;  %v11533_v21 = vpop.eup %11532  ;;  %v7700_v33 = vmul.f32 %v7691_v30, %v7565_v8  ;;  %vm7745_vm7 = vcmp.ge.f32.partialorder %v15487_v4, 0.0 }
0x18bc   : > { %v7769_v63 = vadd.f32 1.0, %v7760_v35  ;;  %v7734_v58 = vsub.f32 1.0, %v7725_v16  ;;  %v7681_v10 = vmul.f32 %v15454_v0, %v7672_v61  ;;  %v7566_v43 = vand.u32 2147483647, %v15502_v41 }
0x18bd   : > { %10225 = vmatmul.mubr.msk.f32.gmra.mrb[220].mxu1 %vm1190_vm3, %v7777_v1  ;;  %11534 = vrcp.f32 %v7583_v51  ;;  %v7545_v0 = vmul.f32 0.5, %v15403_v29  ;;  %v7716_v31 = vmul.f32 1.442695, %v7700_v33  ;;  %vm7746_vm0 = vcmp.ge.f32.partialorder %v15502_v41, 0.0 }
0x18be   : > { %v7778_v6 = vmul.f32 %v7769_v63, %v7544_v7  ;;  %v7752_v25 = vsub.f32 0.0, %v7734_v58  ;;  %v7726_v38 = vmul.f32 %v11533_v21, %v7681_v10  ;;  %10227 = vmatprep.mubr.msk.f32.mxu1 %vm11629_vm5, %v15824_v12  ;;  %v7575_v27 = vmul.f32 0.3275911, %v7566_v43 }
0x18bf   : > { %v7692_v50 = vsub.f32 0.0, %v7566_v43 }
0x18c0   : > { %v7761_v15 = vsel %vm7743_vm14, %v7734_v58, %v7752_v25  ;;  %v7735_v24 = vsub.f32 1.0, %v7726_v38  ;;  %v7584_v52 = vadd.f32 1.0, %v7575_v27 }
0x18c1   : > { %v7770_v28 = vadd.f32 1.0, %v7761_v15  ;;  %10228 = vmatmul.mubr.msk.f32.gmra.mrb[222].mxu1 %vm1190_vm3, %v7778_v6  ;;  %v7701_v48 = vmul.f32 %v7692_v50, %v7566_v43  ;;  %v7547_v43 = vmul.f32 0.5, %v15475_v44  ;;  %v8643_v44 = vld [vmem:[%s15703_s19 + $0x1] ss:$0 sm:$0xff] }
0x18c2   : > { %v7753_v32 = vsub.f32 0.0, %v7735_v24  ;;  %10230 = vmatprep.mubr.msk.f32.mxu1 %vm11629_vm5, %v15824_v12  ;;  %11536 = vrcp.f32 %v7584_v52 }
0x18c3   : > { %v7779_v59 = vmul.f32 %v7770_v28, %v7545_v0  ;;  %11538 = vpow2.f32 %v7716_v31  ;;  %v7718_v17 = vmul.f32 1.442695, %v7701_v48 }
0x18c4   : > { %v7762_v2 = vsel %vm7744_vm15, %v7735_v24, %v7753_v32  ;;  %v7548_v24 = vmul.f32 0.5, %v15495_v45 }
0x18c5   : > { %v7771_v14 = vadd.f32 1.0, %v7762_v2  ;;  %10231 = vmatmul.mubr.msk.f32.gmra.mrb[224].mxu1 %vm1190_vm3, %v7779_v59  ;;  %11540 = vpow2.f32 %v7718_v17 }
0x18c6   : > { %10233 = vmatprep.mubr.msk.f32.mxu1 %vm11629_vm5, %v15824_v12 }
0x18c7   : > { %v7780_v29 = vmul.f32 %v7771_v14, %v7546_v34  ;;  %v11535_v47 = vpop.eup %11534 }
0x18c8   : > { %v7610_v53 = vmul.f32 1.0614054, %v11535_v47 }
0x18c9   : > { %10234 = vmatmul.mubr.msk.f32.gmra.mrb[226].mxu1 %vm1190_vm3, %v7780_v29 }
0x18ca   : > { %10236 = vmatprep.mubr.msk.f32.mxu1 %vm11629_vm5, %v15824_v12  ;;  %v7619_v5 = vadd.f32 -1.4531521, %v7610_v53 }
0x18cc   : > { %v11537_v18 = vpop.eup %11536  ;;  %v7628_v49 = vmul.f32 %v11535_v47, %v7619_v5 }
0x18cd   : > { %v7611_v22 = vmul.f32 1.0614054, %v11537_v18  ;;  %v11539_v16 = vpop.eup %11538 }
0x18ce   : > { %v7637_v26 = vadd.f32 1.4214138, %v7628_v49 }
0x18cf   : > { %v7620_v62 = vadd.f32 -1.4531521, %v7611_v22  ;;  %v11541_v58 = vpop.eup %11540 }
0x18d0   : > { %v7646_v60 = vmul.f32 %v11535_v47, %v7637_v26 }
0x18d1   : > { %v7629_v54 = vmul.f32 %v11537_v18, %v7620_v62 }
0x18d2   : > { %v7655_v13 = vadd.f32 -0.28449672, %v7646_v60 }
0x18d3   : > { %v7638_v39 = vadd.f32 1.4214138, %v7629_v54 }
0x18d4   : > { %v7664_v23 = vmul.f32 %v11535_v47, %v7655_v13 }
0x18d5   : > { %v7647_v8 = vmul.f32 %v11537_v18, %v7638_v39 }
0x18d6   : > { %v7673_v19 = vadd.f32 0.2548296, %v7664_v23 }
0x18d7   : > { %v7656_v42 = vadd.f32 -0.28449672, %v7647_v8 }
0x18d8   : > { %v7682_v1 = vmul.f32 %v11535_v47, %v7673_v19 }
0x18d9   : > { %v7665_v61 = vmul.f32 %v11537_v18, %v7656_v42 }
0x18da   : > { %v7727_v46 = vmul.f32 %v11539_v16, %v7682_v1 }
0x18db   : > { %v7674_v7 = vadd.f32 0.2548296, %v7665_v61 }
0x18dc   : > { %v7736_v35 = vsub.f32 1.0, %v7727_v46 }
0x18dd   : > { %v7683_v63 = vmul.f32 %v11537_v18, %v7674_v7 }
0x18de   : > { %v7754_v10 = vsub.f32 0.0, %v7736_v35 }
0x18df   : > { %v7728_v51 = vmul.f32 %v11541_v58, %v7683_v63 }
0x18e0   : > { %v7763_v21 = vsel %vm7745_vm7, %v7736_v35, %v7754_v10 }
0x18e1   : > { %v7772_v6 = vadd.f32 1.0, %v7763_v21  ;;  %v7737_v25 = vsub.f32 1.0, %v7728_v51 }
0x18e3   : > { %v7781_v38 = vmul.f32 %v7772_v6, %v7547_v43  ;;  %v7755_v27 = vsub.f32 0.0, %v7737_v25 }
0x18e5   : > { %v7764_v15 = vsel %vm7746_vm0, %v7737_v25, %v7755_v27  ;;  %10237 = vmatmul.mubr.msk.f32.gmra.mrb[228].mxu1 %vm1190_vm3, %v7781_v38 }
0x18e6   : > { %v7773_v0 = vadd.f32 1.0, %v7764_v15  ;;  %10239 = vmatprep.mubr.msk.f32.mxu1 %vm11629_vm5, %v15824_v12 }
0x18e8   : > { %v7782_v4 = vmul.f32 %v7773_v0, %v7548_v24 }
0x18ea   : > { %10240 = vmatmul.mubr.msk.f32.gmra.mrb[230].mxu1 %vm1190_vm3, %v7782_v4  ;;  %vm8207_vm3 = vcmask 73728  }
0x1983   : > { %v7885_v28 = vpop.f32.mrb[214].mxu1 }
0x1984   : > { %v7929_v52 = vadd.f32 %v7885_v28, %v15156_v9  ;;  %v10217_v41 = vpop.f32.mrb[215].mxu1 }
0x1986   : > { %v7946_v32 = vadd.f32 %v8643_v44, %v7929_v52 }
0x1987   : > { %v7890_v59 = vpop.f32.mrb[216].mxu1 }
0x1988   : > { %v7930_v2 = vadd.f32 %v7890_v59, %v15161_v40  ;;  %v10220_v45 = vpop.f32.mrb[217].mxu1  ;;  %v7957_v30 = vsel %vm886_vm1, %v7946_v32, 0.0 }
0x1989   : > { %7958 = vadd.xlane.f32.xlu0 %v7957_v30 }
0x198a   : > { %v7947_v12 = vadd.f32 %v8643_v44, %v7930_v2 }
0x198c   : > { %v7895_v34 = vpop.f32.mrb[218].mxu1  ;;  %v7960_v14 = vsel %vm886_vm1, %v7947_v12, 0.0 }
0x198d   : > { %v7931_v29 = vadd.f32 %v7895_v34, %v15166_v11  ;;  %v10223_v47 = vpop.f32.mrb[219].mxu1  ;;  %7961 = vadd.xlane.f32.xlu1 %v7960_v14 }
0x198f   : > { %v7948_v33 = vadd.f32 %v8643_v44, %v7931_v29 }
0x1990   : > { %v7900_v53 = vpop.f32.mrb[220].mxu1 }
0x1991   : > { %v7932_v9 = vadd.f32 %v7900_v53, %v15171_v20  ;;  %v10226_v50 = vpop.f32.mrb[221].mxu1  ;;  %v7963_v5 = vsel %vm886_vm1, %v7948_v33, 0.0 }
0x1992   : > { %7964 = vadd.xlane.f32.xlu0 %v7963_v5 }
0x1993   : > { %v7949_v40 = vadd.f32 %v8643_v44, %v7932_v9 }
0x1994   : > { %v7905_v31 = vpop.f32.mrb[222].mxu1 }
0x1995   : > { %v7933_v18 = vadd.f32 %v7905_v31, %v15176_v36  ;;  %v10229_v49 = vpop.f32.mrb[223].mxu1  ;;  %v7966_v48 = vsel %vm886_vm1, %v7949_v40, 0.0 }
0x1996   : > { %7967 = vadd.xlane.f32.xlu1 %v7966_v48 }
0x1997   : > { %v7950_v22 = vadd.f32 %v8643_v44, %v7933_v18 }
0x1998   : > { %v7910_v11 = vpop.f32.mrb[224].mxu1 }
0x1999   : > { %v7934_v26 = vadd.f32 %v7910_v11, %v15181_v56  ;;  %v10232_v62 = vpop.f32.mrb[225].mxu1  ;;  %v7969_v60 = vsel %vm886_vm1, %v7950_v22, 0.0 }
0x199a   : > { %7970 = vadd.xlane.f32.xlu0 %v7969_v60  ;;  %v8129_v60 = vld [vmem:[%s15706_s22] sm:$0xff] }
0x199b   : > { %v7951_v20 = vadd.f32 %v8643_v44, %v7934_v26 }
0x199c   : > { %v7915_v17 = vpop.f32.mrb[226].mxu1 }
0x199d   : > { %v7935_v54 = vadd.f32 %v7915_v17, %v15186_v37  ;;  %v10235_v13 = vpop.f32.mrb[227].mxu1  ;;  %v7972_v39 = vsel %vm886_vm1, %v7951_v20, 0.0  ;;  %v8131_v17 = vld [vmem:[%s15706_s22 + $0x10] sm:$0xff] }
0x199e   : > { %7973 = vadd.xlane.f32.xlu1 %v7972_v39  ;;  %v8132_v13 = vld [vmem:[%s15706_s22 + $0x18] sm:$0xff] }
0x199f   : > { %v7952_v36 = vadd.f32 %v8643_v44, %v7935_v54  ;;  %v10611_v39 = vpack.c.bf16 %v8132_v13, %v8131_v17 }
0x19a1   : > { %v7975_v23 = vsel %vm886_vm1, %v7952_v36, 0.0 }
0x19a2   : > { %7976 = vadd.xlane.f32.xlu0 %v7975_v23 }
0x19b8   : > { %v7920_v8 = vpop.f32.mrb[228].mxu1 }
0x19b9   : > { %v7936_v19 = vadd.f32 %v7920_v8, %v15191_v57  ;;  %v10238_v56 = vpop.f32.mrb[229].mxu1 }
0x19bb   : > { %v7953_v42 = vadd.f32 %v8643_v44, %v7936_v19 }
0x19bd   : > { %v7925_v1 = vpop.f32.mrb[230].mxu1  ;;  %v7978_v16 = vsel %vm886_vm1, %v7953_v42, 0.0 }
0x19be   : > { %v7937_v61 = vadd.f32 %v7925_v1, %v15196_v55  ;;  %7979 = vadd.xlane.f32.xlu1 %v7978_v16  ;;  %v10241_v37 = vpop.f32.mrb[231].mxu1 }
0x19c0   : > { %v7954_v46 = vadd.f32 %v8643_v44, %v7937_v61 }
0x19c2   : > { %v7981_v7 = vsel %vm1723_vm8, %v7954_v46, 0.0 }
0x19c3   : > { %7982 = vadd.xlane.f32.xlu0 %v7981_v7 }
0x1a16   : > { %v7959_v35 = vpop.xlane.xlu0 %7958 }
0x1a17   : > { %v7984_v63 = vmul.f32 0.03125, %v7959_v35 }
0x1a19   : > { %v15551_v58 = vsub.f32 %v7946_v32, %v7984_v63 }
0x1a1a   : > { %v7962_v10 = vpop.xlane.xlu1 %7961 }
0x1a1b   : > { %v7985_v51 = vmul.f32 0.03125, %v7962_v10  ;;  %v8002_v57 = vmul.f32 %v15551_v58, %v15551_v58 }
0x1a1d   : > { %v15555_v21 = vsub.f32 %v7947_v12, %v7985_v51  ;;  %v8011_v43 = vsel %vm886_vm1, %v8002_v57, 0.0 }
0x1a1e   : > { %8012 = vadd.xlane.f32.xlu1 %v8011_v43 }
0x1a1f   : > { %v7965_v55 = vpop.xlane.xlu0 %7964  ;;  %v8003_v6 = vmul.f32 %v15555_v21, %v15555_v21 }
0x1a20   : > { %v7986_v25 = vmul.f32 0.03125, %v7965_v55 }
0x1a21   : > { %v8014_v38 = vsel %vm886_vm1, %v8003_v6, 0.0 }
0x1a22   : > { %v15561_v27 = vsub.f32 %v7948_v33, %v7986_v25  ;;  %8015 = vadd.xlane.f32.xlu0 %v8014_v38 }
0x1a23   : > { %v7968_v15 = vpop.xlane.xlu1 %7967 }
0x1a24   : > { %v7987_v24 = vmul.f32 0.03125, %v7968_v15  ;;  %v8004_v0 = vmul.f32 %v15561_v27, %v15561_v27 }
0x1a26   : > { %v15565_v4 = vsub.f32 %v7949_v40, %v7987_v24  ;;  %v8017_v28 = vsel %vm886_vm1, %v8004_v0, 0.0 }
0x1a27   : > { %v7971_v44 = vpop.xlane.xlu0 %7970  ;;  %8018 = vadd.xlane.f32.xlu1 %v8017_v28 }
0x1a28   : > { %v7988_v52 = vmul.f32 0.03125, %v7971_v44  ;;  %v8005_v41 = vmul.f32 %v15565_v4, %v15565_v4 }
0x1a2a   : > { %v15570_v32 = vsub.f32 %v7950_v22, %v7988_v52  ;;  %v8020_v59 = vsel %vm886_vm1, %v8005_v41, 0.0 }
0x1a2b   : > { %v7974_v2 = vpop.xlane.xlu1 %7973  ;;  %8021 = vadd.xlane.f32.xlu0 %v8020_v59 }
0x1a2c   : > { %v7989_v45 = vmul.f32 0.03125, %v7974_v2  ;;  %v8006_v30 = vmul.f32 %v15570_v32, %v15570_v32  ;;  %v8644_v2 = vld [vmem:[%s15704_s20] ss:$0 sm:$0xff] }
0x1a2e   : > { %v15575_v12 = vsub.f32 %v7951_v20, %v7989_v45  ;;  %v8023_v34 = vsel %vm886_vm1, %v8006_v30, 0.0  ;;  %v8130_v20 = vld [vmem:[%s15706_s22 + $0x8] sm:$0xff] }
0x1a2f   : > { %v7977_v14 = vpop.xlane.xlu0 %7976  ;;  %8024 = vadd.xlane.f32.xlu1 %v8023_v34  ;;  %v10608_v54 = vpack.c.bf16 %v8130_v20, %v8129_v60 }
0x1a30   : > { %v7990_v29 = vmul.f32 0.03125, %v7977_v14  ;;  %v8007_v47 = vmul.f32 %v15575_v12, %v15575_v12 }
0x1a31   : > { %10609 = vmatpush3.bf16.msra.mxu0 %v10608_v54 }
0x1a32   : > { %v15580_v33 = vsub.f32 %v7952_v36, %v7990_v29  ;;  %v8026_v53 = vsel %vm886_vm1, %v8007_v47, 0.0  ;;  %10610 = vmatprep.subr.bf16.mxu0 %v15825_v3 }
0x1a33   : > { %8027 = vadd.xlane.f32.xlu0 %v8026_v53 }
0x1a34   : > { %v8008_v9 = vmul.f32 %v15580_v33, %v15580_v33 }
0x1a35   : > { %10612 = vmatpush3.bf16.msra.mxu0 %v10611_v39 }
0x1a36   : > { %v8029_v50 = vsel %vm886_vm1, %v8008_v9, 0.0 }
0x1a37   : > { %8030 = vadd.xlane.f32.xlu1 %v8029_v50 }
0x1a4b   : > { %v7980_v5 = vpop.xlane.xlu1 %7979 }
0x1a4c   : > { %v7991_v40 = vmul.f32 0.03125, %v7980_v5 }
0x1a4e   : > { %v15586_v31 = vsub.f32 %v7953_v42, %v7991_v40 }
0x1a50   : > { %v7983_v18 = vpop.xlane.xlu0 %7982  ;;  %v8009_v49 = vmul.f32 %v15586_v31, %v15586_v31 }
0x1a51   : > { %v7992_v48 = vmul.f32 0.03125, %v7983_v18 }
0x1a52   : > { %v8032_v22 = vsel %vm886_vm1, %v8009_v49, 0.0 }
0x1a53   : > { %v15591_v11 = vsub.f32 %v7954_v46, %v7992_v48  ;;  %8033 = vadd.xlane.f32.xlu0 %v8032_v22 }
0x1a55   : > { %v8010_v26 = vmul.f32 %v15591_v11, %v15591_v11 }
0x1a57   : > { %v8035_v62 = vsel %vm1723_vm8, %v8010_v26, 0.0 }
0x1a58   : > { %8036 = vadd.xlane.f32.xlu1 %v8035_v62 }
0x1aab   : > { %v8013_v36 = vpop.xlane.xlu1 %8012 }
0x1aac   : > { %v8038_v56 = vmul.f32 0.03125, %v8013_v36 }
0x1aae   : > { %v8047_v46 = vadd.f32 1e-06, %v8038_v56 }
0x1aaf   : > { %v8016_v23 = vpop.xlane.xlu0 %8015 }
0x1ab0   : > { %v8039_v19 = vmul.f32 0.03125, %v8016_v23 }
0x1ab2   : > { %v8048_v61 = vadd.f32 1e-06, %v8039_v19 }
0x1ab4   : > { %v8019_v8 = vpop.xlane.xlu1 %8018  ;;  %11542 = vrsqrt.f32 %v8048_v61 }
0x1ab5   : > { %v8040_v1 = vmul.f32 0.03125, %v8019_v8  ;;  %11544 = vrsqrt.f32 %v8047_v46 }
0x1ab7   : > { %v8049_v35 = vadd.f32 1e-06, %v8040_v1 }
0x1ab8   : > { %v8022_v42 = vpop.xlane.xlu0 %8021 }
0x1ab9   : > { %v8041_v37 = vmul.f32 0.03125, %v8022_v42  ;;  %11546 = vrsqrt.f32 %v8049_v35 }
0x1abb   : > { %v8050_v51 = vadd.f32 1e-06, %v8041_v37 }
0x1abc   : > { %v8025_v16 = vpop.xlane.xlu1 %8024 }
0x1abd   : > { %v8042_v63 = vmul.f32 0.03125, %v8025_v16  ;;  %11548 = vrsqrt.f32 %v8050_v51 }
0x1abe   : > { %v11543_v25 = vpop.eup %11542 }
0x1abf   : > { %v8051_v3 = vadd.f32 1e-06, %v8042_v63  ;;  %v11545_v38 = vpop.eup %11544  ;;  %v8066_v24 = vmul.f32 %v11543_v25, %v15555_v21 }
0x1ac0   : > { %v8028_v7 = vpop.xlane.xlu0 %8027  ;;  %v8065_v44 = vmul.f32 %v11545_v38, %v15551_v58 }
0x1ac1   : > { %v8043_v57 = vmul.f32 0.03125, %v8028_v7  ;;  %11550 = vrsqrt.f32 %v8051_v3  ;;  %v8081_v45 = vmul.f32 %v8644_v2, %v8066_v24 }
0x1ac2   : > { %v8080_v29 = vmul.f32 %v8644_v2, %v8065_v44 }
0x1ac3   : > { %v8052_v55 = vadd.f32 1e-06, %v8043_v57  ;;  %v11547_v15 = vpop.eup %11546 }
0x1ac4   : > { %v8031_v10 = vpop.xlane.xlu1 %8030  ;;  %v8067_v52 = vmul.f32 %v11547_v15, %v15561_v27  ;;  %v8645_v27 = vld [vmem:[%s15705_s21] ss:$0 sm:$0xff] }
0x1ac5   : > { %v8044_v43 = vmul.f32 0.03125, %v8031_v10  ;;  %11552 = vrsqrt.f32 %v8052_v55  ;;  %v8096_v50 = vadd.f32 %v8645_v27, %v8081_v45 }
0x1ac6   : > { %v8082_v47 = vmul.f32 %v8644_v2, %v8067_v52 }
0x1ac7   : > { %v8053_v6 = vadd.f32 1e-06, %v8044_v43  ;;  %v11549_v0 = vpop.eup %11548 }
0x1ac8   : > { %v8068_v30 = vmul.f32 %v11549_v0, %v15565_v4  ;;  %v8095_v4 = vadd.f32 %v8645_v27, %v8080_v29  ;;  %v8097_v49 = vadd.f32 %v8645_v27, %v8082_v47 }
0x1ac9   : > { %11554 = vrsqrt.f32 %v8053_v6 }
0x1aca   : > { %v8083_v5 = vmul.f32 %v8644_v2, %v8068_v30  ;;  %v8104_v60 = vsel %vm886_vm1, %v8095_v4, 0.0  ;;  %v8107_v20 = vsel %vm886_vm1, %v8097_v49, 0.0 }
0x1acb   : > { %v11551_v59 = vpop.eup %11550 }
0x1acc   : > { %v8069_v21 = vmul.f32 %v11551_v59, %v15570_v32  ;;  %v8105_v32 = vsel %vm886_vm1, %v8096_v50, 0.0  ;;  %v8098_v26 = vadd.f32 %v8645_v27, %v8083_v5 }
0x1acd   : > { %v8106_v13 = vadd.f32 %v8105_v32, %v8104_v60 }
0x1ace   : > { %v8084_v48 = vmul.f32 %v8644_v2, %v8069_v21 }
0x1acf   : > { %v11553_v14 = vpop.eup %11552  ;;  %v8108_v23 = vadd.f32 %v8107_v20, %v8106_v13 }
0x1ad0   : > { %v8070_v40 = vmul.f32 %v11553_v14, %v15575_v12  ;;  %v8099_v17 = vadd.f32 %v8645_v27, %v8084_v48  ;;  %v8109_v12 = vsel %vm886_vm1, %v8098_v26, 0.0 }
0x1ad1   : > { %v8110_v56 = vadd.f32 %v8109_v12, %v8108_v23 }
0x1ad2   : > { %v8085_v62 = vmul.f32 %v8644_v2, %v8070_v40 }
0x1ad3   : > { %v11555_v58 = vpop.eup %11554 }
0x1ad4   : > { %v8071_v22 = vmul.f32 %v11555_v58, %v15580_v33  ;;  %v8100_v36 = vadd.f32 %v8645_v27, %v8085_v62  ;;  %v8111_v33 = vsel %vm886_vm1, %v8099_v17, 0.0 }
0x1ad5   : > { %v8112_v61 = vadd.f32 %v8111_v33, %v8110_v56 }
0x1ad6   : > { %v8086_v54 = vmul.f32 %v8644_v2, %v8071_v22  ;;  %v8113_v1 = vsel %vm886_vm1, %v8100_v36, 0.0 }
0x1ad7   : > { %v8114_v35 = vadd.f32 %v8113_v1, %v8112_v61 }
0x1ad8   : > { %v8101_v19 = vadd.f32 %v8645_v27, %v8086_v54 }
0x1ada   : > { %v8115_v46 = vsel %vm886_vm1, %v8101_v19, 0.0 }
0x1ae0   : > { %v8034_v28 = vpop.xlane.xlu0 %8033 }
0x1ae1   : > { %v8045_v41 = vmul.f32 0.03125, %v8034_v28 }
0x1ae3   : > { %v8054_v34 = vadd.f32 1e-06, %v8045_v41 }
0x1ae5   : > { %11556 = vrsqrt.f32 %v8054_v34  ;;  %v8037_v53 = vpop.xlane.xlu1 %8036 }
0x1ae6   : > { %v8046_v9 = vmul.f32 0.03125, %v8037_v53 }
0x1ae8   : > { %v8055_v18 = vadd.f32 1e-06, %v8046_v9 }
0x1aea   : > { %11558 = vrsqrt.f32 %v8055_v18 }
0x1aef   : > { %v11557_v39 = vpop.eup %11556 }
0x1af0   : > { %v8072_v8 = vmul.f32 %v11557_v39, %v15586_v31  ;;  %v8116_v31 = vadd.f32 %v8115_v46, %v8114_v35 }
0x1af2   : > { %v8087_v42 = vmul.f32 %v8644_v2, %v8072_v8 }
0x1af4   : > { %v11559_v16 = vpop.eup %11558  ;;  %v8102_v37 = vadd.f32 %v8645_v27, %v8087_v42 }
0x1af5   : > { %v8073_v7 = vmul.f32 %v11559_v16, %v15591_v11  ;;  %v8133_v11 = vld [vmem:[%s15707_s23] sm:$0x1] }
0x1af6   : > { %v8117_v63 = vsel %vm886_vm1, %v8102_v37, 0.0 }
0x1af7   : > { %v8088_v10 = vmul.f32 %v8644_v2, %v8073_v7  ;;  %v8118_v57 = vadd.f32 %v8117_v63, %v8116_v31 }
0x1af9   : > { %v8103_v51 = vadd.f32 %v8645_v27, %v8088_v10 }
0x1afb   : > { %v8119_v3 = vsel %vm1723_vm8, %v8103_v51, 0.0 }
0x1afc   : > { %v8120_v43 = vadd.f32 %v8119_v3, %v8118_v57 }
0x1afe   : > { %v8121_v55 = vrot.slane %v8120_v43, 4 }
0x1b00   : > { %v8122_v6 = vadd.f32 %v8121_v55, %v8120_v43 }
0x1b02   : > { %v8123_v25 = vrot.slane %v8122_v6, 2 }
0x1b04   : > { %v8124_v38 = vadd.f32 %v8123_v25, %v8122_v6 }
0x1b06   : > { %v8125_v15 = vrot.slane %v8124_v38, 1 }
0x1b08   : > { %v8126_v24 = vadd.f32 %v8125_v15, %v8124_v38 }
0x1b0a   : > { %v8128_v0 = vmul.f32 0.014492754, %v8126_v24 }
0x1b0c   : > { %10251 = vmatmul.mubr.msk.f32.vlgmr.msra.gmra.mrb[236].mxu0 %vm886_vm1, %v8128_v0 }
0x1bdf   : > { %v8203_v28 = vpop.f32.mrb[236].mxu0 }
0x1be0   : > { %v8204_v44 = vadd.f32 %v8203_v28, %v8133_v11  ;;  %v10252_v52 = vpop.f32.mrb[237].mxu0 }
0x1be2   : > { %8208 = vst.msk [vmem:[%s729_s29] sm:$0x1] %vm8207_vm3, %v8204_v44 }
0x1be3   : > { %11573 = shalt.err (!%p11570_p3)
}
0x1be4   : > { %s11574_s2 = scalar_lea.hbm %s15642_s27, 16  ;;  %s11578_s5 = scalar_lea.hbm %s15708_s24, 32 }
0x1be5   : > { %p11575_p4 = scmp.ne.s32.totalorder %s15642_s27, %s11574_s2  ;;  %p11579_p9 = scmp.lt.u32.totalorder %s15642_s27, %s15708_s24 }
0x1be6   : > { %p11580_p10 = scmp.lt.u32.totalorder %s11578_s5, %s11574_s2  ;;  %p11582_p12 = scmp.lt.u32.totalorder %s11574_s2, %s15642_s27 }
0x1be7   : > { %p11576_p7 = pnand %p11575_p4, %p11806_p5 }
0x1be8   : > { %p11581_p11 = por %p11580_p10, %p11579_p9 }
0x1be9   : > { %p11577_p8 = pneg %p11576_p7 }
0x1bea   : > { %p11583_p13 = por %p11582_p12, %p11581_p11 }
0x1bec   : > { %p11584_p0 = pnand %p11583_p13, %p11577_p8 }
0x1bee   : > { %11587 = shalt.err (!%p11584_p0)
}
0x1bef   : > { %10613 = dma.vmem_to_hbm [thread:$0]  (%p11806_p5), %s15644_s8, 16, %s15642_s27, %s8210_s25  }
0x1bf0 PF: > { %s15875_s28 = sld [smem:[#allocation8_spill]]  ;;  %s15876_s30 = sld [smem:[#allocation6_spill]] }
0x1bf6   : > { %p10619_p1 = scmp.ge.s32.totalorder %s15875_s28, 2  ;;  %s8234_s1 = sand.u32 1, %s15876_s30  }
0x1bf7   : > { %s8235_s29 = scalar_lea.sflag [#allocation4], %s8234_s1 }
0x1bf8   : > { %p10616_p2 = pnand %p10619_p1, %p11810_p6 }
0x1bfa   : > { %11605 = dma.done.wait (!%p10616_p2), %s8235_s29, 16  }
0x1bfb   : > { %11607 = vsyncadd (!%p10616_p2), %s8235_s29, 4294967280  ;;  %s15878_s28 = sld [smem:[#allocation9_spill]]  ;;  %s15879_s2 = sld [smem:[#allocation7_spill]] }
0x1bfc   : > { %s15880_s27 = sld [smem:[#allocation10_spill]]  ;;  %s15881_s5 = smov %s11614_s26 }
0x1c01   : > { %p34_p3 = scmp.ge.s32.totalorder %s15878_s28, 4   ;;  %s15882_s26 = smov %s15879_s2 }
0x1c03   :  { %36 = sbr.rel (!%p34_p3) target bundleno = 13 (0xd), region = 165 }
0x1c0a   :  { %8239 = vsyncpa [#allocation4], 1 }
0x1c0b   :  { %8241 = vsyncpa [#allocation4 + $0x1], 1 }

</bundles_post_ra>
